<compile_context>
chip_gen: v7x
topology: tpu7x:2x2x1
jax: 0.10.0
libtpu: 0.0.40
codegen_flags: <defaults>
</compile_context>

<pallas_src>
import functools

import jax
import jax.numpy as jnp
from jax.experimental import pallas as pl
from jax.experimental.pallas import tpu as pltpu

BN_EPS = 1e-5
N_FEATURE_MAPS = 128

PHALO = 16   # pad-scratch left halo: bf16 (16,128)-tile aligned interior stores
PRHALO = 8   # pad-scratch right halo (only 3 rows must be zero; 8 keeps it tidy)
XHALO = 8    # input left halo along L (covers 'same' pad of the K=7 conv)
XRHALO = 8   # input right halo along L


# ----------------------------------------------------------------------------
# Fused whole-network kernel
# ----------------------------------------------------------------------------
def _make_resnet_kernel(TB, L, C, C_in, nb_classes):
    TBL = TB * L

    def kernel(x_ref, wx0_ref, ws0_ref, wx_ref, wy_ref, wz_ref, ws_ref,
               scale_ref, shift_ref, lw_ref, lb_ref,
               y_ref, pooled_ref, pad_ref):

        def bn_epilogue(acc, idx, relu, residual=None):
            # acc: (TBL, C) f32 ; folded conv-bias + eval-mode BN
            out = acc * scale_ref[idx] + shift_ref[idx]
            if residual is not None:
                out = out + residual
            if relu:
                out = jnp.maximum(out, 0.0)
            return out

        def store_act(act_f32):
            # single bf16 cast per activation; interior store is tile-aligned
            pad_ref[:, PHALO:PHALO + L, :] = (
                act_f32.reshape(TB, L, C).astype(jnp.bfloat16))

        def conv_from_pad(w_ref, blk, K, idx, relu, residual=None):
            # Accumulated dots over shifted windows; windows are paired so each
            # MXU pass has contraction depth 256 (no K-wide im2col temporary).
            pad = (K - 1) // 2
            s0 = PHALO - pad
            acc = None
            k = 0
            while k < K:
                kk = 2 if K - k >= 2 else 1
                if kk == 2:
                    cols = jnp.concatenate(
                        [pad_ref[:, s0 + k:s0 + k + L, :],
                         pad_ref[:, s0 + k + 1:s0 + k + 1 + L, :]], axis=-1)
                else:
                    cols = pad_ref[:, s0 + k:s0 + k + L, :]
                cols = cols.reshape(TBL, kk * C)
                w = w_ref[blk, k * C:(k + kk) * C, :]
                d = jnp.dot(cols, w, preferred_element_type=jnp.float32)
                acc = d if acc is None else acc + d
                k += kk
            return bn_epilogue(acc, idx, relu, residual)

        # Zero ONLY the halo rows (the interior is always overwritten before it
        # is read).  Done every grid step so a core-sharded parallel batch axis
        # on v7x never sees a stale halo.
        pad_ref[:, :PHALO, :] = jnp.zeros((TB, PHALO, C), jnp.bfloat16)
        pad_ref[:, PHALO + L:, :] = jnp.zeros((TB, PRHALO, C), jnp.bfloat16)

        # ---- block 1: the C_in-channel input never enters the 128-lane pad
        # buffer.  Its 1x1 shortcut and K=7 conv_x are tiny VPU broadcast-MACs
        # (C_in*K <= 28 fused multiply-adds) read straight from x_ref.
        xc = x_ref[:, XHALO:XHALO + L, :]                      # (TB, L, C_in)
        sc_acc = jnp.zeros((TB, L, C), jnp.float32)
        for ci in range(C_in):
            sc_acc = sc_acc + xc[:, :, ci:ci + 1] * ws0_ref[ci:ci + 1, :]
        sc = bn_epilogue(sc_acc.reshape(TBL, C), 3, relu=False)

        acc = jnp.zeros((TB, L, C), jnp.float32)
        for k in range(7):
            win = x_ref[:, XHALO - 3 + k:XHALO - 3 + k + L, :]
            for ci in range(C_in):
                acc = acc + (win[:, :, ci:ci + 1]
                             * wx0_ref[k * C_in + ci:k * C_in + ci + 1, :])
        a = bn_epilogue(acc.reshape(TBL, C), 0, relu=True)
        store_act(a)
        b = conv_from_pad(wy_ref, 0, 5, 1, relu=True)
        store_act(b)
        h = conv_from_pad(wz_ref, 0, 3, 2, relu=True, residual=sc)

        # ---- blocks 2 and 3: 128-channel input via the bf16 pad scratch ----
        for i in (1, 2):
            store_act(h)
            # shortcut reads the already-bf16 activation from the pad scratch
            flat_in = pad_ref[:, PHALO:PHALO + L, :].reshape(TBL, C)
            sc = bn_epilogue(
                jnp.dot(flat_in, ws_ref[i - 1],
                        preferred_element_type=jnp.float32),
                4 * i + 3, relu=False)
            a = conv_from_pad(wx_ref, i - 1, 7, 4 * i + 0, relu=True)
            store_act(a)
            b = conv_from_pad(wy_ref, i, 5, 4 * i + 1, relu=True)
            store_act(b)
            h = conv_from_pad(wz_ref, i, 3, 4 * i + 2, relu=True, residual=sc)

        # ---- head: global average pool over L + linear + log_softmax ----
        pooled = jnp.sum(h.reshape(TB, L, C), axis=1) * (1.0 / L)   # (TB, C)
        pooled_ref[...] = pooled
        logits = jnp.dot(pooled, lw_ref[...],
                         preferred_element_type=jnp.float32) + lb_ref[...]
        col = jax.lax.broadcasted_iota(jnp.int32, logits.shape, 1)
        valid = col < nb_classes                      # mask lane padding
        m = jnp.max(jnp.where(valid, logits, -1e30), axis=1, keepdims=True)
        p = jnp.where(valid, jnp.exp(logits - m), 0.0)
        lse = jnp.log(jnp.sum(p, axis=1, keepdims=True)) + m
        y_ref[...] = logits - lse                     # wrapper slices :nb

    return kernel


# ----------------------------------------------------------------------------
# Parameter packing (BN folding, per-window weight layout, bf16 cast)
# ----------------------------------------------------------------------------
def _fold_conv_bn(conv, bn, out_dtype=jnp.bfloat16):
    """PyTorch Conv1d weight (C_out, C_in, K) + eval-mode BN ->
       per-window weight matrix (K*C_in, C_out) plus f32 scale/shift."""
    w, b = conv
    gamma, beta, mean, var = bn
    c_out, c_in, k = w.shape
    w_mat = jnp.transpose(w, (2, 1, 0)).reshape(k * c_in, c_out)
    s = gamma / jnp.sqrt(var + BN_EPS)
    scale = s.reshape(1, c_out)
    shift = (beta + (b - mean) * s).reshape(1, c_out)
    return w_mat.astype(out_dtype), scale, shift


def pack_params(params):
    C = N_FEATURE_MAPS
    wx, wy, wz, ws = [], [], [], []
    scales, shifts = [], []
    wx0 = ws0 = None
    names = (("conv_x", "bn_x"), ("conv_y", "bn_y"),
             ("conv_z", "bn_z"), ("shortcut", "bn_shortcut"))
    for bi, bname in enumerate(("block_1", "block_2", "block_3")):
        p = params[bname]
        for pos, (cname, bnname) in enumerate(names):
            first_in = bi == 0 and pos in (0, 3)   # reads the C_in-channel input
            wm, sc, sh = _fold_conv_bn(
                p[cname], p[bnname],
                out_dtype=jnp.float32 if first_in else jnp.bfloat16)
            scales.append(sc)
            shifts.append(sh)
            if first_in and pos == 0:
                wx0 = wm                           # (7*C_in, C) f32 (VPU path)
            elif first_in:
                ws0 = wm                           # (C_in, C) f32 (VPU path)
            elif pos == 0:
                wx.append(wm)
            elif pos == 1:
                wy.append(wm)
            elif pos == 2:
                wz.append(wm)
            else:
                ws.append(wm)
    nb = params["linear_w"].shape[0]
    lwT = jnp.zeros((C, C), jnp.float32).at[:, :nb].set(params["linear_w"].T)
    lb = jnp.zeros((1, C), jnp.float32).at[:, :nb].set(
        params["linear_b"].reshape(1, nb))
    return dict(
        wx0=wx0, ws0=ws0,
        wx=jnp.stack(wx),           # (2, 7*128, 128) bf16   (blocks 2,3)
        wy=jnp.stack(wy),           # (3, 5*128, 128) bf16
        wz=jnp.stack(wz),           # (3, 3*128, 128) bf16
        ws=jnp.stack(ws),           # (2, 1*128, 128) bf16   (blocks 2,3)
        scale=jnp.stack(scales),    # (12, 1, 128) f32
        shift=jnp.stack(shifts),    # (12, 1, 128) f32
        lwT=lwT, lb=lb)


# ----------------------------------------------------------------------------
# Grid / VMEM sizing helpers
# ----------------------------------------------------------------------------
def _pick_batch_tile(B, L, target_rows=512):
    """Largest divisor of B with TB*L <= target_rows (rows per MXU matmul)."""
    cap = max(1, target_rows // max(L, 1))
    tb = 1
    for d in range(1, B + 1):
        if B % d == 0 and d <= cap:
            tb = d
    return tb


def _vmem_limit_bytes(TB, L, C, C_in, weight_bytes):
    pad_scratch = TB * (PHALO + L + PRHALO) * C * 2
    x_in = 2 * TB * (L + XHALO + XRHALO) * C_in * 4   # double-buffered input
    outs = 2 * 2 * TB * C * 4                         # double-buffered outputs
    live_acts = 6 * TB * L * C * 4                    # f32 activations / temps
    est = pad_scratch + x_in + outs + live_acts + 2 * weight_bytes
    # generation-aware ceiling: stay well under v7x's 64 MiB physical VMEM
    return int(min(max(2 * est, 32 * 1024 * 1024), 48 * 1024 * 1024))


# ----------------------------------------------------------------------------
# Model forward (single pallas_call, batch-tiled grid)
# ----------------------------------------------------------------------------
@functools.partial(jax.jit, static_argnums=(2,))
def resnet_forward(packed, x_ncl, nb_classes):
    """x_ncl: (B, C_in, L) PyTorch NCL -> (log_softmax (B, nb), pooled (B, 128))."""
    B, C_in, L = x_ncl.shape
    C = N_FEATURE_MAPS
    x = jnp.transpose(x_ncl, (0, 2, 1))                     # -> NLC (C_in lanes)
    x = jnp.pad(x, ((0, 0), (XHALO, XRHALO), (0, 0)))       # zero 'same' halo on L
    LP = L + XHALO + XRHALO

    TB = _pick_batch_tile(B, L)
    grid = (B // TB,)

    kernel = _make_resnet_kernel(TB, L, C, C_in, nb_classes)

    def const(shape):
        return pl.BlockSpec(shape, lambda i: (0,) * len(shape))

    weight_bytes = sum(int(v.size) * v.dtype.itemsize for v in packed.values())
    vmem_limit = _vmem_limit_bytes(TB, L, C, C_in, weight_bytes)

    y_pad, pooled = pl.pallas_call(
        kernel,
        out_shape=(jax.ShapeDtypeStruct((B, C), jnp.float32),
                   jax.ShapeDtypeStruct((B, C), jnp.float32)),
        grid=grid,
        in_specs=[
            pl.BlockSpec((TB, LP, C_in), lambda i: (i, 0, 0)),
            const((7 * C_in, C)), const((C_in, C)),
            const((2, 7 * C, C)), const((3, 5 * C, C)),
            const((3, 3 * C, C)), const((2, C, C)),
            const((12, 1, C)), const((12, 1, C)),
            const((C, C)), const((1, C)),
        ],
        out_specs=(pl.BlockSpec((TB, C), lambda i: (i, 0)),
                   pl.BlockSpec((TB, C), lambda i: (i, 0))),
        scratch_shapes=[pltpu.VMEM((TB, PHALO + L + PRHALO, C), jnp.bfloat16)],
        compiler_params=pltpu.CompilerParams(
            dimension_semantics=("parallel",),
            vmem_limit_bytes=vmem_limit),
    )(x, packed["wx0"], packed["ws0"], packed["wx"], packed["wy"],
      packed["wz"], packed["ws"], packed["scale"], packed["shift"],
      packed["lwT"], packed["lb"])

    return y_pad[:, :nb_classes], pooled


# ----------------------------------------------------------------------------
# Deterministic parameter init (mirrors PyTorch module shapes)
# ----------------------------------------------------------------------------
def init_conv(key, c_in, c_out, k):
    kw, kb = jax.random.split(key)
    bound = 1.0 / jnp.sqrt(float(c_in * k))
    w = jax.random.uniform(kw, (c_out, c_in, k), jnp.float32, -bound, bound)
    b = jax.random.uniform(kb, (c_out,), jnp.float32, -bound, bound)
    return w, b


def init_bn(key, c):
    k1, k2, k3, k4 = jax.random.split(key, 4)
    gamma = 1.0 + 0.1 * jax.random.normal(k1, (c,), jnp.float32)
    beta = 0.1 * jax.random.normal(k2, (c,), jnp.float32)
    mean = 0.1 * jax.random.normal(k3, (c,), jnp.float32)
    var = 1.0 + 0.1 * jnp.abs(jax.random.normal(k4, (c,), jnp.float32))
    return gamma, beta, mean, var


def init_block(key, c_in, c_out):
    keys = jax.random.split(key, 8)
    return dict(
        conv_x=init_conv(keys[0], c_in, c_out, 7), bn_x=init_bn(keys[1], c_out),
        conv_y=init_conv(keys[2], c_out, c_out, 5), bn_y=init_bn(keys[3], c_out),
        conv_z=init_conv(keys[4], c_out, c_out, 3), bn_z=init_bn(keys[5], c_out),
        shortcut=init_conv(keys[6], c_in, c_out, 1),
        bn_shortcut=init_bn(keys[7], c_out),
    )


if __name__ == "__main__":
    B, C_in, L, nb_classes = 2, 4, 16, 5
    root = jax.random.PRNGKey(0)
    k_in, kb1, kb2, kb3, kl = jax.random.split(root, 5)

    params = dict(
        block_1=init_block(kb1, C_in, N_FEATURE_MAPS),
        block_2=init_block(kb2, N_FEATURE_MAPS, N_FEATURE_MAPS),
        block_3=init_block(kb3, N_FEATURE_MAPS, N_FEATURE_MAPS),
    )
    klw, klb = jax.random.split(kl)
    bound = 1.0 / jnp.sqrt(float(N_FEATURE_MAPS))
    params["linear_w"] = jax.random.uniform(
        klw, (nb_classes, N_FEATURE_MAPS), jnp.float32, -bound, bound)
    params["linear_b"] = jax.random.uniform(
        klb, (nb_classes,), jnp.float32, -bound, bound)

    packed = pack_params(params)
    x = jax.random.normal(k_in, (B, C_in, L), jnp.float32)

    y, feat = resnet_forward(packed, x, nb_classes)
    jax.block_until_ready((y, feat))
    assert y.shape == (B, nb_classes) and feat.shape == (B, N_FEATURE_MAPS)
    assert bool(jnp.all(jnp.isfinite(y))) and bool(jnp.all(jnp.isfinite(feat)))
    print("KERNEL_OK")
</pallas_src>

<mosaic_0001>
module attributes {stable_mosaic.version = 11 : i64} {
  func.func @kernel(%arg0: i32, %arg1: memref<2x32x4xf32, #tpu.memory_space<vmem>>, %arg2: memref<28x128xf32, #tpu.memory_space<vmem>>, %arg3: memref<4x128xf32, #tpu.memory_space<vmem>>, %arg4: memref<2x896x128xbf16, #tpu.memory_space<vmem>>, %arg5: memref<3x640x128xbf16, #tpu.memory_space<vmem>>, %arg6: memref<3x384x128xbf16, #tpu.memory_space<vmem>>, %arg7: memref<2x128x128xbf16, #tpu.memory_space<vmem>>, %arg8: memref<12x1x128xf32, #tpu.memory_space<vmem>>, %arg9: memref<12x1x128xf32, #tpu.memory_space<vmem>>, %arg10: memref<128x128xf32, #tpu.memory_space<vmem>>, %arg11: memref<1x128xf32, #tpu.memory_space<vmem>>, %arg12: memref<2x128xf32, #tpu.memory_space<vmem>>, %arg13: memref<2x128xf32, #tpu.memory_space<vmem>>, %arg14: memref<2x40x128xbf16, #tpu.memory_space<vmem>>) attributes {dimension_semantics = [#tpu.dimension_semantics<parallel>], iteration_bounds = array<i64: 1>, scalar_prefetch = 0 : i64, scratch_operands = 1 : i64, tpu.core_type = #tpu.core_type<tc>, window_params = [{transform_indices = @transform_0, window_bounds = array<i64: 2, 32, 4>}, {pipeline_mode = #tpu.pipeline_mode<synchronous>, transform_indices = @transform_1, window_bounds = array<i64: 28, 128>}, {pipeline_mode = #tpu.pipeline_mode<synchronous>, transform_indices = @transform_2, window_bounds = array<i64: 4, 128>}, {pipeline_mode = #tpu.pipeline_mode<synchronous>, transform_indices = @transform_3, window_bounds = array<i64: 2, 896, 128>}, {pipeline_mode = #tpu.pipeline_mode<synchronous>, transform_indices = @transform_4, window_bounds = array<i64: 3, 640, 128>}, {pipeline_mode = #tpu.pipeline_mode<synchronous>, transform_indices = @transform_5, window_bounds = array<i64: 3, 384, 128>}, {pipeline_mode = #tpu.pipeline_mode<synchronous>, transform_indices = @transform_6, window_bounds = array<i64: 2, 128, 128>}, {pipeline_mode = #tpu.pipeline_mode<synchronous>, transform_indices = @transform_7, window_bounds = array<i64: 12, 1, 128>}, {pipeline_mode = #tpu.pipeline_mode<synchronous>, transform_indices = @transform_8, window_bounds = array<i64: 12, 1, 128>}, {pipeline_mode = #tpu.pipeline_mode<synchronous>, transform_indices = @transform_9, window_bounds = array<i64: 128, 128>}, {pipeline_mode = #tpu.pipeline_mode<synchronous>, transform_indices = @transform_10, window_bounds = array<i64: 1, 128>}, {transform_indices = @transform_11, window_bounds = array<i64: 2, 128>}, {transform_indices = @transform_12, window_bounds = array<i64: 2, 128>}]} {
    %cst = arith.constant 0.000000e+00 : bf16
    %0 = vector.broadcast %cst : bf16 to vector<2x16x128xbf16>
    %c0 = arith.constant 0 : index
    %c0_0 = arith.constant 0 : index
    %c0_1 = arith.constant 0 : index
    %1 = vector.load %arg14[%c0, %c0_0, %c0_1] : memref<2x40x128xbf16, #tpu.memory_space<vmem>>, vector<2x16x128xbf16>
    tpu.vector_store %arg14[%c0, %c0_0, %c0_1], %0 {strides = array<i32>} : memref<2x40x128xbf16, #tpu.memory_space<vmem>>, vector<2x16x128xbf16>,
    %cst_2 = arith.constant 0.000000e+00 : bf16
    %2 = vector.broadcast %cst_2 : bf16 to vector<2x8x128xbf16>
    %c0_3 = arith.constant 0 : index
    %c32 = arith.constant 32 : index
    %c0_4 = arith.constant 0 : index
    %3 = vector.load %arg14[%c0_3, %c32, %c0_4] : memref<2x40x128xbf16, #tpu.memory_space<vmem>>, vector<2x8x128xbf16>
    tpu.vector_store %arg14[%c0_3, %c32, %c0_4], %2 {strides = array<i32>} : memref<2x40x128xbf16, #tpu.memory_space<vmem>>, vector<2x8x128xbf16>,
    %c0_5 = arith.constant 0 : index
    %c8 = arith.constant 8 : index
    %c0_6 = arith.constant 0 : index
    %4 = vector.load %arg1[%c0_5, %c8, %c0_6] : memref<2x32x4xf32, #tpu.memory_space<vmem>>, vector<2x16x4xf32>
    %cst_7 = arith.constant 0.000000e+00 : f32
    %5 = vector.broadcast %cst_7 : f32 to vector<2x16x128xf32>
    %6 = vector.extract_strided_slice %4 {offsets = [0, 0, 0], sizes = [2, 16, 1], strides = [1, 1, 1]} : vector<2x16x4xf32> to vector<2x16x1xf32>
    %c0_8 = arith.constant 0 : index
    %c0_9 = arith.constant 0 : index
    %7 = vector.load %arg3[%c0_8, %c0_9] : memref<4x128xf32, #tpu.memory_space<vmem>>, vector<1x128xf32>
    %8 = vector.shape_cast %7 : vector<1x128xf32> to vector<1x1x128xf32>
    %9 = vector.broadcast %6 : vector<2x16x1xf32> to vector<2x16x128xf32>
    %10 = vector.broadcast %8 : vector<1x1x128xf32> to vector<2x16x128xf32>
    %11 = arith.mulf %9, %10 : vector<2x16x128xf32>
    %12 = arith.addf %5, %11 : vector<2x16x128xf32>
    %13 = vector.extract_strided_slice %4 {offsets = [0, 0, 1], sizes = [2, 16, 1], strides = [1, 1, 1]} : vector<2x16x4xf32> to vector<2x16x1xf32>
    %c1 = arith.constant 1 : index
    %c0_10 = arith.constant 0 : index
    %14 = vector.load %arg3[%c1, %c0_10] : memref<4x128xf32, #tpu.memory_space<vmem>>, vector<1x128xf32>
    %15 = vector.shape_cast %14 : vector<1x128xf32> to vector<1x1x128xf32>
    %16 = vector.broadcast %13 : vector<2x16x1xf32> to vector<2x16x128xf32>
    %17 = vector.broadcast %15 : vector<1x1x128xf32> to vector<2x16x128xf32>
    %18 = arith.mulf %16, %17 : vector<2x16x128xf32>
    %19 = arith.addf %12, %18 : vector<2x16x128xf32>
    %20 = vector.extract_strided_slice %4 {offsets = [0, 0, 2], sizes = [2, 16, 1], strides = [1, 1, 1]} : vector<2x16x4xf32> to vector<2x16x1xf32>
    %c2 = arith.constant 2 : index
    %c0_11 = arith.constant 0 : index
    %21 = vector.load %arg3[%c2, %c0_11] : memref<4x128xf32, #tpu.memory_space<vmem>>, vector<1x128xf32>
    %22 = vector.shape_cast %21 : vector<1x128xf32> to vector<1x1x128xf32>
    %23 = vector.broadcast %20 : vector<2x16x1xf32> to vector<2x16x128xf32>
    %24 = vector.broadcast %22 : vector<1x1x128xf32> to vector<2x16x128xf32>
    %25 = arith.mulf %23, %24 : vector<2x16x128xf32>
    %26 = arith.addf %19, %25 : vector<2x16x128xf32>
    %27 = vector.extract_strided_slice %4 {offsets = [0, 0, 3], sizes = [2, 16, 1], strides = [1, 1, 1]} : vector<2x16x4xf32> to vector<2x16x1xf32>
    %c3 = arith.constant 3 : index
    %c0_12 = arith.constant 0 : index
    %28 = vector.load %arg3[%c3, %c0_12] : memref<4x128xf32, #tpu.memory_space<vmem>>, vector<1x128xf32>
    %29 = vector.shape_cast %28 : vector<1x128xf32> to vector<1x1x128xf32>
    %30 = vector.broadcast %27 : vector<2x16x1xf32> to vector<2x16x128xf32>
    %31 = vector.broadcast %29 : vector<1x1x128xf32> to vector<2x16x128xf32>
    %32 = arith.mulf %30, %31 : vector<2x16x128xf32>
    %33 = arith.addf %26, %32 : vector<2x16x128xf32>
    %34 = vector.shape_cast %33 : vector<2x16x128xf32> to vector<32x128xf32>
    %c3_13 = arith.constant 3 : index
    %c0_14 = arith.constant 0 : index
    %c0_15 = arith.constant 0 : index
    %35 = vector.load %arg8[%c3_13, %c0_14, %c0_15] : memref<12x1x128xf32, #tpu.memory_space<vmem>>, vector<1x1x128xf32>
    %36 = vector.shape_cast %35 : vector<1x1x128xf32> to vector<1x128xf32>
    %37 = vector.broadcast %36 : vector<1x128xf32> to vector<32x128xf32>
    %38 = arith.mulf %34, %37 : vector<32x128xf32>
    %c3_16 = arith.constant 3 : index
    %c0_17 = arith.constant 0 : index
    %c0_18 = arith.constant 0 : index
    %39 = vector.load %arg9[%c3_16, %c0_17, %c0_18] : memref<12x1x128xf32, #tpu.memory_space<vmem>>, vector<1x1x128xf32>
    %40 = vector.shape_cast %39 : vector<1x1x128xf32> to vector<1x128xf32>
    %41 = vector.broadcast %40 : vector<1x128xf32> to vector<32x128xf32>
    %42 = arith.addf %38, %41 : vector<32x128xf32>
    %cst_19 = arith.constant 0.000000e+00 : f32
    %43 = vector.broadcast %cst_19 : f32 to vector<2x16x128xf32>
    %c0_20 = arith.constant 0 : index
    %c5 = arith.constant 5 : index
    %c0_21 = arith.constant 0 : index
    %44 = vector.load %arg1[%c0_20, %c5, %c0_21] : memref<2x32x4xf32, #tpu.memory_space<vmem>>, vector<2x16x4xf32>
    %45 = vector.extract_strided_slice %44 {offsets = [0, 0, 0], sizes = [2, 16, 1], strides = [1, 1, 1]} : vector<2x16x4xf32> to vector<2x16x1xf32>
    %c0_22 = arith.constant 0 : index
    %c0_23 = arith.constant 0 : index
    %46 = vector.load %arg2[%c0_22, %c0_23] : memref<28x128xf32, #tpu.memory_space<vmem>>, vector<1x128xf32>
    %47 = vector.shape_cast %46 : vector<1x128xf32> to vector<1x1x128xf32>
    %48 = vector.broadcast %45 : vector<2x16x1xf32> to vector<2x16x128xf32>
    %49 = vector.broadcast %47 : vector<1x1x128xf32> to vector<2x16x128xf32>
    %50 = arith.mulf %48, %49 : vector<2x16x128xf32>
    %51 = arith.addf %43, %50 : vector<2x16x128xf32>
    %52 = vector.extract_strided_slice %44 {offsets = [0, 0, 1], sizes = [2, 16, 1], strides = [1, 1, 1]} : vector<2x16x4xf32> to vector<2x16x1xf32>
    %c1_24 = arith.constant 1 : index
    %c0_25 = arith.constant 0 : index
    %53 = vector.load %arg2[%c1_24, %c0_25] : memref<28x128xf32, #tpu.memory_space<vmem>>, vector<1x128xf32>
    %54 = vector.shape_cast %53 : vector<1x128xf32> to vector<1x1x128xf32>
    %55 = vector.broadcast %52 : vector<2x16x1xf32> to vector<2x16x128xf32>
    %56 = vector.broadcast %54 : vector<1x1x128xf32> to vector<2x16x128xf32>
    %57 = arith.mulf %55, %56 : vector<2x16x128xf32>
    %58 = arith.addf %51, %57 : vector<2x16x128xf32>
    %59 = vector.extract_strided_slice %44 {offsets = [0, 0, 2], sizes = [2, 16, 1], strides = [1, 1, 1]} : vector<2x16x4xf32> to vector<2x16x1xf32>
    %c2_26 = arith.constant 2 : index
    %c0_27 = arith.constant 0 : index
    %60 = vector.load %arg2[%c2_26, %c0_27] : memref<28x128xf32, #tpu.memory_space<vmem>>, vector<1x128xf32>
    %61 = vector.shape_cast %60 : vector<1x128xf32> to vector<1x1x128xf32>
    %62 = vector.broadcast %59 : vector<2x16x1xf32> to vector<2x16x128xf32>
    %63 = vector.broadcast %61 : vector<1x1x128xf32> to vector<2x16x128xf32>
    %64 = arith.mulf %62, %63 : vector<2x16x128xf32>
    %65 = arith.addf %58, %64 : vector<2x16x128xf32>
    %66 = vector.extract_strided_slice %44 {offsets = [0, 0, 3], sizes = [2, 16, 1], strides = [1, 1, 1]} : vector<2x16x4xf32> to vector<2x16x1xf32>
    %c3_28 = arith.constant 3 : index
    %c0_29 = arith.constant 0 : index
    %67 = vector.load %arg2[%c3_28, %c0_29] : memref<28x128xf32, #tpu.memory_space<vmem>>, vector<1x128xf32>
    %68 = vector.shape_cast %67 : vector<1x128xf32> to vector<1x1x128xf32>
    %69 = vector.broadcast %66 : vector<2x16x1xf32> to vector<2x16x128xf32>
    %70 = vector.broadcast %68 : vector<1x1x128xf32> to vector<2x16x128xf32>
    %71 = arith.mulf %69, %70 : vector<2x16x128xf32>
    %72 = arith.addf %65, %71 : vector<2x16x128xf32>
    %c0_30 = arith.constant 0 : index
    %c6 = arith.constant 6 : index
    %c0_31 = arith.constant 0 : index
    %73 = vector.load %arg1[%c0_30, %c6, %c0_31] : memref<2x32x4xf32, #tpu.memory_space<vmem>>, vector<2x16x4xf32>
    %74 = vector.extract_strided_slice %73 {offsets = [0, 0, 0], sizes = [2, 16, 1], strides = [1, 1, 1]} : vector<2x16x4xf32> to vector<2x16x1xf32>
    %c4 = arith.constant 4 : index
    %c0_32 = arith.constant 0 : index
    %75 = vector.load %arg2[%c4, %c0_32] : memref<28x128xf32, #tpu.memory_space<vmem>>, vector<1x128xf32>
    %76 = vector.shape_cast %75 : vector<1x128xf32> to vector<1x1x128xf32>
    %77 = vector.broadcast %74 : vector<2x16x1xf32> to vector<2x16x128xf32>
    %78 = vector.broadcast %76 : vector<1x1x128xf32> to vector<2x16x128xf32>
    %79 = arith.mulf %77, %78 : vector<2x16x128xf32>
    %80 = arith.addf %72, %79 : vector<2x16x128xf32>
    %81 = vector.extract_strided_slice %73 {offsets = [0, 0, 1], sizes = [2, 16, 1], strides = [1, 1, 1]} : vector<2x16x4xf32> to vector<2x16x1xf32>
    %c5_33 = arith.constant 5 : index
    %c0_34 = arith.constant 0 : index
    %82 = vector.load %arg2[%c5_33, %c0_34] : memref<28x128xf32, #tpu.memory_space<vmem>>, vector<1x128xf32>
    %83 = vector.shape_cast %82 : vector<1x128xf32> to vector<1x1x128xf32>
    %84 = vector.broadcast %81 : vector<2x16x1xf32> to vector<2x16x128xf32>
    %85 = vector.broadcast %83 : vector<1x1x128xf32> to vector<2x16x128xf32>
    %86 = arith.mulf %84, %85 : vector<2x16x128xf32>
    %87 = arith.addf %80, %86 : vector<2x16x128xf32>
    %88 = vector.extract_strided_slice %73 {offsets = [0, 0, 2], sizes = [2, 16, 1], strides = [1, 1, 1]} : vector<2x16x4xf32> to vector<2x16x1xf32>
    %c6_35 = arith.constant 6 : index
    %c0_36 = arith.constant 0 : index
    %89 = vector.load %arg2[%c6_35, %c0_36] : memref<28x128xf32, #tpu.memory_space<vmem>>, vector<1x128xf32>
    %90 = vector.shape_cast %89 : vector<1x128xf32> to vector<1x1x128xf32>
    %91 = vector.broadcast %88 : vector<2x16x1xf32> to vector<2x16x128xf32>
    %92 = vector.broadcast %90 : vector<1x1x128xf32> to vector<2x16x128xf32>
    %93 = arith.mulf %91, %92 : vector<2x16x128xf32>
    %94 = arith.addf %87, %93 : vector<2x16x128xf32>
    %95 = vector.extract_strided_slice %73 {offsets = [0, 0, 3], sizes = [2, 16, 1], strides = [1, 1, 1]} : vector<2x16x4xf32> to vector<2x16x1xf32>
    %c7 = arith.constant 7 : index
    %c0_37 = arith.constant 0 : index
    %96 = vector.load %arg2[%c7, %c0_37] : memref<28x128xf32, #tpu.memory_space<vmem>>, vector<1x128xf32>
    %97 = vector.shape_cast %96 : vector<1x128xf32> to vector<1x1x128xf32>
    %98 = vector.broadcast %95 : vector<2x16x1xf32> to vector<2x16x128xf32>
    %99 = vector.broadcast %97 : vector<1x1x128xf32> to vector<2x16x128xf32>
    %100 = arith.mulf %98, %99 : vector<2x16x128xf32>
    %101 = arith.addf %94, %100 : vector<2x16x128xf32>
    %c0_38 = arith.constant 0 : index
    %c7_39 = arith.constant 7 : index
    %c0_40 = arith.constant 0 : index
    %102 = vector.load %arg1[%c0_38, %c7_39, %c0_40] : memref<2x32x4xf32, #tpu.memory_space<vmem>>, vector<2x16x4xf32>
    %103 = vector.extract_strided_slice %102 {offsets = [0, 0, 0], sizes = [2, 16, 1], strides = [1, 1, 1]} : vector<2x16x4xf32> to vector<2x16x1xf32>
    %c8_41 = arith.constant 8 : index
    %c0_42 = arith.constant 0 : index
    %104 = vector.load %arg2[%c8_41, %c0_42] : memref<28x128xf32, #tpu.memory_space<vmem>>, vector<1x128xf32>
    %105 = vector.shape_cast %104 : vector<1x128xf32> to vector<1x1x128xf32>
    %106 = vector.broadcast %103 : vector<2x16x1xf32> to vector<2x16x128xf32>
    %107 = vector.broadcast %105 : vector<1x1x128xf32> to vector<2x16x128xf32>
    %108 = arith.mulf %106, %107 : vector<2x16x128xf32>
    %109 = arith.addf %101, %108 : vector<2x16x128xf32>
    %110 = vector.extract_strided_slice %102 {offsets = [0, 0, 1], sizes = [2, 16, 1], strides = [1, 1, 1]} : vector<2x16x4xf32> to vector<2x16x1xf32>
    %c9 = arith.constant 9 : index
    %c0_43 = arith.constant 0 : index
    %111 = vector.load %arg2[%c9, %c0_43] : memref<28x128xf32, #tpu.memory_space<vmem>>, vector<1x128xf32>
    %112 = vector.shape_cast %111 : vector<1x128xf32> to vector<1x1x128xf32>
    %113 = vector.broadcast %110 : vector<2x16x1xf32> to vector<2x16x128xf32>
    %114 = vector.broadcast %112 : vector<1x1x128xf32> to vector<2x16x128xf32>
    %115 = arith.mulf %113, %114 : vector<2x16x128xf32>
    %116 = arith.addf %109, %115 : vector<2x16x128xf32>
    %117 = vector.extract_strided_slice %102 {offsets = [0, 0, 2], sizes = [2, 16, 1], strides = [1, 1, 1]} : vector<2x16x4xf32> to vector<2x16x1xf32>
    %c10 = arith.constant 10 : index
    %c0_44 = arith.constant 0 : index
    %118 = vector.load %arg2[%c10, %c0_44] : memref<28x128xf32, #tpu.memory_space<vmem>>, vector<1x128xf32>
    %119 = vector.shape_cast %118 : vector<1x128xf32> to vector<1x1x128xf32>
    %120 = vector.broadcast %117 : vector<2x16x1xf32> to vector<2x16x128xf32>
    %121 = vector.broadcast %119 : vector<1x1x128xf32> to vector<2x16x128xf32>
    %122 = arith.mulf %120, %121 : vector<2x16x128xf32>
    %123 = arith.addf %116, %122 : vector<2x16x128xf32>
    %124 = vector.extract_strided_slice %102 {offsets = [0, 0, 3], sizes = [2, 16, 1], strides = [1, 1, 1]} : vector<2x16x4xf32> to vector<2x16x1xf32>
    %c11 = arith.constant 11 : index
    %c0_45 = arith.constant 0 : index
    %125 = vector.load %arg2[%c11, %c0_45] : memref<28x128xf32, #tpu.memory_space<vmem>>, vector<1x128xf32>
    %126 = vector.shape_cast %125 : vector<1x128xf32> to vector<1x1x128xf32>
    %127 = vector.broadcast %124 : vector<2x16x1xf32> to vector<2x16x128xf32>
    %128 = vector.broadcast %126 : vector<1x1x128xf32> to vector<2x16x128xf32>
    %129 = arith.mulf %127, %128 : vector<2x16x128xf32>
    %130 = arith.addf %123, %129 : vector<2x16x128xf32>
    %c0_46 = arith.constant 0 : index
    %c8_47 = arith.constant 8 : index
    %c0_48 = arith.constant 0 : index
    %131 = vector.load %arg1[%c0_46, %c8_47, %c0_48] : memref<2x32x4xf32, #tpu.memory_space<vmem>>, vector<2x16x4xf32>
    %132 = vector.extract_strided_slice %131 {offsets = [0, 0, 0], sizes = [2, 16, 1], strides = [1, 1, 1]} : vector<2x16x4xf32> to vector<2x16x1xf32>
    %c12 = arith.constant 12 : index
    %c0_49 = arith.constant 0 : index
    %133 = vector.load %arg2[%c12, %c0_49] : memref<28x128xf32, #tpu.memory_space<vmem>>, vector<1x128xf32>
    %134 = vector.shape_cast %133 : vector<1x128xf32> to vector<1x1x128xf32>
    %135 = vector.broadcast %132 : vector<2x16x1xf32> to vector<2x16x128xf32>
    %136 = vector.broadcast %134 : vector<1x1x128xf32> to vector<2x16x128xf32>
    %137 = arith.mulf %135, %136 : vector<2x16x128xf32>
    %138 = arith.addf %130, %137 : vector<2x16x128xf32>
    %139 = vector.extract_strided_slice %131 {offsets = [0, 0, 1], sizes = [2, 16, 1], strides = [1, 1, 1]} : vector<2x16x4xf32> to vector<2x16x1xf32>
    %c13 = arith.constant 13 : index
    %c0_50 = arith.constant 0 : index
    %140 = vector.load %arg2[%c13, %c0_50] : memref<28x128xf32, #tpu.memory_space<vmem>>, vector<1x128xf32>
    %141 = vector.shape_cast %140 : vector<1x128xf32> to vector<1x1x128xf32>
    %142 = vector.broadcast %139 : vector<2x16x1xf32> to vector<2x16x128xf32>
    %143 = vector.broadcast %141 : vector<1x1x128xf32> to vector<2x16x128xf32>
    %144 = arith.mulf %142, %143 : vector<2x16x128xf32>
    %145 = arith.addf %138, %144 : vector<2x16x128xf32>
    %146 = vector.extract_strided_slice %131 {offsets = [0, 0, 2], sizes = [2, 16, 1], strides = [1, 1, 1]} : vector<2x16x4xf32> to vector<2x16x1xf32>
    %c14 = arith.constant 14 : index
    %c0_51 = arith.constant 0 : index
    %147 = vector.load %arg2[%c14, %c0_51] : memref<28x128xf32, #tpu.memory_space<vmem>>, vector<1x128xf32>
    %148 = vector.shape_cast %147 : vector<1x128xf32> to vector<1x1x128xf32>
    %149 = vector.broadcast %146 : vector<2x16x1xf32> to vector<2x16x128xf32>
    %150 = vector.broadcast %148 : vector<1x1x128xf32> to vector<2x16x128xf32>
    %151 = arith.mulf %149, %150 : vector<2x16x128xf32>
    %152 = arith.addf %145, %151 : vector<2x16x128xf32>
    %153 = vector.extract_strided_slice %131 {offsets = [0, 0, 3], sizes = [2, 16, 1], strides = [1, 1, 1]} : vector<2x16x4xf32> to vector<2x16x1xf32>
    %c15 = arith.constant 15 : index
    %c0_52 = arith.constant 0 : index
    %154 = vector.load %arg2[%c15, %c0_52] : memref<28x128xf32, #tpu.memory_space<vmem>>, vector<1x128xf32>
    %155 = vector.shape_cast %154 : vector<1x128xf32> to vector<1x1x128xf32>
    %156 = vector.broadcast %153 : vector<2x16x1xf32> to vector<2x16x128xf32>
    %157 = vector.broadcast %155 : vector<1x1x128xf32> to vector<2x16x128xf32>
    %158 = arith.mulf %156, %157 : vector<2x16x128xf32>
    %159 = arith.addf %152, %158 : vector<2x16x128xf32>
    %c0_53 = arith.constant 0 : index
    %c9_54 = arith.constant 9 : index
    %c0_55 = arith.constant 0 : index
    %160 = vector.load %arg1[%c0_53, %c9_54, %c0_55] : memref<2x32x4xf32, #tpu.memory_space<vmem>>, vector<2x16x4xf32>
    %161 = vector.extract_strided_slice %160 {offsets = [0, 0, 0], sizes = [2, 16, 1], strides = [1, 1, 1]} : vector<2x16x4xf32> to vector<2x16x1xf32>
    %c16 = arith.constant 16 : index
    %c0_56 = arith.constant 0 : index
    %162 = vector.load %arg2[%c16, %c0_56] : memref<28x128xf32, #tpu.memory_space<vmem>>, vector<1x128xf32>
    %163 = vector.shape_cast %162 : vector<1x128xf32> to vector<1x1x128xf32>
    %164 = vector.broadcast %161 : vector<2x16x1xf32> to vector<2x16x128xf32>
    %165 = vector.broadcast %163 : vector<1x1x128xf32> to vector<2x16x128xf32>
    %166 = arith.mulf %164, %165 : vector<2x16x128xf32>
    %167 = arith.addf %159, %166 : vector<2x16x128xf32>
    %168 = vector.extract_strided_slice %160 {offsets = [0, 0, 1], sizes = [2, 16, 1], strides = [1, 1, 1]} : vector<2x16x4xf32> to vector<2x16x1xf32>
    %c17 = arith.constant 17 : index
    %c0_57 = arith.constant 0 : index
    %169 = vector.load %arg2[%c17, %c0_57] : memref<28x128xf32, #tpu.memory_space<vmem>>, vector<1x128xf32>
    %170 = vector.shape_cast %169 : vector<1x128xf32> to vector<1x1x128xf32>
    %171 = vector.broadcast %168 : vector<2x16x1xf32> to vector<2x16x128xf32>
    %172 = vector.broadcast %170 : vector<1x1x128xf32> to vector<2x16x128xf32>
    %173 = arith.mulf %171, %172 : vector<2x16x128xf32>
    %174 = arith.addf %167, %173 : vector<2x16x128xf32>
    %175 = vector.extract_strided_slice %160 {offsets = [0, 0, 2], sizes = [2, 16, 1], strides = [1, 1, 1]} : vector<2x16x4xf32> to vector<2x16x1xf32>
    %c18 = arith.constant 18 : index
    %c0_58 = arith.constant 0 : index
    %176 = vector.load %arg2[%c18, %c0_58] : memref<28x128xf32, #tpu.memory_space<vmem>>, vector<1x128xf32>
    %177 = vector.shape_cast %176 : vector<1x128xf32> to vector<1x1x128xf32>
    %178 = vector.broadcast %175 : vector<2x16x1xf32> to vector<2x16x128xf32>
    %179 = vector.broadcast %177 : vector<1x1x128xf32> to vector<2x16x128xf32>
    %180 = arith.mulf %178, %179 : vector<2x16x128xf32>
    %181 = arith.addf %174, %180 : vector<2x16x128xf32>
    %182 = vector.extract_strided_slice %160 {offsets = [0, 0, 3], sizes = [2, 16, 1], strides = [1, 1, 1]} : vector<2x16x4xf32> to vector<2x16x1xf32>
    %c19 = arith.constant 19 : index
    %c0_59 = arith.constant 0 : index
    %183 = vector.load %arg2[%c19, %c0_59] : memref<28x128xf32, #tpu.memory_space<vmem>>, vector<1x128xf32>
    %184 = vector.shape_cast %183 : vector<1x128xf32> to vector<1x1x128xf32>
    %185 = vector.broadcast %182 : vector<2x16x1xf32> to vector<2x16x128xf32>
    %186 = vector.broadcast %184 : vector<1x1x128xf32> to vector<2x16x128xf32>
    %187 = arith.mulf %185, %186 : vector<2x16x128xf32>
    %188 = arith.addf %181, %187 : vector<2x16x128xf32>
    %c0_60 = arith.constant 0 : index
    %c10_61 = arith.constant 10 : index
    %c0_62 = arith.constant 0 : index
    %189 = vector.load %arg1[%c0_60, %c10_61, %c0_62] : memref<2x32x4xf32, #tpu.memory_space<vmem>>, vector<2x16x4xf32>
    %190 = vector.extract_strided_slice %189 {offsets = [0, 0, 0], sizes = [2, 16, 1], strides = [1, 1, 1]} : vector<2x16x4xf32> to vector<2x16x1xf32>
    %c20 = arith.constant 20 : index
    %c0_63 = arith.constant 0 : index
    %191 = vector.load %arg2[%c20, %c0_63] : memref<28x128xf32, #tpu.memory_space<vmem>>, vector<1x128xf32>
    %192 = vector.shape_cast %191 : vector<1x128xf32> to vector<1x1x128xf32>
    %193 = vector.broadcast %190 : vector<2x16x1xf32> to vector<2x16x128xf32>
    %194 = vector.broadcast %192 : vector<1x1x128xf32> to vector<2x16x128xf32>
    %195 = arith.mulf %193, %194 : vector<2x16x128xf32>
    %196 = arith.addf %188, %195 : vector<2x16x128xf32>
    %197 = vector.extract_strided_slice %189 {offsets = [0, 0, 1], sizes = [2, 16, 1], strides = [1, 1, 1]} : vector<2x16x4xf32> to vector<2x16x1xf32>
    %c21 = arith.constant 21 : index
    %c0_64 = arith.constant 0 : index
    %198 = vector.load %arg2[%c21, %c0_64] : memref<28x128xf32, #tpu.memory_space<vmem>>, vector<1x128xf32>
    %199 = vector.shape_cast %198 : vector<1x128xf32> to vector<1x1x128xf32>
    %200 = vector.broadcast %197 : vector<2x16x1xf32> to vector<2x16x128xf32>
    %201 = vector.broadcast %199 : vector<1x1x128xf32> to vector<2x16x128xf32>
    %202 = arith.mulf %200, %201 : vector<2x16x128xf32>
    %203 = arith.addf %196, %202 : vector<2x16x128xf32>
    %204 = vector.extract_strided_slice %189 {offsets = [0, 0, 2], sizes = [2, 16, 1], strides = [1, 1, 1]} : vector<2x16x4xf32> to vector<2x16x1xf32>
    %c22 = arith.constant 22 : index
    %c0_65 = arith.constant 0 : index
    %205 = vector.load %arg2[%c22, %c0_65] : memref<28x128xf32, #tpu.memory_space<vmem>>, vector<1x128xf32>
    %206 = vector.shape_cast %205 : vector<1x128xf32> to vector<1x1x128xf32>
    %207 = vector.broadcast %204 : vector<2x16x1xf32> to vector<2x16x128xf32>
    %208 = vector.broadcast %206 : vector<1x1x128xf32> to vector<2x16x128xf32>
    %209 = arith.mulf %207, %208 : vector<2x16x128xf32>
    %210 = arith.addf %203, %209 : vector<2x16x128xf32>
    %211 = vector.extract_strided_slice %189 {offsets = [0, 0, 3], sizes = [2, 16, 1], strides = [1, 1, 1]} : vector<2x16x4xf32> to vector<2x16x1xf32>
    %c23 = arith.constant 23 : index
    %c0_66 = arith.constant 0 : index
    %212 = vector.load %arg2[%c23, %c0_66] : memref<28x128xf32, #tpu.memory_space<vmem>>, vector<1x128xf32>
    %213 = vector.shape_cast %212 : vector<1x128xf32> to vector<1x1x128xf32>
    %214 = vector.broadcast %211 : vector<2x16x1xf32> to vector<2x16x128xf32>
    %215 = vector.broadcast %213 : vector<1x1x128xf32> to vector<2x16x128xf32>
    %216 = arith.mulf %214, %215 : vector<2x16x128xf32>
    %217 = arith.addf %210, %216 : vector<2x16x128xf32>
    %c0_67 = arith.constant 0 : index
    %c11_68 = arith.constant 11 : index
    %c0_69 = arith.constant 0 : index
    %218 = vector.load %arg1[%c0_67, %c11_68, %c0_69] : memref<2x32x4xf32, #tpu.memory_space<vmem>>, vector<2x16x4xf32>
    %219 = vector.extract_strided_slice %218 {offsets = [0, 0, 0], sizes = [2, 16, 1], strides = [1, 1, 1]} : vector<2x16x4xf32> to vector<2x16x1xf32>
    %c24 = arith.constant 24 : index
    %c0_70 = arith.constant 0 : index
    %220 = vector.load %arg2[%c24, %c0_70] : memref<28x128xf32, #tpu.memory_space<vmem>>, vector<1x128xf32>
    %221 = vector.shape_cast %220 : vector<1x128xf32> to vector<1x1x128xf32>
    %222 = vector.broadcast %219 : vector<2x16x1xf32> to vector<2x16x128xf32>
    %223 = vector.broadcast %221 : vector<1x1x128xf32> to vector<2x16x128xf32>
    %224 = arith.mulf %222, %223 : vector<2x16x128xf32>
    %225 = arith.addf %217, %224 : vector<2x16x128xf32>
    %226 = vector.extract_strided_slice %218 {offsets = [0, 0, 1], sizes = [2, 16, 1], strides = [1, 1, 1]} : vector<2x16x4xf32> to vector<2x16x1xf32>
    %c25 = arith.constant 25 : index
    %c0_71 = arith.constant 0 : index
    %227 = vector.load %arg2[%c25, %c0_71] : memref<28x128xf32, #tpu.memory_space<vmem>>, vector<1x128xf32>
    %228 = vector.shape_cast %227 : vector<1x128xf32> to vector<1x1x128xf32>
    %229 = vector.broadcast %226 : vector<2x16x1xf32> to vector<2x16x128xf32>
    %230 = vector.broadcast %228 : vector<1x1x128xf32> to vector<2x16x128xf32>
    %231 = arith.mulf %229, %230 : vector<2x16x128xf32>
    %232 = arith.addf %225, %231 : vector<2x16x128xf32>
    %233 = vector.extract_strided_slice %218 {offsets = [0, 0, 2], sizes = [2, 16, 1], strides = [1, 1, 1]} : vector<2x16x4xf32> to vector<2x16x1xf32>
    %c26 = arith.constant 26 : index
    %c0_72 = arith.constant 0 : index
    %234 = vector.load %arg2[%c26, %c0_72] : memref<28x128xf32, #tpu.memory_space<vmem>>, vector<1x128xf32>
    %235 = vector.shape_cast %234 : vector<1x128xf32> to vector<1x1x128xf32>
    %236 = vector.broadcast %233 : vector<2x16x1xf32> to vector<2x16x128xf32>
    %237 = vector.broadcast %235 : vector<1x1x128xf32> to vector<2x16x128xf32>
    %238 = arith.mulf %236, %237 : vector<2x16x128xf32>
    %239 = arith.addf %232, %238 : vector<2x16x128xf32>
    %240 = vector.extract_strided_slice %218 {offsets = [0, 0, 3], sizes = [2, 16, 1], strides = [1, 1, 1]} : vector<2x16x4xf32> to vector<2x16x1xf32>
    %c27 = arith.constant 27 : index
    %c0_73 = arith.constant 0 : index
    %241 = vector.load %arg2[%c27, %c0_73] : memref<28x128xf32, #tpu.memory_space<vmem>>, vector<1x128xf32>
    %242 = vector.shape_cast %241 : vector<1x128xf32> to vector<1x1x128xf32>
    %243 = vector.broadcast %240 : vector<2x16x1xf32> to vector<2x16x128xf32>
    %244 = vector.broadcast %242 : vector<1x1x128xf32> to vector<2x16x128xf32>
    %245 = arith.mulf %243, %244 : vector<2x16x128xf32>
    %246 = arith.addf %239, %245 : vector<2x16x128xf32>
    %247 = vector.shape_cast %246 : vector<2x16x128xf32> to vector<32x128xf32>
    %c0_74 = arith.constant 0 : index
    %c0_75 = arith.constant 0 : index
    %c0_76 = arith.constant 0 : index
    %248 = vector.load %arg8[%c0_74, %c0_75, %c0_76] : memref<12x1x128xf32, #tpu.memory_space<vmem>>, vector<1x1x128xf32>
    %249 = vector.shape_cast %248 : vector<1x1x128xf32> to vector<1x128xf32>
    %250 = vector.broadcast %249 : vector<1x128xf32> to vector<32x128xf32>
    %251 = arith.mulf %247, %250 : vector<32x128xf32>
    %c0_77 = arith.constant 0 : index
    %c0_78 = arith.constant 0 : index
    %c0_79 = arith.constant 0 : index
    %252 = vector.load %arg9[%c0_77, %c0_78, %c0_79] : memref<12x1x128xf32, #tpu.memory_space<vmem>>, vector<1x1x128xf32>
    %253 = vector.shape_cast %252 : vector<1x1x128xf32> to vector<1x128xf32>
    %254 = vector.broadcast %253 : vector<1x128xf32> to vector<32x128xf32>
    %255 = arith.addf %251, %254 : vector<32x128xf32>
    %cst_80 = arith.constant 0.000000e+00 : f32
    %256 = vector.broadcast %cst_80 : f32 to vector<32x128xf32>
    %257 = arith.maximumf %255, %256 : vector<32x128xf32>
    %258 = vector.shape_cast %257 : vector<32x128xf32> to vector<2x16x128xf32>
    %259 = arith.truncf %258 : vector<2x16x128xf32> to vector<2x16x128xbf16>
    %c0_81 = arith.constant 0 : index
    %c16_82 = arith.constant 16 : index
    %c0_83 = arith.constant 0 : index
    %260 = vector.load %arg14[%c0_81, %c16_82, %c0_83] : memref<2x40x128xbf16, #tpu.memory_space<vmem>>, vector<2x16x128xbf16>
    tpu.vector_store %arg14[%c0_81, %c16_82, %c0_83], %259 {strides = array<i32>} : memref<2x40x128xbf16, #tpu.memory_space<vmem>>, vector<2x16x128xbf16>,
    %c0_84 = arith.constant 0 : index
    %c14_85 = arith.constant 14 : index
    %c0_86 = arith.constant 0 : index
    %261 = vector.load %arg14[%c0_84, %c14_85, %c0_86] : memref<2x40x128xbf16, #tpu.memory_space<vmem>>, vector<2x16x128xbf16>
    %c0_87 = arith.constant 0 : index
    %c15_88 = arith.constant 15 : index
    %c0_89 = arith.constant 0 : index
    %262 = vector.load %arg14[%c0_87, %c15_88, %c0_89] : memref<2x40x128xbf16, #tpu.memory_space<vmem>>, vector<2x16x128xbf16>
    %263 = tpu.concatenate %261, %262 in 2 : vector<2x16x128xbf16>, vector<2x16x128xbf16> -> vector<2x16x256xbf16>
    %264 = vector.shape_cast %263 : vector<2x16x256xbf16> to vector<32x256xbf16>
    %c0_90 = arith.constant 0 : index
    %c0_91 = arith.constant 0 : index
    %c0_92 = arith.constant 0 : index
    %265 = vector.load %arg5[%c0_90, %c0_91, %c0_92] : memref<3x640x128xbf16, #tpu.memory_space<vmem>>, vector<1x256x128xbf16>
    %266 = vector.shape_cast %265 : vector<1x256x128xbf16> to vector<256x128xbf16>
    %cst_93 = arith.constant dense<0.000000e+00> : vector<32x128xf32>
    %267 = tpu.matmul %264, %266, %cst_93 {dimension_numbers = #tpu.dot_dimension_numbers<[1], [0], [0], [1], [0, 0, 1, 1], [], []>} : vector<32x256xbf16>, vector<256x128xbf16>, vector<32x128xf32> -> vector<32x128xf32>
    %c0_94 = arith.constant 0 : index
    %c16_95 = arith.constant 16 : index
    %c0_96 = arith.constant 0 : index
    %268 = vector.load %arg14[%c0_94, %c16_95, %c0_96] : memref<2x40x128xbf16, #tpu.memory_space<vmem>>, vector<2x16x128xbf16>
    %c0_97 = arith.constant 0 : index
    %c17_98 = arith.constant 17 : index
    %c0_99 = arith.constant 0 : index
    %269 = vector.load %arg14[%c0_97, %c17_98, %c0_99] : memref<2x40x128xbf16, #tpu.memory_space<vmem>>, vector<2x16x128xbf16>
    %270 = tpu.concatenate %268, %269 in 2 : vector<2x16x128xbf16>, vector<2x16x128xbf16> -> vector<2x16x256xbf16>
    %271 = vector.shape_cast %270 : vector<2x16x256xbf16> to vector<32x256xbf16>
    %c0_100 = arith.constant 0 : index
    %c256 = arith.constant 256 : index
    %c0_101 = arith.constant 0 : index
    %272 = vector.load %arg5[%c0_100, %c256, %c0_101] : memref<3x640x128xbf16, #tpu.memory_space<vmem>>, vector<1x256x128xbf16>
    %273 = vector.shape_cast %272 : vector<1x256x128xbf16> to vector<256x128xbf16>
    %cst_102 = arith.constant dense<0.000000e+00> : vector<32x128xf32>
    %274 = tpu.matmul %271, %273, %cst_102 {dimension_numbers = #tpu.dot_dimension_numbers<[1], [0], [0], [1], [0, 0, 1, 1], [], []>} : vector<32x256xbf16>, vector<256x128xbf16>, vector<32x128xf32> -> vector<32x128xf32>
    %275 = arith.addf %267, %274 : vector<32x128xf32>
    %c0_103 = arith.constant 0 : index
    %c18_104 = arith.constant 18 : index
    %c0_105 = arith.constant 0 : index
    %276 = vector.load %arg14[%c0_103, %c18_104, %c0_105] : memref<2x40x128xbf16, #tpu.memory_space<vmem>>, vector<2x16x128xbf16>
    %277 = vector.shape_cast %276 : vector<2x16x128xbf16> to vector<32x128xbf16>
    %c0_106 = arith.constant 0 : index
    %c512 = arith.constant 512 : index
    %c0_107 = arith.constant 0 : index
    %278 = vector.load %arg5[%c0_106, %c512, %c0_107] : memref<3x640x128xbf16, #tpu.memory_space<vmem>>, vector<1x128x128xbf16>
    %279 = vector.shape_cast %278 : vector<1x128x128xbf16> to vector<128x128xbf16>
    %cst_108 = arith.constant dense<0.000000e+00> : vector<32x128xf32>
    %280 = tpu.matmul %277, %279, %cst_108 {dimension_numbers = #tpu.dot_dimension_numbers<[1], [0], [0], [1], [0, 0, 1, 1], [], []>} : vector<32x128xbf16>, vector<128x128xbf16>, vector<32x128xf32> -> vector<32x128xf32>
    %281 = arith.addf %275, %280 : vector<32x128xf32>
    %c1_109 = arith.constant 1 : index
    %c0_110 = arith.constant 0 : index
    %c0_111 = arith.constant 0 : index
    %282 = vector.load %arg8[%c1_109, %c0_110, %c0_111] : memref<12x1x128xf32, #tpu.memory_space<vmem>>, vector<1x1x128xf32>
    %283 = vector.shape_cast %282 : vector<1x1x128xf32> to vector<1x128xf32>
    %284 = vector.broadcast %283 : vector<1x128xf32> to vector<32x128xf32>
    %285 = arith.mulf %281, %284 : vector<32x128xf32>
    %c1_112 = arith.constant 1 : index
    %c0_113 = arith.constant 0 : index
    %c0_114 = arith.constant 0 : index
    %286 = vector.load %arg9[%c1_112, %c0_113, %c0_114] : memref<12x1x128xf32, #tpu.memory_space<vmem>>, vector<1x1x128xf32>
    %287 = vector.shape_cast %286 : vector<1x1x128xf32> to vector<1x128xf32>
    %288 = vector.broadcast %287 : vector<1x128xf32> to vector<32x128xf32>
    %289 = arith.addf %285, %288 : vector<32x128xf32>
    %cst_115 = arith.constant 0.000000e+00 : f32
    %290 = vector.broadcast %cst_115 : f32 to vector<32x128xf32>
    %291 = arith.maximumf %289, %290 : vector<32x128xf32>
    %292 = vector.shape_cast %291 : vector<32x128xf32> to vector<2x16x128xf32>
    %293 = arith.truncf %292 : vector<2x16x128xf32> to vector<2x16x128xbf16>
    %c0_116 = arith.constant 0 : index
    %c16_117 = arith.constant 16 : index
    %c0_118 = arith.constant 0 : index
    %294 = vector.load %arg14[%c0_116, %c16_117, %c0_118] : memref<2x40x128xbf16, #tpu.memory_space<vmem>>, vector<2x16x128xbf16>
    tpu.vector_store %arg14[%c0_116, %c16_117, %c0_118], %293 {strides = array<i32>} : memref<2x40x128xbf16, #tpu.memory_space<vmem>>, vector<2x16x128xbf16>,
    %c0_119 = arith.constant 0 : index
    %c15_120 = arith.constant 15 : index
    %c0_121 = arith.constant 0 : index
    %295 = vector.load %arg14[%c0_119, %c15_120, %c0_121] : memref<2x40x128xbf16, #tpu.memory_space<vmem>>, vector<2x16x128xbf16>
    %c0_122 = arith.constant 0 : index
    %c16_123 = arith.constant 16 : index
    %c0_124 = arith.constant 0 : index
    %296 = vector.load %arg14[%c0_122, %c16_123, %c0_124] : memref<2x40x128xbf16, #tpu.memory_space<vmem>>, vector<2x16x128xbf16>
    %297 = tpu.concatenate %295, %296 in 2 : vector<2x16x128xbf16>, vector<2x16x128xbf16> -> vector<2x16x256xbf16>
    %298 = vector.shape_cast %297 : vector<2x16x256xbf16> to vector<32x256xbf16>
    %c0_125 = arith.constant 0 : index
    %c0_126 = arith.constant 0 : index
    %c0_127 = arith.constant 0 : index
    %299 = vector.load %arg6[%c0_125, %c0_126, %c0_127] : memref<3x384x128xbf16, #tpu.memory_space<vmem>>, vector<1x256x128xbf16>
    %300 = vector.shape_cast %299 : vector<1x256x128xbf16> to vector<256x128xbf16>
    %cst_128 = arith.constant dense<0.000000e+00> : vector<32x128xf32>
    %301 = tpu.matmul %298, %300, %cst_128 {dimension_numbers = #tpu.dot_dimension_numbers<[1], [0], [0], [1], [0, 0, 1, 1], [], []>} : vector<32x256xbf16>, vector<256x128xbf16>, vector<32x128xf32> -> vector<32x128xf32>
    %c0_129 = arith.constant 0 : index
    %c17_130 = arith.constant 17 : index
    %c0_131 = arith.constant 0 : index
    %302 = vector.load %arg14[%c0_129, %c17_130, %c0_131] : memref<2x40x128xbf16, #tpu.memory_space<vmem>>, vector<2x16x128xbf16>
    %303 = vector.shape_cast %302 : vector<2x16x128xbf16> to vector<32x128xbf16>
    %c0_132 = arith.constant 0 : index
    %c256_133 = arith.constant 256 : index
    %c0_134 = arith.constant 0 : index
    %304 = vector.load %arg6[%c0_132, %c256_133, %c0_134] : memref<3x384x128xbf16, #tpu.memory_space<vmem>>, vector<1x128x128xbf16>
    %305 = vector.shape_cast %304 : vector<1x128x128xbf16> to vector<128x128xbf16>
    %cst_135 = arith.constant dense<0.000000e+00> : vector<32x128xf32>
    %306 = tpu.matmul %303, %305, %cst_135 {dimension_numbers = #tpu.dot_dimension_numbers<[1], [0], [0], [1], [0, 0, 1, 1], [], []>} : vector<32x128xbf16>, vector<128x128xbf16>, vector<32x128xf32> -> vector<32x128xf32>
    %307 = arith.addf %301, %306 : vector<32x128xf32>
    %c2_136 = arith.constant 2 : index
    %c0_137 = arith.constant 0 : index
    %c0_138 = arith.constant 0 : index
    %308 = vector.load %arg8[%c2_136, %c0_137, %c0_138] : memref<12x1x128xf32, #tpu.memory_space<vmem>>, vector<1x1x128xf32>
    %309 = vector.shape_cast %308 : vector<1x1x128xf32> to vector<1x128xf32>
    %310 = vector.broadcast %309 : vector<1x128xf32> to vector<32x128xf32>
    %311 = arith.mulf %307, %310 : vector<32x128xf32>
    %c2_139 = arith.constant 2 : index
    %c0_140 = arith.constant 0 : index
    %c0_141 = arith.constant 0 : index
    %312 = vector.load %arg9[%c2_139, %c0_140, %c0_141] : memref<12x1x128xf32, #tpu.memory_space<vmem>>, vector<1x1x128xf32>
    %313 = vector.shape_cast %312 : vector<1x1x128xf32> to vector<1x128xf32>
    %314 = vector.broadcast %313 : vector<1x128xf32> to vector<32x128xf32>
    %315 = arith.addf %311, %314 : vector<32x128xf32>
    %316 = arith.addf %315, %42 : vector<32x128xf32>
    %cst_142 = arith.constant 0.000000e+00 : f32
    %317 = vector.broadcast %cst_142 : f32 to vector<32x128xf32>
    %318 = arith.maximumf %316, %317 : vector<32x128xf32>
    %319 = vector.shape_cast %318 : vector<32x128xf32> to vector<2x16x128xf32>
    %320 = arith.truncf %319 : vector<2x16x128xf32> to vector<2x16x128xbf16>
    %c0_143 = arith.constant 0 : index
    %c16_144 = arith.constant 16 : index
    %c0_145 = arith.constant 0 : index
    %321 = vector.load %arg14[%c0_143, %c16_144, %c0_145] : memref<2x40x128xbf16, #tpu.memory_space<vmem>>, vector<2x16x128xbf16>
    tpu.vector_store %arg14[%c0_143, %c16_144, %c0_145], %320 {strides = array<i32>} : memref<2x40x128xbf16, #tpu.memory_space<vmem>>, vector<2x16x128xbf16>,
    %c0_146 = arith.constant 0 : index
    %c16_147 = arith.constant 16 : index
    %c0_148 = arith.constant 0 : index
    %322 = vector.load %arg14[%c0_146, %c16_147, %c0_148] : memref<2x40x128xbf16, #tpu.memory_space<vmem>>, vector<2x16x128xbf16>
    %323 = vector.shape_cast %322 : vector<2x16x128xbf16> to vector<32x128xbf16>
    %c0_149 = arith.constant 0 : index
    %c0_150 = arith.constant 0 : index
    %c0_151 = arith.constant 0 : index
    %324 = vector.load %arg7[%c0_149, %c0_150, %c0_151] : memref<2x128x128xbf16, #tpu.memory_space<vmem>>, vector<1x128x128xbf16>
    %325 = vector.shape_cast %324 : vector<1x128x128xbf16> to vector<128x128xbf16>
    %cst_152 = arith.constant dense<0.000000e+00> : vector<32x128xf32>
    %326 = tpu.matmul %323, %325, %cst_152 {dimension_numbers = #tpu.dot_dimension_numbers<[1], [0], [0], [1], [0, 0, 1, 1], [], []>} : vector<32x128xbf16>, vector<128x128xbf16>, vector<32x128xf32> -> vector<32x128xf32>
    %c7_153 = arith.constant 7 : index
    %c0_154 = arith.constant 0 : index
    %c0_155 = arith.constant 0 : index
    %327 = vector.load %arg8[%c7_153, %c0_154, %c0_155] : memref<12x1x128xf32, #tpu.memory_space<vmem>>, vector<1x1x128xf32>
    %328 = vector.shape_cast %327 : vector<1x1x128xf32> to vector<1x128xf32>
    %329 = vector.broadcast %328 : vector<1x128xf32> to vector<32x128xf32>
    %330 = arith.mulf %326, %329 : vector<32x128xf32>
    %c7_156 = arith.constant 7 : index
    %c0_157 = arith.constant 0 : index
    %c0_158 = arith.constant 0 : index
    %331 = vector.load %arg9[%c7_156, %c0_157, %c0_158] : memref<12x1x128xf32, #tpu.memory_space<vmem>>, vector<1x1x128xf32>
    %332 = vector.shape_cast %331 : vector<1x1x128xf32> to vector<1x128xf32>
    %333 = vector.broadcast %332 : vector<1x128xf32> to vector<32x128xf32>
    %334 = arith.addf %330, %333 : vector<32x128xf32>
    %c0_159 = arith.constant 0 : index
    %c13_160 = arith.constant 13 : index
    %c0_161 = arith.constant 0 : index
    %335 = vector.load %arg14[%c0_159, %c13_160, %c0_161] : memref<2x40x128xbf16, #tpu.memory_space<vmem>>, vector<2x16x128xbf16>
    %c0_162 = arith.constant 0 : index
    %c14_163 = arith.constant 14 : index
    %c0_164 = arith.constant 0 : index
    %336 = vector.load %arg14[%c0_162, %c14_163, %c0_164] : memref<2x40x128xbf16, #tpu.memory_space<vmem>>, vector<2x16x128xbf16>
    %337 = tpu.concatenate %335, %336 in 2 : vector<2x16x128xbf16>, vector<2x16x128xbf16> -> vector<2x16x256xbf16>
    %338 = vector.shape_cast %337 : vector<2x16x256xbf16> to vector<32x256xbf16>
    %c0_165 = arith.constant 0 : index
    %c0_166 = arith.constant 0 : index
    %c0_167 = arith.constant 0 : index
    %339 = vector.load %arg4[%c0_165, %c0_166, %c0_167] : memref<2x896x128xbf16, #tpu.memory_space<vmem>>, vector<1x256x128xbf16>
    %340 = vector.shape_cast %339 : vector<1x256x128xbf16> to vector<256x128xbf16>
    %cst_168 = arith.constant dense<0.000000e+00> : vector<32x128xf32>
    %341 = tpu.matmul %338, %340, %cst_168 {dimension_numbers = #tpu.dot_dimension_numbers<[1], [0], [0], [1], [0, 0, 1, 1], [], []>} : vector<32x256xbf16>, vector<256x128xbf16>, vector<32x128xf32> -> vector<32x128xf32>
    %c0_169 = arith.constant 0 : index
    %c15_170 = arith.constant 15 : index
    %c0_171 = arith.constant 0 : index
    %342 = vector.load %arg14[%c0_169, %c15_170, %c0_171] : memref<2x40x128xbf16, #tpu.memory_space<vmem>>, vector<2x16x128xbf16>
    %c0_172 = arith.constant 0 : index
    %c16_173 = arith.constant 16 : index
    %c0_174 = arith.constant 0 : index
    %343 = vector.load %arg14[%c0_172, %c16_173, %c0_174] : memref<2x40x128xbf16, #tpu.memory_space<vmem>>, vector<2x16x128xbf16>
    %344 = tpu.concatenate %342, %343 in 2 : vector<2x16x128xbf16>, vector<2x16x128xbf16> -> vector<2x16x256xbf16>
    %345 = vector.shape_cast %344 : vector<2x16x256xbf16> to vector<32x256xbf16>
    %c0_175 = arith.constant 0 : index
    %c256_176 = arith.constant 256 : index
    %c0_177 = arith.constant 0 : index
    %346 = vector.load %arg4[%c0_175, %c256_176, %c0_177] : memref<2x896x128xbf16, #tpu.memory_space<vmem>>, vector<1x256x128xbf16>
    %347 = vector.shape_cast %346 : vector<1x256x128xbf16> to vector<256x128xbf16>
    %cst_178 = arith.constant dense<0.000000e+00> : vector<32x128xf32>
    %348 = tpu.matmul %345, %347, %cst_178 {dimension_numbers = #tpu.dot_dimension_numbers<[1], [0], [0], [1], [0, 0, 1, 1], [], []>} : vector<32x256xbf16>, vector<256x128xbf16>, vector<32x128xf32> -> vector<32x128xf32>
    %349 = arith.addf %341, %348 : vector<32x128xf32>
    %c0_179 = arith.constant 0 : index
    %c17_180 = arith.constant 17 : index
    %c0_181 = arith.constant 0 : index
    %350 = vector.load %arg14[%c0_179, %c17_180, %c0_181] : memref<2x40x128xbf16, #tpu.memory_space<vmem>>, vector<2x16x128xbf16>
    %c0_182 = arith.constant 0 : index
    %c18_183 = arith.constant 18 : index
    %c0_184 = arith.constant 0 : index
    %351 = vector.load %arg14[%c0_182, %c18_183, %c0_184] : memref<2x40x128xbf16, #tpu.memory_space<vmem>>, vector<2x16x128xbf16>
    %352 = tpu.concatenate %350, %351 in 2 : vector<2x16x128xbf16>, vector<2x16x128xbf16> -> vector<2x16x256xbf16>
    %353 = vector.shape_cast %352 : vector<2x16x256xbf16> to vector<32x256xbf16>
    %c0_185 = arith.constant 0 : index
    %c512_186 = arith.constant 512 : index
    %c0_187 = arith.constant 0 : index
    %354 = vector.load %arg4[%c0_185, %c512_186, %c0_187] : memref<2x896x128xbf16, #tpu.memory_space<vmem>>, vector<1x256x128xbf16>
    %355 = vector.shape_cast %354 : vector<1x256x128xbf16> to vector<256x128xbf16>
    %cst_188 = arith.constant dense<0.000000e+00> : vector<32x128xf32>
    %356 = tpu.matmul %353, %355, %cst_188 {dimension_numbers = #tpu.dot_dimension_numbers<[1], [0], [0], [1], [0, 0, 1, 1], [], []>} : vector<32x256xbf16>, vector<256x128xbf16>, vector<32x128xf32> -> vector<32x128xf32>
    %357 = arith.addf %349, %356 : vector<32x128xf32>
    %c0_189 = arith.constant 0 : index
    %c19_190 = arith.constant 19 : index
    %c0_191 = arith.constant 0 : index
    %358 = vector.load %arg14[%c0_189, %c19_190, %c0_191] : memref<2x40x128xbf16, #tpu.memory_space<vmem>>, vector<2x16x128xbf16>
    %359 = vector.shape_cast %358 : vector<2x16x128xbf16> to vector<32x128xbf16>
    %c0_192 = arith.constant 0 : index
    %c768 = arith.constant 768 : index
    %c0_193 = arith.constant 0 : index
    %360 = vector.load %arg4[%c0_192, %c768, %c0_193] : memref<2x896x128xbf16, #tpu.memory_space<vmem>>, vector<1x128x128xbf16>
    %361 = vector.shape_cast %360 : vector<1x128x128xbf16> to vector<128x128xbf16>
    %cst_194 = arith.constant dense<0.000000e+00> : vector<32x128xf32>
    %362 = tpu.matmul %359, %361, %cst_194 {dimension_numbers = #tpu.dot_dimension_numbers<[1], [0], [0], [1], [0, 0, 1, 1], [], []>} : vector<32x128xbf16>, vector<128x128xbf16>, vector<32x128xf32> -> vector<32x128xf32>
    %363 = arith.addf %357, %362 : vector<32x128xf32>
    %c4_195 = arith.constant 4 : index
    %c0_196 = arith.constant 0 : index
    %c0_197 = arith.constant 0 : index
    %364 = vector.load %arg8[%c4_195, %c0_196, %c0_197] : memref<12x1x128xf32, #tpu.memory_space<vmem>>, vector<1x1x128xf32>
    %365 = vector.shape_cast %364 : vector<1x1x128xf32> to vector<1x128xf32>
    %366 = vector.broadcast %365 : vector<1x128xf32> to vector<32x128xf32>
    %367 = arith.mulf %363, %366 : vector<32x128xf32>
    %c4_198 = arith.constant 4 : index
    %c0_199 = arith.constant 0 : index
    %c0_200 = arith.constant 0 : index
    %368 = vector.load %arg9[%c4_198, %c0_199, %c0_200] : memref<12x1x128xf32, #tpu.memory_space<vmem>>, vector<1x1x128xf32>
    %369 = vector.shape_cast %368 : vector<1x1x128xf32> to vector<1x128xf32>
    %370 = vector.broadcast %369 : vector<1x128xf32> to vector<32x128xf32>
    %371 = arith.addf %367, %370 : vector<32x128xf32>
    %cst_201 = arith.constant 0.000000e+00 : f32
    %372 = vector.broadcast %cst_201 : f32 to vector<32x128xf32>
    %373 = arith.maximumf %371, %372 : vector<32x128xf32>
    %374 = vector.shape_cast %373 : vector<32x128xf32> to vector<2x16x128xf32>
    %375 = arith.truncf %374 : vector<2x16x128xf32> to vector<2x16x128xbf16>
    %c0_202 = arith.constant 0 : index
    %c16_203 = arith.constant 16 : index
    %c0_204 = arith.constant 0 : index
    %376 = vector.load %arg14[%c0_202, %c16_203, %c0_204] : memref<2x40x128xbf16, #tpu.memory_space<vmem>>, vector<2x16x128xbf16>
    tpu.vector_store %arg14[%c0_202, %c16_203, %c0_204], %375 {strides = array<i32>} : memref<2x40x128xbf16, #tpu.memory_space<vmem>>, vector<2x16x128xbf16>,
    %c0_205 = arith.constant 0 : index
    %c14_206 = arith.constant 14 : index
    %c0_207 = arith.constant 0 : index
    %377 = vector.load %arg14[%c0_205, %c14_206, %c0_207] : memref<2x40x128xbf16, #tpu.memory_space<vmem>>, vector<2x16x128xbf16>
    %c0_208 = arith.constant 0 : index
    %c15_209 = arith.constant 15 : index
    %c0_210 = arith.constant 0 : index
    %378 = vector.load %arg14[%c0_208, %c15_209, %c0_210] : memref<2x40x128xbf16, #tpu.memory_space<vmem>>, vector<2x16x128xbf16>
    %379 = tpu.concatenate %377, %378 in 2 : vector<2x16x128xbf16>, vector<2x16x128xbf16> -> vector<2x16x256xbf16>
    %380 = vector.shape_cast %379 : vector<2x16x256xbf16> to vector<32x256xbf16>
    %c1_211 = arith.constant 1 : index
    %c0_212 = arith.constant 0 : index
    %c0_213 = arith.constant 0 : index
    %381 = vector.load %arg5[%c1_211, %c0_212, %c0_213] : memref<3x640x128xbf16, #tpu.memory_space<vmem>>, vector<1x256x128xbf16>
    %382 = vector.shape_cast %381 : vector<1x256x128xbf16> to vector<256x128xbf16>
    %cst_214 = arith.constant dense<0.000000e+00> : vector<32x128xf32>
    %383 = tpu.matmul %380, %382, %cst_214 {dimension_numbers = #tpu.dot_dimension_numbers<[1], [0], [0], [1], [0, 0, 1, 1], [], []>} : vector<32x256xbf16>, vector<256x128xbf16>, vector<32x128xf32> -> vector<32x128xf32>
    %c0_215 = arith.constant 0 : index
    %c16_216 = arith.constant 16 : index
    %c0_217 = arith.constant 0 : index
    %384 = vector.load %arg14[%c0_215, %c16_216, %c0_217] : memref<2x40x128xbf16, #tpu.memory_space<vmem>>, vector<2x16x128xbf16>
    %c0_218 = arith.constant 0 : index
    %c17_219 = arith.constant 17 : index
    %c0_220 = arith.constant 0 : index
    %385 = vector.load %arg14[%c0_218, %c17_219, %c0_220] : memref<2x40x128xbf16, #tpu.memory_space<vmem>>, vector<2x16x128xbf16>
    %386 = tpu.concatenate %384, %385 in 2 : vector<2x16x128xbf16>, vector<2x16x128xbf16> -> vector<2x16x256xbf16>
    %387 = vector.shape_cast %386 : vector<2x16x256xbf16> to vector<32x256xbf16>
    %c1_221 = arith.constant 1 : index
    %c256_222 = arith.constant 256 : index
    %c0_223 = arith.constant 0 : index
    %388 = vector.load %arg5[%c1_221, %c256_222, %c0_223] : memref<3x640x128xbf16, #tpu.memory_space<vmem>>, vector<1x256x128xbf16>
    %389 = vector.shape_cast %388 : vector<1x256x128xbf16> to vector<256x128xbf16>
    %cst_224 = arith.constant dense<0.000000e+00> : vector<32x128xf32>
    %390 = tpu.matmul %387, %389, %cst_224 {dimension_numbers = #tpu.dot_dimension_numbers<[1], [0], [0], [1], [0, 0, 1, 1], [], []>} : vector<32x256xbf16>, vector<256x128xbf16>, vector<32x128xf32> -> vector<32x128xf32>
    %391 = arith.addf %383, %390 : vector<32x128xf32>
    %c0_225 = arith.constant 0 : index
    %c18_226 = arith.constant 18 : index
    %c0_227 = arith.constant 0 : index
    %392 = vector.load %arg14[%c0_225, %c18_226, %c0_227] : memref<2x40x128xbf16, #tpu.memory_space<vmem>>, vector<2x16x128xbf16>
    %393 = vector.shape_cast %392 : vector<2x16x128xbf16> to vector<32x128xbf16>
    %c1_228 = arith.constant 1 : index
    %c512_229 = arith.constant 512 : index
    %c0_230 = arith.constant 0 : index
    %394 = vector.load %arg5[%c1_228, %c512_229, %c0_230] : memref<3x640x128xbf16, #tpu.memory_space<vmem>>, vector<1x128x128xbf16>
    %395 = vector.shape_cast %394 : vector<1x128x128xbf16> to vector<128x128xbf16>
    %cst_231 = arith.constant dense<0.000000e+00> : vector<32x128xf32>
    %396 = tpu.matmul %393, %395, %cst_231 {dimension_numbers = #tpu.dot_dimension_numbers<[1], [0], [0], [1], [0, 0, 1, 1], [], []>} : vector<32x128xbf16>, vector<128x128xbf16>, vector<32x128xf32> -> vector<32x128xf32>
    %397 = arith.addf %391, %396 : vector<32x128xf32>
    %c5_232 = arith.constant 5 : index
    %c0_233 = arith.constant 0 : index
    %c0_234 = arith.constant 0 : index
    %398 = vector.load %arg8[%c5_232, %c0_233, %c0_234] : memref<12x1x128xf32, #tpu.memory_space<vmem>>, vector<1x1x128xf32>
    %399 = vector.shape_cast %398 : vector<1x1x128xf32> to vector<1x128xf32>
    %400 = vector.broadcast %399 : vector<1x128xf32> to vector<32x128xf32>
    %401 = arith.mulf %397, %400 : vector<32x128xf32>
    %c5_235 = arith.constant 5 : index
    %c0_236 = arith.constant 0 : index
    %c0_237 = arith.constant 0 : index
    %402 = vector.load %arg9[%c5_235, %c0_236, %c0_237] : memref<12x1x128xf32, #tpu.memory_space<vmem>>, vector<1x1x128xf32>
    %403 = vector.shape_cast %402 : vector<1x1x128xf32> to vector<1x128xf32>
    %404 = vector.broadcast %403 : vector<1x128xf32> to vector<32x128xf32>
    %405 = arith.addf %401, %404 : vector<32x128xf32>
    %cst_238 = arith.constant 0.000000e+00 : f32
    %406 = vector.broadcast %cst_238 : f32 to vector<32x128xf32>
    %407 = arith.maximumf %405, %406 : vector<32x128xf32>
    %408 = vector.shape_cast %407 : vector<32x128xf32> to vector<2x16x128xf32>
    %409 = arith.truncf %408 : vector<2x16x128xf32> to vector<2x16x128xbf16>
    %c0_239 = arith.constant 0 : index
    %c16_240 = arith.constant 16 : index
    %c0_241 = arith.constant 0 : index
    %410 = vector.load %arg14[%c0_239, %c16_240, %c0_241] : memref<2x40x128xbf16, #tpu.memory_space<vmem>>, vector<2x16x128xbf16>
    tpu.vector_store %arg14[%c0_239, %c16_240, %c0_241], %409 {strides = array<i32>} : memref<2x40x128xbf16, #tpu.memory_space<vmem>>, vector<2x16x128xbf16>,
    %c0_242 = arith.constant 0 : index
    %c15_243 = arith.constant 15 : index
    %c0_244 = arith.constant 0 : index
    %411 = vector.load %arg14[%c0_242, %c15_243, %c0_244] : memref<2x40x128xbf16, #tpu.memory_space<vmem>>, vector<2x16x128xbf16>
    %c0_245 = arith.constant 0 : index
    %c16_246 = arith.constant 16 : index
    %c0_247 = arith.constant 0 : index
    %412 = vector.load %arg14[%c0_245, %c16_246, %c0_247] : memref<2x40x128xbf16, #tpu.memory_space<vmem>>, vector<2x16x128xbf16>
    %413 = tpu.concatenate %411, %412 in 2 : vector<2x16x128xbf16>, vector<2x16x128xbf16> -> vector<2x16x256xbf16>
    %414 = vector.shape_cast %413 : vector<2x16x256xbf16> to vector<32x256xbf16>
    %c1_248 = arith.constant 1 : index
    %c0_249 = arith.constant 0 : index
    %c0_250 = arith.constant 0 : index
    %415 = vector.load %arg6[%c1_248, %c0_249, %c0_250] : memref<3x384x128xbf16, #tpu.memory_space<vmem>>, vector<1x256x128xbf16>
    %416 = vector.shape_cast %415 : vector<1x256x128xbf16> to vector<256x128xbf16>
    %cst_251 = arith.constant dense<0.000000e+00> : vector<32x128xf32>
    %417 = tpu.matmul %414, %416, %cst_251 {dimension_numbers = #tpu.dot_dimension_numbers<[1], [0], [0], [1], [0, 0, 1, 1], [], []>} : vector<32x256xbf16>, vector<256x128xbf16>, vector<32x128xf32> -> vector<32x128xf32>
    %c0_252 = arith.constant 0 : index
    %c17_253 = arith.constant 17 : index
    %c0_254 = arith.constant 0 : index
    %418 = vector.load %arg14[%c0_252, %c17_253, %c0_254] : memref<2x40x128xbf16, #tpu.memory_space<vmem>>, vector<2x16x128xbf16>
    %419 = vector.shape_cast %418 : vector<2x16x128xbf16> to vector<32x128xbf16>
    %c1_255 = arith.constant 1 : index
    %c256_256 = arith.constant 256 : index
    %c0_257 = arith.constant 0 : index
    %420 = vector.load %arg6[%c1_255, %c256_256, %c0_257] : memref<3x384x128xbf16, #tpu.memory_space<vmem>>, vector<1x128x128xbf16>
    %421 = vector.shape_cast %420 : vector<1x128x128xbf16> to vector<128x128xbf16>
    %cst_258 = arith.constant dense<0.000000e+00> : vector<32x128xf32>
    %422 = tpu.matmul %419, %421, %cst_258 {dimension_numbers = #tpu.dot_dimension_numbers<[1], [0], [0], [1], [0, 0, 1, 1], [], []>} : vector<32x128xbf16>, vector<128x128xbf16>, vector<32x128xf32> -> vector<32x128xf32>
    %423 = arith.addf %417, %422 : vector<32x128xf32>
    %c6_259 = arith.constant 6 : index
    %c0_260 = arith.constant 0 : index
    %c0_261 = arith.constant 0 : index
    %424 = vector.load %arg8[%c6_259, %c0_260, %c0_261] : memref<12x1x128xf32, #tpu.memory_space<vmem>>, vector<1x1x128xf32>
    %425 = vector.shape_cast %424 : vector<1x1x128xf32> to vector<1x128xf32>
    %426 = vector.broadcast %425 : vector<1x128xf32> to vector<32x128xf32>
    %427 = arith.mulf %423, %426 : vector<32x128xf32>
    %c6_262 = arith.constant 6 : index
    %c0_263 = arith.constant 0 : index
    %c0_264 = arith.constant 0 : index
    %428 = vector.load %arg9[%c6_262, %c0_263, %c0_264] : memref<12x1x128xf32, #tpu.memory_space<vmem>>, vector<1x1x128xf32>
    %429 = vector.shape_cast %428 : vector<1x1x128xf32> to vector<1x128xf32>
    %430 = vector.broadcast %429 : vector<1x128xf32> to vector<32x128xf32>
    %431 = arith.addf %427, %430 : vector<32x128xf32>
    %432 = arith.addf %431, %334 : vector<32x128xf32>
    %cst_265 = arith.constant 0.000000e+00 : f32
    %433 = vector.broadcast %cst_265 : f32 to vector<32x128xf32>
    %434 = arith.maximumf %432, %433 : vector<32x128xf32>
    %435 = vector.shape_cast %434 : vector<32x128xf32> to vector<2x16x128xf32>
    %436 = arith.truncf %435 : vector<2x16x128xf32> to vector<2x16x128xbf16>
    %c0_266 = arith.constant 0 : index
    %c16_267 = arith.constant 16 : index
    %c0_268 = arith.constant 0 : index
    %437 = vector.load %arg14[%c0_266, %c16_267, %c0_268] : memref<2x40x128xbf16, #tpu.memory_space<vmem>>, vector<2x16x128xbf16>
    tpu.vector_store %arg14[%c0_266, %c16_267, %c0_268], %436 {strides = array<i32>} : memref<2x40x128xbf16, #tpu.memory_space<vmem>>, vector<2x16x128xbf16>,
    %c0_269 = arith.constant 0 : index
    %c16_270 = arith.constant 16 : index
    %c0_271 = arith.constant 0 : index
    %438 = vector.load %arg14[%c0_269, %c16_270, %c0_271] : memref<2x40x128xbf16, #tpu.memory_space<vmem>>, vector<2x16x128xbf16>
    %439 = vector.shape_cast %438 : vector<2x16x128xbf16> to vector<32x128xbf16>
    %c1_272 = arith.constant 1 : index
    %c0_273 = arith.constant 0 : index
    %c0_274 = arith.constant 0 : index
    %440 = vector.load %arg7[%c1_272, %c0_273, %c0_274] : memref<2x128x128xbf16, #tpu.memory_space<vmem>>, vector<1x128x128xbf16>
    %441 = vector.shape_cast %440 : vector<1x128x128xbf16> to vector<128x128xbf16>
    %cst_275 = arith.constant dense<0.000000e+00> : vector<32x128xf32>
    %442 = tpu.matmul %439, %441, %cst_275 {dimension_numbers = #tpu.dot_dimension_numbers<[1], [0], [0], [1], [0, 0, 1, 1], [], []>} : vector<32x128xbf16>, vector<128x128xbf16>, vector<32x128xf32> -> vector<32x128xf32>
    %c11_276 = arith.constant 11 : index
    %c0_277 = arith.constant 0 : index
    %c0_278 = arith.constant 0 : index
    %443 = vector.load %arg8[%c11_276, %c0_277, %c0_278] : memref<12x1x128xf32, #tpu.memory_space<vmem>>, vector<1x1x128xf32>
    %444 = vector.shape_cast %443 : vector<1x1x128xf32> to vector<1x128xf32>
    %445 = vector.broadcast %444 : vector<1x128xf32> to vector<32x128xf32>
    %446 = arith.mulf %442, %445 : vector<32x128xf32>
    %c11_279 = arith.constant 11 : index
    %c0_280 = arith.constant 0 : index
    %c0_281 = arith.constant 0 : index
    %447 = vector.load %arg9[%c11_279, %c0_280, %c0_281] : memref<12x1x128xf32, #tpu.memory_space<vmem>>, vector<1x1x128xf32>
    %448 = vector.shape_cast %447 : vector<1x1x128xf32> to vector<1x128xf32>
    %449 = vector.broadcast %448 : vector<1x128xf32> to vector<32x128xf32>
    %450 = arith.addf %446, %449 : vector<32x128xf32>
    %c0_282 = arith.constant 0 : index
    %c13_283 = arith.constant 13 : index
    %c0_284 = arith.constant 0 : index
    %451 = vector.load %arg14[%c0_282, %c13_283, %c0_284] : memref<2x40x128xbf16, #tpu.memory_space<vmem>>, vector<2x16x128xbf16>
    %c0_285 = arith.constant 0 : index
    %c14_286 = arith.constant 14 : index
    %c0_287 = arith.constant 0 : index
    %452 = vector.load %arg14[%c0_285, %c14_286, %c0_287] : memref<2x40x128xbf16, #tpu.memory_space<vmem>>, vector<2x16x128xbf16>
    %453 = tpu.concatenate %451, %452 in 2 : vector<2x16x128xbf16>, vector<2x16x128xbf16> -> vector<2x16x256xbf16>
    %454 = vector.shape_cast %453 : vector<2x16x256xbf16> to vector<32x256xbf16>
    %c1_288 = arith.constant 1 : index
    %c0_289 = arith.constant 0 : index
    %c0_290 = arith.constant 0 : index
    %455 = vector.load %arg4[%c1_288, %c0_289, %c0_290] : memref<2x896x128xbf16, #tpu.memory_space<vmem>>, vector<1x256x128xbf16>
    %456 = vector.shape_cast %455 : vector<1x256x128xbf16> to vector<256x128xbf16>
    %cst_291 = arith.constant dense<0.000000e+00> : vector<32x128xf32>
    %457 = tpu.matmul %454, %456, %cst_291 {dimension_numbers = #tpu.dot_dimension_numbers<[1], [0], [0], [1], [0, 0, 1, 1], [], []>} : vector<32x256xbf16>, vector<256x128xbf16>, vector<32x128xf32> -> vector<32x128xf32>
    %c0_292 = arith.constant 0 : index
    %c15_293 = arith.constant 15 : index
    %c0_294 = arith.constant 0 : index
    %458 = vector.load %arg14[%c0_292, %c15_293, %c0_294] : memref<2x40x128xbf16, #tpu.memory_space<vmem>>, vector<2x16x128xbf16>
    %c0_295 = arith.constant 0 : index
    %c16_296 = arith.constant 16 : index
    %c0_297 = arith.constant 0 : index
    %459 = vector.load %arg14[%c0_295, %c16_296, %c0_297] : memref<2x40x128xbf16, #tpu.memory_space<vmem>>, vector<2x16x128xbf16>
    %460 = tpu.concatenate %458, %459 in 2 : vector<2x16x128xbf16>, vector<2x16x128xbf16> -> vector<2x16x256xbf16>
    %461 = vector.shape_cast %460 : vector<2x16x256xbf16> to vector<32x256xbf16>
    %c1_298 = arith.constant 1 : index
    %c256_299 = arith.constant 256 : index
    %c0_300 = arith.constant 0 : index
    %462 = vector.load %arg4[%c1_298, %c256_299, %c0_300] : memref<2x896x128xbf16, #tpu.memory_space<vmem>>, vector<1x256x128xbf16>
    %463 = vector.shape_cast %462 : vector<1x256x128xbf16> to vector<256x128xbf16>
    %cst_301 = arith.constant dense<0.000000e+00> : vector<32x128xf32>
    %464 = tpu.matmul %461, %463, %cst_301 {dimension_numbers = #tpu.dot_dimension_numbers<[1], [0], [0], [1], [0, 0, 1, 1], [], []>} : vector<32x256xbf16>, vector<256x128xbf16>, vector<32x128xf32> -> vector<32x128xf32>
    %465 = arith.addf %457, %464 : vector<32x128xf32>
    %c0_302 = arith.constant 0 : index
    %c17_303 = arith.constant 17 : index
    %c0_304 = arith.constant 0 : index
    %466 = vector.load %arg14[%c0_302, %c17_303, %c0_304] : memref<2x40x128xbf16, #tpu.memory_space<vmem>>, vector<2x16x128xbf16>
    %c0_305 = arith.constant 0 : index
    %c18_306 = arith.constant 18 : index
    %c0_307 = arith.constant 0 : index
    %467 = vector.load %arg14[%c0_305, %c18_306, %c0_307] : memref<2x40x128xbf16, #tpu.memory_space<vmem>>, vector<2x16x128xbf16>
    %468 = tpu.concatenate %466, %467 in 2 : vector<2x16x128xbf16>, vector<2x16x128xbf16> -> vector<2x16x256xbf16>
    %469 = vector.shape_cast %468 : vector<2x16x256xbf16> to vector<32x256xbf16>
    %c1_308 = arith.constant 1 : index
    %c512_309 = arith.constant 512 : index
    %c0_310 = arith.constant 0 : index
    %470 = vector.load %arg4[%c1_308, %c512_309, %c0_310] : memref<2x896x128xbf16, #tpu.memory_space<vmem>>, vector<1x256x128xbf16>
    %471 = vector.shape_cast %470 : vector<1x256x128xbf16> to vector<256x128xbf16>
    %cst_311 = arith.constant dense<0.000000e+00> : vector<32x128xf32>
    %472 = tpu.matmul %469, %471, %cst_311 {dimension_numbers = #tpu.dot_dimension_numbers<[1], [0], [0], [1], [0, 0, 1, 1], [], []>} : vector<32x256xbf16>, vector<256x128xbf16>, vector<32x128xf32> -> vector<32x128xf32>
    %473 = arith.addf %465, %472 : vector<32x128xf32>
    %c0_312 = arith.constant 0 : index
    %c19_313 = arith.constant 19 : index
    %c0_314 = arith.constant 0 : index
    %474 = vector.load %arg14[%c0_312, %c19_313, %c0_314] : memref<2x40x128xbf16, #tpu.memory_space<vmem>>, vector<2x16x128xbf16>
    %475 = vector.shape_cast %474 : vector<2x16x128xbf16> to vector<32x128xbf16>
    %c1_315 = arith.constant 1 : index
    %c768_316 = arith.constant 768 : index
    %c0_317 = arith.constant 0 : index
    %476 = vector.load %arg4[%c1_315, %c768_316, %c0_317] : memref<2x896x128xbf16, #tpu.memory_space<vmem>>, vector<1x128x128xbf16>
    %477 = vector.shape_cast %476 : vector<1x128x128xbf16> to vector<128x128xbf16>
    %cst_318 = arith.constant dense<0.000000e+00> : vector<32x128xf32>
    %478 = tpu.matmul %475, %477, %cst_318 {dimension_numbers = #tpu.dot_dimension_numbers<[1], [0], [0], [1], [0, 0, 1, 1], [], []>} : vector<32x128xbf16>, vector<128x128xbf16>, vector<32x128xf32> -> vector<32x128xf32>
    %479 = arith.addf %473, %478 : vector<32x128xf32>
    %c8_319 = arith.constant 8 : index
    %c0_320 = arith.constant 0 : index
    %c0_321 = arith.constant 0 : index
    %480 = vector.load %arg8[%c8_319, %c0_320, %c0_321] : memref<12x1x128xf32, #tpu.memory_space<vmem>>, vector<1x1x128xf32>
    %481 = vector.shape_cast %480 : vector<1x1x128xf32> to vector<1x128xf32>
    %482 = vector.broadcast %481 : vector<1x128xf32> to vector<32x128xf32>
    %483 = arith.mulf %479, %482 : vector<32x128xf32>
    %c8_322 = arith.constant 8 : index
    %c0_323 = arith.constant 0 : index
    %c0_324 = arith.constant 0 : index
    %484 = vector.load %arg9[%c8_322, %c0_323, %c0_324] : memref<12x1x128xf32, #tpu.memory_space<vmem>>, vector<1x1x128xf32>
    %485 = vector.shape_cast %484 : vector<1x1x128xf32> to vector<1x128xf32>
    %486 = vector.broadcast %485 : vector<1x128xf32> to vector<32x128xf32>
    %487 = arith.addf %483, %486 : vector<32x128xf32>
    %cst_325 = arith.constant 0.000000e+00 : f32
    %488 = vector.broadcast %cst_325 : f32 to vector<32x128xf32>
    %489 = arith.maximumf %487, %488 : vector<32x128xf32>
    %490 = vector.shape_cast %489 : vector<32x128xf32> to vector<2x16x128xf32>
    %491 = arith.truncf %490 : vector<2x16x128xf32> to vector<2x16x128xbf16>
    %c0_326 = arith.constant 0 : index
    %c16_327 = arith.constant 16 : index
    %c0_328 = arith.constant 0 : index
    %492 = vector.load %arg14[%c0_326, %c16_327, %c0_328] : memref<2x40x128xbf16, #tpu.memory_space<vmem>>, vector<2x16x128xbf16>
    tpu.vector_store %arg14[%c0_326, %c16_327, %c0_328], %491 {strides = array<i32>} : memref<2x40x128xbf16, #tpu.memory_space<vmem>>, vector<2x16x128xbf16>,
    %c0_329 = arith.constant 0 : index
    %c14_330 = arith.constant 14 : index
    %c0_331 = arith.constant 0 : index
    %493 = vector.load %arg14[%c0_329, %c14_330, %c0_331] : memref<2x40x128xbf16, #tpu.memory_space<vmem>>, vector<2x16x128xbf16>
    %c0_332 = arith.constant 0 : index
    %c15_333 = arith.constant 15 : index
    %c0_334 = arith.constant 0 : index
    %494 = vector.load %arg14[%c0_332, %c15_333, %c0_334] : memref<2x40x128xbf16, #tpu.memory_space<vmem>>, vector<2x16x128xbf16>
    %495 = tpu.concatenate %493, %494 in 2 : vector<2x16x128xbf16>, vector<2x16x128xbf16> -> vector<2x16x256xbf16>
    %496 = vector.shape_cast %495 : vector<2x16x256xbf16> to vector<32x256xbf16>
    %c2_335 = arith.constant 2 : index
    %c0_336 = arith.constant 0 : index
    %c0_337 = arith.constant 0 : index
    %497 = vector.load %arg5[%c2_335, %c0_336, %c0_337] : memref<3x640x128xbf16, #tpu.memory_space<vmem>>, vector<1x256x128xbf16>
    %498 = vector.shape_cast %497 : vector<1x256x128xbf16> to vector<256x128xbf16>
    %cst_338 = arith.constant dense<0.000000e+00> : vector<32x128xf32>
    %499 = tpu.matmul %496, %498, %cst_338 {dimension_numbers = #tpu.dot_dimension_numbers<[1], [0], [0], [1], [0, 0, 1, 1], [], []>} : vector<32x256xbf16>, vector<256x128xbf16>, vector<32x128xf32> -> vector<32x128xf32>
    %c0_339 = arith.constant 0 : index
    %c16_340 = arith.constant 16 : index
    %c0_341 = arith.constant 0 : index
    %500 = vector.load %arg14[%c0_339, %c16_340, %c0_341] : memref<2x40x128xbf16, #tpu.memory_space<vmem>>, vector<2x16x128xbf16>
    %c0_342 = arith.constant 0 : index
    %c17_343 = arith.constant 17 : index
    %c0_344 = arith.constant 0 : index
    %501 = vector.load %arg14[%c0_342, %c17_343, %c0_344] : memref<2x40x128xbf16, #tpu.memory_space<vmem>>, vector<2x16x128xbf16>
    %502 = tpu.concatenate %500, %501 in 2 : vector<2x16x128xbf16>, vector<2x16x128xbf16> -> vector<2x16x256xbf16>
    %503 = vector.shape_cast %502 : vector<2x16x256xbf16> to vector<32x256xbf16>
    %c2_345 = arith.constant 2 : index
    %c256_346 = arith.constant 256 : index
    %c0_347 = arith.constant 0 : index
    %504 = vector.load %arg5[%c2_345, %c256_346, %c0_347] : memref<3x640x128xbf16, #tpu.memory_space<vmem>>, vector<1x256x128xbf16>
    %505 = vector.shape_cast %504 : vector<1x256x128xbf16> to vector<256x128xbf16>
    %cst_348 = arith.constant dense<0.000000e+00> : vector<32x128xf32>
    %506 = tpu.matmul %503, %505, %cst_348 {dimension_numbers = #tpu.dot_dimension_numbers<[1], [0], [0], [1], [0, 0, 1, 1], [], []>} : vector<32x256xbf16>, vector<256x128xbf16>, vector<32x128xf32> -> vector<32x128xf32>
    %507 = arith.addf %499, %506 : vector<32x128xf32>
    %c0_349 = arith.constant 0 : index
    %c18_350 = arith.constant 18 : index
    %c0_351 = arith.constant 0 : index
    %508 = vector.load %arg14[%c0_349, %c18_350, %c0_351] : memref<2x40x128xbf16, #tpu.memory_space<vmem>>, vector<2x16x128xbf16>
    %509 = vector.shape_cast %508 : vector<2x16x128xbf16> to vector<32x128xbf16>
    %c2_352 = arith.constant 2 : index
    %c512_353 = arith.constant 512 : index
    %c0_354 = arith.constant 0 : index
    %510 = vector.load %arg5[%c2_352, %c512_353, %c0_354] : memref<3x640x128xbf16, #tpu.memory_space<vmem>>, vector<1x128x128xbf16>
    %511 = vector.shape_cast %510 : vector<1x128x128xbf16> to vector<128x128xbf16>
    %cst_355 = arith.constant dense<0.000000e+00> : vector<32x128xf32>
    %512 = tpu.matmul %509, %511, %cst_355 {dimension_numbers = #tpu.dot_dimension_numbers<[1], [0], [0], [1], [0, 0, 1, 1], [], []>} : vector<32x128xbf16>, vector<128x128xbf16>, vector<32x128xf32> -> vector<32x128xf32>
    %513 = arith.addf %507, %512 : vector<32x128xf32>
    %c9_356 = arith.constant 9 : index
    %c0_357 = arith.constant 0 : index
    %c0_358 = arith.constant 0 : index
    %514 = vector.load %arg8[%c9_356, %c0_357, %c0_358] : memref<12x1x128xf32, #tpu.memory_space<vmem>>, vector<1x1x128xf32>
    %515 = vector.shape_cast %514 : vector<1x1x128xf32> to vector<1x128xf32>
    %516 = vector.broadcast %515 : vector<1x128xf32> to vector<32x128xf32>
    %517 = arith.mulf %513, %516 : vector<32x128xf32>
    %c9_359 = arith.constant 9 : index
    %c0_360 = arith.constant 0 : index
    %c0_361 = arith.constant 0 : index
    %518 = vector.load %arg9[%c9_359, %c0_360, %c0_361] : memref<12x1x128xf32, #tpu.memory_space<vmem>>, vector<1x1x128xf32>
    %519 = vector.shape_cast %518 : vector<1x1x128xf32> to vector<1x128xf32>
    %520 = vector.broadcast %519 : vector<1x128xf32> to vector<32x128xf32>
    %521 = arith.addf %517, %520 : vector<32x128xf32>
    %cst_362 = arith.constant 0.000000e+00 : f32
    %522 = vector.broadcast %cst_362 : f32 to vector<32x128xf32>
    %523 = arith.maximumf %521, %522 : vector<32x128xf32>
    %524 = vector.shape_cast %523 : vector<32x128xf32> to vector<2x16x128xf32>
    %525 = arith.truncf %524 : vector<2x16x128xf32> to vector<2x16x128xbf16>
    %c0_363 = arith.constant 0 : index
    %c16_364 = arith.constant 16 : index
    %c0_365 = arith.constant 0 : index
    %526 = vector.load %arg14[%c0_363, %c16_364, %c0_365] : memref<2x40x128xbf16, #tpu.memory_space<vmem>>, vector<2x16x128xbf16>
    tpu.vector_store %arg14[%c0_363, %c16_364, %c0_365], %525 {strides = array<i32>} : memref<2x40x128xbf16, #tpu.memory_space<vmem>>, vector<2x16x128xbf16>,
    %c0_366 = arith.constant 0 : index
    %c15_367 = arith.constant 15 : index
    %c0_368 = arith.constant 0 : index
    %527 = vector.load %arg14[%c0_366, %c15_367, %c0_368] : memref<2x40x128xbf16, #tpu.memory_space<vmem>>, vector<2x16x128xbf16>
    %c0_369 = arith.constant 0 : index
    %c16_370 = arith.constant 16 : index
    %c0_371 = arith.constant 0 : index
    %528 = vector.load %arg14[%c0_369, %c16_370, %c0_371] : memref<2x40x128xbf16, #tpu.memory_space<vmem>>, vector<2x16x128xbf16>
    %529 = tpu.concatenate %527, %528 in 2 : vector<2x16x128xbf16>, vector<2x16x128xbf16> -> vector<2x16x256xbf16>
    %530 = vector.shape_cast %529 : vector<2x16x256xbf16> to vector<32x256xbf16>
    %c2_372 = arith.constant 2 : index
    %c0_373 = arith.constant 0 : index
    %c0_374 = arith.constant 0 : index
    %531 = vector.load %arg6[%c2_372, %c0_373, %c0_374] : memref<3x384x128xbf16, #tpu.memory_space<vmem>>, vector<1x256x128xbf16>
    %532 = vector.shape_cast %531 : vector<1x256x128xbf16> to vector<256x128xbf16>
    %cst_375 = arith.constant dense<0.000000e+00> : vector<32x128xf32>
    %533 = tpu.matmul %530, %532, %cst_375 {dimension_numbers = #tpu.dot_dimension_numbers<[1], [0], [0], [1], [0, 0, 1, 1], [], []>} : vector<32x256xbf16>, vector<256x128xbf16>, vector<32x128xf32> -> vector<32x128xf32>
    %c0_376 = arith.constant 0 : index
    %c17_377 = arith.constant 17 : index
    %c0_378 = arith.constant 0 : index
    %534 = vector.load %arg14[%c0_376, %c17_377, %c0_378] : memref<2x40x128xbf16, #tpu.memory_space<vmem>>, vector<2x16x128xbf16>
    %535 = vector.shape_cast %534 : vector<2x16x128xbf16> to vector<32x128xbf16>
    %c2_379 = arith.constant 2 : index
    %c256_380 = arith.constant 256 : index
    %c0_381 = arith.constant 0 : index
    %536 = vector.load %arg6[%c2_379, %c256_380, %c0_381] : memref<3x384x128xbf16, #tpu.memory_space<vmem>>, vector<1x128x128xbf16>
    %537 = vector.shape_cast %536 : vector<1x128x128xbf16> to vector<128x128xbf16>
    %cst_382 = arith.constant dense<0.000000e+00> : vector<32x128xf32>
    %538 = tpu.matmul %535, %537, %cst_382 {dimension_numbers = #tpu.dot_dimension_numbers<[1], [0], [0], [1], [0, 0, 1, 1], [], []>} : vector<32x128xbf16>, vector<128x128xbf16>, vector<32x128xf32> -> vector<32x128xf32>
    %539 = arith.addf %533, %538 : vector<32x128xf32>
    %c10_383 = arith.constant 10 : index
    %c0_384 = arith.constant 0 : index
    %c0_385 = arith.constant 0 : index
    %540 = vector.load %arg8[%c10_383, %c0_384, %c0_385] : memref<12x1x128xf32, #tpu.memory_space<vmem>>, vector<1x1x128xf32>
    %541 = vector.shape_cast %540 : vector<1x1x128xf32> to vector<1x128xf32>
    %542 = vector.broadcast %541 : vector<1x128xf32> to vector<32x128xf32>
    %543 = arith.mulf %539, %542 : vector<32x128xf32>
    %c10_386 = arith.constant 10 : index
    %c0_387 = arith.constant 0 : index
    %c0_388 = arith.constant 0 : index
    %544 = vector.load %arg9[%c10_386, %c0_387, %c0_388] : memref<12x1x128xf32, #tpu.memory_space<vmem>>, vector<1x1x128xf32>
    %545 = vector.shape_cast %544 : vector<1x1x128xf32> to vector<1x128xf32>
    %546 = vector.broadcast %545 : vector<1x128xf32> to vector<32x128xf32>
    %547 = arith.addf %543, %546 : vector<32x128xf32>
    %548 = arith.addf %547, %450 : vector<32x128xf32>
    %cst_389 = arith.constant 0.000000e+00 : f32
    %549 = vector.broadcast %cst_389 : f32 to vector<32x128xf32>
    %550 = arith.maximumf %548, %549 : vector<32x128xf32>
    %551 = vector.shape_cast %550 : vector<32x128xf32> to vector<2x16x128xf32>
    %cst_390 = arith.constant dense<0.000000e+00> : vector<2x128xf32>
    %552 = vector.multi_reduction <add>, %551, %cst_390 [1] : vector<2x16x128xf32> to vector<2x128xf32>
    %cst_391 = arith.constant 6.250000e-02 : f32
    %553 = vector.broadcast %cst_391 : f32 to vector<2x128xf32>
    %554 = arith.mulf %552, %553 : vector<2x128xf32>
    %c0_392 = arith.constant 0 : index
    %c0_393 = arith.constant 0 : index
    %555 = vector.load %arg13[%c0_392, %c0_393] : memref<2x128xf32, #tpu.memory_space<vmem>>, vector<2x128xf32>
    tpu.vector_store %arg13[%c0_392, %c0_393], %554 {strides = array<i32>} : memref<2x128xf32, #tpu.memory_space<vmem>>, vector<2x128xf32>,
    %c0_394 = arith.constant 0 : index
    %c0_395 = arith.constant 0 : index
    %556 = vector.load %arg10[%c0_394, %c0_395] : memref<128x128xf32, #tpu.memory_space<vmem>>, vector<128x128xf32>
    %cst_396 = arith.constant dense<0.000000e+00> : vector<2x128xf32>
    %557 = tpu.matmul %554, %556, %cst_396 {dimension_numbers = #tpu.dot_dimension_numbers<[1], [0], [0], [1], [0, 0, 1, 1], [], []>} : vector<2x128xf32>, vector<128x128xf32>, vector<2x128xf32> -> vector<2x128xf32>
    %c0_397 = arith.constant 0 : index
    %c0_398 = arith.constant 0 : index
    %558 = vector.load %arg11[%c0_397, %c0_398] : memref<1x128xf32, #tpu.memory_space<vmem>>, vector<1x128xf32>
    %559 = vector.broadcast %558 : vector<1x128xf32> to vector<2x128xf32>
    %560 = arith.addf %557, %559 : vector<2x128xf32>
    %561 = tpu.iota {dimensions = array<i32: 1>} : vector<2x128xi32>
    %c5_i32 = arith.constant 5 : i32
    %562 = vector.broadcast %c5_i32 : i32 to vector<2x128xi32>
    %563 = arith.cmpi slt, %561, %562 : vector<2x128xi32>
    %cst_399 = arith.constant -1.000000e+30 : f32
    %564 = vector.broadcast %cst_399 : f32 to vector<2x128xf32>
    %565 = arith.select %563, %560, %564 : vector<2x128xi1>, vector<2x128xf32>
    %cst_400 = arith.constant dense<0xFF800000> : vector<2xf32>
    %566 = vector.multi_reduction <maximumf>, %565, %cst_400 [1] : vector<2x128xf32> to vector<2xf32>
    %567 = vector.shape_cast %566 : vector<2xf32> to vector<2x1xf32>
    %568 = vector.broadcast %567 : vector<2x1xf32> to vector<2x128xf32>
    %569 = arith.subf %560, %568 : vector<2x128xf32>
    %570 = math.exp %569 : vector<2x128xf32>
    %cst_401 = arith.constant 0.000000e+00 : f32
    %571 = vector.broadcast %cst_401 : f32 to vector<2x128xf32>
    %572 = arith.select %563, %570, %571 : vector<2x128xi1>, vector<2x128xf32>
    %cst_402 = arith.constant dense<0.000000e+00> : vector<2xf32>
    %573 = vector.multi_reduction <add>, %572, %cst_402 [1] : vector<2x128xf32> to vector<2xf32>
    %574 = vector.shape_cast %573 : vector<2xf32> to vector<2x1xf32>
    %575 = math.log %574 : vector<2x1xf32>
    %576 = arith.addf %575, %567 : vector<2x1xf32>
    %577 = vector.broadcast %576 : vector<2x1xf32> to vector<2x128xf32>
    %578 = arith.subf %560, %577 : vector<2x128xf32>
    %c0_403 = arith.constant 0 : index
    %c0_404 = arith.constant 0 : index
    %579 = vector.load %arg12[%c0_403, %c0_404] : memref<2x128xf32, #tpu.memory_space<vmem>>, vector<2x128xf32>
    tpu.vector_store %arg12[%c0_403, %c0_404], %578 {strides = array<i32>} : memref<2x128xf32, #tpu.memory_space<vmem>>, vector<2x128xf32>,
    return
  }
  func.func @transform_0(%arg0: i32) -> (i32, i32, i32) {
    %c0_i32 = arith.constant 0 : i32
    %c0_i32_0 = arith.constant 0 : i32
    %c0_i32_1 = arith.constant 0 : i32
    return %arg0, %c0_i32, %c0_i32_0 : i32, i32, i32
  }
  func.func @transform_1(%arg0: i32) -> (i32, i32) {
    %c0_i32 = arith.constant 0 : i32
    %c0_i32_0 = arith.constant 0 : i32
    %c0_i32_1 = arith.constant 0 : i32
    return %c0_i32, %c0_i32_0 : i32, i32
  }
  func.func @transform_2(%arg0: i32) -> (i32, i32) {
    %c0_i32 = arith.constant 0 : i32
    %c0_i32_0 = arith.constant 0 : i32
    %c0_i32_1 = arith.constant 0 : i32
    return %c0_i32, %c0_i32_0 : i32, i32
  }
  func.func @transform_3(%arg0: i32) -> (i32, i32, i32) {
    %c0_i32 = arith.constant 0 : i32
    %c0_i32_0 = arith.constant 0 : i32
    %c0_i32_1 = arith.constant 0 : i32
    %c0_i32_2 = arith.constant 0 : i32
    return %c0_i32, %c0_i32_0, %c0_i32_1 : i32, i32, i32
  }
  func.func @transform_4(%arg0: i32) -> (i32, i32, i32) {
    %c0_i32 = arith.constant 0 : i32
    %c0_i32_0 = arith.constant 0 : i32
    %c0_i32_1 = arith.constant 0 : i32
    %c0_i32_2 = arith.constant 0 : i32
    return %c0_i32, %c0_i32_0, %c0_i32_1 : i32, i32, i32
  }
  func.func @transform_5(%arg0: i32) -> (i32, i32, i32) {
    %c0_i32 = arith.constant 0 : i32
    %c0_i32_0 = arith.constant 0 : i32
    %c0_i32_1 = arith.constant 0 : i32
    %c0_i32_2 = arith.constant 0 : i32
    return %c0_i32, %c0_i32_0, %c0_i32_1 : i32, i32, i32
  }
  func.func @transform_6(%arg0: i32) -> (i32, i32, i32) {
    %c0_i32 = arith.constant 0 : i32
    %c0_i32_0 = arith.constant 0 : i32
    %c0_i32_1 = arith.constant 0 : i32
    %c0_i32_2 = arith.constant 0 : i32
    return %c0_i32, %c0_i32_0, %c0_i32_1 : i32, i32, i32
  }
  func.func @transform_7(%arg0: i32) -> (i32, i32, i32) {
    %c0_i32 = arith.constant 0 : i32
    %c0_i32_0 = arith.constant 0 : i32
    %c0_i32_1 = arith.constant 0 : i32
    %c0_i32_2 = arith.constant 0 : i32
    return %c0_i32, %c0_i32_0, %c0_i32_1 : i32, i32, i32
  }
  func.func @transform_8(%arg0: i32) -> (i32, i32, i32) {
    %c0_i32 = arith.constant 0 : i32
    %c0_i32_0 = arith.constant 0 : i32
    %c0_i32_1 = arith.constant 0 : i32
    %c0_i32_2 = arith.constant 0 : i32
    return %c0_i32, %c0_i32_0, %c0_i32_1 : i32, i32, i32
  }
  func.func @transform_9(%arg0: i32) -> (i32, i32) {
    %c0_i32 = arith.constant 0 : i32
    %c0_i32_0 = arith.constant 0 : i32
    %c0_i32_1 = arith.constant 0 : i32
    return %c0_i32, %c0_i32_0 : i32, i32
  }
  func.func @transform_10(%arg0: i32) -> (i32, i32) {
    %c0_i32 = arith.constant 0 : i32
    %c0_i32_0 = arith.constant 0 : i32
    %c0_i32_1 = arith.constant 0 : i32
    return %c0_i32, %c0_i32_0 : i32, i32
  }
  func.func @transform_11(%arg0: i32) -> (i32, i32) {
    %c0_i32 = arith.constant 0 : i32
    %c0_i32_0 = arith.constant 0 : i32
    return %arg0, %c0_i32 : i32, i32
  }
  func.func @transform_12(%arg0: i32) -> (i32, i32) {
    %c0_i32 = arith.constant 0 : i32
    %c0_i32_0 = arith.constant 0 : i32
    return %arg0, %c0_i32 : i32, i32
  }
}

</mosaic_0001>

<bundles_post_ra>
// kernel: resnet_forward.1
= control target key start
LH: loop header
LB: loop body
LE: loop exit
PB: predicated region body
PF: predicated region fallthrough
CT: control target
= control target key end

     0   :  { %18 = vsyncpa [#allocation4], 0  ;;  %s10751_s0 = inlined_call_operand.vmem [shape: f32[2,32,4], index: 0, kind: input, shape index: {}]   ;;  %s10752_s1 = inlined_call_operand.vmem [shape: f32[28,128], index: 1, kind: input, shape index: {}]   ;;  %s10753_s2 = inlined_call_operand.hbm [shape: f32[4,128], index: 2, kind: input, shape index: {}]   ;;  %s10754_s3 = inlined_call_operand.hbm [shape: bf16[2,896,128], index: 3, kind: input, shape index: {}]   ;;  %s10755_s4 = inlined_call_operand.hbm [shape: bf16[3,640,128], index: 4, kind: input, shape index: {}]   ;;  %s10756_s5 = inlined_call_operand.hbm [shape: bf16[3,384,128], index: 5, kind: input, shape index: {}]   ;;  %s10757_s6 = inlined_call_operand.vmem [shape: bf16[2,128,128], index: 6, kind: input, shape index: {}]   ;;  %s10758_s7 = inlined_call_operand.hbm [shape: f32[12,1,128], index: 7, kind: input, shape index: {}]   ;;  %s10759_s8 = inlined_call_operand.hbm [shape: f32[12,1,128], index: 8, kind: input, shape index: {}]   ;;  %s10760_s9 = inlined_call_operand.hbm [shape: f32[128,128], index: 9, kind: input, shape index: {}]   ;;  %s10761_s10 = inlined_call_operand.vmem [shape: f32[1,128], index: 10, kind: input, shape index: {}]   ;;  %s10762_s11 = inlined_call_operand.hbm [shape: f32[2,128], index: 11, kind: output, shape index: {0}]   ;;  %s10763_s12 = inlined_call_operand.hbm [shape: f32[2,128], index: 12, kind: output, shape index: {1}]  }
   0x1   :  { %19 = vsyncpa [#allocation7], 0 }
   0x2   :  { %20 = vsyncpa [#allocation10], 0 }
   0x3   :  { %21 = vsyncpa [#allocation13], 0 }
   0x4   :  { %22 = vsyncpa [#allocation5], 0 }
   0x5   :  { %23 = vsyncpa [#allocation17], 0  ;;  %s9333_s21 = smov [#allocation6]   ;;  %s9123_s25 = scalar_lea.hbm %s10754_s3, 14336 }
   0x6   :  { %s43_s22 = sshll.u32 %s9333_s21, 4  ;;  %p9124_p0 = scmp.ne.s32.totalorder %s10754_s3, %s9123_s25  ;;  %s44_s22 = int_to_ptr.vmem [resolvable:$true] %s43_s22 }
   0x7   :  { %p9127_p1 = scmp.lt.u32.totalorder %s9123_s25, %s10754_s3 }
   0x9   :  { %p9129_p2 = pnand %p9127_p1, %p9124_p0 }
   0xb   :  { %9132 = shalt.err (!%p9129_p2)
}
   0xc   :  { %s9133_s30 = scalar_lea.vmem %s44_s22, 14336  ;;  %p9138_p4 = scmp.lt.s32.totalorder %s44_s22, %s44_s22 }
   0xd   :  { %p9134_p3 = scmp.ne.s32.totalorder %s44_s22, %s9133_s30  ;;  %p9139_p5 = scmp.lt.s32.totalorder %s9133_s30, %s9133_s30 }
   0xf   :  { %p9140_p6 = por %p9139_p5, %p9138_p4 }
  0x11   :  { %p9141_p7 = pnand %p9140_p6, %p9134_p3 }
  0x13   :  { %9144 = shalt.err (!%p9141_p7)
}
  0x14   :  { %s9334_s13 = smov 64   ;;  %s9335_s14 = smov 4  }
  0x15   :  { %49 = dma.hbm_to_vmem [thread:$0]  %s10754_s3, 14336, %s44_s22, [#allocation7], %s9334_s13, %s9334_s13, %s9335_s14  }
  0x16   :  { %s9336_s17 = smov [#allocation9]   ;;  %s9145_s21 = scalar_lea.hbm %s10756_s5, 9216 }
  0x17   :  { %s67_s18 = sshll.u32 %s9336_s17, 4  ;;  %p9146_p8 = scmp.ne.s32.totalorder %s10756_s5, %s9145_s21  ;;  %s68_s18 = int_to_ptr.vmem [resolvable:$true] %s67_s18 }
  0x18   :  { %p9149_p9 = scmp.lt.u32.totalorder %s9145_s21, %s10756_s5 }
  0x1a   :  { %p9151_p10 = pnand %p9149_p9, %p9146_p8 }
  0x1c   :  { %9154 = shalt.err (!%p9151_p10)
}
  0x1d   :  { %s9155_s27 = scalar_lea.vmem %s68_s18, 9216  ;;  %p9160_p12 = scmp.lt.s32.totalorder %s68_s18, %s68_s18 }
  0x1e   :  { %p9156_p11 = scmp.ne.s32.totalorder %s68_s18, %s9155_s27  ;;  %p9161_p13 = scmp.lt.s32.totalorder %s9155_s27, %s9155_s27 }
  0x20   :  { %p9162_p0 = por %p9161_p13, %p9160_p12 }
  0x22   :  { %p9163_p1 = pnand %p9162_p0, %p9156_p11 }
  0x24   :  { %9166 = shalt.err (!%p9163_p1)
}
  0x25   :  { %73 = dma.hbm_to_vmem [thread:$0]  %s10756_s5, 9216, %s68_s18, [#allocation10], %s9334_s13, %s9334_s13, %s9335_s14  }
  0x26   :  { %s9337_s28 = smov [#allocation12]   ;;  %s9338_s30 = smov [#allocation3]  }
  0x27   :  { %s93_s29 = sshll.u32 %s9337_s28, 4  ;;  %s34_s15 = sshll.u32 %s9338_s30, 4  ;;  %s94_s29 = int_to_ptr.vmem [resolvable:$true] %s93_s29  ;;  %s35_s15 = int_to_ptr.vmem [resolvable:$true] %s34_s15 }
  0x28   :  { %s9167_s19 = scalar_lea.hbm %s10759_s8, 192 }
  0x29   :  { %p9168_p2 = scmp.ne.s32.totalorder %s10759_s8, %s9167_s19  ;;  %p9171_p3 = scmp.lt.u32.totalorder %s9167_s19, %s10759_s8 }
  0x2b   :  { %p9173_p4 = pnand %p9171_p3, %p9168_p2 }
  0x2d   :  { %9176 = shalt.err (!%p9173_p4)
}
  0x2e   :  { %s9177_s5 = scalar_lea.vmem %s94_s29, 192  ;;  %p9182_p6 = scmp.lt.s32.totalorder %s94_s29, %s94_s29 }
  0x2f   :  { %p9178_p5 = scmp.ne.s32.totalorder %s94_s29, %s9177_s5  ;;  %p9183_p7 = scmp.lt.s32.totalorder %s9177_s5, %s9177_s5 }
  0x31   :  { %p9184_p8 = por %p9183_p7, %p9182_p6 }
  0x33   :  { %p9185_p9 = pnand %p9184_p8, %p9178_p5 }
  0x35   :  { %9188 = shalt.err (!%p9185_p9)
}
  0x36   :  { %s9339_s18 = smov 16   ;;  %s9340_s25 = smov 1  }
  0x37   :  { %99 = dma.hbm_to_vmem [thread:$0]  %s10759_s8, 192, %s94_s29, [#allocation13], %s9339_s18, %s9339_s18, %s9340_s25  }
  0x38   :  { %s9189_s28 = scalar_lea.hbm %s10753_s2, 64 }
  0x39   :  { %p9190_p10 = scmp.ne.s32.totalorder %s10753_s2, %s9189_s28  ;;  %p9193_p11 = scmp.lt.u32.totalorder %s9189_s28, %s10753_s2 }
  0x3b   :  { %p9195_p12 = pnand %p9193_p11, %p9190_p10 }
  0x3d   :  { %9198 = shalt.err (!%p9195_p12)
}
  0x3e   :  { %s9199_s20 = scalar_lea.vmem %s35_s15, 64  ;;  %p9204_p0 = scmp.lt.s32.totalorder %s35_s15, %s35_s15 }
  0x3f   :  { %p9200_p13 = scmp.ne.s32.totalorder %s35_s15, %s9199_s20  ;;  %p9205_p1 = scmp.lt.s32.totalorder %s9199_s20, %s9199_s20 }
  0x41   :  { %p9206_p2 = por %p9205_p1, %p9204_p0 }
  0x43   :  { %p9207_p3 = pnand %p9206_p2, %p9200_p13 }
  0x45   :  { %9210 = shalt.err (!%p9207_p3)
}
  0x46   :  { %37 = dma.hbm_to_vmem [thread:$0]  %s10753_s2, 64, %s35_s15, [#allocation4]  }
  0x47   :  { %s9341_s21 = smov [#allocation8]   ;;  %s9342_s24 = smov [#allocation11]  }
  0x48   :  { %s55_s23 = sshll.u32 %s9341_s21, 4  ;;  %s81_s5 = sshll.u32 %s9342_s24, 4  ;;  %s56_s23 = int_to_ptr.vmem [resolvable:$true] %s55_s23  ;;  %s9477_s5 = int_to_ptr.vmem [resolvable:$true] %s81_s5 }
  0x49   :  { %s9211_s3 = scalar_lea.hbm %s10755_s4, 15360 }
  0x4a   :  { %p9212_p4 = scmp.ne.s32.totalorder %s10755_s4, %s9211_s3  ;;  %p9215_p5 = scmp.lt.u32.totalorder %s9211_s3, %s10755_s4 }
  0x4c   :  { %p9217_p6 = pnand %p9215_p5, %p9212_p4 }
  0x4e   :  { %9220 = shalt.err (!%p9217_p6)
}
  0x4f   :  { %s9221_s2 = scalar_lea.vmem %s56_s23, 15360  ;;  %p9226_p8 = scmp.lt.s32.totalorder %s56_s23, %s56_s23 }
  0x50   :  { %p9222_p7 = scmp.ne.s32.totalorder %s56_s23, %s9221_s2  ;;  %p9227_p9 = scmp.lt.s32.totalorder %s9221_s2, %s9221_s2 }
  0x52   :  { %p9228_p10 = por %p9227_p9, %p9226_p8 }
  0x54   :  { %p9229_p11 = pnand %p9228_p10, %p9222_p7 }
  0x56   :  { %9232 = shalt.err (!%p9229_p11)
}
  0x57   :  { %61 = dma.hbm_to_vmem [thread:$0]  %s10755_s4, 15360, %s56_s23, [#allocation7], %s9334_s13, %s9334_s13, %s9335_s14  }
  0x58   :  { %s9233_s8 = scalar_lea.hbm %s10758_s7, 192 }
  0x59   :  { %p9234_p12 = scmp.ne.s32.totalorder %s10758_s7, %s9233_s8  ;;  %p9237_p13 = scmp.lt.u32.totalorder %s9233_s8, %s10758_s7 }
  0x5b   :  { %p9239_p0 = pnand %p9237_p13, %p9234_p12 }
  0x5d   :  { %9242 = shalt.err (!%p9239_p0)
}
  0x5e   :  { %s9243_s27 = scalar_lea.vmem %s9477_s5, 192  ;;  %p9248_p2 = scmp.lt.s32.totalorder %s9477_s5, %s9477_s5 }
  0x5f   :  { %p9244_p1 = scmp.ne.s32.totalorder %s9477_s5, %s9243_s27  ;;  %p9249_p3 = scmp.lt.s32.totalorder %s9243_s27, %s9243_s27 }
  0x61   :  { %p9250_p4 = por %p9249_p3, %p9248_p2 }
  0x63   :  { %p9251_p5 = pnand %p9250_p4, %p9244_p1 }
  0x65   :  { %9254 = shalt.err (!%p9251_p5)
}
  0x66   :  { %87 = dma.hbm_to_vmem [thread:$0]  %s10758_s7, 192, %s9477_s5, [#allocation10], %s9339_s18, %s9339_s18, %s9340_s25  }
  0x67   :  { %s9343_s14 = smov [#allocation14]   ;;  %s9255_s28 = scalar_lea.hbm %s10760_s9, 2048 }
  0x68   :  { %s105_s23 = sshll.u32 %s9343_s14, 4  ;;  %p9256_p6 = scmp.ne.s32.totalorder %s10760_s9, %s9255_s28  ;;  %s106_s23 = int_to_ptr.vmem [resolvable:$true] %s105_s23 }
  0x69   :  { %p9259_p7 = scmp.lt.u32.totalorder %s9255_s28, %s10760_s9 }
  0x6b   :  { %p9261_p8 = pnand %p9259_p7, %p9256_p6 }
  0x6d   :  { %9264 = shalt.err (!%p9261_p8)
}
  0x6e   :  { %s9265_s17 = scalar_lea.vmem %s106_s23, 2048  ;;  %p9270_p10 = scmp.lt.s32.totalorder %s106_s23, %s106_s23 }
  0x6f   :  { %p9266_p9 = scmp.ne.s32.totalorder %s106_s23, %s9265_s17  ;;  %p9271_p11 = scmp.lt.s32.totalorder %s9265_s17, %s9265_s17 }
  0x71   :  { %p9272_p12 = por %p9271_p11, %p9270_p10 }
  0x73   :  { %p9273_p13 = pnand %p9272_p12, %p9266_p9 }
  0x75   :  { %9276 = shalt.err (!%p9273_p13)
}
  0x76   :  { %s9344_s7 = smov 128   ;;  %s9345_s18 = smov 8  }
  0x77   :  { %111 = dma.hbm_to_vmem [thread:$0]  %s10760_s9, 2048, %s106_s23, [#allocation13], %s9344_s7, %s9344_s7, %s9345_s18  }
  0x78   :  { %9321 = dma.done.wait [#allocation4], 64  }
  0x79   :  { %9322 = vsyncadd [#allocation4], 4294967232 }
  0x7a   :  { %9323 = dma.done.wait [#allocation7], 29696  }
  0x7b   :  { %9324 = vsyncadd [#allocation7], 4294937600 }
  0x7c   :  { %9325 = dma.done.wait [#allocation10], 9408  }
  0x7d   :  { %9326 = vsyncadd [#allocation10], 4294957888 }
  0x7e   :  { %9327 = dma.done.wait [#allocation13], 2240  }
  0x7f   :  { %9328 = vsyncadd [#allocation13], 4294965056  ;;  %v10766_v0 = vmov 2   ;;  %v10764_v1 = vmov 1   ;;  %v10768_v2 = vmov 0   ;;  %v290_v3 = vld [vmem:[%s10751_s0 + $0x5] sm:$0xff] }
  0x80   :  { %8651 = vset.pattern.permute.xlu0 %v10766_v0  ;;  %8650 = vset.pattern.permute.xlu1 %v10764_v1  ;;  %137 = vst [vmem:[#allocation2 + $0x4] sm:$0xf] %v10768_v2  ;;  %139 = vst [vmem:[#allocation2 + $0x18] sm:$0xf] %v10768_v2  ;;  %v415_v4 = vld [vmem:[%s10751_s0 + $0xe] sm:$0xff]  ;;  %v10770_v6 = vmov 3  }
  0x81   :  { %140 = vst [vmem:[#allocation2 + $0x10] sm:$0xf] %v10768_v2  ;;  %141 = vst [vmem:[#allocation2 + $0x24] sm:$0xf] %v10768_v2  ;;  %358 = vperm.xlu0 %8651, %v290_v3   ;;  %329 = vperm.xlu1 %8650, %v290_v3   ;;  %v9541_v5 = vld [vmem:[%s10751_s0 + $0xd] sm:$0xff]  ;;  %v292_v14 = vld [vmem:[%s10751_s0 + $0x25] sm:$0xff] }
  0x82   :  { %v538_v7 = vld [vmem:[%s10751_s0 + $0x7] sm:$0xff]  ;;  %v9558_v9 = vld [vmem:[%s10751_s0 + $0x10] sm:$0xff]  ;;  %v9663_v29 = vld [vmem:[%s10752_s1 + $0x1] ss:$0 sm:$0xff]  ;;  %vm1162_vm0 = vsmask.f32 7424 }
  0x83   :  { %v414_v8 = vld [vmem:[%s10751_s0 + $0x6] sm:$0xff]  ;;  %v9565_v10 = vld [vmem:[%s10751_s0 + $0x2e] sm:$0xff]  ;;  %v9668_v30 = vld [vmem:[%s10752_s1] ss:$0 sm:$0xff]  ;;  %vm1193_vm1 = vcmask 1044480   ;;  %vm1620_vm2 = vcmask 1042432  }
  0x84   :  { %v9571_v11 = vld [vmem:[%s10751_s0 + $0x2f] sm:$0xff]  ;;  %v9594_v15 = vld [vmem:[%s10751_s0 + $0x26] sm:$0xff]  ;;  %v9674_v31 = vld [vmem:[%s10752_s1 + $0x2] ss:$0 sm:$0xff]  ;;  %vm1621_vm3 = vcmask 1046532   ;;  %vm9351_vm13 = vmmov 0  }
  0x85   :  { %486 = vperm.xlu0 %8651, %v415_v4   ;;  %333 = vperm.xlu1 %8650, %v9541_v5   ;;  %v9577_v12 = vld [vmem:[%s10751_s0 + $0x30] sm:$0xff]  ;;  %v9609_v17 = vld [vmem:[%s10751_s0 + $0x27] sm:$0xff]  ;;  %v9711_v49 = vld [vmem:[%s10752_s1 + $0x3] ss:$0 sm:$0xff]  ;;  %vm1945_vm5 = vsmask.f32 3328 }
  0x86   :  { %v539_v13 = vld [vmem:[%s10751_s0 + $0xf] sm:$0xff]  ;;  %v9725_v53 = vld [vmem:[%s10752_s1 + $0x4] ss:$0 sm:$0xff]  ;;  %v9741_v59 = vld [vmem:[%s10752_s1 + $0x6] ss:$0 sm:$0xff]  ;;  %vm7070_vm14 = vcmask 1041409  }
  0x87   :  { %v9602_v16 = vld [vmem:[%s10751_s0 + $0x11] sm:$0xff]  ;;  %v144_v19 = vld [vmem:[%s10751_s0 + $0x28] sm:$0xff]  ;;  %v9746_v60 = vld [vmem:[%s10752_s1 + $0x5] ss:$0 sm:$0xff]  ;;  %vm1946_vm6 = vsmask.f32 7440 }
  0x88   :  { %v9615_v18 = vld [vmem:[%s10751_s0 + $0x12] sm:$0xff]  ;;  %v142_v20 = vld [vmem:[%s10751_s0 + $0x8] sm:$0xff]  ;;  %v9756_v63 = vld [vmem:[%s10752_s1 + $0x7] ss:$0 sm:$0xff]  ;;  %vm1850_vm8 = vsmask.f32 4352 }
  0x89   :  { %8657 = vset.pattern.permute.xlu0 %v10768_v2  ;;  %8652 = vset.pattern.permute.xlu1 %v10766_v0  ;;  %v963_v21 = vld [vmem:[%s10751_s0 + $0x13] sm:$0xff]  ;;  %v714_v24 = vld [vmem:[%s10751_s0 + $0x9] sm:$0xff]  ;;  %v9751_v62 = vld [vmem:[%s10752_s1 + $0x8] ss:$0 sm:$0xff]  ;;  %vm2521_vm9 = vsmask.f32 5376 }
  0x8a   :  { %297 = vperm.xlu0 %8657, %v290_v3   ;;  %362 = vperm.xlu1 %8652, %v9541_v5   ;;  %v293_v22 = vld [vmem:[%s10751_s0 + $0x2d] sm:$0xff]  ;;  %vm10251_vm4 = vmor %vm1620_vm2, %vm1621_vm3  ;;  %vm3287_vm10 = vsmask.f32 2304  ;;  %vm3288_vm11 = vsmask.f32 6416  ;;  %s9353_s28 = smov [#allocation16]  }
  0x8b   :  { %v717_v23 = vld [vmem:[%s10751_s0 + $0x31] sm:$0xff]  ;;  %v9679_v32 = vld [vmem:[%s10751_s0 + $0x29] sm:$0xff]  ;;  %vm10271_vm7 = vmor %vm1945_vm5, %vm1946_vm6  ;;  %s7203_s30 = sshll.u32 %s9353_s28, 4  ;;  %s7204_s30 = int_to_ptr.vmem [resolvable:$true] %s7203_s30 }
  0x8c   :  { %v841_v39 = vld [vmem:[%s10751_s0 + $0x32] sm:$0xff]  ;;  %v9718_v51 = vld [vmem:[%s10751_s0 + $0x2a] sm:$0xff]  ;;  %vm10412_vm12 = vmor %vm3287_vm10, %vm3288_vm11  ;;  %p9282_p1 = scmp.lt.s32.totalorder %s7204_s30, %s7204_s30 }
  0x8d   :  { %v964_v46 = vld [vmem:[%s10751_s0 + $0x2b] sm:$0xff] }
  0x8e   :  { %302 = vperm.xlu0 %8657, %v9541_v5   ;;  %8653 = vset.pattern.permute.xlu1 %v10770_v6  ;;  %v838_v54 = vld [vmem:[%s10751_s0 + $0xa] sm:$0xff] }
  0x8f   :  { %387 = vperm.xlu1 %8653, %v290_v3  }
  0x92   :  { %545 = vperm.xlu0 %8657, %v538_v7  }
  0x93   :  { %8654 = vset.pattern.permute.xlu1 %v10768_v2 }
  0x94   :  { %421 = vperm.xlu1 %8654, %v414_v8  }
  0x96   :  { %154 = vperm.xlu0 %8657, %v9558_v9  }
  0x98   :  { %426 = vperm.xlu1 %8654, %v415_v4  }
  0x9a   :  { %436 = vperm.xlu0 %8657, %v9565_v10  }
  0x9c   :  { %8655 = vset.pattern.permute.xlu1 %v10764_v1 }
  0x9d   :  { %457 = vperm.xlu1 %8655, %v415_v4  }
  0x9e   :  { %560 = vperm.xlu0 %8657, %v9571_v11  }
  0xa1   :  { %8656 = vset.pattern.permute.xlu1 %v10766_v0 }
  0xa2   :  { %482 = vperm.xlu1 %8656, %v414_v8   ;;  %164 = vperm.xlu0 %8657, %v9577_v12  }
  0xa6   :  { %8658 = vset.pattern.permute.xlu1 %v10770_v6  ;;  %8676 = vset.pattern.permute.xlu0 %v10764_v1 }
  0xa7   :  { %511 = vperm.xlu1 %8658, %v414_v8   ;;  %453 = vperm.xlu0 %8676, %v414_v8  }
  0xab   :  { %515 = vperm.xlu1 %8658, %v415_v4   ;;  %581 = vperm.xlu0 %8676, %v539_v13  }
  0xaf   :  { %8659 = vset.pattern.permute.xlu1 %v10768_v2  ;;  %337 = vperm.xlu0 %8676, %v292_v14  }
  0xb0   :  { %550 = vperm.xlu1 %8659, %v539_v13  }
  0xb3   :  { %185 = vperm.xlu0 %8676, %v9558_v9  }
  0xb4   :  { %8660 = vset.pattern.permute.xlu1 %v10764_v1 }
  0xb5   :  { %577 = vperm.xlu1 %8660, %v538_v7  }
  0xb7   :  { %461 = vperm.xlu0 %8676, %v9594_v15  }
  0xb9   :  { %8661 = vset.pattern.permute.xlu1 %v10766_v0 }
  0xba   :  { %606 = vperm.xlu1 %8661, %v538_v7  }
  0xbb   :  { %757 = vperm.xlu0 %8676, %v9602_v16  }
  0xbe   :  { %610 = vperm.xlu1 %8661, %v539_v13  }
  0xbf   :  { %585 = vperm.xlu0 %8676, %v9609_v17  }
  0xc2   :  { %8662 = vset.pattern.permute.xlu1 %v10770_v6 }
  0xc3   :  { %639 = vperm.xlu1 %8662, %v539_v13   ;;  %881 = vperm.xlu0 %8676, %v9615_v18  }
  0xc7   :  { %8663 = vset.pattern.permute.xlu1 %v10768_v2  ;;  %189 = vperm.xlu0 %8676, %v144_v19  }
  0xc8   :  { %149 = vperm.xlu1 %8663, %v142_v20  }
  0xcb   :  { %1005 = vperm.xlu0 %8676, %v963_v21  }
  0xcc   :  { %307 = vperm.xlu1 %8663, %v292_v14  }
  0xcf   :  { %8678 = vset.pattern.permute.xlu0 %v10770_v6 }
  0xd0   :  { %391 = vperm.xlu0 %8678, %v9541_v5   ;;  %312 = vperm.xlu1 %8663, %v293_v22  }
  0xd4   :  { %635 = vperm.xlu0 %8678, %v538_v7   ;;  %8664 = vset.pattern.permute.xlu1 %v10764_v1 }
  0xd5   :  { %341 = vperm.xlu1 %8664, %v293_v22  }
  0xd8   :  { %395 = vperm.xlu0 %8678, %v292_v14  }
  0xd9   :  { %181 = vperm.xlu1 %8664, %v142_v20  }
  0xdc   :  { %243 = vperm.xlu0 %8678, %v9558_v9  }
  0xdd   :  { %8665 = vset.pattern.permute.xlu1 %v10766_v0 }
  0xde   :  { %366 = vperm.xlu1 %8665, %v292_v14  }
  0xe0   :  { %519 = vperm.xlu0 %8678, %v9594_v15  }
  0xe2   :  { %210 = vperm.xlu1 %8665, %v142_v20  }
  0xe4   :  { %815 = vperm.xlu0 %8678, %v9602_v16  }
  0xe6   :  { %214 = vperm.xlu1 %8665, %v9558_v9  }
  0xe8   :  { %643 = vperm.xlu0 %8678, %v9609_v17  }
  0xea   :  { %8666 = vset.pattern.permute.xlu1 %v10770_v6 }
  0xeb   :  { %399 = vperm.xlu1 %8666, %v293_v22  }
  0xec   :  { %939 = vperm.xlu0 %8678, %v9615_v18  }
  0xef   :  { %239 = vperm.xlu1 %8666, %v142_v20   ;;  %v9777_v20 = vld [vmem:[#allocation3] ss:$0 sm:$0xff] }
  0xf0   :  { %247 = vperm.xlu0 %8678, %v144_v19   ;;  %v9107_v19 = vld [vmem:[%s10751_s0 + $0x2f] sm:$0xff] }
  0xf3   :  { %8667 = vset.pattern.permute.xlu1 %v10768_v2 }
  0xf4   :  { %1063 = vperm.xlu0 %8678, %v963_v21   ;;  %431 = vperm.xlu1 %8667, %v9594_v15  }
  0xf8   :  { %823 = vperm.xlu0 %8678, %v717_v23   ;;  %721 = vperm.xlu1 %8667, %v714_v24  }
  0xfc   :  { %8685 = vset.pattern.permute.xlu0 %v10766_v0  ;;  %726 = vperm.xlu1 %8667, %v9602_v16  }
  0xfd   :  { %370 = vperm.xlu0 %8685, %v293_v22  }
 0x100   :  { %v330_v25 = vpop.permute.xlu1 %329  ;;  %8668 = vset.pattern.permute.xlu1 %v10764_v1  ;;  %v359_v26 = vpop.permute.xlu0 %358 }
 0x101   :  { %465 = vperm.xlu1 %8668, %v9565_v10   ;;  %494 = vperm.xlu0 %8685, %v9565_v10   ;;  %v348_v35 = vmul.f32 %v9663_v29, %v330_v25  ;;  %v377_v36 = vmul.f32 %v9674_v31, %v359_v26 }
 0x104   :  { %v9656_v27 = vpop.permute.xlu1 %333  ;;  %v9658_v28 = vpop.permute.xlu0 %486 }
 0x105   :  { %753 = vperm.xlu1 %8668, %v714_v24   ;;  %618 = vperm.xlu0 %8685, %v9571_v11  }
 0x109   :  { %v298_v33 = vpop.permute.xlu0 %297  ;;  %v9681_v34 = vpop.permute.xlu1 %362  ;;  %8669 = vset.pattern.permute.xlu1 %v10766_v0  ;;  %222 = vperm.xlu0 %8685, %v9577_v12  }
 0x10a   :  { %v319_v37 = vmul.f32 %v9668_v30, %v298_v33  ;;  %490 = vperm.xlu1 %8669, %v9594_v15   ;;  %v9770_v15 = vld [vmem:[%s10751_s0 + $0x33] sm:$0xff] }
 0x10c   :  { %v352_v38 = vadd.f32 %v348_v35, %v319_v37 }
 0x10d   :  { %v9692_v40 = vpop.permute.xlu0 %302  ;;  %790 = vperm.xlu0 %8685, %v9679_v32  }
 0x10e   :  { %v381_v41 = vadd.f32 %v377_v36, %v352_v38  ;;  %v388_v42 = vpop.permute.xlu1 %387  ;;  %782 = vperm.xlu1 %8669, %v714_v24  }
 0x10f   :  { %v406_v55 = vmul.f32 %v9711_v49, %v388_v42 }
 0x111   :  { %v546_v43 = vpop.permute.xlu0 %545  ;;  %918 = vperm.xlu0 %8685, %v841_v39   ;;  %v410_v61 = vadd.f32 %v406_v55, %v381_v41  ;;  %v320_v55 = vmul.f32 %v9668_v30, %v9692_v40 }
 0x112   :  { %786 = vperm.xlu1 %8669, %v9602_v16   ;;  %v567_v12 = vmul.f32 %v9751_v62, %v546_v43 }
 0x113   :  { %v422_v44 = vpop.permute.xlu1 %421 }
 0x114   :  { %v443_v58 = vmul.f32 %v9725_v53, %v422_v44 }
 0x115   :  { %v9696_v45 = vpop.permute.xlu0 %154  ;;  %8689 = vset.pattern.permute.xlu0 %v10768_v2 }
 0x116   :  { %8670 = vset.pattern.permute.xlu1 %v10770_v6  ;;  %736 = vperm.xlu0 %8689, %v717_v23   ;;  %v447_v5 = vadd.f32 %v443_v58, %v410_v61  ;;  %v172_v25 = vmul.f32 %v9777_v20, %v9696_v45  ;;  %v9822_v61 = vld [vmem:[%s10751_s0 + $0xb] sm:$0xff] }
 0x117   :  { %v9703_v47 = vpop.permute.xlu1 %426  ;;  %523 = vperm.xlu1 %8670, %v9565_v10  }
 0x119   :  { %v9706_v48 = vpop.permute.xlu0 %436 }
 0x11a   :  { %979 = vperm.xlu0 %8689, %v964_v46  }
 0x11b   :  { %811 = vperm.xlu1 %8670, %v714_v24   ;;  %v9783_v24 = vld [vmem:[#allocation3 + $0x1] ss:$0 sm:$0xff] }
 0x11c   :  { %v9713_v50 = vpop.permute.xlu1 %457 }
 0x11d   :  { %v9720_v52 = vpop.permute.xlu0 %560 }
 0x11e   :  { %8691 = vset.pattern.permute.xlu0 %v10764_v1 }
 0x11f   :  { %8671 = vset.pattern.permute.xlu1 %v10768_v2  ;;  %885 = vperm.xlu0 %8691, %v9718_v51  }
 0x120   :  { %555 = vperm.xlu1 %8671, %v9609_v17  }
 0x121   :  { %v483_v56 = vpop.permute.xlu1 %482  ;;  %v9735_v57 = vpop.permute.xlu0 %164 }
 0x122   :  { %v501_v8 = vmul.f32 %v9741_v59, %v483_v56  ;;  %v349_v56 = vmul.f32 %v9663_v29, %v9656_v27  ;;  %v378_v27 = vmul.f32 %v9674_v31, %v9681_v34 }
 0x123   :  { %1013 = vperm.xlu0 %8691, %v9770_v15  }
 0x124   :  { %845 = vperm.xlu1 %8671, %v838_v54  }
 0x126   :  { %v512_v3 = vpop.permute.xlu1 %511  ;;  %v454_v4 = vpop.permute.xlu0 %453 }
 0x127   :  { %v472_v7 = vmul.f32 %v9746_v60, %v454_v4  ;;  %v530_v13 = vmul.f32 %v9756_v63, %v512_v3  ;;  %8695 = vset.pattern.permute.xlu0 %v10770_v6  ;;  %v9108_v3 = vld [vmem:[%s10751_s0 + $0x28] sm:$0xff] }
 0x128   :  { %850 = vperm.xlu1 %8671, %v9615_v18   ;;  %1067 = vperm.xlu0 %8695, %v964_v46  }
 0x129   :  { %v476_v9 = vadd.f32 %v472_v7, %v447_v5 }
 0x12a   :  { %v9761_v10 = vpop.permute.xlu1 %515  ;;  %v9763_v11 = vpop.permute.xlu0 %581 }
 0x12b   :  { %v505_v14 = vadd.f32 %v501_v8, %v476_v9  ;;  %v444_v8 = vmul.f32 %v9725_v53, %v9703_v47  ;;  %v9847_v47 = vld [vmem:[%s10752_s1 + $0x9] ss:$0 sm:$0xff] }
 0x12c   :  { %8672 = vset.pattern.permute.xlu1 %v10764_v1 }
 0x12d   :  { %v534_v16 = vadd.f32 %v530_v13, %v505_v14  ;;  %589 = vperm.xlu1 %8672, %v9107_v19   ;;  %v502_v13 = vmul.f32 %v9741_v59, %v9658_v28  ;;  %v473_v14 = vmul.f32 %v9746_v60, %v9713_v50  ;;  %v531_v28 = vmul.f32 %v9756_v63, %v9761_v10 }
 0x12e   :  { %v9779_v21 = vpop.permute.xlu0 %337 }
 0x12f   :  { %v551_v22 = vpop.permute.xlu1 %550  ;;  %v9781_v23 = vadd.f32 %v567_v12, %v534_v16  ;;  %v9109_v16 = vld [vmem:[%s10751_s0 + $0x13] sm:$0xff] }
 0x131   :  { %877 = vperm.xlu1 %8672, %v838_v54  }
 0x132   :  { %v9788_v26 = vpop.permute.xlu0 %185 }
 0x133   :  { %v201_v33 = vmul.f32 %v9783_v24, %v9788_v26 }
 0x134   :  { %v578_v35 = vpop.permute.xlu1 %577 }
 0x135   :  { %v9792_v36 = vadd.f32 %v201_v33, %v172_v25  ;;  %8673 = vset.pattern.permute.xlu1 %v10766_v0 }
 0x136   :  { %614 = vperm.xlu1 %8673, %v9609_v17   ;;  %v9796_v37 = vpop.permute.xlu0 %461 }
 0x139   :  { %v607_v38 = vpop.permute.xlu1 %606 }
 0x13a   :  { %906 = vperm.xlu1 %8673, %v838_v54   ;;  %v9798_v39 = vpop.permute.xlu0 %757 }
 0x13d   :  { %v611_v41 = vpop.permute.xlu1 %610 }
 0x13e   :  { %910 = vperm.xlu1 %8673, %v9615_v18   ;;  %v9801_v42 = vpop.permute.xlu0 %585 }
 0x142   :  { %v640_v43 = vpop.permute.xlu1 %639  ;;  %8674 = vset.pattern.permute.xlu1 %v10770_v6  ;;  %v9804_v44 = vpop.permute.xlu0 %881 }
 0x143   :  { %647 = vperm.xlu1 %8674, %v9107_v19  }
 0x146   :  { %v9806_v46 = vpop.permute.xlu0 %189 }
 0x147   :  { %935 = vperm.xlu1 %8674, %v838_v54   ;;  %v9808_v17 = vpop.permute.xlu1 %149  ;;  %v353_v54 = vadd.f32 %v349_v56, %v320_v55  ;;  %v9110_v56 = vld [vmem:[%s10751_s0 + $0x30] sm:$0xff] }
 0x149   :  { %v382_v5 = vadd.f32 %v378_v27, %v353_v54  ;;  %v597_v54 = vmul.f32 %v9847_v47, %v9763_v11  ;;  %v568_v27 = vmul.f32 %v9751_v62, %v551_v22  ;;  %v9877_v11 = vld [vmem:[%s10752_s1 + $0xc] ss:$0 sm:$0xff]  ;;  %v596_v22 = vmul.f32 %v9847_v47, %v578_v35 }
 0x14a   :  { %v9814_v18 = vpop.permute.xlu0 %1005 }
 0x14b   :  { %8675 = vset.pattern.permute.xlu1 %v10768_v2  ;;  %v9817_v58 = vpop.permute.xlu1 %307 }
 0x14c   :  { %159 = vperm.xlu1 %8675, %v9108_v3  }
 0x14f   :  { %v392_v40 = vpop.permute.xlu0 %391  ;;  %v9829_v4 = vpop.permute.xlu1 %312 }
 0x150   :  { %v407_v7 = vmul.f32 %v9711_v49, %v392_v40  ;;  %969 = vperm.xlu1 %8675, %v9822_v61   ;;  %v9865_v40 = vld [vmem:[%s10752_s1 + $0xa] ss:$0 sm:$0xff] }
 0x152   :  { %v411_v9 = vadd.f32 %v407_v7, %v382_v5  ;;  %v9870_v5 = vld [vmem:[%s10752_s1 + $0xb] ss:$0 sm:$0xff] }
 0x153   :  { %v636_v12 = vpop.permute.xlu0 %635 }
 0x154   :  { %v448_v34 = vadd.f32 %v444_v8, %v411_v9  ;;  %974 = vperm.xlu1 %8675, %v9109_v16   ;;  %v9842_v19 = vpop.permute.xlu1 %341  ;;  %v654_v35 = vmul.f32 %v9870_v5, %v636_v12 }
 0x156   :  { %v477_v25 = vadd.f32 %v473_v14, %v448_v34  ;;  %v625_v34 = vmul.f32 %v9865_v40, %v607_v38 }
 0x157   :  { %v9849_v33 = vpop.permute.xlu0 %395 }
 0x158   :  { %v506_v50 = vadd.f32 %v502_v13, %v477_v25  ;;  %8677 = vset.pattern.permute.xlu1 %v10764_v1  ;;  %v9854_v55 = vpop.permute.xlu1 %181  ;;  %v626_v13 = vmul.f32 %v9865_v40, %v611_v41  ;;  %v9890_v1 = vld [vmem:[#allocation3 + $0x3] ss:$0 sm:$0xff] }
 0x159   :  { %193 = vperm.xlu1 %8677, %v9110_v56  }
 0x15a   :  { %v535_v10 = vadd.f32 %v531_v28, %v506_v50  ;;  %v668_v28 = vmul.f32 %v9877_v11, %v9696_v45  ;;  %v655_v50 = vmul.f32 %v9870_v5, %v640_v43  ;;  %v9900_v45 = vld [vmem:[%s10752_s1 + $0xd] ss:$0 sm:$0xff] }
 0x15b   :  { %v9872_v7 = vpop.permute.xlu0 %243 }
 0x15c   :  { %v572_v8 = vadd.f32 %v568_v27, %v535_v10  ;;  %v600_v10 = vadd.f32 %v596_v22, %v9781_v23  ;;  %v9902_v22 = vld [vmem:[#allocation3 + $0x2] ss:$0 sm:$0xff] }
 0x15d   :  { %1001 = vperm.xlu1 %8677, %v9822_v61   ;;  %v367_v9 = vpop.permute.xlu1 %366 }
 0x15e   :  { %v601_v14 = vadd.f32 %v597_v54, %v572_v8  ;;  %v629_v54 = vadd.f32 %v625_v34, %v600_v10  ;;  %v667_v34 = vmul.f32 %v9877_v11, %v9808_v17  ;;  %v680_v10 = vmul.f32 %v9900_v45, %v9854_v55 }
 0x15f   :  { %v9883_v25 = vpop.permute.xlu0 %519 }
 0x160   :  { %v630_v27 = vadd.f32 %v626_v13, %v601_v14  ;;  %v658_v23 = vadd.f32 %v654_v35, %v629_v54  ;;  %v259_v13 = vmul.f32 %v9890_v1, %v9872_v7  ;;  %v350_v35 = vmul.f32 %v9663_v29, %v9779_v21  ;;  %v9936_v29 = vld [vmem:[%s10752_s1 + $0xf] ss:$0 sm:$0xff] }
 0x161   :  { %8679 = vset.pattern.permute.xlu1 %v10766_v0  ;;  %v9893_v41 = vpop.permute.xlu1 %210 }
 0x162   :  { %218 = vperm.xlu1 %8679, %v9108_v3   ;;  %v659_v38 = vadd.f32 %v655_v50, %v630_v27  ;;  %v9909_v3 = vld [vmem:[%s10752_s1 + $0xe] ss:$0 sm:$0xff]  ;;  %v671_v27 = vadd.f32 %v667_v34, %v658_v23 }
 0x163   :  { %v9895_v8 = vpop.permute.xlu0 %815  ;;  %v693_v2 = vmul.f32 %v9909_v3, %v9893_v41  ;;  %v8697_v34 = vld [vmem:[#allocation8 + $0xc0] sm:$0xff]  }
 0x164   :  { %v672_v43 = vadd.f32 %v668_v28, %v659_v38  ;;  %v321_v38 = vmul.f32 %v9668_v30, %v9817_v58  ;;  %v684_v23 = vadd.f32 %v680_v10, %v671_v27  ;;  %v10774_v30 = vmov 3   ;;  %v8698_v27 = vld [vmem:[#allocation8 + $0x80] sm:$0xff]   ;;  %7832 = vmatprep.subr.bf16.mxu0 %v8697_v34 }
 0x165   :  { %v215_v12 = vpop.permute.xlu1 %214  ;;  %7833 = vmatpush3.bf16.msra.mxu0 %v8698_v27 }
 0x166   :  { %v230_v14 = vmul.f32 %v9902_v22, %v215_v12  ;;  %1030 = vperm.xlu1 %8679, %v9822_v61   ;;  %v697_v58 = vadd.f32 %v693_v2, %v684_v23  ;;  %v474_v2 = vmul.f32 %v9746_v60, %v9796_v37  ;;  %v8700_v23 = vld [vmem:[#allocation8 + $0xc8] sm:$0xff]  }
 0x167   :  { %v9915_v28 = vpop.permute.xlu0 %643  ;;  %7834 = vmatprep.subr.bf16.mxu0 %v8700_v23 }
 0x168   :  { %v234_v50 = vadd.f32 %v230_v14, %v9792_v36  ;;  %v379_v36 = vmul.f32 %v9674_v31, %v367_v9  ;;  %v354_v14 = vadd.f32 %v350_v35, %v321_v38  ;;  %v681_v31 = vmul.f32 %v9900_v45, %v9788_v26  ;;  %v8699_v35 = vld [vmem:[#allocation8 + $0x40] sm:$0xff]  }
 0x169   :  { %v408_v9 = vmul.f32 %v9711_v49, %v9849_v33  ;;  %7860 = vmatprep.subr.bf16.mxu1 %v8699_v35 }
 0x16a   :  { %v9924_v54 = vadd.f32 %v259_v13, %v234_v50  ;;  %1034 = vperm.xlu1 %8679, %v9109_v16   ;;  %v9926_v0 = vpop.permute.xlu1 %399  ;;  %v383_v50 = vadd.f32 %v379_v36, %v354_v14  ;;  %v685_v26 = vadd.f32 %v681_v31, %v672_v43  ;;  %v8702_v14 = vld [vmem:[#allocation8 + $0x88] sm:$0xff]   ;;  %v707_v43 = vmul.f32 %v9936_v29, %v9872_v7  ;;  %v8704_v31 = vld [vmem:[#allocation8 + $0xd0] sm:$0xff]  }
 0x16b   :  { %v9930_v6 = vpop.permute.xlu0 %939  ;;  %7835 = vmatpush3.bf16.msra.mxu0 %v8702_v14  ;;  %v9111_v7 = vld [vmem:[%s10752_s1 + $0x1] ss:$0 sm:$0xff] }
 0x16c   :  { %10773 = vst [vmem:[#allocation24_spill] sm:$0xff] %v9924_v54  ;;  %v8701_v54 = vld [vmem:[#allocation8] sm:$0xff]   ;;  %v412_v33 = vadd.f32 %v408_v9, %v383_v50  ;;  %v8705_v9 = vld [vmem:[#allocation8 + $0x8] sm:$0xff]   ;;  %7836 = vmatprep.subr.bf16.mxu0 %v8704_v31  ;;  %v9113_v31 = vld [vmem:[%s10752_s1 + $0x2] ss:$0 sm:$0xff] }
 0x16d   :  { %7861 = vmatpush3.bf16.msra.mxu1 %v8701_v54  ;;  %v8706_v54 = vld [vmem:[#allocation8 + $0x90] sm:$0xff]  }
 0x16e   :  { %8680 = vset.pattern.permute.xlu1 %v10774_v30  ;;  %v9939_v21 = vpop.permute.xlu1 %239 }
 0x16f   :  { %10775 = vst [vmem:[#allocation25_spill] sm:$0xff] %v9939_v21  ;;  %v706_v16 = vmul.f32 %v9936_v29, %v9939_v21  ;;  %251 = vperm.xlu1 %8680, %v9110_v56   ;;  %v9943_v13 = vpop.permute.xlu0 %247  ;;  %v694_v21 = vmul.f32 %v9909_v3, %v215_v12  ;;  %7837 = vmatpush3.bf16.msra.mxu0 %v8706_v54 }
 0x170   :  { %v409_v54 = vmul.f32 %v9711_v49, %v9926_v0  ;;  %v8716_v0 = vld [vmem:[#allocation8 + $0xe8] sm:$0xff]   ;;  %v8717_v49 = vld [vmem:[#allocation8 + $0x20] sm:$0xff]  }
 0x171   :  { %v710_v10 = vadd.f32 %v706_v16, %v697_v58  ;;  %v9959_v58 = vld [vmem:[%s10752_s1 + $0x10] ss:$0 sm:$0xff]  ;;  %v10776_v16 = vmov 0   ;;  %v698_v50 = vadd.f32 %v694_v21, %v685_v26  ;;  %v9112_v21 = vld [vmem:[%s10752_s1] ss:$0 sm:$0xff]  ;;  %v8708_v26 = vld [vmem:[#allocation8 + $0xd8] sm:$0xff]  }
 0x172   :  { %7838 = vmatprep.subr.bf16.mxu0 %v8708_v26  ;;  %v9115_v26 = vld [vmem:[%s10751_s0 + $0x31] sm:$0xff] }
 0x173   :  { %1059 = vperm.xlu1 %8680, %v9822_v61   ;;  %v432_v56 = vpop.permute.xlu1 %431  ;;  %v9952_v38 = vpop.permute.xlu0 %1063  ;;  %v8703_v61 = vld [vmem:[#allocation8 + $0x48] sm:$0xff]   ;;  %v711_v14 = vadd.f32 %v707_v43, %v698_v50  ;;  %v8711_v50 = vld [vmem:[#allocation8 + $0x58] sm:$0xff]  }
 0x174   :  { %v445_v36 = vmul.f32 %v9725_v53, %v432_v56  ;;  %7862 = vmatprep.subr.bf16.mxu1 %v8703_v61  ;;  %v351_v56 = vmul.f32 %v9111_v7, %v9842_v19  ;;  %v8710_v19 = vld [vmem:[#allocation8 + $0x98] sm:$0xff]  }
 0x175   :  { %7863 = vmatpush3.bf16.msra.mxu1 %v8705_v9  ;;  %7839 = vmatpush3.bf16.msra.mxu0 %v8710_v19 }
 0x176   :  { %v449_v37 = vadd.f32 %v445_v36, %v412_v33  ;;  %v8707_v33 = vld [vmem:[#allocation8 + $0x50] sm:$0xff]  }
 0x177   :  { %8681 = vset.pattern.permute.xlu1 %v10776_v16  ;;  %v722_v12 = vpop.permute.xlu1 %721  ;;  %v9964_v34 = vpop.permute.xlu0 %823  ;;  %v8709_v36 = vld [vmem:[#allocation8 + $0x10] sm:$0xff]   ;;  %7864 = vmatprep.subr.bf16.mxu1 %v8707_v33  ;;  %v8713_v33 = vld [vmem:[#allocation8 + $0x18] sm:$0xff]  }
 0x178   :  { %v743_v27 = vmul.f32 %v9959_v58, %v722_v12  ;;  %731 = vperm.xlu1 %8681, %v9679_v32   ;;  %v9968_v35 = vadd.f32 %v474_v2, %v449_v37  ;;  %v322_v32 = vmul.f32 %v9112_v21, %v9829_v4  ;;  %v10777_v12 = vmov 1   ;;  %v9114_v4 = vld [vmem:[%s10751_s0 + $0x29] sm:$0xff] }
 0x179   :  { %7865 = vmatpush3.bf16.msra.mxu1 %v8709_v36  ;;  %v8715_v36 = vld [vmem:[#allocation8 + $0x60] sm:$0xff]  }
 0x17a   :  { %v747_v23 = vadd.f32 %v743_v27, %v710_v10  ;;  %v355_v10 = vadd.f32 %v351_v56, %v322_v32  ;;  %v446_v27 = vmul.f32 %v9725_v53, %v9706_v48  ;;  %v8712_v56 = vld [vmem:[#allocation8 + $0xe0] sm:$0xff]   ;;  %7866 = vmatprep.subr.bf16.mxu1 %v8711_v50  ;;  %v8720_v50 = vld [vmem:[#allocation8 + $0xf0] sm:$0xff]  }
 0x17b   :  { %v727_v2 = vpop.permute.xlu1 %726  ;;  %v8714_v32 = vld [vmem:[#allocation8 + $0xa0] sm:$0xff]   ;;  %7840 = vmatprep.subr.bf16.mxu0 %v8712_v56 }
 0x17c   :  { %v744_v37 = vmul.f32 %v9959_v58, %v727_v2  ;;  %v371_v61 = vpop.permute.xlu0 %370  ;;  %8682 = vset.pattern.permute.xlu1 %v10777_v12  ;;  %7841 = vmatpush3.bf16.msra.mxu0 %v8714_v32  ;;  %v8725_v32 = vld [vmem:[#allocation8 + $0x30] sm:$0xff]  }
 0x17d   :  { %v380_v9 = vmul.f32 %v9113_v31, %v371_v61  ;;  %761 = vperm.xlu1 %8682, %v9114_v4   ;;  %7867 = vmatpush3.bf16.msra.mxu1 %v8713_v33  ;;  %v8718_v61 = vld [vmem:[#allocation8 + $0xa8] sm:$0xff]   ;;  %v10778_v31 = vmov 2   ;;  %v8723_v33 = vld [vmem:[#allocation8 + $0x70] sm:$0xff]  }
 0x17e   :  { %v9986_v43 = vadd.f32 %v744_v37, %v711_v14  ;;  %v9999_v14 = vld [vmem:[%s10752_s1 + $0x11] ss:$0 sm:$0xff]  ;;  %7868 = vmatprep.subr.bf16.mxu1 %v8715_v36  ;;  %7842 = vmatprep.subr.bf16.mxu0 %v8716_v0  ;;  %v8730_v0 = vld [vmem:[#allocation8 + $0x38] sm:$0xff]  }
 0x17f   :  { %v384_v7 = vadd.f32 %v380_v9, %v355_v10  ;;  %v8719_v9 = vld [vmem:[#allocation8 + $0x68] sm:$0xff]  }
 0x180   :  { %v466_v21 = vpop.permute.xlu1 %465  ;;  %7843 = vmatpush3.bf16.msra.mxu0 %v8718_v61 }
 0x181   :  { %v413_v2 = vadd.f32 %v409_v54, %v384_v7  ;;  %765 = vperm.xlu1 %8682, %v9115_v26   ;;  %v475_v53 = vmul.f32 %v9746_v60, %v466_v21  ;;  %7869 = vmatpush3.bf16.msra.mxu1 %v8717_v49  ;;  %v8722_v54 = vld [vmem:[#allocation8 + $0xb0] sm:$0xff]   ;;  %v10008_v21 = vld [vmem:[%s10752_s1 + $0x12] ss:$0 sm:$0xff]  ;;  %v495_v49 = vpop.permute.xlu0 %494 }
 0x182   :  { %7870 = vmatprep.subr.bf16.mxu1 %v8719_v9  ;;  %7844 = vmatprep.subr.bf16.mxu0 %v8720_v50  ;;  %v9116_v50 = vld [vmem:[%s10751_s0 + $0x32] sm:$0xff] }
 0x183   :  { %v450_v48 = vadd.f32 %v446_v27, %v413_v2  ;;  %v8721_v27 = vld [vmem:[#allocation8 + $0x28] sm:$0xff]  }
 0x184   :  { %v754_v37 = vpop.permute.xlu1 %753  ;;  %7845 = vmatpush3.bf16.msra.mxu0 %v8722_v54 }
 0x185   :  { %v479_v19 = vadd.f32 %v475_v53, %v450_v48  ;;  %v772_v10 = vmul.f32 %v9999_v14, %v754_v37  ;;  %8683 = vset.pattern.permute.xlu1 %v10778_v31  ;;  %7871 = vmatpush3.bf16.msra.mxu1 %v8721_v27  ;;  %v773_v48 = vmul.f32 %v9999_v14, %v9798_v39 }
 0x186   :  { %794 = vperm.xlu1 %8683, %v9115_v26   ;;  %7872 = vmatprep.subr.bf16.mxu1 %v8723_v33  ;;  %v8726_v26 = vld [vmem:[#allocation8 + $0xb8] sm:$0xff]   ;;  %v504_v39 = vmul.f32 %v9741_v59, %v495_v49 }
 0x187   :  { %v776_v60 = vadd.f32 %v772_v10, %v747_v23  ;;  %v8724_v23 = vld [vmem:[#allocation8 + $0xf8] sm:$0xff]   ;;  %v777_v61 = vadd.f32 %v773_v48, %v9986_v43 }
 0x188   :  { %7846 = vmatprep.subr.bf16.mxu0 %v8724_v23  ;;  %v532_v23 = vmul.f32 %v9756_v63, %v9883_v25 }
 0x189   :  { %v491_v7 = vpop.permute.xlu1 %490  ;;  %7873 = vmatpush3.bf16.msra.mxu1 %v8725_v32  ;;  %7847 = vmatpush3.bf16.msra.mxu0 %v8726_v26  ;;  %v598_v26 = vmul.f32 %v9847_v47, %v9801_v42 }
 0x18a   :  { %v503_v56 = vmul.f32 %v9741_v59, %v491_v7  ;;  %8684 = vset.pattern.permute.xlu1 %v10774_v30  ;;  %v10031_v59 = vld [vmem:[%s10752_s1 + $0x13] ss:$0 sm:$0xff] }
 0x18b   :  { %819 = vperm.xlu1 %8684, %v9114_v4   ;;  %v8729_v4 = vld [vmem:[#allocation8 + $0x78] sm:$0xff]  }
 0x18c   :  { %v507_v2 = vadd.f32 %v503_v56, %v9968_v35  ;;  %7874 = vmatprep.subr.bf16.mxu1 %v8729_v4 }
 0x18d   :  { %v783_v36 = vpop.permute.xlu1 %782  ;;  %7875 = vmatpush3.bf16.msra.mxu1 %v8730_v0 }
 0x18e   :  { %v801_v53 = vmul.f32 %v10008_v21, %v783_v36  ;;  %v536_v36 = vadd.f32 %v532_v23, %v507_v2  ;;  %v9118_v2 = vld [vmem:[%s10751_s0 + $0x2b] sm:$0xff]  ;;  %v682_v23 = vmul.f32 %v9900_v45, %v9806_v46 }
 0x18f   :  { %8686 = vset.pattern.permute.xlu1 %v10776_v16 }
 0x190   :  { %v805_v37 = vadd.f32 %v801_v53, %v776_v60  ;;  %855 = vperm.xlu1 %8686, %v9718_v51   ;;  %v570_v51 = vmul.f32 %v9751_v62, %v9720_v52  ;;  %v508_v60 = vadd.f32 %v504_v39, %v479_v19  ;;  %v9117_v19 = vld [vmem:[%s10751_s0 + $0x2a] sm:$0xff] }
 0x191   :  { %v787_v35 = vpop.permute.xlu1 %786 }
 0x192   :  { %v802_v10 = vmul.f32 %v10008_v21, %v787_v35 }
 0x194   :  { %v10019_v9 = vadd.f32 %v802_v10, %v777_v61  ;;  %860 = vperm.xlu1 %8686, %v9116_v50  }
 0x196   :  { %v524_v27 = vpop.permute.xlu1 %523 }
 0x197   :  { %v533_v54 = vmul.f32 %v9756_v63, %v524_v27  ;;  %v670_v27 = vmul.f32 %v9877_v11, %v9735_v57 }
 0x198   :  { %8687 = vset.pattern.permute.xlu1 %v10777_v12 }
 0x199   :  { %v537_v43 = vadd.f32 %v533_v54, %v508_v60  ;;  %889 = vperm.xlu1 %8687, %v9116_v50   ;;  %v10068_v54 = vld [vmem:[#allocation8 + $0x100] sm:$0xff]  }
 0x19a   :  { %v812_v7 = vpop.permute.xlu1 %811  ;;  %8369 = vmatprep.subr.bf16.mxu0 %v10068_v54 }
 0x19b   :  { %v830_v56 = vmul.f32 %v10031_v59, %v812_v7  ;;  %v574_v33 = vadd.f32 %v570_v51, %v537_v43  ;;  %v656_v7 = vmul.f32 %v9870_v5, %v9915_v28  ;;  %v831_v28 = vmul.f32 %v10031_v59, %v9895_v8 }
 0x19c   :  { %v174_v8 = vmul.f32 %v9777_v20, %v9735_v57 }
 0x19d   :  { %v10036_v52 = vadd.f32 %v830_v56, %v805_v37  ;;  %8688 = vset.pattern.permute.xlu1 %v10778_v31 }
 0x19e   :  { %914 = vperm.xlu1 %8688, %v9117_v19  }
 0x19f   :  { %v556_v32 = vpop.permute.xlu1 %555 }
 0x1a0   :  { %v569_v48 = vmul.f32 %v9751_v62, %v556_v32 }
 0x1a2   :  { %v573_v53 = vadd.f32 %v569_v48, %v536_v36  ;;  %8690 = vset.pattern.permute.xlu1 %v10774_v30  ;;  %v10086_v48 = vld [vmem:[%s10752_s1 + $0x14] ss:$0 sm:$0xff] }
 0x1a3   :  { %943 = vperm.xlu1 %8690, %v9117_v19   ;;  %v10046_v63 = vpop.permute.xlu1 %845 }
 0x1a4   :  { %v602_v25 = vadd.f32 %v598_v26, %v573_v53 }
 0x1a7   :  { %947 = vperm.xlu1 %8690, %v9116_v50   ;;  %v851_v4 = vpop.permute.xlu1 %850 }
 0x1a8   :  { %v868_v53 = vmul.f32 %v10086_v48, %v851_v4 }
 0x1ab   :  { %8692 = vset.pattern.permute.xlu1 %v10776_v16 }
 0x1ac   :  { %984 = vperm.xlu1 %8692, %v9770_v15   ;;  %v590_v0 = vpop.permute.xlu1 %589 }
 0x1ad   :  { %v599_v49 = vmul.f32 %v9847_v47, %v590_v0  ;;  %v619_v47 = vpop.permute.xlu0 %618 }
 0x1ae   :  { %v628_v10 = vmul.f32 %v9865_v40, %v619_v47 }
 0x1af   :  { %v603_v42 = vadd.f32 %v599_v49, %v574_v33 }
 0x1b0   :  { %8693 = vset.pattern.permute.xlu1 %v10777_v12  ;;  %v10052_v62 = vpop.permute.xlu1 %877 }
 0x1b1   :  { %1009 = vperm.xlu1 %8693, %v9118_v2   ;;  %v632_v50 = vadd.f32 %v628_v10, %v603_v42 }
 0x1b5   :  { %8694 = vset.pattern.permute.xlu1 %v10778_v31  ;;  %v615_v37 = vpop.permute.xlu1 %614 }
 0x1b6   :  { %v627_v16 = vmul.f32 %v9865_v40, %v615_v37  ;;  %1038 = vperm.xlu1 %8694, %v9118_v2  }
 0x1b8   :  { %v631_v35 = vadd.f32 %v627_v16, %v602_v25  ;;  %v835_v25 = vadd.f32 %v831_v28, %v10019_v9  ;;  %v10108_v16 = vld [vmem:[%s10752_s1 + $0x16] ss:$0 sm:$0xff] }
 0x1b9   :  { %v10059_v61 = vpop.permute.xlu1 %906 }
 0x1ba   :  { %1042 = vperm.xlu1 %8694, %v9770_v15   ;;  %v872_v37 = vadd.f32 %v868_v53, %v835_v25 }
 0x1bd   :  { %v911_v12 = vpop.permute.xlu1 %910 }
 0x1be   :  { %8696 = vset.pattern.permute.xlu1 %v10774_v30  ;;  %v660_v30 = vadd.f32 %v656_v7, %v631_v35  ;;  %v926_v57 = vmul.f32 %v10108_v16, %v911_v12  ;;  %v10137_v7 = vld [vmem:[%s10752_s1 + $0x19] ss:$0 sm:$0xff] }
 0x1bf   :  { %1071 = vperm.xlu1 %8696, %v9770_v15   ;;  %v202_v15 = vmul.f32 %v9783_v24, %v9806_v46  ;;  %v10094_v46 = vld [vmem:[%s10752_s1 + $0x15] ss:$0 sm:$0xff] }
 0x1c0   :  { %v897_v2 = vmul.f32 %v10094_v46, %v9804_v44 }
 0x1c2   :  { %v648_v39 = vpop.permute.xlu1 %647  ;;  %v901_v47 = vadd.f32 %v897_v2, %v872_v37  ;;  %v10169_v37 = vld [vmem:[#allocation11] ss:$0 sm:$0xff] }
 0x1c3   :  { %v657_v31 = vmul.f32 %v9870_v5, %v648_v39  ;;  %v10123_v39 = vld [vmem:[%s10752_s1 + $0x18] ss:$0 sm:$0xff] }
 0x1c4   :  { %v930_v10 = vadd.f32 %v926_v57, %v901_v47 }
 0x1c5   :  { %v661_v51 = vadd.f32 %v657_v31, %v632_v50 }
 0x1c6   :  { %v936_v60 = vpop.permute.xlu1 %935 }
 0x1c7   :  { %v674_v43 = vadd.f32 %v670_v27, %v661_v51  ;;  %v867_v27 = vmul.f32 %v10086_v48, %v10046_v63  ;;  %v260_v51 = vmul.f32 %v9890_v1, %v9943_v13  ;;  %v925_v63 = vmul.f32 %v10108_v16, %v10059_v61 }
 0x1cb   :  { %v160_v40 = vpop.permute.xlu1 %159 }
 0x1cc   :  { %v173_v56 = vmul.f32 %v9777_v20, %v160_v40  ;;  %v669_v33 = vmul.f32 %v9877_v11, %v160_v40  ;;  %v10089_v11 = vpop.permute.xlu0 %222  ;;  %v896_v40 = vmul.f32 %v10094_v46, %v10052_v62 }
 0x1cd   :  { %v232_v4 = vmul.f32 %v9902_v22, %v10089_v11 }
 0x1ce   :  { %v206_v19 = vadd.f32 %v202_v15, %v173_v56  ;;  %v673_v32 = vadd.f32 %v669_v33, %v660_v30  ;;  %v1021_v33 = vmul.f32 %v10137_v7, %v9814_v18 }
 0x1cf   :  { %v970_v26 = vpop.permute.xlu1 %969 }
 0x1d0   :  { %v10079_v36 = vadd.f32 %v682_v23, %v673_v32  ;;  %v10152_v32 = vld [vmem:[%s10752_s1 + $0x1a] ss:$0 sm:$0xff]  ;;  %v991_v18 = vmul.f32 %v10123_v39, %v970_v26 }
 0x1d3   :  { %v975_v5 = vpop.permute.xlu1 %974 }
 0x1d4   :  { %v992_v12 = vmul.f32 %v10123_v39, %v975_v5  ;;  %v10157_v5 = vld [vmem:[%s10752_s1 + $0x1b] ss:$0 sm:$0xff] }
 0x1d8   :  { %v194_v0 = vpop.permute.xlu1 %193 }
 0x1d9   :  { %v203_v49 = vmul.f32 %v9783_v24, %v194_v0  ;;  %v683_v42 = vmul.f32 %v9900_v45, %v194_v0  ;;  %v10116_v24 = vld [vmem:[%s10752_s1 + $0x17] ss:$0 sm:$0xff] }
 0x1da   :  { %v955_v44 = vmul.f32 %v10116_v24, %v9930_v6 }
 0x1db   :  { %v207_v9 = vadd.f32 %v203_v49, %v174_v8  ;;  %v10110_v35 = vadd.f32 %v683_v42, %v674_v43 }
 0x1dc   :  { %v1002_v20 = vpop.permute.xlu1 %1001  ;;  %v959_v6 = vadd.f32 %v955_v44, %v930_v10  ;;  %v10175_v44 = vld [vmem:[#allocation12] ss:$0 sm:$0xff] }
 0x1dd   :  { %v236_v45 = vadd.f32 %v232_v4, %v207_v9  ;;  %v1020_v0 = vmul.f32 %v10137_v7, %v1002_v20 }
 0x1de   :  { %v996_v30 = vadd.f32 %v992_v12, %v959_v6 }
 0x1e1   :  { %v10125_v50 = vpop.permute.xlu1 %218 }
 0x1e2   :  { %v231_v31 = vmul.f32 %v9902_v22, %v10125_v50  ;;  %v871_v22 = vadd.f32 %v867_v27, %v10036_v52  ;;  %v1025_v52 = vadd.f32 %v1021_v33, %v996_v30 }
 0x1e4   :  { %v235_v43 = vadd.f32 %v231_v31, %v206_v19  ;;  %v900_v23 = vadd.f32 %v896_v40, %v871_v22  ;;  %v954_v19 = vmul.f32 %v10116_v24, %v936_v60  ;;  %v1079_v60 = vmul.f32 %v10157_v5, %v9952_v38  ;;  %v10184_v40 = vld [vmem:[#allocation2 + $0x10] sm:$0x1]  ;;  %v1132_v22 = vld [vmem:[#allocation2 + $0x4] sm:$0x8] }
 0x1e5   :  { %v1031_v15 = vpop.permute.xlu1 %1030  ;;  %v7268_v30 = vcombine.low %v10184_v40, %v10184_v40 }
 0x1e6   :  { %v10141_v56 = vadd.f32 %v260_v51, %v235_v43  ;;  %v929_v28 = vadd.f32 %v925_v63, %v900_v23  ;;  %v1049_v42 = vmul.f32 %v10152_v32, %v1031_v15 }
 0x1e7   :  { %v1276_v33 = vshll.u32 %v7268_v30, 16 }
 0x1e8   :  { %v958_v25 = vadd.f32 %v954_v19, %v929_v28 }
 0x1e9   :  { %v1035_v62 = vpop.permute.xlu1 %1034 }
 0x1ea   :  { %v1050_v61 = vmul.f32 %v10152_v32, %v1035_v62  ;;  %v995_v49 = vadd.f32 %v991_v18, %v958_v25 }
 0x1ec   :  { %v1054_v53 = vadd.f32 %v1050_v61, %v1025_v52  ;;  %v1024_v9 = vadd.f32 %v1020_v0, %v995_v49  ;;  %v1278_v0 = vrot.slane %v1276_v33, 1  ;;  %v8736_v33 = vld [vmem:[#allocation8 + $0x108] sm:$0xff]  }
 0x1ee   :  { %v10164_v8 = vpop.permute.xlu1 %251  ;;  %v1083_v4 = vadd.f32 %v1079_v60, %v1054_v53  ;;  %v1053_v47 = vadd.f32 %v1049_v42, %v1024_v9 }
 0x1ef   :  { %v261_v2 = vmul.f32 %v9890_v1, %v10164_v8 }
 0x1f0   :  { %v1094_v38 = vmul.f32 %v10169_v37, %v1083_v4 }
 0x1f1   :  { %v10171_v26 = vadd.f32 %v261_v2, %v236_v45 }
 0x1f2   :  { %v1060_v57 = vpop.permute.xlu1 %1059  ;;  %v1105_v12 = vadd.f32 %v10175_v44, %v1094_v38 }
 0x1f3   :  { %v1078_v20 = vmul.f32 %v10157_v5, %v1060_v57 }
 0x1f4   :  { %v1109_v51 = vmax.f32 %v1105_v12, 0.0 }
 0x1f5   :  { %v1082_v10 = vadd.f32 %v1078_v20, %v1053_v47 }
 0x1f7   :  { %v1093_v31 = vmul.f32 %v10169_v37, %v1082_v10  ;;  %v10179_v27 = vpop.permute.xlu1 %731 }
 0x1f9   :  { %v1104_v1 = vadd.f32 %v10175_v44, %v1093_v31 }
 0x1fb   :  { %v1108_v45 = vmax.f32 %v1104_v1, 0.0  ;;  %v791_v1 = vpop.permute.xlu0 %790 }
 0x1fc   :  { %v10182_v6 = vpop.permute.xlu1 %761 }
 0x1fd   :  { %v7787_v43 = vpack.c.bf16 %v1109_v51, %v1108_v45 }
 0x1ff   :  { %7824 = vst [vmem:[#allocation2 + $0x8] sm:$0xff] %v7787_v43  }
 0x200   :  { %v10186_v15 = vpop.permute.xlu1 %765 }
 0x205   :  { %v10190_v63 = vpop.permute.xlu1 %794 }
 0x206   :  { %v1242_v23 = vld [vmem:[#allocation2 + $0x8] sm:$0xf]  ;;  %v10192_v19 = vld [vmem:[#allocation2 + $0xc] sm:$0xf] }
 0x207   :  { %v1133_v62 = vld [vmem:[#allocation2 + $0x8] sm:$0xf]  ;;  %v7267_v52 = vcombine.low %v1242_v23, %v10192_v19  ;;  %v1138_v61 = vld [vmem:[#allocation2 + $0xc] sm:$0xf] }
 0x208   :  { %v7259_v28 = vcombine.low %v1132_v22, %v1133_v62  ;;  %v7263_v18 = vcombine.low %v1138_v61, %v1138_v61  ;;  %v8734_v42 = vld [vmem:[#allocation2 + $0xc] ss:$0 sps:$4 sm:$0x77]   ;;  %v7265_v12 = vcombine.low %v1133_v62, %v1138_v61 }
 0x209   :  { %v1271_v53 = vshll.u32 %v7267_v52, 16  ;;  %v1269_v4 = vshrl.u32 %v7267_v52, 16  ;;  %v1195_v22 = vrot.slane %v8734_v42, 3 }
 0x20a   :  { %v1166_v60 = vshll.u32 %v7259_v28, 16  ;;  %v10195_v25 = vpop.permute.xlu1 %819  ;;  %v1171_v49 = vshll.u32 %v7263_v18, 16  ;;  %v1164_v9 = vshrl.u32 %v7259_v28, 16  ;;  %v1175_v38 = vshrl.u32 %v7263_v18, 16 }
 0x20b   :  { %v1273_v2 = vrot.slane %v1271_v53, 1  ;;  %v1194_v30 = vrot.slane %v7259_v28, 3  ;;  %v8737_v53 = vld [vmem:[#allocation8 + $0x110] sm:$0xff]   ;;  %v695_v28 = vmul.f32 %v9909_v3, %v10125_v50 }
 0x20c   :  { %v1168_v57 = vrot.slane %v1166_v60, 1  ;;  %v1173_v47 = vrot.slane %v1171_v49, 1  ;;  %v10204_v60 = vpop.permute.xlu0 %918 }
 0x20d   :  { %v1274_v20 = vor.u32 %v1273_v2, %v1269_v4  ;;  %v1196_v61 = vsel %vm1193_vm1, %v1194_v30, %v1195_v22  ;;  %v699_v49 = vadd.f32 %v695_v28, %v10079_v36  ;;  %v745_v4 = vmul.f32 %v9959_v58, %v10179_v27 }
 0x20e   :  { %v1169_v10 = vor.u32 %v1168_v57, %v1164_v9  ;;  %v1177_v31 = vor.u32 %v1175_v38, %v1173_v47  ;;  %v696_v2 = vmul.f32 %v9909_v3, %v10089_v11  ;;  %v8739_v9 = vld [vmem:[#allocation8 + $0x120] sm:$0xff]   ;;  %v709_v36 = vmul.f32 %v9936_v29, %v10164_v8  ;;  %v8744_v8 = vld [vmem:[#allocation8 + $0x130] sm:$0xff]  }
 0x20f   :  { %v856_v51 = vpop.permute.xlu1 %855  ;;  %v1279_v45 = vsel %vm1162_vm0, %v1274_v20, %v1278_v0  ;;  %v8738_v0 = vld [vmem:[#allocation8 + $0x118] sm:$0xff]   ;;  %v803_v3 = vmul.f32 %v10008_v21, %v791_v1  ;;  %v804_v1 = vmul.f32 %v10008_v21, %v10190_v63 }
 0x210   :  { %v1174_v43 = vsel %vm1162_vm0, %v1169_v10, %v1173_v47  ;;  %1454 = vmatprep.mubr.bf16.mxu0 %v1279_v45  ;;  %v1198_v52 = vrot.slane %v1177_v31, 3  ;;  %v737_v50 = vpop.permute.xlu0 %736  ;;  %v774_v47 = vmul.f32 %v9999_v14, %v10182_v6  ;;  %v8740_v10 = vld [vmem:[#allocation8 + $0x128] sm:$0xff]   ;;  %v832_v6 = vmul.f32 %v10031_v59, %v10195_v25  ;;  %v8748_v25 = vld [vmem:[#allocation8 + $0x138] sm:$0xff]  }
 0x211   :  { %v1197_v23 = vrot.slane %v1174_v43, 3  ;;  %1455 = vmatmul.mubr.bf16.vlgmr.msra.gmra.mrb[0].mxu0 %v7265_v12  ;;  %v746_v31 = vmul.f32 %v9959_v58, %v737_v50  ;;  %v869_v43 = vmul.f32 %v10086_v48, %v856_v51  ;;  %v833_v51 = vmul.f32 %v10031_v59, %v9964_v34 }
 0x212   :  { %8370 = vmatpush3.bf16.msra.mxu0 %v10068_v54  ;;  %v708_v54 = vmul.f32 %v9936_v29, %v9943_v13  ;;  %v700_v13 = vadd.f32 %v696_v2, %v10110_v35  ;;  %v775_v29 = vmul.f32 %v9999_v14, %v10186_v15  ;;  %v928_v59 = vmul.f32 %v10108_v16, %v10204_v60 }
 0x213   :  { %v1199_v18 = vsel %vm1193_vm1, %v1197_v23, %v1198_v52  ;;  %v861_v62 = vpop.permute.xlu1 %860  ;;  %8371 = vmatprep.subr.bf16.mxu0 %v8736_v33 }
 0x214   :  { %1599 = vmatprep.mubr.bf16.mxu1 %v1199_v18  ;;  %v712_v57 = vadd.f32 %v708_v54, %v699_v49  ;;  %v980_v27 = vpop.permute.xlu0 %979  ;;  %v713_v12 = vadd.f32 %v709_v36, %v700_v13 }
 0x215   :  { %1600 = vmatmul.mubr.bf16.vlgmr.msra.gmra.mrb[0].mxu1 %v1196_v61  ;;  %v870_v61 = vmul.f32 %v10086_v48, %v861_v62  ;;  %v993_v2 = vmul.f32 %v10123_v39, %v980_v27 }
 0x216   :  { %8372 = vmatpush3.bf16.msra.mxu0 %v8736_v33  ;;  %v749_v20 = vadd.f32 %v745_v4, %v712_v57  ;;  %v750_v30 = vadd.f32 %v746_v31, %v713_v12 }
 0x217   :  { %8373 = vmatprep.subr.bf16.mxu0 %v8737_v53 }
 0x218   :  { %v890_v42 = vpop.permute.xlu1 %889  ;;  %v778_v11 = vadd.f32 %v774_v47, %v749_v20  ;;  %v886_v22 = vpop.permute.xlu0 %885  ;;  %v779_v23 = vadd.f32 %v775_v29, %v750_v30 }
 0x219   :  { %v898_v18 = vmul.f32 %v10094_v46, %v886_v22 }
 0x21a   :  { %8374 = vmatpush3.bf16.msra.mxu0 %v8737_v53  ;;  %v807_v35 = vadd.f32 %v803_v3, %v778_v11  ;;  %v808_v14 = vadd.f32 %v804_v1, %v779_v23 }
 0x21b   :  { %8375 = vmatprep.subr.bf16.mxu0 %v8738_v0 }
 0x21c   :  { %v836_v33 = vadd.f32 %v832_v6, %v807_v35  ;;  %v837_v28 = vadd.f32 %v833_v51, %v808_v14  ;;  %v1014_v4 = vpop.permute.xlu0 %1013 }
 0x21d   :  { %v915_v38 = vpop.permute.xlu1 %914  ;;  %v1023_v11 = vmul.f32 %v10137_v7, %v1014_v4 }
 0x21e   :  { %8376 = vmatpush3.bf16.msra.mxu0 %v8738_v0  ;;  %v873_v52 = vadd.f32 %v869_v43, %v836_v33  ;;  %v927_v15 = vmul.f32 %v10108_v16, %v915_v38  ;;  %v899_v0 = vmul.f32 %v10094_v46, %v890_v42  ;;  %v874_v54 = vadd.f32 %v870_v61, %v837_v28  ;;  %v1247_v33 = vld [vmem:[#allocation2 + $0x24] sm:$0x1] }
 0x21f   :  { %8377 = vmatprep.subr.bf16.mxu0 %v8739_v9 }
 0x220   :  { %v902_v63 = vadd.f32 %v898_v18, %v873_v52  ;;  %v903_v57 = vadd.f32 %v899_v0, %v874_v54  ;;  %v1068_v62 = vpop.permute.xlu0 %1067 }
 0x221   :  { %v1080_v13 = vmul.f32 %v10157_v5, %v1068_v62 }
 0x222   :  { %v944_v45 = vpop.permute.xlu1 %943  ;;  %8378 = vmatpush3.bf16.msra.mxu0 %v8739_v9  ;;  %v931_v49 = vadd.f32 %v927_v15, %v902_v63  ;;  %v932_v36 = vadd.f32 %v928_v59, %v903_v57  ;;  %v1625_v15 = vrot.slane %v10192_v19, 5  ;;  %v1616_v63 = vld [vmem:[#allocation2 + $0x8] sm:$0xe] }
 0x223   :  { %8379 = vmatprep.subr.bf16.mxu0 %v8740_v10  ;;  %v956_v53 = vmul.f32 %v10116_v24, %v944_v45  ;;  %v9081_v59 = vld [vmem:[#allocation9 + $0x218] sm:$0xff]  }
 0x225   :  { %v960_v50 = vadd.f32 %v956_v53, %v931_v49  ;;  %v1627_v49 = vrot.slane %v1625_v15, 4 }
 0x226   :  { %v948_v58 = vpop.permute.xlu1 %947  ;;  %8380 = vmatpush3.bf16.msra.mxu0 %v8740_v10 }
 0x227   :  { %8381 = vmatprep.subr.bf16.mxu0 %v8744_v8  ;;  %v957_v48 = vmul.f32 %v10116_v24, %v948_v58  ;;  %v997_v47 = vadd.f32 %v993_v2, %v960_v50  ;;  %v7303_v2 = vrot.slane %v1616_v63, 9  ;;  %v8771_v63 = vld [vmem:[#allocation9 + $0x78] sm:$0xff]  }
 0x229   :  { %v961_v27 = vadd.f32 %v957_v48, %v932_v36 }
 0x22a   :  { %8382 = vmatpush3.bf16.msra.mxu0 %v8744_v8 }
 0x22b   :  { %v985_v21 = vpop.permute.xlu1 %984  ;;  %8383 = vmatprep.subr.bf16.mxu0 %v8748_v25 }
 0x22c   :  { %v994_v46 = vmul.f32 %v10123_v39, %v985_v21 }
 0x22e   :  { %8384 = vmatpush3.bf16.msra.mxu0 %v8748_v25  ;;  %v998_v3 = vadd.f32 %v994_v46, %v961_v27  ;;  %v7270_v25 = vcombine.low %v1247_v33, %v1247_v33  ;;  %v1626_v27 = vsel %vm10251_vm4, %v7303_v2, %v1625_v15  ;;  %v8766_v15 = vld [vmem:[#allocation9 + $0xb0] sm:$0xff]  }
 0x230   :  { %v1010_v9 = vpop.permute.xlu1 %1009  ;;  %v1027_v31 = vadd.f32 %v1023_v11, %v998_v3  ;;  %v1288_v14 = vshll.u32 %v7270_v25, 16  ;;  %v8761_v25 = vld [vmem:[#allocation9 + $0x18] sm:$0xff]  }
 0x231   :  { %v1022_v34 = vmul.f32 %v10137_v7, %v1010_v9 }
 0x232   :  { %v1290_v54 = vrot.slane %v1288_v14, 1  ;;  %v8764_v14 = vld [vmem:[#allocation9 + $0x20] sm:$0xff]  }
 0x233   :  { %v1026_v38 = vadd.f32 %v1022_v34, %v997_v47 }
 0x235   :  { %v1039_v42 = vpop.permute.xlu1 %1038 }
 0x236   :  { %v1051_v20 = vmul.f32 %v10152_v32, %v1039_v42 }
 0x238   :  { %v1055_v10 = vadd.f32 %v1051_v20, %v1026_v38 }
 0x239   :  { %v1043_v12 = vpop.permute.xlu1 %1042 }
 0x23a   :  { %v1084_v16 = vadd.f32 %v1080_v13, %v1055_v10  ;;  %v1052_v24 = vmul.f32 %v10152_v32, %v1043_v12  ;;  %v1135_v32 = vld [vmem:[#allocation2 + $0x18] sm:$0x8]  ;;  %v1635_v10 = vrot.slane %v1247_v33, 5  ;;  %v8758_v33 = vld [vmem:[#allocation9 + $0x10] sm:$0xff]  }
 0x23c   :  { %v1095_v60 = vmul.f32 %v10169_v37, %v1084_v16  ;;  %v1056_v45 = vadd.f32 %v1052_v24, %v1027_v31 }
 0x23e   :  { %v1106_v39 = vadd.f32 %v10175_v44, %v1095_v60  ;;  %v1072_v6 = vpop.permute.xlu1 %1071 }
 0x23f   :  { %v1081_v29 = vmul.f32 %v10157_v5, %v1072_v6 }
 0x240   :  { %v1110_v8 = vmax.f32 %v1106_v39, 0.0 }
 0x241   :  { %v1085_v35 = vadd.f32 %v1081_v29, %v1056_v45  ;;  %v8749_v29 = vld [vmem:[#allocation9 + $0x80] sm:$0xff]  }
 0x242   :  { %v7754_v43 = vpack.c.bf16 %v1110_v8, %v1110_v8  ;;  %8389 = vmatprep.subr.bf16.mxu1 %v8749_v29  ;;  %v8750_v8 = vld [vmem:[#allocation9 + $0x40] sm:$0xff]  }
 0x243   :  { %v1096_v30 = vmul.f32 %v10169_v37, %v1085_v35  ;;  %8390 = vmatpush3.bf16.msra.mxu1 %v8749_v29  ;;  %v8751_v35 = vld [vmem:[#allocation9 + $0x88] sm:$0xff]   ;;  %7908 = vmatprep.subr.bf16.mxu0 %v8750_v8 }
 0x244   :  { %1130 = vst [vmem:[#allocation2 + $0x1c] sm:$0xf] %v7754_v43  ;;  %v8752_v43 = vld [vmem:[#allocation9] sm:$0xff]   ;;  %8391 = vmatprep.subr.bf16.mxu1 %v8751_v35 }
 0x245   :  { %v1107_v7 = vadd.f32 %v10175_v44, %v1096_v30  ;;  %v1628_v44 = vrot.slane %v10184_v40, 5  ;;  %v8753_v30 = vld [vmem:[#allocation9 + $0x48] sm:$0xff]  }
 0x247   :  { %v1111_v1 = vmax.f32 %v1107_v7, 0.0  ;;  %v1629_v36 = vsel %vm10251_vm4, %v1627_v49, %v1628_v44  ;;  %8392 = vmatpush3.bf16.msra.mxu1 %v8751_v35  ;;  %v8754_v7 = vld [vmem:[#allocation9 + $0x90] sm:$0xff]   ;;  %v8772_v44 = vld [vmem:[#allocation9 + $0x38] sm:$0xff]  }
 0x248   :  { %v7305_v3 = vcombine.low %v1626_v27, %v1629_v36  ;;  %8393 = vmatprep.subr.bf16.mxu1 %v8754_v7 }
 0x249   :  { %v7755_v22 = vpack.c.bf16 %v1111_v1, %v1111_v1  ;;  %v8755_v1 = vld [vmem:[#allocation9 + $0x8] sm:$0xff]  }
 0x24b   :  { %1131 = vst [vmem:[#allocation2 + $0x20] sm:$0xf] %v7755_v22  ;;  %v1136_v58 = vld [vmem:[#allocation2 + $0x1c] sm:$0xf]  ;;  %8394 = vmatpush3.bf16.msra.mxu1 %v8754_v7 }
 0x24c   :  { %v7261_v23 = vcombine.low %v1135_v32, %v1136_v58  ;;  %v1245_v18 = vld [vmem:[#allocation2 + $0x1c] sm:$0xf]  ;;  %v8757_v32 = vld [vmem:[#allocation9 + $0x98] sm:$0xff]  }
 0x24d   :  { %v1617_v24 = vld [vmem:[#allocation2 + $0x1c] sm:$0xe]  ;;  %8395 = vmatprep.subr.bf16.mxu1 %v8757_v32 }
 0x24e   :  { %v1181_v52 = vshll.u32 %v7261_v23, 16  ;;  %v1179_v53 = vshrl.u32 %v7261_v23, 16  ;;  %v1200_v11 = vrot.slane %v7261_v23, 3  ;;  %v7304_v31 = vrot.slane %v1617_v24, 9  ;;  %v8756_v22 = vld [vmem:[#allocation9 + $0x50] sm:$0xff]   ;;  %v8760_v23 = vld [vmem:[#allocation9 + $0xa0] sm:$0xff]  }
 0x24f   :  { %8396 = vmatpush3.bf16.msra.mxu1 %v8757_v32  ;;  %v7315_v24 = vld [vmem:[#allocation11 + $0x1] ss:$0 sm:$0xff] }
 0x250   :  { %v1183_v5 = vrot.slane %v1181_v52, 1  ;;  %v8762_v52 = vld [vmem:[#allocation9 + $0x60] sm:$0xff]   ;;  %8397 = vmatprep.subr.bf16.mxu1 %v8760_v23 }
 0x252   :  { %v1246_v51 = vld [vmem:[#allocation2 + $0x20] sm:$0xf]  ;;  %v1184_v4 = vor.u32 %v1183_v5, %v1179_v53  ;;  %v8765_v5 = vld [vmem:[#allocation9 + $0x68] sm:$0xff]  }
 0x253   :  { %v1139_v61 = vld [vmem:[#allocation2 + $0x20] sm:$0xf]  ;;  %v7269_v37 = vcombine.low %v1245_v18, %v1246_v51  ;;  %v1632_v48 = vrot.slane %v1246_v51, 5  ;;  %v8763_v18 = vld [vmem:[#allocation9 + $0xa8] sm:$0xff]   ;;  %8398 = vmatpush3.bf16.msra.mxu1 %v8760_v23 }
 0x254   :  { %v7264_v21 = vcombine.low %v1139_v61, %v1139_v61  ;;  %v8747_v50 = vld [vmem:[#allocation2 + $0x20] ss:$0 sps:$4 sm:$0x77]   ;;  %v7266_v20 = vcombine.low %v1136_v58, %v1139_v61  ;;  %v8759_v58 = vld [vmem:[#allocation9 + $0x58] sm:$0xff]   ;;  %8399 = vmatprep.subr.bf16.mxu1 %v8763_v18  ;;  %v8767_v51 = vld [vmem:[#allocation9 + $0x28] sm:$0xff]  }
 0x255   :  { %v1283_v28 = vshll.u32 %v7269_v37, 16  ;;  %v1281_v9 = vshrl.u32 %v7269_v37, 16  ;;  %v1201_v42 = vrot.slane %v8747_v50, 3  ;;  %v1634_v12 = vrot.slane %v1632_v48, 4  ;;  %v8768_v61 = vld [vmem:[#allocation9 + $0x70] sm:$0xff]   ;;  %v8769_v37 = vld [vmem:[#allocation9 + $0xb8] sm:$0xff]  }
 0x256   :  { %v1186_v0 = vshll.u32 %v7264_v21, 16  ;;  %v1190_v34 = vshrl.u32 %v7264_v21, 16  ;;  %v1633_v6 = vsel %vm10251_vm4, %v7304_v31, %v1632_v48  ;;  %v8770_v21 = vld [vmem:[#allocation9 + $0x30] sm:$0xff]  }
 0x257   :  { %v1285_v57 = vrot.slane %v1283_v28, 1  ;;  %v1202_v60 = vsel %vm1193_vm1, %v1200_v11, %v1201_v42  ;;  %v1636_v39 = vsel %vm10251_vm4, %v1634_v12, %v1635_v10  ;;  %8400 = vmatpush3.bf16.msra.mxu1 %v8763_v18 }
 0x258   :  { %v1188_v19 = vrot.slane %v1186_v0, 1  ;;  %v7306_v45 = vcombine.low %v1633_v6, %v1636_v39  ;;  %8401 = vmatprep.subr.bf16.mxu1 %v8766_v15  ;;  %v7316_v6 = vld [vmem:[#allocation12 + $0x1] ss:$0 sm:$0xff] }
 0x259   :  { %v1286_v40 = vor.u32 %v1285_v57, %v1281_v9 }
 0x25a   :  { %v1189_v62 = vsel %vm1162_vm0, %v1184_v4, %v1188_v19  ;;  %v1192_v47 = vor.u32 %v1190_v34, %v1188_v19 }
 0x25b   :  { %v1203_v46 = vrot.slane %v1189_v62, 3  ;;  %v1291_v38 = vsel %vm1162_vm0, %v1286_v40, %v1290_v54  ;;  %8402 = vmatpush3.bf16.msra.mxu1 %v8766_v15 }
 0x25c   :  { %v1204_v13 = vrot.slane %v1192_v47, 3  ;;  %1462 = vmatprep.mubr.bf16.mxu0 %v1291_v38  ;;  %8403 = vmatprep.subr.bf16.mxu1 %v8769_v37 }
 0x25d   :  { %1463 = vmatmul.mubr.bf16.gmra.mrb[4].mxu0 %v7266_v20 }
 0x25e   :  { %v1205_v16 = vsel %vm1193_vm1, %v1203_v46, %v1204_v13  ;;  %8385 = vmatprep.mubr.bf16.mxu0 %v7305_v3 }
 0x25f   :  { %1607 = vmatprep.mubr.bf16.mxu1 %v1205_v16  ;;  %8404 = vmatpush3.bf16.msra.mxu1 %v8769_v37  ;;  %v1944_v37 = vld [vmem:[#allocation2 + $0x24] sm:$0x1] }
 0x260   :  { %1608 = vmatmul.mubr.bf16.gmra.mrb[4].mxu1 %v1202_v60 }
 0x265   :  { %8386 = vmatmul.mubr.bf16.vlgmr.msra.gmra.mrb[8].mxu0 %v7306_v45 }
 0x266   :  { %7909 = vmatpush3.bf16.msra.mxu0 %v8752_v43 }
 0x267   :  { %7910 = vmatprep.subr.bf16.mxu0 %v8753_v30 }
 0x26a   :  { %7911 = vmatpush3.bf16.msra.mxu0 %v8755_v1 }
 0x26b   :  { %7912 = vmatprep.subr.bf16.mxu0 %v8756_v22 }
 0x26e   :  { %7913 = vmatpush3.bf16.msra.mxu0 %v8758_v33 }
 0x26f   :  { %7914 = vmatprep.subr.bf16.mxu0 %v8759_v58 }
 0x272   :  { %7915 = vmatpush3.bf16.msra.mxu0 %v8761_v25 }
 0x273   :  { %7916 = vmatprep.subr.bf16.mxu0 %v8762_v52 }
 0x276   :  { %7917 = vmatpush3.bf16.msra.mxu0 %v8764_v14 }
 0x277   :  { %7918 = vmatprep.subr.bf16.mxu0 %v8765_v5 }
 0x27a   :  { %7919 = vmatpush3.bf16.msra.mxu0 %v8767_v51 }
 0x27b   :  { %7920 = vmatprep.subr.bf16.mxu0 %v8768_v61  ;;  %v1941_v61 = vld [vmem:[#allocation2 + $0x10] sm:$0x1] }
 0x27e   :  { %7921 = vmatpush3.bf16.msra.mxu0 %v8770_v21  ;;  %v1968_v21 = vshll.u32 %v1941_v61, 16  ;;  %v1813_v61 = vld [vmem:[#allocation2 + $0x18] sm:$0x8] }
 0x27f   :  { %7922 = vmatprep.subr.bf16.mxu0 %v8771_v63  ;;  %v1992_v63 = vshll.u32 %v1944_v37, 16 }
 0x282   :  { %7923 = vmatpush3.bf16.msra.mxu0 %v8772_v44 }
 0x2e4   :  { %v7848_v53 = vpop.f32.mrb[0].mxu0 }
 0x2e5   :  { %v7849_v28 = vpop.f32.mrb[1].mxu0 }
 0x2e6   :  { %v7850_v0 = vadd.f32 %v7849_v28, %v7848_v53  ;;  %v7851_v49 = vpop.f32.mrb[2].mxu0  ;;  %v1970_v53 = vrot.slane %v1968_v21, 5 }
 0x2e7   :  { %v7852_v54 = vpop.f32.mrb[3].mxu0 }
 0x2e8   :  { %v7876_v4 = vpop.f32.mrb[0].mxu1  ;;  %v7853_v2 = vadd.f32 %v7852_v54, %v7851_v49  ;;  %v1994_v49 = vrot.slane %v1992_v63, 5  ;;  %v1810_v54 = vld [vmem:[#allocation2 + $0x4] sm:$0x8] }
 0x2e9   :  { %v7877_v50 = vpop.f32.mrb[1].mxu1 }
 0x2ea   :  { %v7878_v9 = vadd.f32 %v7877_v50, %v7876_v4  ;;  %v7879_v57 = vpop.f32.mrb[2].mxu1 }
 0x2eb   :  { %v7880_v19 = vpop.f32.mrb[3].mxu1 }
 0x2ec   :  { %v7881_v34 = vadd.f32 %v7880_v19, %v7879_v57  ;;  %v1602_v48 = vadd.f32 %v7878_v9, %v7850_v0 }
 0x2ee   :  { %v1605_v40 = vadd.f32 %v7881_v34, %v7853_v2 }
 0x330   :  { %v7854_v62 = vpop.f32.mrb[4].mxu0 }
 0x331   :  { %v7855_v47 = vpop.f32.mrb[5].mxu0 }
 0x332   :  { %v7856_v36 = vadd.f32 %v7855_v47, %v7854_v62  ;;  %v7857_v46 = vpop.f32.mrb[6].mxu0 }
 0x333   :  { %v7882_v42 = vpop.f32.mrb[4].mxu1  ;;  %v7858_v38 = vpop.f32.mrb[7].mxu0 }
 0x334   :  { %v7883_v20 = vpop.f32.mrb[5].mxu1  ;;  %v7859_v13 = vadd.f32 %v7858_v38, %v7857_v46 }
 0x335   :  { %v7884_v27 = vadd.f32 %v7883_v20, %v7882_v42  ;;  %v7885_v10 = vpop.f32.mrb[6].mxu1 }
 0x336   :  { %v7886_v3 = vpop.f32.mrb[7].mxu1 }
 0x337   :  { %v7887_v11 = vadd.f32 %v7886_v3, %v7885_v10  ;;  %v1610_v12 = vadd.f32 %v7884_v27, %v7856_v36 }
 0x338   :  { %v8387_v16 = vpop.f32.mrb[8].mxu0 }
 0x339   :  { %v1613_v60 = vadd.f32 %v7887_v11, %v7859_v13  ;;  %v1760_v31 = vadd.f32 %v8387_v16, %v1610_v12  ;;  %v1743_v39 = vpop.f32.mrb[9].mxu0 }
 0x33a   :  { %v1758_v45 = vadd.f32 %v1743_v39, %v1602_v48  ;;  %v8388_v29 = vpop.f32.mrb[10].mxu0 }
 0x33b   :  { %v1772_v8 = vmul.f32 %v7315_v24, %v1760_v31  ;;  %v1761_v35 = vadd.f32 %v8388_v29, %v1613_v60  ;;  %v1746_v43 = vpop.f32.mrb[11].mxu0 }
 0x33c   :  { %v1770_v30 = vmul.f32 %v7315_v24, %v1758_v45  ;;  %v1759_v7 = vadd.f32 %v1746_v43, %v1605_v40 }
 0x33d   :  { %v1784_v1 = vadd.f32 %v7316_v6, %v1772_v8  ;;  %v1773_v22 = vmul.f32 %v7315_v24, %v1761_v35 }
 0x33e   :  { %v1782_v32 = vadd.f32 %v7316_v6, %v1770_v30  ;;  %v1771_v33 = vmul.f32 %v7315_v24, %v1759_v7 }
 0x33f   :  { %v1788_v58 = vmax.f32 %v1784_v1, 0.0  ;;  %v1785_v23 = vadd.f32 %v7316_v6, %v1773_v22 }
 0x340   :  { %v1783_v25 = vadd.f32 %v7316_v6, %v1771_v33  ;;  %v1786_v14 = vmax.f32 %v1782_v32, 0.0 }
 0x341   :  { %v7758_v52 = vpack.c.bf16 %v1788_v58, %v1788_v58  ;;  %v1789_v18 = vmax.f32 %v1785_v23, 0.0 }
 0x342   :  { %v1787_v5 = vmax.f32 %v1783_v25, 0.0 }
 0x343   :  { %1808 = vst [vmem:[#allocation2 + $0x1c] sm:$0xf] %v7758_v52  ;;  %v7759_v15 = vpack.c.bf16 %v1789_v18, %v1789_v18 }
 0x344   :  { %v7792_v51 = vpack.c.bf16 %v1787_v5, %v1786_v14 }
 0x345   :  { %1809 = vst [vmem:[#allocation2 + $0x20] sm:$0xf] %v7759_v15 }
 0x346   :  { %7825 = vst [vmem:[#allocation2 + $0x8] sm:$0xff] %v7792_v51  }
 0x34a   :  { %v1942_v44 = vld [vmem:[#allocation2 + $0x1c] sm:$0xf] }
 0x34b   :  { %v1973_v28 = vshrl.u32 %v1942_v44, 16  ;;  %v1976_v0 = vshll.u32 %v1942_v44, 16  ;;  %v1814_v2 = vld [vmem:[#allocation2 + $0x1c] sm:$0xf] }
 0x34c   :  { %v1943_v4 = vld [vmem:[#allocation2 + $0x20] sm:$0xf] }
 0x34d   :  { %v1815_v50 = vld [vmem:[#allocation2 + $0x20] sm:$0xf]  ;;  %v1939_v9 = vld [vmem:[#allocation2 + $0x8] sm:$0xf]  ;;  %v1940_v57 = vld [vmem:[#allocation2 + $0xc] sm:$0xf] }
 0x34e   :  { %v1975_v19 = vrot.slane %v1973_v28, 4  ;;  %v1978_v34 = vrot.slane %v1976_v0, 5  ;;  %v7326_v48 = vcombine.low %v1814_v2, %v1815_v50  ;;  %v10267_v40 = vcombine.low %v1815_v50, %v1815_v50  ;;  %v1811_v42 = vld [vmem:[#allocation2 + $0x8] sm:$0xf]  ;;  %v1812_v27 = vld [vmem:[#allocation2 + $0xc] sm:$0xf] }
 0x34f   :  { %v1949_v62 = vshrl.u32 %v1939_v9, 16  ;;  %v1952_v47 = vshll.u32 %v1939_v9, 16  ;;  %v1958_v36 = vshll.u32 %v1940_v57, 16  ;;  %v1962_v46 = vshrl.u32 %v1940_v57, 16 }
 0x350   :  { %v1979_v38 = vor.u32 %v1978_v34, %v1975_v19  ;;  %v1982_v20 = vshll.u32 %v1943_v4, 16  ;;  %v1986_v13 = vshrl.u32 %v1943_v4, 16  ;;  %v7321_v10 = vcombine.low %v1810_v54, %v1811_v42 }
 0x351   :  { %v1951_v11 = vrot.slane %v1949_v62, 4  ;;  %v1954_v12 = vrot.slane %v1952_v47, 5  ;;  %v1960_v16 = vrot.slane %v1958_v36, 5  ;;  %v1964_v24 = vrot.slane %v1962_v46, 4 }
 0x352   :  { %v1980_v60 = vrot.slane %v1979_v38, 4  ;;  %v1984_v31 = vrot.slane %v1982_v20, 5  ;;  %v1988_v39 = vrot.slane %v1986_v13, 4  ;;  %v7325_v6 = vcombine.low %v1811_v42, %v1812_v27 }
 0x353   :  { %v1955_v45 = vor.u32 %v1954_v12, %v1951_v11  ;;  %v1965_v29 = vor.u32 %v1964_v24, %v1960_v16  ;;  %v7322_v8 = vcombine.low %v1812_v27, %v1812_v27  ;;  %v1852_v35 = vshrl.u32 %v7321_v10, 16 }
 0x354   :  { %v1985_v43 = vsel %vm10271_vm7, %v1980_v60, %v1984_v31  ;;  %v1989_v30 = vor.u32 %v1988_v39, %v1984_v31  ;;  %v1835_v7 = vshrl.u32 %v7325_v6, 16  ;;  %v1838_v1 = vshll.u32 %v7325_v6, 16 }
 0x355   :  { %v1956_v22 = vrot.slane %v1955_v45, 4  ;;  %v1966_v32 = vrot.slane %v1965_v29, 4  ;;  %v1854_v33 = vrot.slane %v1852_v35, 3  ;;  %v1855_v58 = vshll.u32 %v7321_v10, 16  ;;  %v8779_v45 = vld [vmem:[%s10757_s6] sm:$0xff]   ;;  %v8780_v29 = vld [vmem:[%s10757_s6 + $0x8] sm:$0xff]  }
 0x356   :  { %v1990_v23 = vrot.slane %v1989_v30, 4  ;;  %v1837_v25 = vrot.slane %v1835_v7, 4  ;;  %v1840_v52 = vrot.slane %v1838_v1, 5  ;;  %v1860_v18 = vshrl.u32 %v7322_v8, 16  ;;  %8409 = vmatprep.subr.bf16.mxu1 %v8779_v45  ;;  %v8782_v35 = vld [vmem:[#allocation6 + $0x80] sm:$0xff]   ;;  %v8784_v30 = vld [vmem:[#allocation6 + $0xc8] sm:$0xff]  }
 0x357   :  { %v1961_v14 = vsel %vm10271_vm7, %v1956_v22, %v1960_v16  ;;  %v1971_v5 = vsel %vm10271_vm7, %v1966_v32, %v1970_v53  ;;  %v1857_v15 = vrot.slane %v1855_v58, 4  ;;  %v1863_v51 = vshll.u32 %v7322_v8, 16  ;;  %v8781_v8 = vld [vmem:[#allocation6 + $0xc0] sm:$0xff]   ;;  %v8785_v7 = vld [vmem:[#allocation6 + $0x88] sm:$0xff]   ;;  %v8787_v22 = vld [vmem:[#allocation6 + $0xd0] sm:$0xff]  }
 0x358   :  { %v7327_v37 = vcombine.low %v1961_v14, %v1971_v5  ;;  %v1995_v21 = vsel %vm10271_vm7, %v1990_v23, %v1994_v49  ;;  %v1841_v63 = vor.u32 %v1840_v52, %v1837_v25  ;;  %v1862_v44 = vrot.slane %v1860_v18, 3  ;;  %7946 = vmatprep.subr.bf16.mxu0 %v8781_v8  ;;  %v8786_v1 = vld [vmem:[%s10757_s6 + $0x18] sm:$0xff]   ;;  %v8790_v58 = vld [vmem:[#allocation6 + $0xd8] sm:$0xff]   ;;  %v8793_v52 = vld [vmem:[#allocation6 + $0xe0] sm:$0xff]  }
 0x359   :  { %v7328_v28 = vcombine.low %v1985_v43, %v1995_v21  ;;  %v1865_v0 = vrot.slane %v1863_v51, 4  ;;  %v1843_v54 = vshrl.u32 %v7326_v48, 16  ;;  %v1846_v9 = vshll.u32 %v7326_v48, 16  ;;  %v8783_v43 = vld [vmem:[%s10757_s6 + $0x10] sm:$0xff]   ;;  %v8788_v32 = vld [vmem:[#allocation6 + $0x90] sm:$0xff]   ;;  %v8791_v23 = vld [vmem:[#allocation6 + $0x98] sm:$0xff]  }
 0x35a   :  { %8405 = vmatprep.mubr.bf16.mxu1 %v7327_v37  ;;  %v1869_v4 = vshrl.u32 %v1841_v63, 16  ;;  %v1872_v50 = vshll.u32 %v1841_v63, 16  ;;  %v7323_v57 = vcombine.low %v1813_v61, %v1814_v2  ;;  %v1858_v53 = vor.u32 %v1857_v15, %v1854_v33  ;;  %v8789_v33 = vld [vmem:[%s10757_s6 + $0x20] sm:$0xff]   ;;  %v8792_v25 = vld [vmem:[%s10757_s6 + $0x28] sm:$0xff]   ;;  %v8795_v14 = vld [vmem:[%s10757_s6 + $0x30] sm:$0xff]  }
 0x35b   :  { %8406 = vmatmul.mubr.bf16.vlgmr.msra.gmra.mrb[8].mxu1 %v7328_v28  ;;  %v1866_v19 = vor.u32 %v1865_v0, %v1862_v44  ;;  %v1845_v34 = vrot.slane %v1843_v54, 4  ;;  %v1848_v36 = vrot.slane %v1846_v9, 5  ;;  %v1886_v49 = vshrl.u32 %v10267_v40, 16  ;;  %v8794_v18 = vld [vmem:[#allocation6 + $0xa0] sm:$0xff]   ;;  %v8799_v5 = vld [vmem:[#allocation6 + $0xe8] sm:$0xff]   ;;  %v8802_v61 = vld [vmem:[#allocation6 + $0xf0] sm:$0xff]  }
 0x35c   :  { %v1871_v62 = vrot.slane %v1869_v4, 3  ;;  %v1874_v47 = vrot.slane %v1872_v50, 4  ;;  %v1889_v46 = vshll.u32 %v10267_v40, 16  ;;  %v1878_v20 = vshrl.u32 %v7323_v57, 16  ;;  %8410 = vmatpush3.bf16.msra.mxu1 %v8779_v45  ;;  %v8800_v15 = vld [vmem:[#allocation6 + $0xa8] sm:$0xff]   ;;  %v8803_v37 = vld [vmem:[#allocation6 + $0xb0] sm:$0xff]  }
 0x35d   :  { %v1849_v38 = vor.u32 %v1848_v36, %v1845_v34  ;;  %v1881_v13 = vshll.u32 %v7323_v57, 16  ;;  %v1867_v27 = vsel %vm1850_vm8, %v1858_v53, %v1866_v19  ;;  %v1888_v10 = vrot.slane %v1886_v49, 3  ;;  %8411 = vmatprep.subr.bf16.mxu1 %v8780_v29  ;;  %v8801_v51 = vld [vmem:[%s10757_s6 + $0x38] sm:$0xff]   ;;  %v8804_v21 = vld [vmem:[#allocation6 + $0x40] sm:$0xff]   ;;  %v8806_v63 = vld [vmem:[#allocation6 + $0xf8] sm:$0xff]  }
 0x35e   :  { %v1875_v42 = vor.u32 %v1874_v47, %v1871_v62  ;;  %v1891_v11 = vrot.slane %v1889_v46, 4  ;;  %v1880_v24 = vrot.slane %v1878_v20, 3  ;;  %v8808_v44 = vld [vmem:[#allocation6 + $0xb8] sm:$0xff]   ;;  %v8811_v28 = vld [vmem:[#allocation6 + $0x140] sm:$0xff]  }
 0x35f   :  { %v1895_v2 = vshrl.u32 %v1849_v38, 16  ;;  %v1898_v48 = vshll.u32 %v1849_v38, 16  ;;  %v1883_v60 = vrot.slane %v1881_v13, 4  ;;  %v9119_v0 = vld [vmem:[#allocation3 + $0x1] ss:$0 sm:$0xff]  ;;  %v10783_v47 = vld [vmem:[#allocation25_spill] sm:$0xff] }
 0x360   :  { %2245 = vmatprep.mubr.bf16.mxu0 %v1875_v42  ;;  %v1892_v39 = vor.u32 %v1891_v11, %v1888_v10  ;;  %8412 = vmatpush3.bf16.msra.mxu1 %v8780_v29  ;;  %v200_v54 = vmul.f32 %v9119_v0, %v9854_v55  ;;  %v9120_v4 = vld [vmem:[#allocation3] ss:$0 sm:$0xff]  ;;  %v9121_v9 = vld [vmem:[#allocation3 + $0x2] ss:$0 sm:$0xff]  ;;  %v9122_v62 = vld [vmem:[#allocation3 + $0x3] ss:$0 sm:$0xff] }
 0x361   :  { %2246 = vmatmul.mubr.bf16.vlgmr.msra.gmra.mrb[12].mxu0 %v1867_v27  ;;  %v1897_v12 = vrot.slane %v1895_v2, 3  ;;  %v1900_v16 = vrot.slane %v1898_v48, 4  ;;  %v1884_v40 = vor.u32 %v1883_v60, %v1880_v24  ;;  %8413 = vmatprep.subr.bf16.mxu1 %v8783_v43  ;;  %v171_v50 = vmul.f32 %v9120_v4, %v9808_v17  ;;  %v7223_v2 = vld [vmem:[#allocation11 + $0x3] ss:$0 sm:$0xff]  ;;  %v7353_v48 = vld [vmem:[#allocation11 + $0x2] ss:$0 sm:$0xff] }
 0x362   :  { %7947 = vmatpush3.bf16.msra.mxu0 %v8782_v35  ;;  %v229_v57 = vmul.f32 %v9121_v9, %v9893_v41  ;;  %v258_v36 = vmul.f32 %v9122_v62, %v10783_v47  ;;  %v2471_v4 = vld [vmem:[#allocation2 + $0x4] sm:$0x8]  ;;  %v10324_v62 = vld [vmem:[#allocation2 + $0x10] ss:$0 sps:$4 sm:$0x11]  }
 0x363   :  { %v1901_v31 = vor.u32 %v1900_v16, %v1897_v12  ;;  %v1893_v6 = vsel %vm1850_vm8, %v1884_v40, %v1892_v39  ;;  %7948 = vmatprep.subr.bf16.mxu0 %v8784_v30  ;;  %v204_v34 = vadd.f32 %v200_v54, %v171_v50  ;;  %v7354_v12 = vld [vmem:[#allocation12 + $0x2] ss:$0 sm:$0xff]  ;;  %v10784_v16 = vld [vmem:[#allocation24_spill] sm:$0xff]  ;;  %v7224_v39 = vld [vmem:[#allocation12 + $0x3] ss:$0 sm:$0xff] }
 0x364   :  { %8414 = vmatpush3.bf16.msra.mxu1 %v8783_v43  ;;  %v275_v24 = vmul.f32 %v7223_v2, %v10784_v16 }
 0x365   :  { %2253 = vmatprep.mubr.bf16.mxu0 %v1901_v31  ;;  %8415 = vmatprep.subr.bf16.mxu1 %v8786_v1  ;;  %v233_v42 = vadd.f32 %v229_v57, %v204_v34 }
 0x366   :  { %7949 = vmatpush3.bf16.msra.mxu0 %v8785_v7  ;;  %v287_v43 = vadd.f32 %v7224_v39, %v275_v24 }
 0x367   :  { %7950 = vmatprep.subr.bf16.mxu0 %v8787_v22  ;;  %v262_v38 = vadd.f32 %v258_v36, %v233_v42  ;;  %v2472_v42 = vld [vmem:[#allocation2 + $0x18] sm:$0x8] }
 0x368   :  { %8416 = vmatpush3.bf16.msra.mxu1 %v8786_v1 }
 0x369   :  { %2254 = vmatmul.mubr.bf16.gmra.mrb[16].mxu0 %v1893_v6  ;;  %8417 = vmatprep.subr.bf16.mxu1 %v8789_v33  ;;  %v274_v10 = vmul.f32 %v7223_v2, %v262_v38 }
 0x36a   :  { %7951 = vmatpush3.bf16.msra.mxu0 %v8788_v32  ;;  %v276_v32 = vmul.f32 %v7223_v2, %v10141_v56 }
 0x36b   :  { %7952 = vmatprep.subr.bf16.mxu0 %v8790_v58  ;;  %v286_v40 = vadd.f32 %v7224_v39, %v274_v10 }
 0x36c   :  { %8418 = vmatpush3.bf16.msra.mxu1 %v8789_v33 }
 0x36d   :  { %8419 = vmatprep.subr.bf16.mxu1 %v8792_v25 }
 0x36e   :  { %7953 = vmatpush3.bf16.msra.mxu0 %v8791_v23 }
 0x36f   :  { %7954 = vmatprep.subr.bf16.mxu0 %v8793_v52 }
 0x370   :  { %8420 = vmatpush3.bf16.msra.mxu1 %v8792_v25  ;;  %v277_v25 = vmul.f32 %v7223_v2, %v10171_v26 }
 0x371   :  { %8421 = vmatprep.subr.bf16.mxu1 %v8795_v14 }
 0x372   :  { %7955 = vmatpush3.bf16.msra.mxu0 %v8794_v18 }
 0x373   :  { %7956 = vmatprep.subr.bf16.mxu0 %v8799_v5 }
 0x374   :  { %8422 = vmatpush3.bf16.msra.mxu1 %v8795_v14 }
 0x375   :  { %8423 = vmatprep.subr.bf16.mxu1 %v8801_v51 }
 0x376   :  { %7957 = vmatpush3.bf16.msra.mxu0 %v8800_v15  ;;  %v288_v15 = vadd.f32 %v7224_v39, %v276_v32 }
 0x377   :  { %7958 = vmatprep.subr.bf16.mxu0 %v8802_v61 }
 0x378   :  { %8424 = vmatpush3.bf16.msra.mxu1 %v8801_v51 }
 0x379   :  { %7974 = vmatprep.subr.bf16.mxu1 %v8804_v21  ;;  %v289_v21 = vadd.f32 %v7224_v39, %v277_v25 }
 0x37a   :  { %7959 = vmatpush3.bf16.msra.mxu0 %v8803_v37 }
 0x37b   :  { %7960 = vmatprep.subr.bf16.mxu0 %v8806_v63 }
 0x37e   :  { %7961 = vmatpush3.bf16.msra.mxu0 %v8808_v44 }
 0x37f   :  { %8002 = vmatprep.subr.bf16.mxu0 %v8811_v28 }
 0x42e   :  { %v8407_v53 = vpop.f32.mrb[8].mxu1 }
 0x42f   :  { %v2102_v19 = vpop.f32.mrb[9].mxu1 }
 0x430   :  { %v8408_v49 = vpop.f32.mrb[10].mxu1 }
 0x431   :  { %v2105_v46 = vpop.f32.mrb[11].mxu1 }
 0x434   :  { %v7924_v20 = vpop.f32.mrb[12].mxu0 }
 0x435   :  { %v7925_v13 = vpop.f32.mrb[13].mxu0 }
 0x436   :  { %v7926_v27 = vadd.f32 %v7925_v13, %v7924_v20  ;;  %v7927_v55 = vpop.f32.mrb[14].mxu0 }
 0x437   :  { %v7928_v17 = vpop.f32.mrb[15].mxu0 }
 0x438   :  { %v2248_v11 = vadd.f32 %v7926_v27, %v2102_v19  ;;  %v7929_v41 = vadd.f32 %v7928_v17, %v7927_v55 }
 0x43a   :  { %v2270_v60 = vmul.f32 %v7353_v48, %v2248_v11  ;;  %v2251_v31 = vadd.f32 %v7929_v41, %v2105_v46 }
 0x43c   :  { %v2282_v6 = vadd.f32 %v7354_v12, %v2270_v60  ;;  %v2271_v45 = vmul.f32 %v7353_v48, %v2251_v31  ;;  %v7930_v29 = vpop.f32.mrb[16].mxu0 }
 0x43d   :  { %v7931_v8 = vpop.f32.mrb[17].mxu0 }
 0x43e   :  { %v2286_v35 = vadd.f32 %v2282_v6, %v286_v40  ;;  %v2283_v30 = vadd.f32 %v7354_v12, %v2271_v45  ;;  %v7932_v7 = vadd.f32 %v7931_v8, %v7930_v29  ;;  %v7933_v1 = vpop.f32.mrb[18].mxu0  ;;  %v3040_v40 = vshll.u32 %v10324_v62, 16  ;;  %v8807_v45 = vld [vmem:[#allocation6] sm:$0xff]  }
 0x43f   :  { %v7934_v22 = vpop.f32.mrb[19].mxu0 }
 0x440   :  { %v2287_v33 = vadd.f32 %v2283_v30, %v287_v43  ;;  %v2256_v58 = vadd.f32 %v8407_v53, %v7932_v7  ;;  %v7935_v23 = vadd.f32 %v7934_v22, %v7933_v1  ;;  %v2290_v52 = vmax.f32 %v2286_v35, 0.0  ;;  %v8809_v7 = vld [vmem:[#allocation6 + $0x48] sm:$0xff]  }
 0x442   :  { %v2291_v18 = vmax.f32 %v2287_v33, 0.0  ;;  %v2272_v14 = vmul.f32 %v7353_v48, %v2256_v58  ;;  %v2259_v5 = vadd.f32 %v8408_v49, %v7935_v23 }
 0x444   :  { %v7797_v51 = vpack.c.bf16 %v2291_v18, %v2290_v52  ;;  %v2284_v61 = vadd.f32 %v7354_v12, %v2272_v14  ;;  %v2273_v37 = vmul.f32 %v7353_v48, %v2259_v5 }
 0x446   :  { %7826 = vst [vmem:[#allocation2 + $0x8] sm:$0xff] %v7797_v51   ;;  %v2288_v63 = vadd.f32 %v2284_v61, %v288_v15  ;;  %v2285_v44 = vadd.f32 %v7354_v12, %v2273_v37  ;;  %v8810_v15 = vld [vmem:[#allocation6 + $0x8] sm:$0xff]  }
 0x448   :  { %v2292_v28 = vmax.f32 %v2288_v63, 0.0  ;;  %v2289_v0 = vadd.f32 %v2285_v44, %v289_v21  ;;  %v8813_v44 = vld [vmem:[#allocation6 + $0x100] sm:$0xff]  }
 0x44a   :  { %v7762_v56 = vpack.c.bf16 %v2292_v28, %v2292_v28  ;;  %v2293_v54 = vmax.f32 %v2289_v0, 0.0  ;;  %v8815_v0 = vld [vmem:[#allocation6 + $0x50] sm:$0xff]  }
 0x44c   :  { %2312 = vst [vmem:[#allocation2 + $0x1c] sm:$0xf] %v7762_v56  ;;  %v7763_v50 = vpack.c.bf16 %v2293_v54, %v2293_v54 }
 0x44d   :  { %v10318_v26 = vld [vmem:[#allocation2 + $0x8] sm:$0xf]  ;;  %v2315_v9 = vld [vmem:[#allocation2 + $0xc] sm:$0xf] }
 0x44e   :  { %2313 = vst [vmem:[#allocation2 + $0x20] sm:$0xf] %v7763_v50  ;;  %v7359_v57 = vcombine.low %v10318_v26, %v2315_v9  ;;  %v7375_v53 = vcombine.low %v2471_v4, %v10318_v26  ;;  %v7377_v19 = vcombine.low %v2315_v9, %v2315_v9  ;;  %v10322_v34 = vld [vmem:[#allocation2 + $0xc] ss:$0 sps:$4 sm:$0x77]   ;;  %v8817_v50 = vld [vmem:[#allocation6 + $0x148] sm:$0xff]  }
 0x44f   :  { %v2499_v13 = vshll.u32 %v10322_v34, 16  ;;  %v2503_v27 = vshrl.u32 %v10322_v34, 16  ;;  %v10328_v55 = vld [vmem:[#allocation2 + $0xc] sm:$0xf]  ;;  %v10330_v11 = vld [vmem:[#allocation2 + $0x8] sm:$0xe] }
 0x450   :  { %8425 = vmatprep.mubr.bf16.mxu1 %v7359_v57  ;;  %v2492_v47 = vshrl.u32 %v7375_v53, 16  ;;  %v2494_v36 = vshll.u32 %v7375_v53, 16  ;;  %v2619_v49 = vshrl.u32 %v7359_v57, 16  ;;  %v2622_v46 = vshll.u32 %v7359_v57, 16  ;;  %v8840_v34 = vld [vmem:[#allocation6 + $0x38] sm:$0xff]  }
 0x451   :  { %v2638_v38 = vshrl.u32 %v7377_v19, 16  ;;  %v2641_v20 = vshll.u32 %v7377_v19, 16  ;;  %v2501_v60 = vrot.slane %v2499_v13, 1  ;;  %v10344_v43 = vcombine.low %v10330_v11, %v10328_v55 }
 0x452   :  { %v2496_v2 = vrot.slane %v2494_v36, 1  ;;  %v2621_v48 = vrot.slane %v2619_v49, 4  ;;  %v2624_v17 = vrot.slane %v2622_v46, 5  ;;  %v2634_v10 = vrot.slane %v2492_v47, 3  ;;  %v8816_v46 = vld [vmem:[#allocation6 + $0x10] sm:$0xff]  }
 0x453   :  { %v10332_v41 = vld [vmem:[#allocation2 + $0x1c] sm:$0xf]  ;;  %v2635_v12 = vrot.slane %v2494_v36, 4  ;;  %v2640_v16 = vrot.slane %v2638_v38, 3  ;;  %v2643_v24 = vrot.slane %v2641_v20, 4  ;;  %v2505_v8 = vor.u32 %v2503_v27, %v2501_v60  ;;  %v8819_v38 = vld [vmem:[#allocation6 + $0x58] sm:$0xff]  }
 0x454   :  { %v2625_v31 = vor.u32 %v2624_v17, %v2621_v48  ;;  %v2497_v39 = vor.u32 %v2496_v2, %v2492_v47  ;;  %v10340_v35 = vcombine.low %v2472_v42, %v10332_v41  ;;  %v3035_v36 = vshll.u32 %v10344_v43, 16  ;;  %v8818_v42 = vld [vmem:[#allocation6 + $0x108] sm:$0xff]  }
 0x455   :  { %v2317_v6 = vld [vmem:[#allocation2 + $0x20] sm:$0xf]  ;;  %v2636_v29 = vor.u32 %v2635_v12, %v2634_v10  ;;  %v2644_v33 = vor.u32 %v2643_v24, %v2640_v16  ;;  %v2543_v25 = vshrl.u32 %v2505_v8, 16  ;;  %v2546_v14 = vshll.u32 %v2505_v8, 16 }
 0x456   :  { %v7360_v30 = vcombine.low %v10332_v41, %v2317_v6  ;;  %v2647_v1 = vshrl.u32 %v2625_v31, 16  ;;  %v2650_v22 = vshll.u32 %v2625_v31, 16  ;;  %v2502_v32 = vsel %vm1162_vm0, %v2497_v39, %v2501_v60  ;;  %v10357_v60 = vld [vmem:[#allocation2 + $0x20] ss:$0 sps:$4 sm:$0x77]  }
 0x457   :  { %v2535_v58 = vshrl.u32 %v2502_v32, 16  ;;  %v2538_v23 = vshll.u32 %v2502_v32, 16  ;;  %v2545_v37 = vrot.slane %v2543_v25, 2  ;;  %v2548_v28 = vrot.slane %v2546_v14, 3  ;;  %v8821_v39 = vld [vmem:[#allocation6 + $0x150] sm:$0xff]  }
 0x458   :  { %8426 = vmatmul.mubr.bf16.vlgmr.msra.gmra.mrb[12].mxu1 %v7360_v30  ;;  %v2649_v52 = vrot.slane %v2647_v1, 3  ;;  %v2652_v18 = vrot.slane %v2650_v22, 4  ;;  %v2627_v5 = vshrl.u32 %v7360_v30, 16  ;;  %v2630_v21 = vshll.u32 %v7360_v30, 16  ;;  %v2467_v30 = vld [vmem:[#allocation2 + $0x4] sm:$0xc] }
 0x459   :  { %7975 = vmatpush3.bf16.msra.mxu1 %v8807_v45  ;;  %v2537_v51 = vrot.slane %v2535_v58, 2  ;;  %v2540_v61 = vrot.slane %v2538_v23, 3  ;;  %v2507_v54 = vshrl.u32 %v10340_v35, 16  ;;  %v2509_v57 = vshll.u32 %v10340_v35, 16  ;;  %v8820_v22 = vld [vmem:[#allocation6 + $0x18] sm:$0xff]  }
 0x45a   :  { %7976 = vmatprep.subr.bf16.mxu1 %v8809_v7  ;;  %v2653_v63 = vor.u32 %v2652_v18, %v2649_v52  ;;  %v2629_v56 = vrot.slane %v2627_v5, 4  ;;  %v2632_v9 = vrot.slane %v2630_v21, 5  ;;  %v7378_v53 = vcombine.low %v2317_v6, %v2317_v6  ;;  %v10362_v23 = vld [vmem:[#allocation2 + $0x20] sm:$0xf]  ;;  %v8829_v21 = vld [vmem:[#allocation6 + $0x158] sm:$0xff]  }
 0x45b   :  { %v2541_v4 = vor.u32 %v2540_v61, %v2537_v51  ;;  %v2645_v19 = vsel %vm1850_vm8, %v2636_v29, %v2644_v33  ;;  %v2549_v47 = vor.u32 %v2548_v28, %v2545_v37  ;;  %v3044_v49 = vshrl.u32 %v10324_v62, 16  ;;  %v10364_v25 = vld [vmem:[#allocation2 + $0x24] ss:$0 sps:$4 sm:$0x11]   ;;  %v8824_v5 = vld [vmem:[#allocation6 + $0x110] sm:$0xff]  }
 0x45c   :  { %2840 = vmatprep.mubr.bf16.mxu0 %v2653_v63  ;;  %v2633_v20 = vor.u32 %v2632_v9, %v2629_v56  ;;  %v2655_v2 = vrot.slane %v2507_v54, 3  ;;  %v2659_v48 = vshrl.u32 %v7378_v53, 16  ;;  %v10353_v17 = vrot.slane %v3040_v40, 1  ;;  %v8828_v56 = vld [vmem:[#allocation6 + $0x20] sm:$0xff]  }
 0x45d   :  { %7977 = vmatpush3.bf16.msra.mxu1 %v8810_v15  ;;  %2841 = vmatmul.mubr.bf16.vlgmr.msra.gmra.mrb[20].mxu0 %v2645_v19  ;;  %v2550_v10 = vsel %vm2521_vm9, %v2541_v4, %v2549_v47  ;;  %v2662_v12 = vshll.u32 %v7378_v53, 16  ;;  %v3033_v16 = vshrl.u32 %v10344_v43, 16  ;;  %v3037_v24 = vrot.slane %v3035_v36, 1  ;;  %v8827_v43 = vld [vmem:[#allocation6 + $0x60] sm:$0xff]   ;;  %v8830_v53 = vld [vmem:[#allocation6 + $0x118] sm:$0xff]   ;;  %v8832_v36 = vld [vmem:[#allocation6 + $0x28] sm:$0xff]  }
 0x45e   :  { %8003 = vmatpush3.bf16.msra.mxu0 %v8813_v44  ;;  %7978 = vmatprep.subr.bf16.mxu1 %v8815_v0  ;;  %v2668_v62 = vshrl.u32 %v2633_v20, 16  ;;  %v2671_v31 = vshll.u32 %v2633_v20, 16  ;;  %v2511_v6 = vrot.slane %v2509_v57, 1  ;;  %v2656_v45 = vrot.slane %v2509_v57, 4  ;;  %v10369_v44 = vld [vmem:[#allocation2 + $0x1c] sm:$0xe] }
 0x45f   :  { %2985 = vmatprep.mubr.bf16.mxu1 %v2550_v10  ;;  %8004 = vmatprep.subr.bf16.mxu0 %v8817_v50  ;;  %v2661_v29 = vrot.slane %v2659_v48, 3  ;;  %v2664_v40 = vrot.slane %v2662_v12, 4  ;;  %v3038_v8 = vor.u32 %v3037_v24, %v3033_v16  ;;  %v3076_v35 = vshll.u32 %v3044_v49, 16  ;;  %v10376_v9 = vld [vmem:[#allocation2 + $0x10] sm:$0x3] }
 0x460   :  { %v2670_v7 = vrot.slane %v2668_v62, 3  ;;  %v2673_v1 = vrot.slane %v2671_v31, 4  ;;  %v2514_v58 = vshll.u32 %v10357_v60, 16  ;;  %v2512_v18 = vor.u32 %v2511_v6, %v2507_v54  ;;  %v8833_v49 = vld [vmem:[#allocation6 + $0x160] sm:$0xff]   ;;  %v3002_v62 = vld [vmem:[#allocation2 + $0x8] sm:$0xf] }
 0x461   :  { %7979 = vmatpush3.bf16.msra.mxu1 %v8816_v46  ;;  %v2665_v32 = vor.u32 %v2664_v40, %v2661_v29  ;;  %v3043_v33 = vsel %vm1162_vm0, %v3038_v8, %v10353_v17  ;;  %v2657_v14 = vor.u32 %v2656_v45, %v2655_v2  ;;  %v7371_v51 = vcombine.low %v2467_v30, %v10318_v26  ;;  %v8831_v26 = vld [vmem:[#allocation6 + $0x68] sm:$0xff]  }
 0x462   :  { %8005 = vmatpush3.bf16.msra.mxu0 %v8818_v42  ;;  %7980 = vmatprep.subr.bf16.mxu1 %v8819_v38  ;;  %v2674_v52 = vor.u32 %v2673_v1, %v2670_v7  ;;  %v3071_v15 = vshll.u32 %v3043_v33, 16  ;;  %v3069_v61 = vshrl.u32 %v3043_v33, 16  ;;  %v3078_v37 = vrot.slane %v3076_v35, 1  ;;  %v8835_v38 = vld [vmem:[#allocation6 + $0x70] sm:$0xff]   ;;  %v2469_v2 = vld [vmem:[#allocation2 + $0x18] sm:$0xc] }
 0x463   :  { %8006 = vmatprep.subr.bf16.mxu0 %v8821_v39  ;;  %v2516_v63 = vrot.slane %v2514_v58, 1  ;;  %v2666_v28 = vsel %vm1850_vm8, %v2657_v14, %v2665_v32  ;;  %v2518_v54 = vshrl.u32 %v10357_v60, 16  ;;  %v7416_v4 = vcombine.low %v10369_v44, %v10362_v23  ;;  %v8834_v39 = vld [vmem:[#allocation6 + $0x120] sm:$0xff]   ;;  %v8837_v8 = vld [vmem:[#allocation6 + $0x168] sm:$0xff]  }
 0x464   :  { %2848 = vmatprep.mubr.bf16.mxu0 %v2674_v52  ;;  %v3073_v0 = vrot.slane %v3071_v15, 1  ;;  %v3054_v50 = vshll.u32 %v10364_v25, 16  ;;  %v2523_v46 = vshrl.u32 %v7371_v51, 16  ;;  %v3310_v48 = vshrl.u32 %v10376_v9, 16 }
 0x465   :  { %7981 = vmatpush3.bf16.msra.mxu1 %v8820_v22  ;;  %2849 = vmatmul.mubr.bf16.gmra.mrb[24].mxu0 %v2666_v28  ;;  %v2517_v19 = vsel %vm1162_vm0, %v2512_v18, %v2516_v63  ;;  %v2520_v47 = vor.u32 %v2518_v54, %v2516_v63  ;;  %v3049_v20 = vshll.u32 %v7416_v4, 16  ;;  %v3313_v10 = vshll.u32 %v10376_v9, 16  ;;  %v8836_v22 = vld [vmem:[#allocation6 + $0x30] sm:$0xff]   ;;  %v8839_v18 = vld [vmem:[#allocation6 + $0x78] sm:$0xff]   ;;  %v8843_v9 = vld [vmem:[#allocation6 + $0x180] sm:$0xff]  }
 0x466   :  { %7982 = vmatprep.subr.bf16.mxu1 %v8827_v43  ;;  %8007 = vmatpush3.bf16.msra.mxu0 %v8824_v5  ;;  %v3074_v57 = vor.u32 %v3073_v0, %v3069_v61  ;;  %v2526_v12 = vshll.u32 %v7371_v51, 16  ;;  %v2564_v16 = vshrl.u32 %v2517_v19, 16  ;;  %v2567_v24 = vshll.u32 %v2517_v19, 16  ;;  %v8838_v61 = vld [vmem:[#allocation6 + $0x128] sm:$0xff]   ;;  %v8841_v63 = vld [vmem:[#allocation6 + $0x170] sm:$0xff]  }
 0x467   :  { %8008 = vmatprep.subr.bf16.mxu0 %v8829_v21  ;;  %v10384_v31 = vrot.slane %v3054_v50, 1  ;;  %v2572_v6 = vshrl.u32 %v2520_v47, 16  ;;  %v2575_v45 = vshll.u32 %v2520_v47, 16  ;;  %v3047_v29 = vshrl.u32 %v7416_v4, 16  ;;  %v8842_v19 = vld [vmem:[#allocation6 + $0x130] sm:$0xff]  }
 0x468   :  { %v3079_v42 = vsel %vm1162_vm0, %v3074_v57, %v3078_v37  ;;  %v3051_v40 = vrot.slane %v3049_v20, 1  ;;  %v2525_v35 = vrot.slane %v2523_v46, 2  ;;  %v3291_v30 = vshrl.u32 %v10330_v11, 16 }
 0x469   :  { %7983 = vmatpush3.bf16.msra.mxu1 %v8828_v56  ;;  %3264 = vmatprep.mubr.bf16.mxu0 %v3079_v42  ;;  %v3300_v7 = vshrl.u32 %v10328_v55, 16  ;;  %v3303_v1 = vshll.u32 %v10328_v55, 16  ;;  %v2530_v43 = vrot.slane %v2503_v27, 2  ;;  %v10392_v32 = vcombine.low %v3002_v62, %v10328_v55  ;;  %v8845_v42 = vld [vmem:[#allocation6 + $0x178] sm:$0xff]  }
 0x46a   :  { %7984 = vmatprep.subr.bf16.mxu1 %v8831_v26  ;;  %8009 = vmatpush3.bf16.msra.mxu0 %v8830_v53  ;;  %v3052_v33 = vor.u32 %v3051_v40, %v3047_v29  ;;  %v3294_v52 = vshll.u32 %v10330_v11, 16  ;;  %v2528_v14 = vrot.slane %v2526_v12, 3  ;;  %v2531_v5 = vrot.slane %v2499_v13, 3 }
 0x46b   :  { %8010 = vmatprep.subr.bf16.mxu0 %v8833_v49  ;;  %v2566_v15 = vrot.slane %v2564_v16, 2  ;;  %v7373_v51 = vcombine.low %v2469_v2, %v10332_v41  ;;  %v2569_v37 = vrot.slane %v2567_v24, 3  ;;  %v2574_v21 = vrot.slane %v2572_v6, 2  ;;  %v3005_v2 = vld [vmem:[#allocation2 + $0x1c] sm:$0xf]  ;;  %v8847_v16 = vld [vmem:[#allocation6 + $0x188] sm:$0xff]  }
 0x46c   :  { %v2577_v27 = vrot.slane %v2575_v45, 3  ;;  %v3057_v55 = vsel %vm1162_vm0, %v3052_v33, %v10384_v31  ;;  %v3293_v11 = vrot.slane %v3291_v30, 5  ;;  %v3296_v28 = vrot.slane %v3294_v52, 6  ;;  %v8846_v6 = vld [vmem:[#allocation6 + $0x138] sm:$0xff]  }
 0x46d   :  { %7985 = vmatpush3.bf16.msra.mxu1 %v8832_v36  ;;  %v3302_v0 = vrot.slane %v3300_v7, 5  ;;  %v3305_v56 = vrot.slane %v3303_v1, 6  ;;  %v3063_v13 = vshll.u32 %v10392_v32, 16  ;;  %v3312_v4 = vrot.slane %v3310_v48, 5 }
 0x46e   :  { %7986 = vmatprep.subr.bf16.mxu1 %v8835_v38  ;;  %8011 = vmatpush3.bf16.msra.mxu0 %v8834_v39  ;;  %v3315_v41 = vrot.slane %v3313_v10, 6  ;;  %v2529_v26 = vor.u32 %v2528_v14, %v2525_v35  ;;  %v2532_v50 = vor.u32 %v2531_v5, %v2530_v43  ;;  %v3058_v57 = vshrl.u32 %v10364_v25, 16 }
 0x46f   :  { %8012 = vmatprep.subr.bf16.mxu0 %v8837_v8  ;;  %v3091_v53 = vshll.u32 %v3057_v55, 16  ;;  %v2552_v47 = vshrl.u32 %v7373_v51, 16  ;;  %v2555_v36 = vshll.u32 %v7373_v51, 16  ;;  %v2570_v49 = vor.u32 %v2569_v37, %v2566_v15 }
 0x470   :  { %v2578_v46 = vor.u32 %v2577_v27, %v2574_v21  ;;  %v3297_v38 = vor.u32 %v3296_v28, %v3293_v11  ;;  %v3306_v20 = vor.u32 %v3305_v56, %v3302_v0  ;;  %v3065_v48 = vrot.slane %v3063_v13, 1  ;;  %v3286_v28 = vld [vmem:[#allocation2 + $0x24] sm:$0x3]  ;;  %v8856_v13 = vld [vmem:[#allocation6 + $0x1a8] sm:$0xff]  }
 0x471   :  { %7987 = vmatpush3.bf16.msra.mxu1 %v8836_v22  ;;  %v3316_v10 = vor.u32 %v3315_v41, %v3312_v4  ;;  %v7413_v12 = vcombine.low %v3005_v2, %v10362_v23  ;;  %v2533_v25 = vsel %vm2521_vm9, %v2529_v26, %v2532_v50  ;;  %v3093_v24 = vrot.slane %v3091_v53, 1  ;;  %v8859_v2 = vld [vmem:[#allocation8 + $0x200] sm:$0xff]  }
 0x472   :  { %7988 = vmatprep.subr.bf16.mxu1 %v8839_v18  ;;  %8013 = vmatpush3.bf16.msra.mxu0 %v8838_v61  ;;  %v3096_v62 = vshll.u32 %v3058_v57, 16  ;;  %v2559_v39 = vrot.slane %v2518_v54, 2  ;;  %v3061_v45 = vshrl.u32 %v10392_v32, 16  ;;  %v2554_v29 = vrot.slane %v2552_v47, 2  ;;  %v8852_v32 = vld [vmem:[#allocation6 + $0x190] sm:$0xff]   ;;  %v8853_v61 = vld [vmem:[#allocation6 + $0x198] sm:$0xff]  }
 0x473   :  { %8014 = vmatprep.subr.bf16.mxu0 %v8841_v63  ;;  %v2557_v40 = vrot.slane %v2555_v36, 3  ;;  %v2560_v8 = vrot.slane %v2514_v58, 3  ;;  %v2579_v35 = vsel %vm2521_vm9, %v2570_v49, %v2578_v46  ;;  %v3089_v30 = vshrl.u32 %v3057_v55, 16  ;;  %v8855_v63 = vld [vmem:[#allocation6 + $0x1a0] sm:$0xff]   ;;  %v8858_v36 = vld [vmem:[#allocation6 + $0x1b8] sm:$0xff]  }
 0x474   :  { %v3298_v7 = vrot.slane %v3297_v38, 4  ;;  %v3308_v1 = vrot.slane %v3306_v20, 4  ;;  %v3066_v22 = vor.u32 %v3065_v48, %v3061_v45  ;;  %v3083_v43 = vshll.u32 %v7413_v12, 16  ;;  %v8860_v48 = vld [vmem:[#allocation8 + $0x1c0] sm:$0xff]   ;;  %v8869_v45 = vld [vmem:[#allocation8 + $0x218] sm:$0xff]  }
 0x475   :  { %7989 = vmatpush3.bf16.msra.mxu1 %v8840_v34  ;;  %v3094_v60 = vor.u32 %v3093_v24, %v3089_v30  ;;  %v3098_v58 = vrot.slane %v3096_v62, 1  ;;  %v2558_v33 = vor.u32 %v2557_v40, %v2554_v29  ;;  %v2561_v52 = vor.u32 %v2560_v8, %v2559_v39  ;;  %v8865_v24 = vld [vmem:[#allocation8 + $0x210] sm:$0xff]   ;;  %v8866_v62 = vld [vmem:[#allocation8 + $0x188] sm:$0xff]   ;;  %v8871_v40 = vld [vmem:[#allocation8 + $0x1d8] sm:$0xff]  }
 0x476   :  { %8429 = vmatprep.subr.bf16.mxu1 %v8843_v9  ;;  %8015 = vmatpush3.bf16.msra.mxu0 %v8842_v19  ;;  %v3307_v18 = vsel %vm10412_vm12, %v3298_v7, %v3306_v20  ;;  %v3317_v14 = vsel %vm10412_vm12, %v3308_v1, %v3316_v10  ;;  %v3067_v5 = vsel %vm1162_vm0, %v3066_v22, %v10353_v17  ;;  %v3085_v15 = vrot.slane %v3083_v43, 1  ;;  %v8861_v10 = vld [vmem:[#allocation8 + $0x208] sm:$0xff]   ;;  %v8867_v39 = vld [vmem:[#allocation8 + $0x1d0] sm:$0xff]   ;;  %v8874_v30 = vld [vmem:[#allocation8 + $0x198] sm:$0xff]  }
 0x477   :  { %8016 = vmatprep.subr.bf16.mxu0 %v8845_v42  ;;  %v3099_v51 = vsel %vm1162_vm0, %v3094_v60, %v3098_v58  ;;  %v2562_v37 = vsel %vm2521_vm9, %v2558_v33, %v2561_v52  ;;  %v7433_v21 = vcombine.low %v3307_v18, %v3317_v14  ;;  %v3081_v27 = vshrl.u32 %v7413_v12, 16  ;;  %v8862_v12 = vld [vmem:[#allocation8 + $0x180] sm:$0xff]   ;;  %v8870_v29 = vld [vmem:[#allocation8 + $0x190] sm:$0xff]   ;;  %v8876_v1 = vld [vmem:[#allocation8 + $0x158] sm:$0xff]  }
 0x478   :  { %2986 = vmatmul.mubr.bf16.vlgmr.msra.gmra.mrb[16].mxu1 %v2533_v25  ;;  %v3328_v17 = vshrl.u32 %v10362_v23, 16  ;;  %v3331_v11 = vshll.u32 %v10362_v23, 16  ;;  %v3319_v56 = vshrl.u32 %v10369_v44, 16  ;;  %v3322_v34 = vshll.u32 %v10369_v44, 16  ;;  %v8857_v23 = vld [vmem:[#allocation6 + $0x1b0] sm:$0xff]   ;;  %v8863_v25 = vld [vmem:[#allocation8 + $0x1c8] sm:$0xff]  }
 0x479   :  { %2993 = vmatprep.mubr.bf16.mxu1 %v2579_v35  ;;  %8430 = vmatpush3.bf16.msra.mxu1 %v8843_v9  ;;  %v3086_v55 = vor.u32 %v3085_v15, %v3081_v27  ;;  %v3338_v26 = vshrl.u32 %v3286_v28, 16  ;;  %v3341_v50 = vshll.u32 %v3286_v28, 16  ;;  %v8872_v8 = vld [vmem:[#allocation8 + $0x150] sm:$0xff]   ;;  %v8873_v35 = vld [vmem:[#allocation8 + $0x220] sm:$0xff]   ;;  %v8877_v22 = vld [vmem:[#allocation8 + $0x228] sm:$0xff]  }
 0x47a   :  { %8431 = vmatprep.subr.bf16.mxu1 %v8847_v16  ;;  %8017 = vmatpush3.bf16.msra.mxu0 %v8846_v6  ;;  %v3330_v4 = vrot.slane %v3328_v17, 5  ;;  %v3333_v41 = vrot.slane %v3331_v11, 6  ;;  %v3321_v9 = vrot.slane %v3319_v56, 5  ;;  %v3324_v57 = vrot.slane %v3322_v34, 6  ;;  %v8868_v6 = vld [vmem:[#allocation8 + $0x148] sm:$0xff]   ;;  %v8875_v7 = vld [vmem:[#allocation8 + $0x1e0] sm:$0xff]  }
 0x47b   :  { %v3087_v0 = vsel %vm1162_vm0, %v3086_v55, %v10384_v31  ;;  %v3340_v19 = vrot.slane %v3338_v26, 5  ;;  %v3343_v31 = vrot.slane %v3341_v50, 6  ;;  %8040 = vmatprep.subr.bf16.mxu0 %v8859_v2  ;;  %v8878_v43 = vld [vmem:[#allocation8 + $0x1a0] sm:$0xff]   ;;  %v8879_v60 = vld [vmem:[#allocation8 + $0x1e8] sm:$0xff]   ;;  %v8883_v52 = vld [vmem:[#allocation8 + $0x1f0] sm:$0xff]  }
 0x47c   :  { %v3334_v53 = vor.u32 %v3333_v41, %v3330_v4  ;;  %v3325_v47 = vor.u32 %v3324_v57, %v3321_v9  ;;  %v8880_v58 = vld [vmem:[#allocation8 + $0x160] sm:$0xff]   ;;  %v8882_v33 = vld [vmem:[#allocation8 + $0x1a8] sm:$0xff]   ;;  %v8885_v14 = vld [vmem:[#allocation8 + $0x238] sm:$0xff]  }
 0x47d   :  { %8432 = vmatpush3.bf16.msra.mxu1 %v8847_v16  ;;  %3265 = vmatmul.mubr.bf16.vlgmr.msra.gmra.mrb[28].mxu0 %v3067_v5  ;;  %v3344_v49 = vor.u32 %v3343_v31, %v3340_v19  ;;  %v8864_v16 = vld [vmem:[#allocation8 + $0x140] sm:$0xff]   ;;  %v8884_v18 = vld [vmem:[#allocation8 + $0x168] sm:$0xff]   ;;  %v8886_v5 = vld [vmem:[#allocation8 + $0x1b0] sm:$0xff]  }
 0x47e   :  { %8433 = vmatprep.subr.bf16.mxu1 %v8852_v32  ;;  %3272 = vmatprep.mubr.bf16.mxu0 %v3099_v51  ;;  %v3336_v44 = vrot.slane %v3334_v53, 4  ;;  %v3326_v46 = vrot.slane %v3325_v47, 4  ;;  %v8887_v15 = vld [vmem:[#allocation8 + $0x1f8] sm:$0xff]   ;;  %v8888_v51 = vld [vmem:[#allocation8 + $0x170] sm:$0xff]  }
 0x47f   :  { %8041 = vmatpush3.bf16.msra.mxu0 %v8860_v48  ;;  %v9031_v54 = vld [vmem:[#allocation8 + $0x358] sm:$0xff]  }
 0x480   :  { %2994 = vmatmul.mubr.bf16.gmra.mrb[20].mxu1 %v2562_v37  ;;  %v3345_v42 = vsel %vm10412_vm12, %v3336_v44, %v3344_v49  ;;  %v3335_v38 = vsel %vm10412_vm12, %v3326_v46, %v3334_v53  ;;  %8042 = vmatprep.subr.bf16.mxu0 %v8861_v10  ;;  %v10434_v37 = vld [vmem:[#allocation8 + $0x240] sm:$0xff]  }
 0x481   :  { %8434 = vmatpush3.bf16.msra.mxu1 %v8852_v32  ;;  %8445 = vmatprep.mubr.bf16.mxu1 %v7433_v21  ;;  %v7434_v20 = vcombine.low %v3335_v38, %v3345_v42  ;;  %v8881_v32 = vld [vmem:[#allocation8 + $0x230] sm:$0xff]   ;;  %v8895_v21 = vld [vmem:[#allocation8 + $0x178] sm:$0xff]  }
 0x482   :  { %8435 = vmatprep.subr.bf16.mxu1 %v8853_v61 }
 0x483   :  { %8043 = vmatpush3.bf16.msra.mxu0 %v8863_v25 }
 0x484   :  { %8044 = vmatprep.subr.bf16.mxu0 %v8865_v24 }
 0x485   :  { %8436 = vmatpush3.bf16.msra.mxu1 %v8853_v61  ;;  %3273 = vmatmul.mubr.bf16.gmra.mrb[32].mxu0 %v3087_v0  ;;  %v8891_v61 = vld [vmem:[#allocation8 + $0x1b8] sm:$0xff]  }
 0x486   :  { %8437 = vmatprep.subr.bf16.mxu1 %v8855_v63 }
 0x487   :  { %8045 = vmatpush3.bf16.msra.mxu0 %v8867_v39 }
 0x488   :  { %8046 = vmatprep.subr.bf16.mxu0 %v8869_v45 }
 0x489   :  { %8438 = vmatpush3.bf16.msra.mxu1 %v8855_v63 }
 0x48a   :  { %8439 = vmatprep.subr.bf16.mxu1 %v8856_v13 }
 0x48b   :  { %8047 = vmatpush3.bf16.msra.mxu0 %v8871_v40 }
 0x48c   :  { %8048 = vmatprep.subr.bf16.mxu0 %v8873_v35 }
 0x48d   :  { %8440 = vmatpush3.bf16.msra.mxu1 %v8856_v13 }
 0x48e   :  { %8441 = vmatprep.subr.bf16.mxu1 %v8857_v23 }
 0x48f   :  { %8049 = vmatpush3.bf16.msra.mxu0 %v8875_v7 }
 0x490   :  { %8050 = vmatprep.subr.bf16.mxu0 %v8877_v22 }
 0x491   :  { %8442 = vmatpush3.bf16.msra.mxu1 %v8857_v23 }
 0x492   :  { %8443 = vmatprep.subr.bf16.mxu1 %v8858_v36 }
 0x493   :  { %8051 = vmatpush3.bf16.msra.mxu0 %v8879_v60 }
 0x494   :  { %8052 = vmatprep.subr.bf16.mxu0 %v8881_v32 }
 0x495   :  { %8444 = vmatpush3.bf16.msra.mxu1 %v8858_v36 }
 0x496   :  { %8068 = vmatprep.subr.bf16.mxu1 %v8862_v12 }
 0x497   :  { %8053 = vmatpush3.bf16.msra.mxu0 %v8883_v52  ;;  %v7444_v52 = vld [vmem:[#allocation12 + $0x4] ss:$0 sm:$0xff] }
 0x498   :  { %8446 = vmatmul.mubr.bf16.vlgmr.msra.gmra.mrb[24].mxu1 %v7434_v20  ;;  %8054 = vmatprep.subr.bf16.mxu0 %v8885_v14 }
 0x499   :  { %8069 = vmatpush3.bf16.msra.mxu1 %v8864_v16 }
 0x49a   :  { %8070 = vmatprep.subr.bf16.mxu1 %v8866_v62 }
 0x49b   :  { %8055 = vmatpush3.bf16.msra.mxu0 %v8887_v15 }
 0x49c   :  { %8449 = vmatprep.subr.bf16.mxu0 %v10434_v37 }
 0x49d   :  { %8071 = vmatpush3.bf16.msra.mxu1 %v8868_v6 }
 0x49e   :  { %8072 = vmatprep.subr.bf16.mxu1 %v8870_v29 }
 0x4a1   :  { %8073 = vmatpush3.bf16.msra.mxu1 %v8872_v8 }
 0x4a2   :  { %8074 = vmatprep.subr.bf16.mxu1 %v8874_v30 }
 0x4a5   :  { %8075 = vmatpush3.bf16.msra.mxu1 %v8876_v1 }
 0x4a6   :  { %8076 = vmatprep.subr.bf16.mxu1 %v8878_v43 }
 0x4a9   :  { %8077 = vmatpush3.bf16.msra.mxu1 %v8880_v58  ;;  %v7443_v58 = vld [vmem:[#allocation11 + $0x4] ss:$0 sm:$0xff] }
 0x4aa   :  { %8078 = vmatprep.subr.bf16.mxu1 %v8882_v33 }
 0x4ad   :  { %8079 = vmatpush3.bf16.msra.mxu1 %v8884_v18 }
 0x4ae   :  { %8080 = vmatprep.subr.bf16.mxu1 %v8886_v5 }
 0x4b1   :  { %8081 = vmatpush3.bf16.msra.mxu1 %v8888_v51 }
 0x4b2   :  { %8082 = vmatprep.subr.bf16.mxu1 %v8891_v61 }
 0x4b5   :  { %8083 = vmatpush3.bf16.msra.mxu1 %v8895_v21 }
 0x52b   :  { %v10437_v27 = vpop.f32.mrb[12].mxu1 }
 0x52c   :  { %v10439_v55 = vpop.f32.mrb[13].mxu1 }
 0x52d   :  { %v10441_v63 = vpop.f32.mrb[14].mxu1 }
 0x52e   :  { %v10443_v17 = vpop.f32.mrb[15].mxu1 }
 0x530   :  { %v7962_v11 = vpop.f32.mrb[20].mxu0 }
 0x531   :  { %v7963_v28 = vpop.f32.mrb[21].mxu0 }
 0x532   :  { %v7964_v0 = vadd.f32 %v7963_v28, %v7962_v11  ;;  %v7965_v56 = vpop.f32.mrb[22].mxu0 }
 0x533   :  { %v7966_v34 = vpop.f32.mrb[23].mxu0 }
 0x534   :  { %v7967_v13 = vadd.f32 %v7966_v34, %v7965_v56 }
 0x538   :  { %v7968_v4 = vpop.f32.mrb[24].mxu0 }
 0x539   :  { %v7969_v41 = vpop.f32.mrb[25].mxu0 }
 0x53a   :  { %v7970_v26 = vadd.f32 %v7969_v41, %v7968_v4  ;;  %v7971_v50 = vpop.f32.mrb[26].mxu0 }
 0x53b   :  { %v7972_v9 = vpop.f32.mrb[27].mxu0 }
 0x53c   :  { %v7973_v57 = vadd.f32 %v7972_v9, %v7971_v50 }
 0x54b   :  { %v7990_v23 = vpop.f32.mrb[16].mxu1 }
 0x54c   :  { %v7991_v53 = vpop.f32.mrb[17].mxu1 }
 0x54d   :  { %v7992_v19 = vadd.f32 %v7991_v53, %v7990_v23  ;;  %v7993_v31 = vpop.f32.mrb[18].mxu1  ;;  %v10445_v23 = vld [vmem:[#allocation2 + $0x10] sm:$0x1] }
 0x54e   :  { %v7994_v47 = vpop.f32.mrb[19].mxu1 }
 0x54f   :  { %v2988_v36 = vadd.f32 %v7992_v19, %v7964_v0  ;;  %v7995_v44 = vadd.f32 %v7994_v47, %v7993_v31  ;;  %v10447_v19 = vld [vmem:[#allocation2 + $0x24] sm:$0x1]  ;;  %v7458_v31 = vcombine.low %v10445_v23, %v10445_v23 }
 0x550   :  { %v8018_v46 = vpop.f32.mrb[28].mxu0  ;;  %v7460_v47 = vcombine.low %v10447_v19, %v10447_v19 }
 0x551   :  { %v2991_v49 = vadd.f32 %v7995_v44, %v7967_v13  ;;  %v8019_v42 = vpop.f32.mrb[29].mxu0  ;;  %v3662_v44 = vshll.u32 %v7458_v31, 16 }
 0x552   :  { %v8020_v38 = vadd.f32 %v8019_v42, %v8018_v46  ;;  %v8021_v20 = vpop.f32.mrb[30].mxu0  ;;  %v3519_v46 = vld [vmem:[#allocation2 + $0x4] sm:$0x8] }
 0x553   :  { %v7996_v2 = vpop.f32.mrb[20].mxu1  ;;  %v8022_v48 = vpop.f32.mrb[31].mxu0 }
 0x554   :  { %v7997_v10 = vpop.f32.mrb[21].mxu1  ;;  %v8023_v12 = vadd.f32 %v8022_v48, %v8021_v20  ;;  %v3281_v24 = vadd.f32 %v8020_v38, %v2988_v36  ;;  %v3522_v36 = vld [vmem:[#allocation2 + $0x18] sm:$0x8]  ;;  %v3674_v38 = vshll.u32 %v7460_v47, 16 }
 0x555   :  { %v7998_v25 = vadd.f32 %v7997_v10, %v7996_v2  ;;  %v7999_v16 = vpop.f32.mrb[22].mxu1 }
 0x556   :  { %v8000_v62 = vpop.f32.mrb[23].mxu1  ;;  %v3282_v45 = vadd.f32 %v8023_v12, %v2991_v49 }
 0x557   :  { %v2996_v39 = vadd.f32 %v7998_v25, %v7970_v26  ;;  %v8001_v6 = vadd.f32 %v8000_v62, %v7999_v16  ;;  %v3664_v62 = vrot.slane %v3662_v44, 1 }
 0x558   :  { %v8024_v40 = vpop.f32.mrb[32].mxu0 }
 0x559   :  { %v2999_v29 = vadd.f32 %v8001_v6, %v7973_v57  ;;  %v8025_v8 = vpop.f32.mrb[33].mxu0 }
 0x55a   :  { %v8026_v35 = vadd.f32 %v8025_v8, %v8024_v40  ;;  %v8027_v30 = vpop.f32.mrb[34].mxu0  ;;  %v3676_v40 = vrot.slane %v3674_v38, 1 }
 0x55b   :  { %v8028_v7 = vpop.f32.mrb[35].mxu0 }
 0x55c   :  { %v8029_v1 = vadd.f32 %v8028_v7, %v8027_v30  ;;  %v3283_v22 = vadd.f32 %v8026_v35, %v2996_v39 }
 0x55e   :  { %v3284_v43 = vadd.f32 %v8029_v1, %v2999_v29 }
 0x56b   :  { %v8447_v60 = vpop.f32.mrb[24].mxu1 }
 0x56c   :  { %v3469_v32 = vadd.f32 %v8447_v60, %v3283_v22  ;;  %v3452_v33 = vpop.f32.mrb[25].mxu1 }
 0x56d   :  { %v3467_v18 = vadd.f32 %v3452_v33, %v3281_v24  ;;  %v8448_v14 = vpop.f32.mrb[26].mxu1 }
 0x56e   :  { %v3481_v5 = vmul.f32 %v7443_v58, %v3469_v32  ;;  %v3470_v15 = vadd.f32 %v8448_v14, %v3284_v43  ;;  %v3455_v51 = vpop.f32.mrb[27].mxu1 }
 0x56f   :  { %v3479_v61 = vmul.f32 %v7443_v58, %v3467_v18  ;;  %v3468_v21 = vadd.f32 %v3455_v51, %v3282_v45 }
 0x570   :  { %v3493_v11 = vadd.f32 %v7444_v52, %v3481_v5  ;;  %v3482_v28 = vmul.f32 %v7443_v58, %v3470_v15 }
 0x571   :  { %v3491_v0 = vadd.f32 %v7444_v52, %v3479_v61  ;;  %v3480_v56 = vmul.f32 %v7443_v58, %v3468_v21 }
 0x572   :  { %v3497_v34 = vmax.f32 %v3493_v11, 0.0  ;;  %v3494_v13 = vadd.f32 %v7444_v52, %v3482_v28 }
 0x573   :  { %v3492_v4 = vadd.f32 %v7444_v52, %v3480_v56  ;;  %v3495_v50 = vmax.f32 %v3491_v0, 0.0 }
 0x574   :  { %v7766_v41 = vpack.c.bf16 %v3497_v34, %v3497_v34  ;;  %v3498_v26 = vmax.f32 %v3494_v13, 0.0 }
 0x575   :  { %v3496_v9 = vmax.f32 %v3492_v4, 0.0 }
 0x576   :  { %3517 = vst [vmem:[#allocation2 + $0x1c] sm:$0xf] %v7766_v41  ;;  %v7767_v57 = vpack.c.bf16 %v3498_v26, %v3498_v26 }
 0x577   :  { %v7802_v53 = vpack.c.bf16 %v3496_v9, %v3495_v50  ;;  %v8900_v9 = vld [vmem:[#allocation8 + $0x248] sm:$0xff]  }
 0x578   :  { %3518 = vst [vmem:[#allocation2 + $0x20] sm:$0xf] %v7767_v57 }
 0x579   :  { %7827 = vst [vmem:[#allocation2 + $0x8] sm:$0xff] %v7802_v53  }
 0x57d   :  { %v10453_v49 = vld [vmem:[#allocation2 + $0x1c] sm:$0xf] }
 0x57e   :  { %v3631_v42 = vld [vmem:[#allocation2 + $0x1c] sm:$0xf]  ;;  %v10456_v20 = vcombine.low %v3522_v36, %v10453_v49 }
 0x57f   :  { %v10458_v2 = vld [vmem:[#allocation2 + $0x20] sm:$0xf] }
 0x580   :  { %v10460_v48 = vld [vmem:[#allocation2 + $0x20] sm:$0xf]  ;;  %v3628_v10 = vld [vmem:[#allocation2 + $0x8] sm:$0xf]  ;;  %v10462_v12 = vld [vmem:[#allocation2 + $0xc] sm:$0xf]  ;;  %v7459_v16 = vcombine.low %v3631_v42, %v10458_v2 }
 0x581   :  { %v3520_v25 = vld [vmem:[#allocation2 + $0x8] sm:$0xf]  ;;  %v7457_v24 = vcombine.low %v3628_v10, %v10462_v12  ;;  %v3525_v39 = vld [vmem:[#allocation2 + $0xc] sm:$0xf]  ;;  %v3567_v45 = vshll.u32 %v10456_v20, 16  ;;  %v7454_v35 = vcombine.low %v10460_v48, %v10460_v48  ;;  %v3565_v22 = vshrl.u32 %v10456_v20, 16 }
 0x582   :  { %v7449_v6 = vcombine.low %v3519_v46, %v3520_v25  ;;  %v3669_v29 = vshll.u32 %v7459_v16, 16  ;;  %v7453_v8 = vcombine.low %v3525_v39, %v3525_v39  ;;  %v3667_v7 = vshrl.u32 %v7459_v16, 16  ;;  %v8899_v32 = vld [vmem:[#allocation2 + $0xc] ss:$0 sps:$4 sm:$0x77]  }
 0x583   :  { %v3657_v30 = vshll.u32 %v7457_v24, 16  ;;  %v3655_v43 = vshrl.u32 %v7457_v24, 16  ;;  %v3569_v14 = vrot.slane %v3567_v45, 1  ;;  %v7455_v5 = vcombine.low %v3520_v25, %v3525_v39  ;;  %v4002_v44 = vld [vmem:[#allocation2 + $0x8] sm:$0xe]  ;;  %v8903_v24 = vld [vmem:[#allocation8 + $0x250] sm:$0xff]  }
 0x584   :  { %v3552_v1 = vshll.u32 %v7449_v6, 16  ;;  %v3671_v60 = vrot.slane %v3669_v29, 1  ;;  %v3557_v58 = vshll.u32 %v7453_v8, 16  ;;  %v3550_v52 = vshrl.u32 %v7449_v6, 16 }
 0x585   :  { %v3659_v33 = vrot.slane %v3657_v30, 1  ;;  %v3561_v51 = vshrl.u32 %v7453_v8, 16  ;;  %v3572_v61 = vshll.u32 %v7454_v35, 16  ;;  %v3570_v0 = vor.u32 %v3569_v14, %v3565_v22  ;;  %v8905_v39 = vld [vmem:[#allocation2 + $0x20] ss:$0 sps:$4 sm:$0x77]  }
 0x586   :  { %v3554_v18 = vrot.slane %v3552_v1, 1  ;;  %v3559_v15 = vrot.slane %v3557_v58, 1  ;;  %v3672_v11 = vor.u32 %v3671_v60, %v3667_v7  ;;  %v3579_v34 = vrot.slane %v7449_v6, 3  ;;  %v8906_v8 = vld [vmem:[#allocation8 + $0x258] sm:$0xff]   ;;  %v8907_v7 = vld [vmem:[#allocation8 + $0x260] sm:$0xff]   ;;  %v8908_v1 = vld [vmem:[#allocation8 + $0x268] sm:$0xff]  }
 0x587   :  { %v3660_v21 = vor.u32 %v3659_v33, %v3655_v43  ;;  %v3574_v13 = vrot.slane %v3572_v61, 1  ;;  %v3576_v4 = vshrl.u32 %v7454_v35, 16  ;;  %v3580_v50 = vrot.slane %v8899_v32, 3  ;;  %v4003_v60 = vld [vmem:[#allocation2 + $0x1c] sm:$0xe]  ;;  %v8913_v14 = vld [vmem:[#allocation9 + $0x148] sm:$0xff]  }
 0x588   :  { %v3555_v28 = vor.u32 %v3554_v18, %v3550_v52  ;;  %v3563_v56 = vor.u32 %v3561_v51, %v3559_v15  ;;  %v4008_v57 = vrot.slane %v10462_v12, 5  ;;  %v4011_v46 = vrot.slane %v10445_v23, 5  ;;  %v8912_v18 = vld [vmem:[#allocation9 + $0x100] sm:$0xff]   ;;  %v8917_v51 = vld [vmem:[#allocation9 + $0xc8] sm:$0xff]   ;;  %v8918_v61 = vld [vmem:[#allocation9 + $0x110] sm:$0xff]  }
 0x589   :  { %v3665_v41 = vsel %vm1162_vm0, %v3660_v21, %v3664_v62  ;;  %v3575_v47 = vsel %vm1162_vm0, %v3570_v0, %v3574_v13  ;;  %v3578_v36 = vor.u32 %v3576_v4, %v3574_v13  ;;  %v3677_v42 = vsel %vm1162_vm0, %v3672_v11, %v3676_v40  ;;  %v8919_v21 = vld [vmem:[#allocation9 + $0x158] sm:$0xff]   ;;  %v8920_v11 = vld [vmem:[#allocation9 + $0xd0] sm:$0xff]   ;;  %v8922_v0 = vld [vmem:[#allocation9 + $0x160] sm:$0xff]  }
 0x58a   :  { %v3560_v26 = vsel %vm1162_vm0, %v3555_v28, %v3559_v15  ;;  %3840 = vmatprep.mubr.bf16.mxu0 %v3665_v41  ;;  %v3583_v31 = vrot.slane %v3563_v56, 3  ;;  %v3588_v38 = vrot.slane %v3575_v47, 3  ;;  %v4010_v10 = vrot.slane %v4008_v57, 4  ;;  %v8916_v15 = vld [vmem:[#allocation9 + $0x150] sm:$0xff]   ;;  %v8921_v28 = vld [vmem:[#allocation9 + $0x118] sm:$0xff]   ;;  %v8925_v13 = vld [vmem:[#allocation9 + $0x168] sm:$0xff]  }
 0x58b   :  { %v3582_v53 = vrot.slane %v3560_v26, 3  ;;  %3841 = vmatmul.mubr.bf16.vlgmr.msra.gmra.mrb[36].mxu0 %v7455_v5  ;;  %v3589_v12 = vrot.slane %v3578_v36, 3  ;;  %v3581_v16 = vsel %vm1193_vm1, %v3579_v34, %v3580_v50  ;;  %v7493_v62 = vrot.slane %v4002_v44, 9  ;;  %v8914_v5 = vld [vmem:[#allocation9 + $0xc0] sm:$0xff]   ;;  %v8923_v56 = vld [vmem:[#allocation9 + $0xd8] sm:$0xff]   ;;  %v8927_v41 = vld [vmem:[#allocation9 + $0x128] sm:$0xff]  }
 0x58c   :  { %8450 = vmatpush3.bf16.msra.mxu0 %v10434_v37  ;;  %3848 = vmatprep.mubr.bf16.mxu0 %v3677_v42  ;;  %v4012_v6 = vsel %vm10251_vm4, %v4010_v10, %v4011_v46  ;;  %v7456_v37 = vcombine.low %v10453_v49, %v10460_v48  ;;  %v3585_v29 = vrot.slane %v10456_v20, 3  ;;  %v3586_v40 = vrot.slane %v8905_v39, 3  ;;  %v8909_v49 = vld [vmem:[#allocation8 + $0x270] sm:$0xff]   ;;  %v8910_v20 = vld [vmem:[#allocation8 + $0x278] sm:$0xff]   ;;  %v8924_v34 = vld [vmem:[#allocation9 + $0x120] sm:$0xff]  }
 0x58d   :  { %v3584_v25 = vsel %vm1193_vm1, %v3582_v53, %v3583_v31  ;;  %8451 = vmatprep.subr.bf16.mxu0 %v8900_v9  ;;  %v3590_v23 = vsel %vm1193_vm1, %v3588_v38, %v3589_v12  ;;  %v4009_v45 = vsel %vm10251_vm4, %v7493_v62, %v4008_v57  ;;  %v4015_v48 = vrot.slane %v10458_v2, 5  ;;  %v8911_v2 = vld [vmem:[#allocation9 + $0x140] sm:$0xff]   ;;  %v8928_v26 = vld [vmem:[#allocation9 + $0x170] sm:$0xff]   ;;  %v8929_v50 = vld [vmem:[#allocation9 + $0xe8] sm:$0xff]  }
 0x58e   :  { %3985 = vmatprep.mubr.bf16.mxu1 %v3584_v25  ;;  %v7495_v35 = vcombine.low %v4009_v45, %v4012_v6  ;;  %v3587_v30 = vsel %vm1193_vm1, %v3585_v29, %v3586_v40  ;;  %v4018_v22 = vrot.slane %v10447_v19, 5  ;;  %v7494_v58 = vrot.slane %v4003_v60, 9  ;;  %8469 = vmatprep.subr.bf16.mxu1 %v8911_v2  ;;  %v8915_v19 = vld [vmem:[#allocation9 + $0x108] sm:$0xff]   ;;  %v8926_v4 = vld [vmem:[#allocation9 + $0xe0] sm:$0xff]   ;;  %v8931_v57 = vld [vmem:[#allocation9 + $0x178] sm:$0xff]  }
 0x58f   :  { %3986 = vmatmul.mubr.bf16.vlgmr.msra.gmra.mrb[28].mxu1 %v3581_v16  ;;  %v4017_v43 = vrot.slane %v4015_v48, 4  ;;  %v8932_v53 = vld [vmem:[#allocation9 + $0xf0] sm:$0xff]   ;;  %v8933_v31 = vld [vmem:[#allocation9 + $0x138] sm:$0xff]  }
 0x590   :  { %3993 = vmatprep.mubr.bf16.mxu1 %v3590_v23  ;;  %8452 = vmatpush3.bf16.msra.mxu0 %v8900_v9  ;;  %v4016_v33 = vsel %vm10251_vm4, %v7494_v58, %v4015_v48  ;;  %v8930_v9 = vld [vmem:[#allocation9 + $0x130] sm:$0xff]   ;;  %v8934_v47 = vld [vmem:[#allocation9 + $0xf8] sm:$0xff]   ;;  %v7505_v58 = vld [vmem:[#allocation11 + $0x5] ss:$0 sm:$0xff] }
 0x591   :  { %8453 = vmatprep.subr.bf16.mxu0 %v8903_v24  ;;  %v4019_v32 = vsel %vm10251_vm4, %v4017_v43, %v4018_v22  ;;  %8470 = vmatpush3.bf16.msra.mxu1 %v8911_v2 }
 0x592   :  { %v7496_v52 = vcombine.low %v4016_v33, %v4019_v32  ;;  %8471 = vmatprep.subr.bf16.mxu1 %v8913_v14 }
 0x593   :  { %3849 = vmatmul.mubr.bf16.gmra.mrb[40].mxu0 %v7456_v37 }
 0x594   :  { %8454 = vmatpush3.bf16.msra.mxu0 %v8903_v24  ;;  %8465 = vmatprep.mubr.bf16.mxu0 %v7495_v35 }
 0x595   :  { %8455 = vmatprep.subr.bf16.mxu0 %v8906_v8  ;;  %8472 = vmatpush3.bf16.msra.mxu1 %v8913_v14 }
 0x596   :  { %8473 = vmatprep.subr.bf16.mxu1 %v8916_v15 }
 0x597   :  { %3994 = vmatmul.mubr.bf16.gmra.mrb[32].mxu1 %v3587_v30 }
 0x598   :  { %8456 = vmatpush3.bf16.msra.mxu0 %v8906_v8 }
 0x599   :  { %8457 = vmatprep.subr.bf16.mxu0 %v8907_v7  ;;  %8474 = vmatpush3.bf16.msra.mxu1 %v8916_v15 }
 0x59a   :  { %8475 = vmatprep.subr.bf16.mxu1 %v8919_v21 }
 0x59c   :  { %8458 = vmatpush3.bf16.msra.mxu0 %v8907_v7 }
 0x59d   :  { %8459 = vmatprep.subr.bf16.mxu0 %v8908_v1  ;;  %8476 = vmatpush3.bf16.msra.mxu1 %v8919_v21 }
 0x59e   :  { %8477 = vmatprep.subr.bf16.mxu1 %v8922_v0 }
 0x5a0   :  { %8460 = vmatpush3.bf16.msra.mxu0 %v8908_v1 }
 0x5a1   :  { %8461 = vmatprep.subr.bf16.mxu0 %v8909_v49  ;;  %8478 = vmatpush3.bf16.msra.mxu1 %v8922_v0 }
 0x5a2   :  { %8479 = vmatprep.subr.bf16.mxu1 %v8925_v13 }
 0x5a4   :  { %8462 = vmatpush3.bf16.msra.mxu0 %v8909_v49 }
 0x5a5   :  { %8463 = vmatprep.subr.bf16.mxu0 %v8910_v20  ;;  %8480 = vmatpush3.bf16.msra.mxu1 %v8925_v13 }
 0x5a6   :  { %8481 = vmatprep.subr.bf16.mxu1 %v8928_v26 }
 0x5a8   :  { %8464 = vmatpush3.bf16.msra.mxu0 %v8910_v20 }
 0x5a9   :  { %8116 = vmatprep.subr.bf16.mxu0 %v8912_v18  ;;  %8482 = vmatpush3.bf16.msra.mxu1 %v8928_v26 }
 0x5aa   :  { %8483 = vmatprep.subr.bf16.mxu1 %v8931_v57 }
 0x5ab   :  { %8466 = vmatmul.mubr.bf16.vlgmr.msra.gmra.mrb[44].mxu0 %v7496_v52  ;;  %v7506_v52 = vld [vmem:[#allocation12 + $0x5] ss:$0 sm:$0xff] }
 0x5ac   :  { %8117 = vmatpush3.bf16.msra.mxu0 %v8914_v5 }
 0x5ad   :  { %8118 = vmatprep.subr.bf16.mxu0 %v8915_v19  ;;  %8484 = vmatpush3.bf16.msra.mxu1 %v8931_v57  ;;  %v4324_v57 = vld [vmem:[#allocation2 + $0x10] sm:$0x1] }
 0x5b0   :  { %8119 = vmatpush3.bf16.msra.mxu0 %v8917_v51 }
 0x5b1   :  { %8120 = vmatprep.subr.bf16.mxu0 %v8918_v61 }
 0x5b4   :  { %8121 = vmatpush3.bf16.msra.mxu0 %v8920_v11 }
 0x5b5   :  { %8122 = vmatprep.subr.bf16.mxu0 %v8921_v28 }
 0x5b8   :  { %8123 = vmatpush3.bf16.msra.mxu0 %v8923_v56 }
 0x5b9   :  { %8124 = vmatprep.subr.bf16.mxu0 %v8924_v34 }
 0x5bc   :  { %8125 = vmatpush3.bf16.msra.mxu0 %v8926_v4 }
 0x5bd   :  { %8126 = vmatprep.subr.bf16.mxu0 %v8927_v41 }
 0x5c0   :  { %8127 = vmatpush3.bf16.msra.mxu0 %v8929_v50 }
 0x5c1   :  { %8128 = vmatprep.subr.bf16.mxu0 %v8930_v9 }
 0x5c4   :  { %8129 = vmatpush3.bf16.msra.mxu0 %v8932_v53  ;;  %v4327_v53 = vld [vmem:[#allocation2 + $0x24] sm:$0x1] }
 0x5c5   :  { %8130 = vmatprep.subr.bf16.mxu0 %v8933_v31  ;;  %v4348_v31 = vshll.u32 %v4324_v57, 16  ;;  %v4196_v57 = vld [vmem:[#allocation2 + $0x18] sm:$0x8] }
 0x5c8   :  { %8131 = vmatpush3.bf16.msra.mxu0 %v8934_v47  ;;  %v4372_v47 = vshll.u32 %v4327_v53, 16 }
 0x65e   :  { %v8056_v36 = vpop.f32.mrb[36].mxu0 }
 0x65f   :  { %v8057_v44 = vpop.f32.mrb[37].mxu0 }
 0x660   :  { %v8058_v46 = vadd.f32 %v8057_v44, %v8056_v36  ;;  %v8059_v42 = vpop.f32.mrb[38].mxu0  ;;  %v4350_v44 = vrot.slane %v4348_v31, 5 }
 0x661   :  { %v8060_v38 = vpop.f32.mrb[39].mxu0 }
 0x662   :  { %v8084_v10 = vpop.f32.mrb[28].mxu1  ;;  %v8061_v25 = vadd.f32 %v8060_v38, %v8059_v42  ;;  %v4374_v38 = vrot.slane %v4372_v47, 5 }
 0x663   :  { %v8085_v12 = vpop.f32.mrb[29].mxu1 }
 0x664   :  { %v8086_v16 = vadd.f32 %v8085_v12, %v8084_v10  ;;  %v8087_v24 = vpop.f32.mrb[30].mxu1  ;;  %v4193_v10 = vld [vmem:[#allocation2 + $0x4] sm:$0x8] }
 0x665   :  { %v8088_v62 = vpop.f32.mrb[31].mxu1 }
 0x666   :  { %v8089_v39 = vadd.f32 %v8088_v62, %v8087_v24  ;;  %v3988_v23 = vadd.f32 %v8086_v16, %v8058_v46  ;;  %v8062_v6 = vpop.f32.mrb[40].mxu0 }
 0x667   :  { %v8063_v37 = vpop.f32.mrb[41].mxu0 }
 0x668   :  { %v3991_v45 = vadd.f32 %v8089_v39, %v8061_v25  ;;  %v8064_v29 = vadd.f32 %v8063_v37, %v8062_v6  ;;  %v8065_v40 = vpop.f32.mrb[42].mxu0 }
 0x669   :  { %v8066_v8 = vpop.f32.mrb[43].mxu0 }
 0x66a   :  { %v8090_v35 = vpop.f32.mrb[32].mxu1  ;;  %v8067_v30 = vadd.f32 %v8066_v8, %v8065_v40 }
 0x66b   :  { %v8091_v7 = vpop.f32.mrb[33].mxu1 }
 0x66c   :  { %v8092_v1 = vadd.f32 %v8091_v7, %v8090_v35  ;;  %v8093_v49 = vpop.f32.mrb[34].mxu1 }
 0x66d   :  { %v8094_v48 = vpop.f32.mrb[35].mxu1 }
 0x66e   :  { %v8095_v20 = vadd.f32 %v8094_v48, %v8093_v49  ;;  %v3996_v22 = vadd.f32 %v8092_v1, %v8064_v29 }
 0x670   :  { %v3999_v43 = vadd.f32 %v8095_v20, %v8067_v30 }
 0x67e   :  { %v8467_v60 = vpop.f32.mrb[44].mxu0 }
 0x67f   :  { %v4143_v32 = vadd.f32 %v8467_v60, %v3996_v22  ;;  %v4126_v33 = vpop.f32.mrb[45].mxu0 }
 0x680   :  { %v4141_v2 = vadd.f32 %v4126_v33, %v3988_v23  ;;  %v8468_v18 = vpop.f32.mrb[46].mxu0 }
 0x681   :  { %v4155_v14 = vmul.f32 %v7505_v58, %v4143_v32  ;;  %v4144_v5 = vadd.f32 %v8468_v18, %v3999_v43  ;;  %v4129_v19 = vpop.f32.mrb[47].mxu0 }
 0x682   :  { %v4153_v15 = vmul.f32 %v7505_v58, %v4141_v2  ;;  %v4142_v51 = vadd.f32 %v4129_v19, %v3991_v45 }
 0x683   :  { %v4167_v61 = vadd.f32 %v7506_v52, %v4155_v14  ;;  %v4156_v21 = vmul.f32 %v7505_v58, %v4144_v5 }
 0x684   :  { %v4165_v11 = vadd.f32 %v7506_v52, %v4153_v15  ;;  %v4154_v28 = vmul.f32 %v7505_v58, %v4142_v51 }
 0x685   :  { %v4171_v0 = vmax.f32 %v4167_v61, 0.0  ;;  %v4168_v56 = vadd.f32 %v7506_v52, %v4156_v21 }
 0x686   :  { %v4166_v34 = vadd.f32 %v7506_v52, %v4154_v28  ;;  %v4169_v41 = vmax.f32 %v4165_v11, 0.0 }
 0x687   :  { %v7770_v13 = vpack.c.bf16 %v4171_v0, %v4171_v0  ;;  %v4172_v4 = vmax.f32 %v4168_v56, 0.0 }
 0x688   :  { %v4170_v26 = vmax.f32 %v4166_v34, 0.0 }
 0x689   :  { %4191 = vst [vmem:[#allocation2 + $0x1c] sm:$0xf] %v7770_v13  ;;  %v7771_v50 = vpack.c.bf16 %v4172_v4, %v4172_v4 }
 0x68a   :  { %v7807_v9 = vpack.c.bf16 %v4170_v26, %v4169_v41 }
 0x68b   :  { %4192 = vst [vmem:[#allocation2 + $0x20] sm:$0xf] %v7771_v50 }
 0x68c   :  { %7828 = vst [vmem:[#allocation2 + $0x8] sm:$0xff] %v7807_v9  }
 0x690   :  { %v4325_v36 = vld [vmem:[#allocation2 + $0x1c] sm:$0xf] }
 0x691   :  { %v4353_v46 = vshrl.u32 %v4325_v36, 16  ;;  %v4356_v42 = vshll.u32 %v4325_v36, 16  ;;  %v4197_v12 = vld [vmem:[#allocation2 + $0x1c] sm:$0xf] }
 0x692   :  { %v4326_v25 = vld [vmem:[#allocation2 + $0x20] sm:$0xf] }
 0x693   :  { %v4198_v16 = vld [vmem:[#allocation2 + $0x20] sm:$0xf]  ;;  %v4322_v24 = vld [vmem:[#allocation2 + $0x8] sm:$0xf]  ;;  %v4323_v62 = vld [vmem:[#allocation2 + $0xc] sm:$0xf] }
 0x694   :  { %v4355_v39 = vrot.slane %v4353_v46, 4  ;;  %v4358_v23 = vrot.slane %v4356_v42, 5  ;;  %v7516_v6 = vcombine.low %v4197_v12, %v4198_v16  ;;  %v10494_v37 = vcombine.low %v4198_v16, %v4198_v16  ;;  %v4194_v35 = vld [vmem:[#allocation2 + $0x8] sm:$0xf]  ;;  %v4195_v49 = vld [vmem:[#allocation2 + $0xc] sm:$0xf] }
 0x695   :  { %v4329_v45 = vshrl.u32 %v4322_v24, 16  ;;  %v4332_v29 = vshll.u32 %v4322_v24, 16  ;;  %v4338_v40 = vshll.u32 %v4323_v62, 16  ;;  %v4342_v8 = vshrl.u32 %v4323_v62, 16 }
 0x696   :  { %v4359_v30 = vor.u32 %v4358_v23, %v4355_v39  ;;  %v4362_v7 = vshll.u32 %v4326_v25, 16  ;;  %v4366_v1 = vshrl.u32 %v4326_v25, 16  ;;  %v7511_v48 = vcombine.low %v4193_v10, %v4194_v35 }
 0x697   :  { %v4331_v20 = vrot.slane %v4329_v45, 4  ;;  %v4334_v22 = vrot.slane %v4332_v29, 5  ;;  %v4340_v43 = vrot.slane %v4338_v40, 5  ;;  %v4344_v60 = vrot.slane %v4342_v8, 4 }
 0x698   :  { %v4360_v58 = vrot.slane %v4359_v30, 4  ;;  %v4364_v32 = vrot.slane %v4362_v7, 5  ;;  %v4368_v33 = vrot.slane %v4366_v1, 4  ;;  %v7515_v52 = vcombine.low %v4194_v35, %v4195_v49 }
 0x699   :  { %v4335_v2 = vor.u32 %v4334_v22, %v4331_v20  ;;  %v4345_v18 = vor.u32 %v4344_v60, %v4340_v43  ;;  %v7512_v14 = vcombine.low %v4195_v49, %v4195_v49  ;;  %v4234_v5 = vshrl.u32 %v7511_v48, 16 }
 0x69a   :  { %v4365_v19 = vsel %vm10271_vm7, %v4360_v58, %v4364_v32  ;;  %v4369_v15 = vor.u32 %v4368_v33, %v4364_v32  ;;  %v4218_v51 = vshrl.u32 %v7515_v52, 16  ;;  %v4221_v61 = vshll.u32 %v7515_v52, 16 }
 0x69b   :  { %v4336_v21 = vrot.slane %v4335_v2, 4  ;;  %v4346_v11 = vrot.slane %v4345_v18, 4  ;;  %v4236_v28 = vrot.slane %v4234_v5, 3  ;;  %v4237_v0 = vshll.u32 %v7511_v48, 16  ;;  %v8941_v2 = vld [vmem:[%s10757_s6 + $0x40] sm:$0xff]   ;;  %v8942_v18 = vld [vmem:[%s10757_s6 + $0x48] sm:$0xff]  }
 0x69c   :  { %v4370_v56 = vrot.slane %v4369_v15, 4  ;;  %v4220_v34 = vrot.slane %v4218_v51, 4  ;;  %v4223_v13 = vrot.slane %v4221_v61, 5  ;;  %v4242_v4 = vshrl.u32 %v7512_v14, 16  ;;  %8489 = vmatprep.subr.bf16.mxu1 %v8941_v2  ;;  %v8944_v5 = vld [vmem:[#allocation6 + $0x240] sm:$0xff]   ;;  %v8946_v15 = vld [vmem:[#allocation6 + $0x288] sm:$0xff]  }
 0x69d   :  { %v4341_v41 = vsel %vm10271_vm7, %v4336_v21, %v4340_v43  ;;  %v4351_v26 = vsel %vm10271_vm7, %v4346_v11, %v4350_v44  ;;  %v4239_v50 = vrot.slane %v4237_v0, 4  ;;  %v4245_v9 = vshll.u32 %v7512_v14, 16  ;;  %v8943_v14 = vld [vmem:[#allocation6 + $0x280] sm:$0xff]   ;;  %v8947_v51 = vld [vmem:[#allocation6 + $0x248] sm:$0xff]   ;;  %v8949_v21 = vld [vmem:[#allocation6 + $0x290] sm:$0xff]  }
 0x69e   :  { %v7517_v53 = vcombine.low %v4341_v41, %v4351_v26  ;;  %v4375_v31 = vsel %vm10271_vm7, %v4370_v56, %v4374_v38  ;;  %v4224_v47 = vor.u32 %v4223_v13, %v4220_v34  ;;  %v4244_v36 = vrot.slane %v4242_v4, 3  ;;  %8154 = vmatprep.subr.bf16.mxu0 %v8943_v14  ;;  %v8948_v61 = vld [vmem:[%s10757_s6 + $0x58] sm:$0xff]   ;;  %v8952_v0 = vld [vmem:[#allocation6 + $0x298] sm:$0xff]   ;;  %v8955_v13 = vld [vmem:[#allocation6 + $0x2a0] sm:$0xff]  }
 0x69f   :  { %v7518_v46 = vcombine.low %v4365_v19, %v4375_v31  ;;  %v4247_v42 = vrot.slane %v4245_v9, 4  ;;  %v4226_v10 = vshrl.u32 %v7516_v6, 16  ;;  %v4229_v24 = vshll.u32 %v7516_v6, 16  ;;  %v8945_v19 = vld [vmem:[%s10757_s6 + $0x50] sm:$0xff]   ;;  %v8950_v11 = vld [vmem:[#allocation6 + $0x250] sm:$0xff]   ;;  %v8953_v56 = vld [vmem:[#allocation6 + $0x258] sm:$0xff]  }
 0x6a0   :  { %8485 = vmatprep.mubr.bf16.mxu1 %v7517_v53  ;;  %v4251_v25 = vshrl.u32 %v4224_v47, 16  ;;  %v4254_v16 = vshll.u32 %v4224_v47, 16  ;;  %v7513_v62 = vcombine.low %v4196_v57, %v4197_v12  ;;  %v4240_v39 = vor.u32 %v4239_v50, %v4236_v28  ;;  %v8951_v28 = vld [vmem:[%s10757_s6 + $0x60] sm:$0xff]   ;;  %v8954_v34 = vld [vmem:[%s10757_s6 + $0x68] sm:$0xff]   ;;  %v8957_v41 = vld [vmem:[%s10757_s6 + $0x70] sm:$0xff]  }
 0x6a1   :  { %8486 = vmatmul.mubr.bf16.vlgmr.msra.gmra.mrb[36].mxu1 %v7518_v46  ;;  %v4248_v44 = vor.u32 %v4247_v42, %v4244_v36  ;;  %v4228_v23 = vrot.slane %v4226_v10, 4  ;;  %v4231_v40 = vrot.slane %v4229_v24, 5  ;;  %v4268_v8 = vshrl.u32 %v10494_v37, 16  ;;  %v8956_v4 = vld [vmem:[#allocation6 + $0x260] sm:$0xff]   ;;  %v8962_v26 = vld [vmem:[#allocation6 + $0x2a8] sm:$0xff]   ;;  %v8965_v57 = vld [vmem:[#allocation6 + $0x2b0] sm:$0xff]  }
 0x6a2   :  { %v4253_v45 = vrot.slane %v4251_v25, 3  ;;  %v4256_v29 = vrot.slane %v4254_v16, 4  ;;  %v4271_v38 = vshll.u32 %v10494_v37, 16  ;;  %v4260_v7 = vshrl.u32 %v7513_v62, 16  ;;  %8490 = vmatpush3.bf16.msra.mxu1 %v8941_v2  ;;  %v8963_v50 = vld [vmem:[#allocation6 + $0x268] sm:$0xff]   ;;  %v8966_v53 = vld [vmem:[#allocation6 + $0x270] sm:$0xff]  }
 0x6a3   :  { %v4232_v30 = vor.u32 %v4231_v40, %v4228_v23  ;;  %v4263_v1 = vshll.u32 %v7513_v62, 16  ;;  %v4249_v49 = vsel %vm1850_vm8, %v4240_v39, %v4248_v44  ;;  %v4270_v48 = vrot.slane %v4268_v8, 3  ;;  %8491 = vmatprep.subr.bf16.mxu1 %v8942_v18  ;;  %v8964_v9 = vld [vmem:[%s10757_s6 + $0x78] sm:$0xff]   ;;  %v8967_v31 = vld [vmem:[#allocation6 + $0x200] sm:$0xff]   ;;  %v8969_v47 = vld [vmem:[#allocation6 + $0x2b8] sm:$0xff]  }
 0x6a4   :  { %v4257_v35 = vor.u32 %v4256_v29, %v4253_v45  ;;  %v4273_v20 = vrot.slane %v4271_v38, 4  ;;  %v4262_v60 = vrot.slane %v4260_v7, 3  ;;  %v8971_v36 = vld [vmem:[#allocation6 + $0x278] sm:$0xff]   ;;  %v8974_v46 = vld [vmem:[#allocation6 + $0x300] sm:$0xff]  }
 0x6a5   :  { %v4277_v6 = vshrl.u32 %v4232_v30, 16  ;;  %v4280_v12 = vshll.u32 %v4232_v30, 16  ;;  %v4265_v58 = vrot.slane %v4263_v1, 4  ;;  %v7369_v62 = vld [vmem:[#allocation11 + $0x7] ss:$0 sm:$0xff] }
 0x6a6   :  { %4625 = vmatprep.mubr.bf16.mxu0 %v4257_v35  ;;  %v4274_v33 = vor.u32 %v4273_v20, %v4270_v48  ;;  %8492 = vmatpush3.bf16.msra.mxu1 %v8942_v18  ;;  %v7543_v45 = vld [vmem:[#allocation11 + $0x6] ss:$0 sm:$0xff]  ;;  %v2451_v40 = vmul.f32 %v7369_v62, %v10439_v55  ;;  %v7370_v35 = vld [vmem:[#allocation12 + $0x7] ss:$0 sm:$0xff]  ;;  %v7544_v30 = vld [vmem:[#allocation12 + $0x6] ss:$0 sm:$0xff]  ;;  %v2452_v7 = vmul.f32 %v7369_v62, %v10443_v17 }
 0x6a7   :  { %4626 = vmatmul.mubr.bf16.vlgmr.msra.gmra.mrb[48].mxu0 %v4249_v49  ;;  %v4279_v22 = vrot.slane %v4277_v6, 3  ;;  %v4282_v43 = vrot.slane %v4280_v12, 4  ;;  %v4266_v37 = vor.u32 %v4265_v58, %v4262_v60  ;;  %8493 = vmatprep.subr.bf16.mxu1 %v8945_v19  ;;  %v2453_v55 = vmul.f32 %v10437_v27, %v7369_v62 }
 0x6a8   :  { %8155 = vmatpush3.bf16.msra.mxu0 %v8944_v5  ;;  %v2463_v6 = vadd.f32 %v7370_v35, %v2451_v40  ;;  %v2454_v17 = vmul.f32 %v10441_v63, %v7369_v62 }
 0x6a9   :  { %v4283_v32 = vor.u32 %v4282_v43, %v4279_v22  ;;  %v4275_v52 = vsel %vm1850_vm8, %v4266_v37, %v4274_v33  ;;  %8156 = vmatprep.subr.bf16.mxu0 %v8946_v15  ;;  %v2464_v43 = vadd.f32 %v7370_v35, %v2452_v7 }
 0x6aa   :  { %8494 = vmatpush3.bf16.msra.mxu1 %v8945_v19 }
 0x6ab   :  { %4633 = vmatprep.mubr.bf16.mxu0 %v4283_v32  ;;  %8495 = vmatprep.subr.bf16.mxu1 %v8948_v61 }
 0x6ac   :  { %8157 = vmatpush3.bf16.msra.mxu0 %v8947_v51  ;;  %v2465_v51 = vadd.f32 %v7370_v35, %v2453_v55 }
 0x6ad   :  { %8158 = vmatprep.subr.bf16.mxu0 %v8949_v21 }
 0x6ae   :  { %8496 = vmatpush3.bf16.msra.mxu1 %v8948_v61 }
 0x6af   :  { %4634 = vmatmul.mubr.bf16.gmra.mrb[52].mxu0 %v4275_v52  ;;  %8497 = vmatprep.subr.bf16.mxu1 %v8951_v28 }
 0x6b0   :  { %8159 = vmatpush3.bf16.msra.mxu0 %v8950_v11 }
 0x6b1   :  { %8160 = vmatprep.subr.bf16.mxu0 %v8952_v0 }
 0x6b2   :  { %8498 = vmatpush3.bf16.msra.mxu1 %v8951_v28  ;;  %v2466_v28 = vadd.f32 %v7370_v35, %v2454_v17 }
 0x6b3   :  { %8499 = vmatprep.subr.bf16.mxu1 %v8954_v34 }
 0x6b4   :  { %8161 = vmatpush3.bf16.msra.mxu0 %v8953_v56 }
 0x6b5   :  { %8162 = vmatprep.subr.bf16.mxu0 %v8955_v13 }
 0x6b6   :  { %8500 = vmatpush3.bf16.msra.mxu1 %v8954_v34 }
 0x6b7   :  { %8501 = vmatprep.subr.bf16.mxu1 %v8957_v41 }
 0x6b8   :  { %8163 = vmatpush3.bf16.msra.mxu0 %v8956_v4 }
 0x6b9   :  { %8164 = vmatprep.subr.bf16.mxu0 %v8962_v26 }
 0x6ba   :  { %8502 = vmatpush3.bf16.msra.mxu1 %v8957_v41  ;;  %v4852_v41 = vld [vmem:[#allocation2 + $0x4] sm:$0x8] }
 0x6bb   :  { %8503 = vmatprep.subr.bf16.mxu1 %v8964_v9 }
 0x6bc   :  { %8165 = vmatpush3.bf16.msra.mxu0 %v8963_v50 }
 0x6bd   :  { %8166 = vmatprep.subr.bf16.mxu0 %v8965_v57 }
 0x6be   :  { %8504 = vmatpush3.bf16.msra.mxu1 %v8964_v9 }
 0x6bf   :  { %8182 = vmatprep.subr.bf16.mxu1 %v8967_v31 }
 0x6c0   :  { %8167 = vmatpush3.bf16.msra.mxu0 %v8966_v53 }
 0x6c1   :  { %8168 = vmatprep.subr.bf16.mxu0 %v8969_v47  ;;  %v10542_v47 = vld [vmem:[#allocation2 + $0x10] ss:$0 sps:$4 sm:$0x11]  }
 0x6c4   :  { %8169 = vmatpush3.bf16.msra.mxu0 %v8971_v36 }
 0x6c5   :  { %8210 = vmatprep.subr.bf16.mxu0 %v8974_v46 }
 0x774   :  { %v8487_v42 = vpop.f32.mrb[36].mxu1 }
 0x775   :  { %v4482_v10 = vpop.f32.mrb[37].mxu1 }
 0x776   :  { %v8488_v25 = vpop.f32.mrb[38].mxu1 }
 0x777   :  { %v4485_v16 = vpop.f32.mrb[39].mxu1 }
 0x77a   :  { %v8132_v24 = vpop.f32.mrb[48].mxu0 }
 0x77b   :  { %v8133_v39 = vpop.f32.mrb[49].mxu0 }
 0x77c   :  { %v8134_v44 = vadd.f32 %v8133_v39, %v8132_v24  ;;  %v8135_v23 = vpop.f32.mrb[50].mxu0 }
 0x77d   :  { %v8136_v29 = vpop.f32.mrb[51].mxu0 }
 0x77e   :  { %v4628_v8 = vadd.f32 %v8134_v44, %v4482_v10  ;;  %v8137_v38 = vadd.f32 %v8136_v29, %v8135_v23 }
 0x780   :  { %v4650_v1 = vmul.f32 %v7543_v45, %v4628_v8  ;;  %v4631_v49 = vadd.f32 %v8137_v38, %v4485_v16 }
 0x782   :  { %v4662_v12 = vadd.f32 %v7544_v30, %v4650_v1  ;;  %v4651_v48 = vmul.f32 %v7543_v45, %v4631_v49  ;;  %v8138_v20 = vpop.f32.mrb[52].mxu0 }
 0x783   :  { %v8139_v22 = vpop.f32.mrb[53].mxu0 }
 0x784   :  { %v4666_v60 = vadd.f32 %v4662_v12, %v2463_v6  ;;  %v4663_v58 = vadd.f32 %v7544_v30, %v4651_v48  ;;  %v8140_v32 = vadd.f32 %v8139_v22, %v8138_v20  ;;  %v8141_v33 = vpop.f32.mrb[54].mxu0  ;;  %v5421_v12 = vshll.u32 %v10542_v47, 16  ;;  %v8970_v20 = vld [vmem:[#allocation6 + $0x1c0] sm:$0xff]  }
 0x785   :  { %v8142_v37 = vpop.f32.mrb[55].mxu0 }
 0x786   :  { %v4667_v52 = vadd.f32 %v4663_v58, %v2464_v43  ;;  %v4636_v2 = vadd.f32 %v8487_v42, %v8140_v32  ;;  %v8143_v18 = vadd.f32 %v8142_v37, %v8141_v33  ;;  %v4670_v14 = vmax.f32 %v4666_v60, 0.0  ;;  %v8972_v33 = vld [vmem:[#allocation6 + $0x208] sm:$0xff]  }
 0x788   :  { %v4671_v5 = vmax.f32 %v4667_v52, 0.0  ;;  %v4652_v19 = vmul.f32 %v7543_v45, %v4636_v2  ;;  %v4639_v15 = vadd.f32 %v8488_v25, %v8143_v18  ;;  %v4853_v25 = vld [vmem:[#allocation2 + $0x18] sm:$0x8] }
 0x78a   :  { %v7812_v61 = vpack.c.bf16 %v4671_v5, %v4670_v14  ;;  %v4664_v21 = vadd.f32 %v7544_v30, %v4652_v19  ;;  %v4653_v11 = vmul.f32 %v7543_v45, %v4639_v15 }
 0x78c   :  { %7829 = vst [vmem:[#allocation2 + $0x8] sm:$0xff] %v7812_v61   ;;  %v4668_v0 = vadd.f32 %v4664_v21, %v2465_v51  ;;  %v4665_v56 = vadd.f32 %v7544_v30, %v4653_v11  ;;  %v8973_v61 = vld [vmem:[#allocation6 + $0x1c8] sm:$0xff]  }
 0x78e   :  { %v4672_v34 = vmax.f32 %v4668_v0, 0.0  ;;  %v4669_v13 = vadd.f32 %v4665_v56, %v2466_v28 }
 0x790   :  { %v7774_v27 = vpack.c.bf16 %v4672_v34, %v4672_v34  ;;  %v4673_v4 = vmax.f32 %v4669_v13, 0.0  ;;  %v8975_v34 = vld [vmem:[#allocation6 + $0x2c0] sm:$0xff]  }
 0x792   :  { %4692 = vst [vmem:[#allocation2 + $0x1c] sm:$0xf] %v7774_v27  ;;  %v7775_v26 = vpack.c.bf16 %v4673_v4, %v4673_v4  ;;  %v8977_v27 = vld [vmem:[#allocation6 + $0x210] sm:$0xff]  }
 0x793   :  { %v10536_v63 = vld [vmem:[#allocation2 + $0x8] sm:$0xf]  ;;  %v4695_v50 = vld [vmem:[#allocation2 + $0xc] sm:$0xf] }
 0x794   :  { %4693 = vst [vmem:[#allocation2 + $0x20] sm:$0xf] %v7775_v26  ;;  %v7565_v9 = vcombine.low %v10536_v63, %v4695_v50  ;;  %v7581_v57 = vcombine.low %v4852_v41, %v10536_v63  ;;  %v7583_v53 = vcombine.low %v4695_v50, %v4695_v50  ;;  %v10540_v31 = vld [vmem:[#allocation2 + $0xc] ss:$0 sps:$4 sm:$0x77]   ;;  %v8979_v50 = vld [vmem:[#allocation6 + $0x308] sm:$0xff]  }
 0x795   :  { %v4880_v62 = vshll.u32 %v10540_v31, 16  ;;  %v4884_v39 = vshrl.u32 %v10540_v31, 16  ;;  %v10546_v44 = vld [vmem:[#allocation2 + $0xc] sm:$0xf]  ;;  %v10548_v8 = vld [vmem:[#allocation2 + $0x8] sm:$0xe] }
 0x796   :  { %8505 = vmatprep.mubr.bf16.mxu1 %v7565_v9  ;;  %v4873_v36 = vshrl.u32 %v7581_v57, 16  ;;  %v4875_v46 = vshll.u32 %v7581_v57, 16  ;;  %v5000_v42 = vshrl.u32 %v7565_v9, 16  ;;  %v5003_v10 = vshll.u32 %v7565_v9, 16  ;;  %v9002_v31 = vld [vmem:[#allocation6 + $0x1f8] sm:$0xff]  }
 0x797   :  { %v5019_v16 = vshrl.u32 %v7583_v53, 16  ;;  %v5022_v24 = vshll.u32 %v7583_v53, 16  ;;  %v4882_v1 = vrot.slane %v4880_v62, 1  ;;  %v10562_v58 = vcombine.low %v10548_v8, %v10546_v44 }
 0x798   :  { %v4877_v23 = vrot.slane %v4875_v46, 1  ;;  %v5002_v45 = vrot.slane %v5000_v42, 4  ;;  %v5005_v29 = vrot.slane %v5003_v10, 5  ;;  %v5015_v40 = vrot.slane %v4873_v36, 3 }
 0x799   :  { %v10550_v38 = vld [vmem:[#allocation2 + $0x1c] sm:$0xf]  ;;  %v5016_v35 = vrot.slane %v4875_v46, 4  ;;  %v5021_v30 = vrot.slane %v5019_v16, 3  ;;  %v5024_v7 = vrot.slane %v5022_v24, 4  ;;  %v4886_v43 = vor.u32 %v4884_v39, %v4882_v1  ;;  %v8980_v16 = vld [vmem:[#allocation6 + $0x2c8] sm:$0xff]  }
 0x79a   :  { %v5006_v49 = vor.u32 %v5005_v29, %v5002_v45  ;;  %v4878_v6 = vor.u32 %v4877_v23, %v4873_v36  ;;  %v10558_v60 = vcombine.low %v4853_v25, %v10550_v38  ;;  %v5416_v42 = vshll.u32 %v10562_v58, 16  ;;  %v8978_v25 = vld [vmem:[#allocation6 + $0x1d0] sm:$0xff]   ;;  %v8981_v24 = vld [vmem:[#allocation6 + $0x218] sm:$0xff]  }
 0x79b   :  { %v4697_v48 = vld [vmem:[#allocation2 + $0x20] sm:$0xf]  ;;  %v5017_v22 = vor.u32 %v5016_v35, %v5015_v40  ;;  %v5025_v2 = vor.u32 %v5024_v7, %v5021_v30  ;;  %v4923_v14 = vshrl.u32 %v4886_v43, 16  ;;  %v4926_v15 = vshll.u32 %v4886_v43, 16 }
 0x79c   :  { %v7566_v32 = vcombine.low %v10550_v38, %v4697_v48  ;;  %v5028_v37 = vshrl.u32 %v5006_v49, 16  ;;  %v5031_v55 = vshll.u32 %v5006_v49, 16  ;;  %v4883_v52 = vsel %vm1162_vm0, %v4878_v6, %v4882_v1  ;;  %v10575_v49 = vld [vmem:[#allocation2 + $0x20] ss:$0 sps:$4 sm:$0x77]  }
 0x79d   :  { %v4915_v18 = vshrl.u32 %v4883_v52, 16  ;;  %v4918_v17 = vshll.u32 %v4883_v52, 16  ;;  %v4925_v28 = vrot.slane %v4923_v14, 2  ;;  %v4928_v13 = vrot.slane %v4926_v15, 3  ;;  %v8982_v52 = vld [vmem:[#allocation6 + $0x1d8] sm:$0xff]  }
 0x79e   :  { %8506 = vmatmul.mubr.bf16.vlgmr.msra.gmra.mrb[40].mxu1 %v7566_v32  ;;  %v5030_v5 = vrot.slane %v5028_v37, 3  ;;  %v5033_v19 = vrot.slane %v5031_v55, 4  ;;  %v5008_v51 = vshrl.u32 %v7566_v32, 16  ;;  %v5011_v0 = vshll.u32 %v7566_v32, 16  ;;  %v10580_v14 = vld [vmem:[#allocation2 + $0x20] sm:$0xf] }
 0x79f   :  { %8183 = vmatpush3.bf16.msra.mxu1 %v8970_v20  ;;  %v4917_v21 = vrot.slane %v4915_v18, 2  ;;  %v4920_v11 = vrot.slane %v4918_v17, 3  ;;  %v4888_v41 = vshrl.u32 %v10558_v60, 16  ;;  %v4890_v57 = vshll.u32 %v10558_v60, 16 }
 0x7a0   :  { %8184 = vmatprep.subr.bf16.mxu1 %v8972_v33  ;;  %v5034_v56 = vor.u32 %v5033_v19, %v5030_v5  ;;  %v5010_v4 = vrot.slane %v5008_v51, 4  ;;  %v5013_v9 = vrot.slane %v5011_v0, 5  ;;  %v7584_v53 = vcombine.low %v4697_v48, %v4697_v48  ;;  %v8983_v48 = vld [vmem:[#allocation6 + $0x310] sm:$0xff]   ;;  %v4848_v33 = vld [vmem:[#allocation2 + $0x4] sm:$0xc] }
 0x7a1   :  { %v4921_v26 = vor.u32 %v4920_v11, %v4917_v21  ;;  %v5026_v36 = vsel %vm1850_vm8, %v5017_v22, %v5025_v2  ;;  %v4929_v46 = vor.u32 %v4928_v13, %v4925_v28  ;;  %v5425_v10 = vshrl.u32 %v10542_v47, 16  ;;  %v10582_v5 = vld [vmem:[#allocation2 + $0x24] ss:$0 sps:$4 sm:$0x11]   ;;  %v10587_v13 = vld [vmem:[#allocation2 + $0x1c] sm:$0xe] }
 0x7a2   :  { %5221 = vmatprep.mubr.bf16.mxu0 %v5034_v56  ;;  %v5014_v23 = vor.u32 %v5013_v9, %v5010_v4  ;;  %v5036_v45 = vrot.slane %v4888_v41, 3  ;;  %v5040_v29 = vshrl.u32 %v7584_v53, 16  ;;  %v10571_v40 = vrot.slane %v5421_v12, 1  ;;  %v8991_v56 = vld [vmem:[#allocation6 + $0x318] sm:$0xff]  }
 0x7a3   :  { %8185 = vmatpush3.bf16.msra.mxu1 %v8973_v61  ;;  %5222 = vmatmul.mubr.bf16.vlgmr.msra.gmra.mrb[56].mxu0 %v5026_v36  ;;  %v4930_v35 = vsel %vm2521_vm9, %v4921_v26, %v4929_v46  ;;  %v5043_v30 = vshll.u32 %v7584_v53, 16  ;;  %v5414_v7 = vshrl.u32 %v10562_v58, 16  ;;  %v5418_v1 = vrot.slane %v5416_v42, 1  ;;  %v8989_v58 = vld [vmem:[#allocation6 + $0x220] sm:$0xff]   ;;  %v8986_v61 = vld [vmem:[#allocation6 + $0x2d0] sm:$0xff]   ;;  %v8992_v36 = vld [vmem:[#allocation6 + $0x2d8] sm:$0xff]  }
 0x7a4   :  { %8211 = vmatpush3.bf16.msra.mxu0 %v8975_v34  ;;  %8186 = vmatprep.subr.bf16.mxu1 %v8977_v27  ;;  %v5049_v47 = vshrl.u32 %v5014_v23, 16  ;;  %v5052_v6 = vshll.u32 %v5014_v23, 16  ;;  %v4892_v20 = vrot.slane %v4890_v57, 1  ;;  %v5037_v22 = vrot.slane %v4890_v57, 4  ;;  %v8990_v26 = vld [vmem:[#allocation6 + $0x1e0] sm:$0xff]  }
 0x7a5   :  { %5366 = vmatprep.mubr.bf16.mxu1 %v4930_v35  ;;  %8212 = vmatprep.subr.bf16.mxu0 %v8979_v50  ;;  %v5042_v43 = vrot.slane %v5040_v29, 3  ;;  %v5045_v12 = vrot.slane %v5043_v30, 4  ;;  %v5419_v60 = vor.u32 %v5418_v1, %v5414_v7  ;;  %v5457_v32 = vshll.u32 %v5425_v10, 16  ;;  %v10594_v57 = vld [vmem:[#allocation2 + $0x10] sm:$0x3] }
 0x7a6   :  { %v5051_v37 = vrot.slane %v5049_v47, 3  ;;  %v5054_v55 = vrot.slane %v5052_v6, 4  ;;  %v4895_v17 = vshll.u32 %v10575_v49, 16  ;;  %v4893_v15 = vor.u32 %v4892_v20, %v4888_v41  ;;  %v8995_v10 = vld [vmem:[#allocation6 + $0x320] sm:$0xff]   ;;  %v5383_v6 = vld [vmem:[#allocation2 + $0x8] sm:$0xf] }
 0x7a7   :  { %8187 = vmatpush3.bf16.msra.mxu1 %v8978_v25  ;;  %v5046_v2 = vor.u32 %v5045_v12, %v5042_v43  ;;  %v5424_v18 = vsel %vm1162_vm0, %v5419_v60, %v10571_v40  ;;  %v5038_v51 = vor.u32 %v5037_v22, %v5036_v45  ;;  %v7577_v11 = vcombine.low %v4848_v33, %v10536_v63  ;;  %v8993_v63 = vld [vmem:[#allocation6 + $0x228] sm:$0xff]   ;;  %v8996_v23 = vld [vmem:[#allocation6 + $0x2e0] sm:$0xff]   ;;  %v8997_v45 = vld [vmem:[#allocation6 + $0x230] sm:$0xff]  }
 0x7a8   :  { %8213 = vmatpush3.bf16.msra.mxu0 %v8980_v16  ;;  %8188 = vmatprep.subr.bf16.mxu1 %v8981_v24  ;;  %v5055_v19 = vor.u32 %v5054_v55, %v5051_v37  ;;  %v5452_v21 = vshll.u32 %v5424_v18, 16  ;;  %v5450_v28 = vshrl.u32 %v5424_v18, 16  ;;  %v5459_v0 = vrot.slane %v5457_v32, 1  ;;  %v8994_v24 = vld [vmem:[#allocation6 + $0x1e8] sm:$0xff]  }
 0x7a9   :  { %8214 = vmatprep.subr.bf16.mxu0 %v8983_v48  ;;  %v4897_v34 = vrot.slane %v4895_v17, 1  ;;  %v5047_v27 = vsel %vm1850_vm8, %v5038_v51, %v5046_v2  ;;  %v4899_v41 = vshrl.u32 %v10575_v49, 16  ;;  %v7622_v50 = vcombine.low %v10587_v13, %v10580_v14  ;;  %v4850_v60 = vld [vmem:[#allocation2 + $0x18] sm:$0xc]  ;;  %v9001_v51 = vld [vmem:[#allocation6 + $0x238] sm:$0xff]  }
 0x7aa   :  { %5229 = vmatprep.mubr.bf16.mxu0 %v5055_v19  ;;  %v5454_v4 = vrot.slane %v5452_v21, 1  ;;  %v5435_v9 = vshll.u32 %v10582_v5, 16  ;;  %v4903_v25 = vshrl.u32 %v7577_v11, 16  ;;  %v5688_v35 = vshrl.u32 %v10594_v57, 16  ;;  %v8999_v32 = vld [vmem:[#allocation6 + $0x328] sm:$0xff]  }
 0x7ab   :  { %8189 = vmatpush3.bf16.msra.mxu1 %v8982_v52  ;;  %5230 = vmatmul.mubr.bf16.gmra.mrb[60].mxu0 %v5047_v27  ;;  %v4898_v46 = vsel %vm1162_vm0, %v4893_v15, %v4897_v34  ;;  %v4901_v42 = vor.u32 %v4899_v41, %v4897_v34  ;;  %v5430_v29 = vshll.u32 %v7622_v50, 16  ;;  %v5691_v30 = vshll.u32 %v10594_v57, 16  ;;  %v9003_v27 = vld [vmem:[#allocation6 + $0x330] sm:$0xff]  }
 0x7ac   :  { %8190 = vmatprep.subr.bf16.mxu1 %v8989_v58  ;;  %8215 = vmatpush3.bf16.msra.mxu0 %v8986_v61  ;;  %v5455_v53 = vor.u32 %v5454_v4, %v5450_v28  ;;  %v4906_v7 = vshll.u32 %v7577_v11, 16  ;;  %v4944_v1 = vshrl.u32 %v4898_v46, 16  ;;  %v4947_v47 = vshll.u32 %v4898_v46, 16  ;;  %v8998_v58 = vld [vmem:[#allocation6 + $0x1f0] sm:$0xff]  }
 0x7ad   :  { %8216 = vmatprep.subr.bf16.mxu0 %v8991_v56  ;;  %v10602_v48 = vrot.slane %v5435_v9, 1  ;;  %v4952_v20 = vshrl.u32 %v4901_v42, 16  ;;  %v4955_v22 = vshll.u32 %v4901_v42, 16  ;;  %v5428_v43 = vshrl.u32 %v7622_v50, 16  ;;  %v9004_v42 = vld [vmem:[#allocation6 + $0x2f0] sm:$0xff]  }
 0x7ae   :  { %v5460_v16 = vsel %vm1162_vm0, %v5455_v53, %v5459_v0  ;;  %v5432_v12 = vrot.slane %v5430_v29, 1  ;;  %v4905_v33 = vrot.slane %v4903_v25, 2  ;;  %v5669_v37 = vshrl.u32 %v10548_v8, 16  ;;  %v9000_v0 = vld [vmem:[#allocation6 + $0x2e8] sm:$0xff]   ;;  %v9005_v53 = vld [vmem:[#allocation6 + $0x340] sm:$0xff]  }
 0x7af   :  { %8191 = vmatpush3.bf16.msra.mxu1 %v8990_v26  ;;  %5645 = vmatprep.mubr.bf16.mxu0 %v5460_v16  ;;  %v5678_v55 = vshrl.u32 %v10546_v44, 16  ;;  %v5681_v52 = vshll.u32 %v10546_v44, 16  ;;  %v4910_v2 = vrot.slane %v4884_v39, 2  ;;  %v10610_v18 = vcombine.low %v5383_v6, %v10546_v44 }
 0x7b0   :  { %8192 = vmatprep.subr.bf16.mxu1 %v8993_v63  ;;  %8217 = vmatpush3.bf16.msra.mxu0 %v8992_v36  ;;  %v5433_v19 = vor.u32 %v5432_v12, %v5428_v43  ;;  %v5672_v15 = vshll.u32 %v10548_v8, 16  ;;  %v4908_v61 = vrot.slane %v4906_v7, 3  ;;  %v4911_v21 = vrot.slane %v4880_v62, 3  ;;  %v5386_v7 = vld [vmem:[#allocation2 + $0x1c] sm:$0xf]  ;;  %v9008_v43 = vld [vmem:[#allocation6 + $0x2f8] sm:$0xff]  }
 0x7b1   :  { %8218 = vmatprep.subr.bf16.mxu0 %v8995_v10  ;;  %v4946_v11 = vrot.slane %v4944_v1, 2  ;;  %v7579_v28 = vcombine.low %v4850_v60, %v10550_v38  ;;  %v4949_v56 = vrot.slane %v4947_v47, 3  ;;  %v4954_v34 = vrot.slane %v4952_v20, 2 }
 0x7b2   :  { %v4957_v39 = vrot.slane %v4955_v22, 3  ;;  %v5438_v44 = vsel %vm1162_vm0, %v5433_v19, %v10602_v48  ;;  %v5671_v8 = vrot.slane %v5669_v37, 5  ;;  %v5674_v4 = vrot.slane %v5672_v15, 6 }
 0x7b3   :  { %8193 = vmatpush3.bf16.msra.mxu1 %v8994_v24  ;;  %v5680_v26 = vrot.slane %v5678_v55, 5  ;;  %v5683_v50 = vrot.slane %v5681_v52, 6  ;;  %v5444_v62 = vshll.u32 %v10610_v18, 16  ;;  %v5690_v63 = vrot.slane %v5688_v35, 5 }
 0x7b4   :  { %8194 = vmatprep.subr.bf16.mxu1 %v8997_v45  ;;  %8219 = vmatpush3.bf16.msra.mxu0 %v8996_v23  ;;  %v5693_v38 = vrot.slane %v5691_v30, 6  ;;  %v4909_v9 = vor.u32 %v4908_v61, %v4905_v33  ;;  %v4912_v57 = vor.u32 %v4911_v21, %v4910_v2  ;;  %v5439_v36 = vshrl.u32 %v10582_v5, 16  ;;  %v9007_v23 = vld [vmem:[#allocation6 + $0x338] sm:$0xff]   ;;  %v9009_v5 = vld [vmem:[#allocation6 + $0x348] sm:$0xff]  }
 0x7b5   :  { %8220 = vmatprep.subr.bf16.mxu0 %v8999_v32  ;;  %v5472_v46 = vshll.u32 %v5438_v44, 16  ;;  %v4932_v10 = vshrl.u32 %v7579_v28, 16  ;;  %v4935_v25 = vshll.u32 %v7579_v28, 16  ;;  %v4950_v16 = vor.u32 %v4949_v56, %v4946_v11 }
 0x7b6   :  { %v4958_v24 = vor.u32 %v4957_v39, %v4954_v34  ;;  %v5675_v45 = vor.u32 %v5674_v4, %v5671_v8  ;;  %v5684_v29 = vor.u32 %v5683_v50, %v5680_v26  ;;  %v5446_v35 = vrot.slane %v5444_v62, 1  ;;  %v5667_v4 = vld [vmem:[#allocation2 + $0x24] sm:$0x3]  ;;  %v9018_v62 = vld [vmem:[#allocation6 + $0x368] sm:$0xff]  }
 0x7b7   :  { %8195 = vmatpush3.bf16.msra.mxu1 %v8998_v58  ;;  %v5694_v30 = vor.u32 %v5693_v38, %v5690_v63  ;;  %v7619_v1 = vcombine.low %v5386_v7, %v10580_v14  ;;  %v4913_v47 = vsel %vm2521_vm9, %v4909_v9, %v4912_v57  ;;  %v5474_v6 = vrot.slane %v5472_v46, 1  ;;  %v9021_v7 = vld [vmem:[#allocation8 + $0x340] sm:$0xff]  }
 0x7b8   :  { %8196 = vmatprep.subr.bf16.mxu1 %v9001_v51  ;;  %8221 = vmatpush3.bf16.msra.mxu0 %v9000_v0  ;;  %v5477_v20 = vshll.u32 %v5439_v36, 16  ;;  %v4939_v22 = vrot.slane %v4899_v41, 2  ;;  %v5442_v12 = vshrl.u32 %v10610_v18, 16  ;;  %v4934_v60 = vrot.slane %v4932_v10, 2  ;;  %v9014_v18 = vld [vmem:[#allocation6 + $0x350] sm:$0xff]   ;;  %v9015_v0 = vld [vmem:[#allocation6 + $0x358] sm:$0xff]  }
 0x7b9   :  { %8222 = vmatprep.subr.bf16.mxu0 %v9003_v27  ;;  %v4937_v32 = vrot.slane %v4935_v25, 3  ;;  %v4940_v33 = vrot.slane %v4895_v17, 3  ;;  %v4959_v37 = vsel %vm2521_vm9, %v4950_v16, %v4958_v24  ;;  %v5470_v55 = vshrl.u32 %v5438_v44, 16  ;;  %v9017_v27 = vld [vmem:[#allocation6 + $0x360] sm:$0xff]   ;;  %v9020_v25 = vld [vmem:[#allocation6 + $0x378] sm:$0xff]  }
 0x7ba   :  { %v5676_v52 = vrot.slane %v5675_v45, 4  ;;  %v5686_v58 = vrot.slane %v5684_v29, 4  ;;  %v5447_v2 = vor.u32 %v5446_v35, %v5442_v12  ;;  %v5464_v41 = vshll.u32 %v7619_v1, 16  ;;  %v9022_v35 = vld [vmem:[#allocation8 + $0x300] sm:$0xff]   ;;  %v9032_v12 = vld [vmem:[#allocation8 + $0x2d0] sm:$0xff]  }
 0x7bb   :  { %8197 = vmatpush3.bf16.msra.mxu1 %v9002_v31  ;;  %v5475_v19 = vor.u32 %v5474_v6, %v5470_v55  ;;  %v5479_v15 = vrot.slane %v5477_v20, 1  ;;  %v4938_v51 = vor.u32 %v4937_v32, %v4934_v60  ;;  %v4941_v61 = vor.u32 %v4940_v33, %v4939_v22  ;;  %v9027_v6 = vld [vmem:[#allocation8 + $0x350] sm:$0xff]   ;;  %v9028_v20 = vld [vmem:[#allocation8 + $0x2c8] sm:$0xff]   ;;  %v9033_v60 = vld [vmem:[#allocation8 + $0x318] sm:$0xff]  }
 0x7bc   :  { %8509 = vmatprep.subr.bf16.mxu1 %v9005_v53  ;;  %8223 = vmatpush3.bf16.msra.mxu0 %v9004_v42  ;;  %v5685_v49 = vsel %vm10412_vm12, %v5676_v52, %v5684_v29  ;;  %v5695_v17 = vsel %vm10412_vm12, %v5686_v58, %v5694_v30  ;;  %v5448_v21 = vsel %vm1162_vm0, %v5447_v2, %v10571_v40  ;;  %v5466_v11 = vrot.slane %v5464_v41, 1  ;;  %v9023_v30 = vld [vmem:[#allocation8 + $0x348] sm:$0xff]   ;;  %v9029_v22 = vld [vmem:[#allocation8 + $0x310] sm:$0xff]   ;;  %v9035_v33 = vld [vmem:[#allocation8 + $0x360] sm:$0xff]  }
 0x7bd   :  { %8224 = vmatprep.subr.bf16.mxu0 %v9007_v23  ;;  %v5480_v28 = vsel %vm1162_vm0, %v5475_v19, %v5479_v15  ;;  %v4942_v56 = vsel %vm2521_vm9, %v4938_v51, %v4941_v61  ;;  %v7639_v34 = vcombine.low %v5685_v49, %v5695_v17  ;;  %v5462_v39 = vshrl.u32 %v7619_v1, 16  ;;  %v9024_v1 = vld [vmem:[#allocation8 + $0x2c0] sm:$0xff]   ;;  %v9034_v32 = vld [vmem:[#allocation8 + $0x290] sm:$0xff]   ;;  %v9038_v52 = vld [vmem:[#allocation8 + $0x298] sm:$0xff]  }
 0x7be   :  { %5367 = vmatmul.mubr.bf16.vlgmr.msra.gmra.mrb[44].mxu1 %v4913_v47  ;;  %v5706_v40 = vshrl.u32 %v10580_v14, 16  ;;  %v5709_v8 = vshll.u32 %v10580_v14, 16  ;;  %v5697_v50 = vshrl.u32 %v10587_v13, 16  ;;  %v5700_v31 = vshll.u32 %v10587_v13, 16  ;;  %v9019_v14 = vld [vmem:[#allocation6 + $0x370] sm:$0xff]   ;;  %v9025_v47 = vld [vmem:[#allocation8 + $0x308] sm:$0xff]  }
 0x7bf   :  { %5374 = vmatprep.mubr.bf16.mxu1 %v4959_v37  ;;  %8510 = vmatpush3.bf16.msra.mxu1 %v9005_v53  ;;  %v5467_v44 = vor.u32 %v5466_v11, %v5462_v39  ;;  %v5716_v9 = vshrl.u32 %v5667_v4, 16  ;;  %v5719_v57 = vshll.u32 %v5667_v4, 16  ;;  %v9036_v37 = vld [vmem:[#allocation8 + $0x2d8] sm:$0xff]   ;;  %v9037_v55 = vld [vmem:[#allocation8 + $0x320] sm:$0xff]   ;;  %v9039_v58 = vld [vmem:[#allocation8 + $0x368] sm:$0xff]  }
 0x7c0   :  { %8511 = vmatprep.subr.bf16.mxu1 %v9009_v5  ;;  %8225 = vmatpush3.bf16.msra.mxu0 %v9008_v43  ;;  %v5708_v63 = vrot.slane %v5706_v40, 5  ;;  %v5711_v38 = vrot.slane %v5709_v8, 6  ;;  %v5699_v53 = vrot.slane %v5697_v50, 5  ;;  %v5702_v36 = vrot.slane %v5700_v31, 6  ;;  %v9030_v43 = vld [vmem:[#allocation8 + $0x288] sm:$0xff]   ;;  %v9040_v2 = vld [vmem:[#allocation8 + $0x2e0] sm:$0xff]  }
 0x7c1   :  { %v5468_v26 = vsel %vm1162_vm0, %v5467_v44, %v10602_v48  ;;  %v5718_v42 = vrot.slane %v5716_v9, 5  ;;  %v5721_v48 = vrot.slane %v5719_v57, 6  ;;  %8248 = vmatprep.subr.bf16.mxu0 %v9021_v7  ;;  %v9041_v41 = vld [vmem:[#allocation8 + $0x328] sm:$0xff]   ;;  %v9042_v19 = vld [vmem:[#allocation8 + $0x2a0] sm:$0xff]   ;;  %v9043_v15 = vld [vmem:[#allocation8 + $0x370] sm:$0xff]  }
 0x7c2   :  { %v5712_v46 = vor.u32 %v5711_v38, %v5708_v63  ;;  %v5703_v10 = vor.u32 %v5702_v36, %v5699_v53  ;;  %v9045_v51 = vld [vmem:[#allocation8 + $0x330] sm:$0xff]   ;;  %v9046_v61 = vld [vmem:[#allocation8 + $0x2a8] sm:$0xff]   ;;  %v9047_v49 = vld [vmem:[#allocation8 + $0x378] sm:$0xff]  }
 0x7c3   :  { %8512 = vmatpush3.bf16.msra.mxu1 %v9009_v5  ;;  %5646 = vmatmul.mubr.bf16.vlgmr.msra.gmra.mrb[64].mxu0 %v5448_v21  ;;  %v5722_v16 = vor.u32 %v5721_v48, %v5718_v42  ;;  %v9026_v5 = vld [vmem:[#allocation8 + $0x280] sm:$0xff]   ;;  %v9048_v17 = vld [vmem:[#allocation8 + $0x2f0] sm:$0xff]   ;;  %v9049_v21 = vld [vmem:[#allocation8 + $0x338] sm:$0xff]  }
 0x7c4   :  { %8513 = vmatprep.subr.bf16.mxu1 %v9014_v18  ;;  %5653 = vmatprep.mubr.bf16.mxu0 %v5480_v28  ;;  %v5714_v13 = vrot.slane %v5712_v46, 4  ;;  %v5704_v24 = vrot.slane %v5703_v10, 4  ;;  %v9050_v11 = vld [vmem:[#allocation8 + $0x2b0] sm:$0xff]   ;;  %v9053_v28 = vld [vmem:[#allocation8 + $0x2f8] sm:$0xff]  }
 0x7c5   :  { %8249 = vmatpush3.bf16.msra.mxu0 %v9022_v35 }
 0x7c6   :  { %5375 = vmatmul.mubr.bf16.gmra.mrb[48].mxu1 %v4942_v56  ;;  %v5723_v23 = vsel %vm10412_vm12, %v5714_v13, %v5722_v16  ;;  %v5713_v45 = vsel %vm10412_vm12, %v5704_v24, %v5712_v46  ;;  %8250 = vmatprep.subr.bf16.mxu0 %v9023_v30  ;;  %v9057_v56 = vld [vmem:[#allocation8 + $0x2b8] sm:$0xff]  }
 0x7c7   :  { %8514 = vmatpush3.bf16.msra.mxu1 %v9014_v18  ;;  %8525 = vmatprep.mubr.bf16.mxu1 %v7639_v34  ;;  %v7640_v29 = vcombine.low %v5713_v45, %v5723_v23  ;;  %v9044_v18 = vld [vmem:[#allocation8 + $0x2e8] sm:$0xff]  }
 0x7c8   :  { %8515 = vmatprep.subr.bf16.mxu1 %v9015_v0 }
 0x7c9   :  { %8251 = vmatpush3.bf16.msra.mxu0 %v9025_v47 }
 0x7ca   :  { %8252 = vmatprep.subr.bf16.mxu0 %v9027_v6 }
 0x7cb   :  { %8516 = vmatpush3.bf16.msra.mxu1 %v9015_v0  ;;  %5654 = vmatmul.mubr.bf16.gmra.mrb[68].mxu0 %v5468_v26  ;;  %v10646_v0 = vld [vmem:[#allocation8 + $0x380] sm:$0xff]  }
 0x7cc   :  { %8517 = vmatprep.subr.bf16.mxu1 %v9017_v27 }
 0x7cd   :  { %8253 = vmatpush3.bf16.msra.mxu0 %v9029_v22 }
 0x7ce   :  { %8254 = vmatprep.subr.bf16.mxu0 %v9031_v54 }
 0x7cf   :  { %8518 = vmatpush3.bf16.msra.mxu1 %v9017_v27 }
 0x7d0   :  { %8519 = vmatprep.subr.bf16.mxu1 %v9018_v62 }
 0x7d1   :  { %8255 = vmatpush3.bf16.msra.mxu0 %v9033_v60 }
 0x7d2   :  { %8256 = vmatprep.subr.bf16.mxu0 %v9035_v33 }
 0x7d3   :  { %8520 = vmatpush3.bf16.msra.mxu1 %v9018_v62 }
 0x7d4   :  { %8521 = vmatprep.subr.bf16.mxu1 %v9019_v14 }
 0x7d5   :  { %8257 = vmatpush3.bf16.msra.mxu0 %v9037_v55 }
 0x7d6   :  { %8258 = vmatprep.subr.bf16.mxu0 %v9039_v58 }
 0x7d7   :  { %8522 = vmatpush3.bf16.msra.mxu1 %v9019_v14 }
 0x7d8   :  { %8523 = vmatprep.subr.bf16.mxu1 %v9020_v25 }
 0x7d9   :  { %8259 = vmatpush3.bf16.msra.mxu0 %v9041_v41  ;;  %v7649_v41 = vld [vmem:[#allocation11 + $0x8] ss:$0 sm:$0xff] }
 0x7da   :  { %8260 = vmatprep.subr.bf16.mxu0 %v9043_v15 }
 0x7db   :  { %8524 = vmatpush3.bf16.msra.mxu1 %v9020_v25 }
 0x7dc   :  { %8276 = vmatprep.subr.bf16.mxu1 %v9024_v1 }
 0x7dd   :  { %8261 = vmatpush3.bf16.msra.mxu0 %v9045_v51 }
 0x7de   :  { %8526 = vmatmul.mubr.bf16.vlgmr.msra.gmra.mrb[52].mxu1 %v7640_v29  ;;  %8262 = vmatprep.subr.bf16.mxu0 %v9047_v49 }
 0x7df   :  { %8277 = vmatpush3.bf16.msra.mxu1 %v9026_v5 }
 0x7e0   :  { %8278 = vmatprep.subr.bf16.mxu1 %v9028_v20 }
 0x7e1   :  { %8263 = vmatpush3.bf16.msra.mxu0 %v9049_v21 }
 0x7e2   :  { %8529 = vmatprep.subr.bf16.mxu0 %v10646_v0 }
 0x7e3   :  { %8279 = vmatpush3.bf16.msra.mxu1 %v9030_v43 }
 0x7e4   :  { %8280 = vmatprep.subr.bf16.mxu1 %v9032_v12 }
 0x7e7   :  { %8281 = vmatpush3.bf16.msra.mxu1 %v9034_v32 }
 0x7e8   :  { %8282 = vmatprep.subr.bf16.mxu1 %v9036_v37 }
 0x7eb   :  { %8283 = vmatpush3.bf16.msra.mxu1 %v9038_v52 }
 0x7ec   :  { %8284 = vmatprep.subr.bf16.mxu1 %v9040_v2 }
 0x7ef   :  { %8285 = vmatpush3.bf16.msra.mxu1 %v9042_v19 }
 0x7f0   :  { %8286 = vmatprep.subr.bf16.mxu1 %v9044_v18  ;;  %v7650_v18 = vld [vmem:[#allocation12 + $0x8] ss:$0 sm:$0xff] }
 0x7f3   :  { %8287 = vmatpush3.bf16.msra.mxu1 %v9046_v61 }
 0x7f4   :  { %8288 = vmatprep.subr.bf16.mxu1 %v9048_v17 }
 0x7f7   :  { %8289 = vmatpush3.bf16.msra.mxu1 %v9050_v11 }
 0x7f8   :  { %8290 = vmatprep.subr.bf16.mxu1 %v9053_v28 }
 0x7fb   :  { %8291 = vmatpush3.bf16.msra.mxu1 %v9057_v56 }
 0x871   :  { %v10649_v34 = vpop.f32.mrb[40].mxu1 }
 0x872   :  { %v10651_v39 = vpop.f32.mrb[41].mxu1 }
 0x873   :  { %v10653_v44 = vpop.f32.mrb[42].mxu1 }
 0x874   :  { %v10655_v27 = vpop.f32.mrb[43].mxu1 }
 0x876   :  { %v8170_v40 = vpop.f32.mrb[56].mxu0 }
 0x877   :  { %v8171_v8 = vpop.f32.mrb[57].mxu0 }
 0x878   :  { %v8172_v4 = vadd.f32 %v8171_v8, %v8170_v40  ;;  %v8173_v26 = vpop.f32.mrb[58].mxu0 }
 0x879   :  { %v8174_v50 = vpop.f32.mrb[59].mxu0 }
 0x87a   :  { %v8175_v31 = vadd.f32 %v8174_v50, %v8173_v26 }
 0x87e   :  { %v8176_v62 = vpop.f32.mrb[60].mxu0 }
 0x87f   :  { %v8177_v63 = vpop.f32.mrb[61].mxu0 }
 0x880   :  { %v8178_v38 = vadd.f32 %v8177_v63, %v8176_v62  ;;  %v8179_v9 = vpop.f32.mrb[62].mxu0 }
 0x881   :  { %v8180_v57 = vpop.f32.mrb[63].mxu0 }
 0x882   :  { %v8181_v53 = vadd.f32 %v8180_v57, %v8179_v9 }
 0x891   :  { %v8198_v36 = vpop.f32.mrb[44].mxu1 }
 0x892   :  { %v8199_v14 = vpop.f32.mrb[45].mxu1 }
 0x893   :  { %v8200_v46 = vadd.f32 %v8199_v14, %v8198_v36  ;;  %v8201_v42 = vpop.f32.mrb[46].mxu1  ;;  %v10659_v14 = vld [vmem:[#allocation2 + $0x24] sm:$0x1] }
 0x894   :  { %v8202_v48 = vpop.f32.mrb[47].mxu1 }
 0x895   :  { %v5369_v10 = vadd.f32 %v8200_v46, %v8172_v4  ;;  %v8203_v25 = vadd.f32 %v8202_v48, %v8201_v42  ;;  %v7666_v42 = vcombine.low %v10659_v14, %v10659_v14  ;;  %v5900_v48 = vld [vmem:[#allocation2 + $0x18] sm:$0x8] }
 0x896   :  { %v8226_v16 = vpop.f32.mrb[64].mxu0 }
 0x897   :  { %v5372_v13 = vadd.f32 %v8203_v25, %v8175_v31  ;;  %v8227_v24 = vpop.f32.mrb[65].mxu0 }
 0x898   :  { %v8228_v23 = vadd.f32 %v8227_v24, %v8226_v16  ;;  %v8229_v45 = vpop.f32.mrb[66].mxu0  ;;  %v6052_v24 = vshll.u32 %v7666_v42, 16 }
 0x899   :  { %v8204_v29 = vpop.f32.mrb[48].mxu1  ;;  %v8230_v7 = vpop.f32.mrb[67].mxu0 }
 0x89a   :  { %v8205_v35 = vpop.f32.mrb[49].mxu1  ;;  %v8231_v30 = vadd.f32 %v8230_v7, %v8229_v45  ;;  %v5662_v5 = vadd.f32 %v8228_v23, %v5369_v10 }
 0x89b   :  { %v8206_v1 = vadd.f32 %v8205_v35, %v8204_v29  ;;  %v8207_v47 = vpop.f32.mrb[50].mxu1 }
 0x89c   :  { %v8208_v6 = vpop.f32.mrb[51].mxu1  ;;  %v5663_v43 = vadd.f32 %v8231_v30, %v5372_v13  ;;  %v5897_v13 = vld [vmem:[#allocation2 + $0x4] sm:$0x8] }
 0x89d   :  { %v5377_v20 = vadd.f32 %v8206_v1, %v8178_v38  ;;  %v8209_v22 = vadd.f32 %v8208_v6, %v8207_v47 }
 0x89e   :  { %v8232_v12 = vpop.f32.mrb[68].mxu0 }
 0x89f   :  { %v5380_v54 = vadd.f32 %v8209_v22, %v8181_v53  ;;  %v8233_v60 = vpop.f32.mrb[69].mxu0  ;;  %v10657_v53 = vld [vmem:[#allocation2 + $0x10] sm:$0x1] }
 0x8a0   :  { %v8234_v32 = vadd.f32 %v8233_v60, %v8232_v12  ;;  %v8235_v33 = vpop.f32.mrb[70].mxu0  ;;  %v7664_v46 = vcombine.low %v10657_v53, %v10657_v53  ;;  %v6389_v22 = vrot.slane %v10657_v53, 5 }
 0x8a1   :  { %v8236_v37 = vpop.f32.mrb[71].mxu0 }
 0x8a2   :  { %v8237_v55 = vadd.f32 %v8236_v37, %v8235_v33  ;;  %v5664_v52 = vadd.f32 %v8234_v32, %v5377_v20  ;;  %v6040_v10 = vshll.u32 %v7664_v46, 16  ;;  %v6054_v33 = vrot.slane %v6052_v24, 1 }
 0x8a4   :  { %v5665_v58 = vadd.f32 %v8237_v55, %v5380_v54 }
 0x8b1   :  { %v8527_v2 = vpop.f32.mrb[52].mxu1 }
 0x8b2   :  { %v5847_v19 = vadd.f32 %v8527_v2, %v5664_v52  ;;  %v5830_v15 = vpop.f32.mrb[53].mxu1 }
 0x8b3   :  { %v5845_v51 = vadd.f32 %v5830_v15, %v5662_v5  ;;  %v8528_v61 = vpop.f32.mrb[54].mxu1  ;;  %v6042_v5 = vrot.slane %v6040_v10, 1 }
 0x8b4   :  { %v5859_v49 = vmul.f32 %v7649_v41, %v5847_v19  ;;  %v5848_v17 = vadd.f32 %v8528_v61, %v5665_v58  ;;  %v5833_v21 = vpop.f32.mrb[55].mxu1 }
 0x8b5   :  { %v5857_v11 = vmul.f32 %v7649_v41, %v5845_v51  ;;  %v5846_v28 = vadd.f32 %v5833_v21, %v5663_v43 }
 0x8b6   :  { %v5871_v56 = vadd.f32 %v7650_v18, %v5859_v49  ;;  %v5860_v40 = vmul.f32 %v7649_v41, %v5848_v17 }
 0x8b7   :  { %v5869_v8 = vadd.f32 %v7650_v18, %v5857_v11  ;;  %v5858_v4 = vmul.f32 %v7649_v41, %v5846_v28 }
 0x8b8   :  { %v5875_v26 = vmax.f32 %v5871_v56, 0.0  ;;  %v5872_v50 = vadd.f32 %v7650_v18, %v5860_v40 }
 0x8b9   :  { %v5870_v31 = vadd.f32 %v7650_v18, %v5858_v4  ;;  %v5873_v38 = vmax.f32 %v5869_v8, 0.0 }
 0x8ba   :  { %v7778_v62 = vpack.c.bf16 %v5875_v26, %v5875_v26  ;;  %v5876_v63 = vmax.f32 %v5872_v50, 0.0 }
 0x8bb   :  { %v5874_v9 = vmax.f32 %v5870_v31, 0.0 }
 0x8bc   :  { %5895 = vst [vmem:[#allocation2 + $0x1c] sm:$0xf] %v7778_v62  ;;  %v7779_v57 = vpack.c.bf16 %v5876_v63, %v5876_v63  ;;  %v9062_v62 = vld [vmem:[#allocation8 + $0x388] sm:$0xff]  }
 0x8bd   :  { %v7817_v36 = vpack.c.bf16 %v5874_v9, %v5873_v38 }
 0x8be   :  { %5896 = vst [vmem:[#allocation2 + $0x20] sm:$0xf] %v7779_v57 }
 0x8bf   :  { %7830 = vst [vmem:[#allocation2 + $0x8] sm:$0xff] %v7817_v36  }
 0x8c3   :  { %v10665_v25 = vld [vmem:[#allocation2 + $0x1c] sm:$0xf] }
 0x8c4   :  { %v6009_v16 = vld [vmem:[#allocation2 + $0x1c] sm:$0xf]  ;;  %v10672_v29 = vcombine.low %v5900_v48, %v10665_v25 }
 0x8c5   :  { %v10667_v23 = vld [vmem:[#allocation2 + $0x20] sm:$0xf] }
 0x8c6   :  { %v10669_v45 = vld [vmem:[#allocation2 + $0x20] sm:$0xf]  ;;  %v6006_v7 = vld [vmem:[#allocation2 + $0x8] sm:$0xf]  ;;  %v10674_v35 = vld [vmem:[#allocation2 + $0xc] sm:$0xf]  ;;  %v7665_v1 = vcombine.low %v6009_v16, %v10667_v23 }
 0x8c7   :  { %v5898_v30 = vld [vmem:[#allocation2 + $0x8] sm:$0xf]  ;;  %v7663_v47 = vcombine.low %v6006_v7, %v10674_v35  ;;  %v5903_v6 = vld [vmem:[#allocation2 + $0xc] sm:$0xf]  ;;  %v7660_v12 = vcombine.low %v10669_v45, %v10669_v45  ;;  %v5943_v37 = vshrl.u32 %v10672_v29, 16  ;;  %v5945_v18 = vshll.u32 %v10672_v29, 16 }
 0x8c8   :  { %v7655_v20 = vcombine.low %v5897_v13, %v5898_v30  ;;  %v6047_v43 = vshll.u32 %v7665_v1, 16  ;;  %v7659_v54 = vcombine.low %v5903_v6, %v5903_v6  ;;  %v6045_v32 = vshrl.u32 %v7665_v1, 16  ;;  %v9061_v2 = vld [vmem:[#allocation2 + $0xc] ss:$0 sps:$4 sm:$0x77]  }
 0x8c9   :  { %v6035_v60 = vshll.u32 %v7663_v47, 16  ;;  %v6033_v41 = vshrl.u32 %v7663_v47, 16  ;;  %v5950_v17 = vshll.u32 %v7660_v12, 16  ;;  %v7661_v11 = vcombine.low %v5898_v30, %v5903_v6  ;;  %v6380_v46 = vld [vmem:[#allocation2 + $0x8] sm:$0xe] }
 0x8ca   :  { %v6049_v55 = vrot.slane %v6047_v43, 1  ;;  %v5930_v52 = vshll.u32 %v7655_v20, 16  ;;  %v5935_v58 = vshll.u32 %v7659_v54, 16  ;;  %v5928_v15 = vshrl.u32 %v7655_v20, 16  ;;  %v9068_v43 = vld [vmem:[#allocation8 + $0x398] sm:$0xff]  }
 0x8cb   :  { %v6037_v19 = vrot.slane %v6035_v60, 1  ;;  %v5939_v49 = vshrl.u32 %v7659_v54, 16  ;;  %v5947_v56 = vrot.slane %v5945_v18, 1  ;;  %v5952_v4 = vrot.slane %v5950_v17, 1  ;;  %v9075_v18 = vld [vmem:[#allocation9 + $0x208] sm:$0xff]   ;;  %v9080_v17 = vld [vmem:[#allocation9 + $0x1d0] sm:$0xff]  }
 0x8cc   :  { %v5932_v51 = vrot.slane %v5930_v52, 1  ;;  %v5937_v61 = vrot.slane %v5935_v58, 1  ;;  %v6050_v28 = vor.u32 %v6049_v55, %v6045_v32  ;;  %v5954_v26 = vshrl.u32 %v7660_v12, 16  ;;  %v9067_v47 = vld [vmem:[#allocation2 + $0x20] ss:$0 sps:$4 sm:$0x77]  }
 0x8cd   :  { %v6038_v21 = vor.u32 %v6037_v19, %v6033_v41  ;;  %v5957_v31 = vrot.slane %v7655_v20, 3  ;;  %v5948_v63 = vor.u32 %v5947_v56, %v5943_v37  ;;  %v6386_v38 = vrot.slane %v10674_v35, 5  ;;  %v9065_v35 = vld [vmem:[#allocation8 + $0x390] sm:$0xff]   ;;  %v9069_v32 = vld [vmem:[#allocation8 + $0x3a0] sm:$0xff]   ;;  %v9085_v56 = vld [vmem:[#allocation9 + $0x198] sm:$0xff]  }
 0x8ce   :  { %v5933_v40 = vor.u32 %v5932_v51, %v5928_v15  ;;  %v5941_v8 = vor.u32 %v5939_v49, %v5937_v61  ;;  %v5958_v53 = vrot.slane %v9061_v2, 3  ;;  %v5956_v36 = vor.u32 %v5954_v26, %v5952_v4  ;;  %v6381_v52 = vld [vmem:[#allocation2 + $0x1c] sm:$0xe]  ;;  %v9074_v15 = vld [vmem:[#allocation9 + $0x1c0] sm:$0xff]   ;;  %v9079_v49 = vld [vmem:[#allocation9 + $0x188] sm:$0xff]  }
 0x8cf   :  { %v6043_v50 = vsel %vm1162_vm0, %v6038_v21, %v6042_v5  ;;  %v6055_v42 = vsel %vm1162_vm0, %v6050_v28, %v6054_v33  ;;  %v5953_v10 = vsel %vm1162_vm0, %v5948_v63, %v5952_v4  ;;  %v6388_v13 = vrot.slane %v6386_v38, 4  ;;  %v9070_v33 = vld [vmem:[#allocation8 + $0x3a8] sm:$0xff]   ;;  %v9076_v51 = vld [vmem:[#allocation9 + $0x180] sm:$0xff]   ;;  %v9082_v21 = vld [vmem:[#allocation9 + $0x190] sm:$0xff]  }
 0x8d0   :  { %6218 = vmatprep.mubr.bf16.mxu0 %v6043_v50  ;;  %v5938_v9 = vsel %vm1162_vm0, %v5933_v40, %v5937_v61  ;;  %v5961_v57 = vrot.slane %v5941_v8, 3  ;;  %v5966_v16 = vrot.slane %v5953_v10, 3  ;;  %v5967_v24 = vrot.slane %v5956_v36, 3  ;;  %v9077_v61 = vld [vmem:[#allocation9 + $0x1c8] sm:$0xff]   ;;  %v9084_v28 = vld [vmem:[#allocation9 + $0x220] sm:$0xff]   ;;  %v9090_v50 = vld [vmem:[#allocation9 + $0x230] sm:$0xff]  }
 0x8d1   :  { %6219 = vmatmul.mubr.bf16.vlgmr.msra.gmra.mrb[72].mxu0 %v7661_v11  ;;  %v5960_v48 = vrot.slane %v5938_v9, 3  ;;  %v7699_v30 = vrot.slane %v6380_v46, 9  ;;  %v5959_v1 = vsel %vm1193_vm1, %v5957_v31, %v5958_v53  ;;  %v6390_v6 = vsel %vm10251_vm4, %v6388_v13, %v6389_v22  ;;  %v9083_v11 = vld [vmem:[#allocation9 + $0x1d8] sm:$0xff]   ;;  %v9086_v40 = vld [vmem:[#allocation9 + $0x1e0] sm:$0xff]   ;;  %v9087_v8 = vld [vmem:[#allocation9 + $0x228] sm:$0xff]  }
 0x8d2   :  { %8530 = vmatpush3.bf16.msra.mxu0 %v10646_v0  ;;  %6226 = vmatprep.mubr.bf16.mxu0 %v6055_v42  ;;  %v5968_v5 = vsel %vm1193_vm1, %v5966_v16, %v5967_v24  ;;  %v7662_v0 = vcombine.low %v10665_v25, %v10669_v45  ;;  %v5963_v12 = vrot.slane %v10672_v29, 3  ;;  %v5964_v60 = vrot.slane %v9067_v47, 3  ;;  %v9071_v25 = vld [vmem:[#allocation8 + $0x3b0] sm:$0xff]   ;;  %v9072_v29 = vld [vmem:[#allocation8 + $0x3b8] sm:$0xff]   ;;  %v9088_v4 = vld [vmem:[#allocation9 + $0x1a0] sm:$0xff]  }
 0x8d3   :  { %v5962_v7 = vsel %vm1193_vm1, %v5960_v48, %v5961_v57  ;;  %8531 = vmatprep.subr.bf16.mxu0 %v9062_v62  ;;  %v6387_v20 = vsel %vm10251_vm4, %v7699_v30, %v6386_v38  ;;  %v6393_v45 = vrot.slane %v10667_v23, 5  ;;  %v6396_v55 = vrot.slane %v10659_v14, 5  ;;  %v9073_v23 = vld [vmem:[#allocation9 + $0x200] sm:$0xff]   ;;  %v9078_v14 = vld [vmem:[#allocation9 + $0x210] sm:$0xff]   ;;  %v9089_v26 = vld [vmem:[#allocation9 + $0x1e8] sm:$0xff]  }
 0x8d4   :  { %6363 = vmatprep.mubr.bf16.mxu1 %v5962_v7  ;;  %v7701_v54 = vcombine.low %v6387_v20, %v6390_v6  ;;  %v5965_v22 = vsel %vm1193_vm1, %v5963_v12, %v5964_v60  ;;  %v7700_v58 = vrot.slane %v6381_v52, 9  ;;  %8549 = vmatprep.subr.bf16.mxu1 %v9073_v23  ;;  %v9091_v31 = vld [vmem:[#allocation9 + $0x1a8] sm:$0xff]   ;;  %v9093_v63 = vld [vmem:[#allocation9 + $0x238] sm:$0xff]   ;;  %v9094_v38 = vld [vmem:[#allocation9 + $0x1b0] sm:$0xff]   ;;  %vm7171_vm0 = vcmask 1041408  }
 0x8d5   :  { %6364 = vmatmul.mubr.bf16.vlgmr.msra.gmra.mrb[56].mxu1 %v5959_v1  ;;  %v6395_v37 = vrot.slane %v6393_v45, 4  ;;  %v9095_v9 = vld [vmem:[#allocation9 + $0x1f8] sm:$0xff]  }
 0x8d6   :  { %6371 = vmatprep.mubr.bf16.mxu1 %v5968_v5  ;;  %8532 = vmatpush3.bf16.msra.mxu0 %v9062_v62  ;;  %v6394_v41 = vsel %vm10251_vm4, %v7700_v58, %v6393_v45  ;;  %v9092_v62 = vld [vmem:[#allocation9 + $0x1f0] sm:$0xff]   ;;  %v9096_v57 = vld [vmem:[#allocation9 + $0x1b8] sm:$0xff]  }
 0x8d7   :  { %8533 = vmatprep.subr.bf16.mxu0 %v9065_v35  ;;  %v6397_v2 = vsel %vm10251_vm4, %v6395_v37, %v6396_v55  ;;  %8550 = vmatpush3.bf16.msra.mxu1 %v9073_v23  ;;  %v7711_v55 = vld [vmem:[#allocation11 + $0x9] ss:$0 sm:$0xff] }
 0x8d8   :  { %v7702_v19 = vcombine.low %v6394_v41, %v6397_v2  ;;  %8551 = vmatprep.subr.bf16.mxu1 %v9075_v18  ;;  %v7712_v2 = vld [vmem:[#allocation12 + $0x9] ss:$0 sm:$0xff] }
 0x8d9   :  { %6227 = vmatmul.mubr.bf16.gmra.mrb[76].mxu0 %v7662_v0 }
 0x8da   :  { %8534 = vmatpush3.bf16.msra.mxu0 %v9065_v35  ;;  %8545 = vmatprep.mubr.bf16.mxu0 %v7701_v54 }
 0x8db   :  { %8535 = vmatprep.subr.bf16.mxu0 %v9068_v43  ;;  %8552 = vmatpush3.bf16.msra.mxu1 %v9075_v18 }
 0x8dc   :  { %8553 = vmatprep.subr.bf16.mxu1 %v9078_v14 }
 0x8dd   :  { %6372 = vmatmul.mubr.bf16.gmra.mrb[60].mxu1 %v5965_v22 }
 0x8de   :  { %8536 = vmatpush3.bf16.msra.mxu0 %v9068_v43 }
 0x8df   :  { %8537 = vmatprep.subr.bf16.mxu0 %v9069_v32  ;;  %8554 = vmatpush3.bf16.msra.mxu1 %v9078_v14 }
 0x8e0   :  { %8555 = vmatprep.subr.bf16.mxu1 %v9081_v59 }
 0x8e2   :  { %8538 = vmatpush3.bf16.msra.mxu0 %v9069_v32 }
 0x8e3   :  { %8539 = vmatprep.subr.bf16.mxu0 %v9070_v33  ;;  %8556 = vmatpush3.bf16.msra.mxu1 %v9081_v59 }
 0x8e4   :  { %8557 = vmatprep.subr.bf16.mxu1 %v9084_v28 }
 0x8e6   :  { %8540 = vmatpush3.bf16.msra.mxu0 %v9070_v33 }
 0x8e7   :  { %8541 = vmatprep.subr.bf16.mxu0 %v9071_v25  ;;  %8558 = vmatpush3.bf16.msra.mxu1 %v9084_v28 }
 0x8e8   :  { %8559 = vmatprep.subr.bf16.mxu1 %v9087_v8 }
 0x8ea   :  { %8542 = vmatpush3.bf16.msra.mxu0 %v9071_v25 }
 0x8eb   :  { %8543 = vmatprep.subr.bf16.mxu0 %v9072_v29  ;;  %8560 = vmatpush3.bf16.msra.mxu1 %v9087_v8 }
 0x8ec   :  { %8561 = vmatprep.subr.bf16.mxu1 %v9090_v50 }
 0x8ee   :  { %8544 = vmatpush3.bf16.msra.mxu0 %v9072_v29 }
 0x8ef   :  { %8324 = vmatprep.subr.bf16.mxu0 %v9074_v15  ;;  %8562 = vmatpush3.bf16.msra.mxu1 %v9090_v50 }
 0x8f0   :  { %8563 = vmatprep.subr.bf16.mxu1 %v9093_v63 }
 0x8f1   :  { %8546 = vmatmul.mubr.bf16.vlgmr.msra.gmra.mrb[80].mxu0 %v7702_v19 }
 0x8f2   :  { %8325 = vmatpush3.bf16.msra.mxu0 %v9076_v51 }
 0x8f3   :  { %8326 = vmatprep.subr.bf16.mxu0 %v9077_v61  ;;  %8564 = vmatpush3.bf16.msra.mxu1 %v9093_v63 }
 0x8f6   :  { %8327 = vmatpush3.bf16.msra.mxu0 %v9079_v49 }
 0x8f7   :  { %8328 = vmatprep.subr.bf16.mxu0 %v9080_v17 }
 0x8fa   :  { %8329 = vmatpush3.bf16.msra.mxu0 %v9082_v21 }
 0x8fb   :  { %8330 = vmatprep.subr.bf16.mxu0 %v9083_v11 }
 0x8fe   :  { %8331 = vmatpush3.bf16.msra.mxu0 %v9085_v56 }
 0x8ff   :  { %8332 = vmatprep.subr.bf16.mxu0 %v9086_v40 }
 0x902   :  { %8333 = vmatpush3.bf16.msra.mxu0 %v9088_v4 }
 0x903   :  { %8334 = vmatprep.subr.bf16.mxu0 %v9089_v26 }
 0x906   :  { %8335 = vmatpush3.bf16.msra.mxu0 %v9091_v31  ;;  %v6702_v31 = vld [vmem:[#allocation2 + $0x10] sm:$0x1] }
 0x907   :  { %8336 = vmatprep.subr.bf16.mxu0 %v9092_v62  ;;  %v6705_v62 = vld [vmem:[#allocation2 + $0x24] sm:$0x1]  ;;  %v6726_v63 = vshll.u32 %v6702_v31, 16 }
 0x90a   :  { %8337 = vmatpush3.bf16.msra.mxu0 %v9094_v38  ;;  %v6750_v38 = vshll.u32 %v6705_v62, 16 }
 0x90b   :  { %8338 = vmatprep.subr.bf16.mxu0 %v9095_v9 }
 0x90e   :  { %8339 = vmatpush3.bf16.msra.mxu0 %v9096_v57  ;;  %v6728_v57 = vrot.slane %v6726_v63, 5 }
 0x9a4   :  { %v8264_v53 = vpop.f32.mrb[72].mxu0 }
 0x9a5   :  { %v8265_v36 = vpop.f32.mrb[73].mxu0 }
 0x9a6   :  { %v8266_v46 = vadd.f32 %v8265_v36, %v8264_v53  ;;  %v8267_v42 = vpop.f32.mrb[74].mxu0 }
 0x9a7   :  { %v8268_v48 = vpop.f32.mrb[75].mxu0 }
 0x9a8   :  { %v8269_v10 = vadd.f32 %v8268_v48, %v8267_v42  ;;  %v8292_v13 = vpop.f32.mrb[56].mxu1  ;;  %v6571_v42 = vld [vmem:[#allocation2 + $0x4] sm:$0x8] }
 0x9a9   :  { %v8293_v16 = vpop.f32.mrb[57].mxu1 }
 0x9aa   :  { %v8294_v24 = vadd.f32 %v8293_v16, %v8292_v13  ;;  %v8295_v7 = vpop.f32.mrb[58].mxu1 }
 0x9ab   :  { %v8296_v35 = vpop.f32.mrb[59].mxu1 }
 0x9ac   :  { %v8297_v30 = vadd.f32 %v8296_v35, %v8295_v7  ;;  %v8270_v1 = vpop.f32.mrb[76].mxu0  ;;  %v6366_v47 = vadd.f32 %v8294_v24, %v8266_v46  ;;  %v6752_v46 = vrot.slane %v6750_v38, 5 }
 0x9ad   :  { %v8271_v5 = vpop.f32.mrb[77].mxu0 }
 0x9ae   :  { %v8272_v6 = vadd.f32 %v8271_v5, %v8270_v1  ;;  %v8273_v0 = vpop.f32.mrb[78].mxu0  ;;  %v6369_v20 = vadd.f32 %v8297_v30, %v8269_v10 }
 0x9af   :  { %v8274_v43 = vpop.f32.mrb[79].mxu0 }
 0x9b0   :  { %v8275_v54 = vadd.f32 %v8274_v43, %v8273_v0  ;;  %v8298_v12 = vpop.f32.mrb[60].mxu1 }
 0x9b1   :  { %v8299_v60 = vpop.f32.mrb[61].mxu1 }
 0x9b2   :  { %v8300_v32 = vadd.f32 %v8299_v60, %v8298_v12  ;;  %v8301_v22 = vpop.f32.mrb[62].mxu1 }
 0x9b3   :  { %v8302_v33 = vpop.f32.mrb[63].mxu1 }
 0x9b4   :  { %v8303_v25 = vadd.f32 %v8302_v33, %v8301_v22  ;;  %v6374_v45 = vadd.f32 %v8300_v32, %v8272_v6 }
 0x9b6   :  { %v6377_v29 = vadd.f32 %v8303_v25, %v8275_v54 }
 0x9c4   :  { %v8547_v37 = vpop.f32.mrb[80].mxu0 }
 0x9c5   :  { %v6521_v52 = vadd.f32 %v8547_v37, %v6374_v45  ;;  %v6504_v58 = vpop.f32.mrb[81].mxu0 }
 0x9c6   :  { %v6519_v41 = vadd.f32 %v6504_v58, %v6366_v47  ;;  %v8548_v19 = vpop.f32.mrb[82].mxu0 }
 0x9c7   :  { %v6533_v23 = vmul.f32 %v7711_v55, %v6521_v52  ;;  %v6522_v15 = vadd.f32 %v8548_v19, %v6377_v29  ;;  %v6507_v18 = vpop.f32.mrb[83].mxu0 }
 0x9c8   :  { %v6531_v51 = vmul.f32 %v7711_v55, %v6519_v41  ;;  %v6520_v61 = vadd.f32 %v6507_v18, %v6369_v20 }
 0x9c9   :  { %v6545_v14 = vadd.f32 %v7712_v2, %v6533_v23  ;;  %v6534_v49 = vmul.f32 %v7711_v55, %v6522_v15 }
 0x9ca   :  { %v6543_v17 = vadd.f32 %v7712_v2, %v6531_v51  ;;  %v6532_v59 = vmul.f32 %v7711_v55, %v6520_v61 }
 0x9cb   :  { %v6549_v21 = vmax.f32 %v6545_v14, 0.0  ;;  %v6546_v11 = vadd.f32 %v7712_v2, %v6534_v49 }
 0x9cc   :  { %v6544_v28 = vadd.f32 %v7712_v2, %v6532_v59  ;;  %v6547_v8 = vmax.f32 %v6543_v17, 0.0 }
 0x9cd   :  { %v7782_v56 = vpack.c.bf16 %v6549_v21, %v6549_v21  ;;  %v6550_v40 = vmax.f32 %v6546_v11, 0.0 }
 0x9ce   :  { %v6548_v4 = vmax.f32 %v6544_v28, 0.0 }
 0x9cf   :  { %6569 = vst [vmem:[#allocation2 + $0x1c] sm:$0xf] %v7782_v56  ;;  %v7783_v26 = vpack.c.bf16 %v6550_v40, %v6550_v40 }
 0x9d0   :  { %v7822_v50 = vpack.c.bf16 %v6548_v4, %v6547_v8 }
 0x9d1   :  { %6570 = vst [vmem:[#allocation2 + $0x20] sm:$0xf] %v7783_v26  ;;  %v6574_v26 = vld [vmem:[#allocation2 + $0x18] sm:$0x8] }
 0x9d2   :  { %7831 = vst [vmem:[#allocation2 + $0x8] sm:$0xff] %v7822_v50  }
 0x9d6   :  { %v6703_v9 = vld [vmem:[#allocation2 + $0x1c] sm:$0xf] }
 0x9d7   :  { %v6731_v53 = vshrl.u32 %v6703_v9, 16  ;;  %v6734_v36 = vshll.u32 %v6703_v9, 16  ;;  %v6575_v10 = vld [vmem:[#allocation2 + $0x1c] sm:$0xf] }
 0x9d8   :  { %v6704_v48 = vld [vmem:[#allocation2 + $0x20] sm:$0xf] }
 0x9d9   :  { %v6576_v13 = vld [vmem:[#allocation2 + $0x20] sm:$0xf]  ;;  %v6700_v16 = vld [vmem:[#allocation2 + $0x8] sm:$0xf]  ;;  %v6701_v24 = vld [vmem:[#allocation2 + $0xc] sm:$0xf] }
 0x9da   :  { %v6733_v7 = vrot.slane %v6731_v53, 4  ;;  %v6736_v35 = vrot.slane %v6734_v36, 5  ;;  %v7722_v30 = vcombine.low %v6575_v10, %v6576_v13  ;;  %v10706_v1 = vcombine.low %v6576_v13, %v6576_v13  ;;  %v6572_v20 = vld [vmem:[#allocation2 + $0x8] sm:$0xf]  ;;  %v6573_v60 = vld [vmem:[#allocation2 + $0xc] sm:$0xf] }
 0x9db   :  { %v6707_v47 = vshrl.u32 %v6700_v16, 16  ;;  %v6710_v5 = vshll.u32 %v6700_v16, 16  ;;  %v6716_v6 = vshll.u32 %v6701_v24, 16  ;;  %v6720_v0 = vshrl.u32 %v6701_v24, 16 }
 0x9dc   :  { %v6737_v43 = vor.u32 %v6736_v35, %v6733_v7  ;;  %v6740_v54 = vshll.u32 %v6704_v48, 16  ;;  %v6744_v12 = vshrl.u32 %v6704_v48, 16  ;;  %v7717_v32 = vcombine.low %v6571_v42, %v6572_v20 }
 0x9dd   :  { %v6709_v22 = vrot.slane %v6707_v47, 4  ;;  %v6712_v33 = vrot.slane %v6710_v5, 5  ;;  %v6718_v25 = vrot.slane %v6716_v6, 5  ;;  %v6722_v45 = vrot.slane %v6720_v0, 4 }
 0x9de   :  { %v6738_v29 = vrot.slane %v6737_v43, 4  ;;  %v6742_v37 = vrot.slane %v6740_v54, 5  ;;  %v6746_v55 = vrot.slane %v6744_v12, 4  ;;  %v7721_v52 = vcombine.low %v6572_v20, %v6573_v60 }
 0x9df   :  { %v6713_v58 = vor.u32 %v6712_v33, %v6709_v22  ;;  %v6723_v2 = vor.u32 %v6722_v45, %v6718_v25  ;;  %v7718_v41 = vcombine.low %v6573_v60, %v6573_v60  ;;  %v6612_v19 = vshrl.u32 %v7717_v32, 16 }
 0x9e0   :  { %v6743_v23 = vsel %vm10271_vm7, %v6738_v29, %v6742_v37  ;;  %v6747_v15 = vor.u32 %v6746_v55, %v6742_v37  ;;  %v6596_v18 = vshrl.u32 %v7721_v52, 16  ;;  %v6599_v51 = vshll.u32 %v7721_v52, 16  ;;  %v7074_v37 = vld [vmem:[#allocation14] sm:$0xff]  ;;  %v7075_v55 = vld [vmem:[#allocation14 + $0x8] sm:$0xff] }
 0x9e1   :  { %v6714_v61 = vrot.slane %v6713_v58, 4  ;;  %v6724_v14 = vrot.slane %v6723_v2, 4  ;;  %v6614_v49 = vrot.slane %v6612_v19, 3  ;;  %v6615_v17 = vshll.u32 %v7717_v32, 16  ;;  %v7076_v2 = vld [vmem:[#allocation14 + $0x10] sm:$0xff]  ;;  %v7078_v19 = vld [vmem:[#allocation14 + $0x20] sm:$0xff] }
 0x9e2   :  { %v6748_v59 = vrot.slane %v6747_v15, 4  ;;  %v6598_v21 = vrot.slane %v6596_v18, 4  ;;  %v6601_v11 = vrot.slane %v6599_v51, 5  ;;  %v6620_v28 = vshrl.u32 %v7718_v41, 16  ;;  %v7079_v15 = vld [vmem:[#allocation14 + $0x28] sm:$0xff] }
 0x9e3   :  { %v6719_v56 = vsel %vm10271_vm7, %v6714_v61, %v6718_v25  ;;  %v6729_v40 = vsel %vm10271_vm7, %v6724_v14, %v6728_v57  ;;  %v6617_v8 = vrot.slane %v6615_v17, 4  ;;  %v6623_v4 = vshll.u32 %v7718_v41, 16  ;;  %v7077_v41 = vld [vmem:[#allocation14 + $0x18] sm:$0xff]  ;;  %v7080_v61 = vld [vmem:[#allocation14 + $0x30] sm:$0xff]  ;;  %v7082_v17 = vld [vmem:[#allocation14 + $0x40] sm:$0xff] }
 0x9e4   :  { %v7723_v50 = vcombine.low %v6719_v56, %v6729_v40  ;;  %v6753_v31 = vsel %vm10271_vm7, %v6748_v59, %v6752_v46  ;;  %v6602_v62 = vor.u32 %v6601_v11, %v6598_v21  ;;  %v6622_v63 = vrot.slane %v6620_v28, 3  ;;  %v7081_v14 = vld [vmem:[#allocation14 + $0x38] sm:$0xff]  ;;  %v7083_v59 = vld [vmem:[#allocation14 + $0x48] sm:$0xff]  ;;  %v7084_v11 = vld [vmem:[#allocation14 + $0x50] sm:$0xff] }
 0x9e5   :  { %v7724_v38 = vcombine.low %v6743_v23, %v6753_v31  ;;  %v6625_v9 = vrot.slane %v6623_v4, 4  ;;  %v6604_v53 = vshrl.u32 %v7722_v30, 16  ;;  %v6607_v48 = vshll.u32 %v7722_v30, 16  ;;  %v7085_v28 = vld [vmem:[#allocation14 + $0x58] sm:$0xff]  ;;  %v7086_v40 = vld [vmem:[#allocation14 + $0x60] sm:$0xff] }
 0x9e6   :  { %8565 = vmatprep.mubr.bf16.mxu1 %v7723_v50  ;;  %v6629_v36 = vshrl.u32 %v6602_v62, 16  ;;  %v6632_v42 = vshll.u32 %v6602_v62, 16  ;;  %v7719_v13 = vcombine.low %v6574_v26, %v6575_v10  ;;  %v6618_v16 = vor.u32 %v6617_v8, %v6614_v49  ;;  %v7087_v8 = vld [vmem:[#allocation14 + $0x68] sm:$0xff]  ;;  %v7088_v26 = vld [vmem:[#allocation14 + $0x70] sm:$0xff]  ;;  %v7089_v50 = vld [vmem:[#allocation14 + $0x78] sm:$0xff] }
 0x9e7   :  { %8566 = vmatmul.mubr.bf16.vlgmr.msra.gmra.mrb[64].mxu1 %v7724_v38  ;;  %v6626_v57 = vor.u32 %v6625_v9, %v6622_v63  ;;  %v6606_v24 = vrot.slane %v6604_v53, 4  ;;  %v6609_v47 = vrot.slane %v6607_v48, 5  ;;  %v6646_v3 = vshrl.u32 %v10706_v1, 16 }
 0x9e8   :  { %v6631_v7 = vrot.slane %v6629_v36, 3  ;;  %v6634_v35 = vrot.slane %v6632_v42, 4  ;;  %v6649_v46 = vshll.u32 %v10706_v1, 16  ;;  %v6638_v0 = vshrl.u32 %v7719_v13, 16  ;;  %v7575_v36 = vld [vmem:[#allocation11 + $0xb] ss:$0 sm:$0xff] }
 0x9e9   :  { %v6610_v6 = vor.u32 %v6609_v47, %v6606_v24  ;;  %v6641_v20 = vshll.u32 %v7719_v13, 16  ;;  %v6627_v43 = vsel %vm1850_vm8, %v6618_v16, %v6626_v57  ;;  %v6648_v54 = vrot.slane %v6646_v3, 3  ;;  %v7749_v16 = vld [vmem:[#allocation11 + $0xa] ss:$0 sm:$0xff]  ;;  %v7576_v47 = vld [vmem:[#allocation12 + $0xb] ss:$0 sm:$0xff] }
 0x9ea   :  { %v6635_v5 = vor.u32 %v6634_v35, %v6631_v7  ;;  %v6651_v12 = vrot.slane %v6649_v46, 4  ;;  %v6640_v22 = vrot.slane %v6638_v0, 3  ;;  %v9350_v52 = vmov 0.0|0.0   ;;  %v7750_v3 = vld [vmem:[#allocation12 + $0xa] ss:$0 sm:$0xff] }
 0x9eb   :  { %v6655_v30 = vshrl.u32 %v6610_v6, 16  ;;  %v6658_v10 = vshll.u32 %v6610_v6, 16  ;;  %v6643_v33 = vrot.slane %v6641_v20, 4  ;;  %8604 = vmatprep.subr.bf16.mxu1 %v9350_v52  ;;  %v8605_v58 = vpack.c.bf16 %v7075_v55, %v7074_v37 }
 0x9ec   :  { %7003 = vmatprep.mubr.bf16.mxu0 %v6635_v5  ;;  %v6652_v45 = vor.u32 %v6651_v12, %v6648_v54  ;;  %v8608_v23 = vpack.c.bf16 %v7077_v41, %v7076_v2  ;;  %v9352_v18 = vmov 0.0   ;;  %v8611_v51 = vpack.c.bf16 %v7079_v15, %v7078_v19 }
 0x9ed   :  { %7004 = vmatmul.mubr.bf16.vlgmr.msra.gmra.mrb[84].mxu0 %v6627_v43  ;;  %v6657_v60 = vrot.slane %v6655_v30, 3  ;;  %v6660_v32 = vrot.slane %v6658_v10, 4  ;;  %v6644_v1 = vor.u32 %v6643_v33, %v6640_v22  ;;  %8606 = vmatpush3.bf16.msra.mxu1 %v8605_v58  ;;  %v8614_v49 = vpack.c.bf16 %v7081_v14, %v7080_v61 }
 0x9ee   :  { %8607 = vmatprep.subr.bf16.mxu1 %v9350_v52  ;;  %8601 = vmatprep.mubr.msk.f32.mxu1 %vm9351_vm13, %v9352_v18  ;;  %v8617_v21 = vpack.c.bf16 %v7083_v59, %v7082_v17  ;;  %v8620_v56 = vpack.c.bf16 %v7085_v28, %v7084_v11  ;;  %v8623_v4 = vpack.c.bf16 %v7087_v8, %v7086_v40 }
 0x9ef   :  { %v6661_v25 = vor.u32 %v6660_v32, %v6657_v60  ;;  %v6653_v29 = vsel %vm1850_vm8, %v6644_v1, %v6652_v45  ;;  %v8626_v31 = vpack.c.bf16 %v7089_v50, %v7088_v26  ;;  %v4832_v24 = vmul.f32 %v7575_v36, %v10651_v39 }
 0x9f0   :  { %v4833_v46 = vmul.f32 %v7575_v36, %v10655_v27  ;;  %v4834_v39 = vmul.f32 %v10649_v34, %v7575_v36  ;;  %v4835_v27 = vmul.f32 %v10653_v44, %v7575_v36 }
 0x9f1   :  { %7011 = vmatprep.mubr.bf16.mxu0 %v6661_v25  ;;  %8609 = vmatpush3.bf16.msra.mxu1 %v8608_v23  ;;  %v4844_v0 = vadd.f32 %v7576_v47, %v4832_v24 }
 0x9f2   :  { %8610 = vmatprep.subr.bf16.mxu1 %v9350_v52  ;;  %v4845_v54 = vadd.f32 %v7576_v47, %v4833_v46  ;;  %v4846_v58 = vadd.f32 %v7576_v47, %v4834_v39  ;;  %v4847_v23 = vadd.f32 %v7576_v47, %v4835_v27 }
 0x9f5   :  { %7012 = vmatmul.mubr.bf16.gmra.mrb[88].mxu0 %v6653_v29  ;;  %8612 = vmatpush3.bf16.msra.mxu1 %v8611_v51 }
 0x9f6   :  { %8613 = vmatprep.subr.bf16.mxu1 %v9350_v52 }
 0x9f9   :  { %8615 = vmatpush3.bf16.msra.mxu1 %v8614_v49 }
 0x9fa   :  { %8616 = vmatprep.subr.bf16.mxu1 %v9350_v52 }
 0x9fd   :  { %8618 = vmatpush3.bf16.msra.mxu1 %v8617_v21 }
 0x9fe   :  { %8619 = vmatprep.subr.bf16.mxu1 %v9350_v52 }
 0xa01   :  { %8621 = vmatpush3.bf16.msra.mxu1 %v8620_v56 }
 0xa02   :  { %8622 = vmatprep.subr.bf16.mxu1 %v9350_v52 }
 0xa05   :  { %8624 = vmatpush3.bf16.msra.mxu1 %v8623_v4 }
 0xa06   :  { %8625 = vmatprep.subr.bf16.mxu1 %v9350_v52 }
 0xa09   :  { %8627 = vmatpush3.bf16.msra.mxu1 %v8626_v31 }
 0xaba   :  { %v8567_v62 = vpop.f32.mrb[64].mxu1 }
 0xabb   :  { %v6860_v63 = vpop.f32.mrb[65].mxu1 }
 0xabc   :  { %v8568_v38 = vpop.f32.mrb[66].mxu1 }
 0xabd   :  { %v6863_v9 = vpop.f32.mrb[67].mxu1 }
 0xac0   :  { %v8340_v53 = vpop.f32.mrb[84].mxu0 }
 0xac1   :  { %v8341_v42 = vpop.f32.mrb[85].mxu0 }
 0xac2   :  { %v8342_v48 = vadd.f32 %v8341_v42, %v8340_v53  ;;  %v8343_v13 = vpop.f32.mrb[86].mxu0 }
 0xac3   :  { %v8344_v57 = vpop.f32.mrb[87].mxu0 }
 0xac4   :  { %v7006_v7 = vadd.f32 %v8342_v48, %v6860_v63  ;;  %v8345_v35 = vadd.f32 %v8344_v57, %v8343_v13  ;;  %v7167_v63 = vlaneseq }
 0xac6   :  { %v7028_v5 = vmul.f32 %v7749_v16, %v7006_v7  ;;  %v7009_v6 = vadd.f32 %v8345_v35, %v6863_v9  ;;  %v7751_v9 = vld [vmem:[%s10761_s10] ss:$0 sm:$0xff]  ;;  %s9277_s10 = scalar_lea.vmem %s7204_s30, 32 }
 0xac7   :  { %p9278_p0 = scmp.ne.s32.totalorder %s7204_s30, %s9277_s10  ;;  %p9283_p2 = scmp.lt.s32.totalorder %s9277_s10, %s9277_s10 }
 0xac8   :  { %v7040_v20 = vadd.f32 %v7750_v3, %v7028_v5  ;;  %v7029_v43 = vmul.f32 %v7749_v16, %v7009_v6  ;;  %v8346_v30 = vpop.f32.mrb[88].mxu0 }
 0xac9   :  { %v8347_v10 = vpop.f32.mrb[89].mxu0  ;;  %p9284_p3 = por %p9283_p2, %p9282_p1 }
 0xaca   :  { %v7044_v12 = vadd.f32 %v7040_v20, %v4844_v0  ;;  %v7041_v60 = vadd.f32 %v7750_v3, %v7029_v43  ;;  %v8348_v32 = vadd.f32 %v8347_v10, %v8346_v30  ;;  %v8349_v22 = vpop.f32.mrb[90].mxu0 }
 0xacb   :  { %v8350_v33 = vpop.f32.mrb[91].mxu0  ;;  %p9285_p4 = pnand %p9284_p3, %p9278_p0 }
 0xacc   :  { %v7045_v25 = vadd.f32 %v7041_v60, %v4845_v54  ;;  %v7014_v45 = vadd.f32 %v8567_v62, %v8348_v32  ;;  %v8351_v1 = vadd.f32 %v8350_v33, %v8349_v22  ;;  %v7048_v29 = vmax.f32 %v7044_v12, 0.0 }
 0xace   :  { %v7049_v37 = vmax.f32 %v7045_v25, 0.0  ;;  %v7030_v55 = vmul.f32 %v7749_v16, %v7014_v45  ;;  %v7017_v52 = vadd.f32 %v8568_v38, %v8351_v1  ;;  %v7168_v38 = vand.u32 127, %v7167_v63 }
 0xad0   :  { %v7052_v2 = vadd.f32 %v7049_v37, %v7048_v29  ;;  %v7042_v41 = vadd.f32 %v7750_v3, %v7030_v55  ;;  %v7031_v19 = vmul.f32 %v7749_v16, %v7017_v52  ;;  %vm7169_vm15 = vcmp.lt.s32.totalorder %v7168_v38, 5 }
 0xad2   :  { %v7053_v15 = vrot.slane %v7052_v2, 4  ;;  %v7046_v18 = vadd.f32 %v7042_v41, %v4846_v58  ;;  %v7043_v51 = vadd.f32 %v7750_v3, %v7031_v19 }
 0xad4   :  { %v7047_v61 = vadd.f32 %v7043_v51, %v4847_v23  ;;  %v7054_v14 = vadd.f32 %v7053_v15, %v7052_v2  ;;  %v7050_v34 = vmax.f32 %v7046_v18, 0.0 }
 0xad6   :  { %v7051_v49 = vmax.f32 %v7047_v61, 0.0  ;;  %v7055_v17 = vrot.slane %v7054_v14, 2 }
 0xad8   :  { %v7059_v59 = vadd.f32 %v7051_v49, %v7050_v34  ;;  %v7056_v44 = vadd.f32 %v7055_v17, %v7054_v14 }
 0xada   :  { %v7060_v21 = vrot.slane %v7059_v59, 4  ;;  %v7057_v28 = vrot.slane %v7056_v44, 1 }
 0xadc   :  { %v7061_v11 = vadd.f32 %v7060_v21, %v7059_v59  ;;  %v7058_v8 = vadd.f32 %v7057_v28, %v7056_v44 }
 0xade   :  { %v7062_v56 = vrot.slane %v7061_v11, 2  ;;  %v7066_v50 = vmul.f32 0.0625, %v7058_v8 }
 0xae0   :  { %v7063_v40 = vadd.f32 %v7062_v56, %v7061_v11 }
 0xae2   :  { %v7064_v4 = vrot.slane %v7063_v40, 1 }
 0xae4   :  { %v7065_v26 = vadd.f32 %v7064_v4, %v7063_v40 }
 0xae6   :  { %v7067_v31 = vmul.f32 0.0625, %v7065_v26 }
 0xae8   :  { %v7071_v62 = vsel %vm7070_vm14, %v7067_v31, %v7066_v50 }
 0xae9   :  { %8602 = vmatmul.mubr.f32.vlgmr.msra.gmra.mrb[68].mxu1 %v7071_v62  ;;  %7073 = vst [vmem:[#allocation16] sm:$0x3] %v7071_v62 }
 0xbbc   :  { %v7163_v53 = vpop.f32.mrb[68].mxu1 }
 0xbbd   :  { %v7164_v36 = vadd.f32 %v7751_v9, %v7163_v53  ;;  %v8603_v42 = vpop.f32.mrb[69].mxu1 }
 0xbbf   :  { %v7170_v48 = vsel %vm7169_vm15, %v7164_v36, -1e+30 }
 0xbc0   :  { %v7172_v13 = vsel %vm7171_vm0, %v7170_v48, -inf }
 0xbc1   :  { %7173 = vmax.xlane.f32.xlu1 %v7172_v13 }
 0xc4e   :  { %v7174_v16 = vpop.xlane.xlu1 %7173 }
 0xc4f   :  { %v7175_v57 = vsub.f32 %v7164_v36, %v7174_v16 }
 0xc51   :  { %v7176_v24 = vmul.f32 1.442695, %v7175_v57 }
 0xc53   :  { %9103 = vpow2.f32 %v7176_v24 }
 0xc5d   :  { %v9104_v7 = vpop.eup %9103 }
 0xc5e   :  { %v7178_v35 = vsel %vm7169_vm15, %v9104_v7, 0.0 }
 0xc5f   :  { %v7179_v47 = vsel %vm7171_vm0, %v7178_v35, 0.0 }
 0xc60   :  { %7180 = vadd.xlane.f32.xlu0 %v7179_v47 }
 0xc61   :  { %9288 = shalt.err (!%p9285_p4)
}
 0xc62   :  { %s9289_s15 = scalar_lea.hbm %s10763_s12, 32 }
 0xc63   :  { %p9290_p5 = scmp.ne.s32.totalorder %s10763_s12, %s9289_s15  ;;  %p9293_p6 = scmp.lt.u32.totalorder %s9289_s15, %s10763_s12 }
 0xc65   :  { %p9295_p7 = pnand %p9293_p6, %p9290_p5 }
 0xc67   :  { %9298 = shalt.err (!%p9295_p7)
}
 0xc68   :  { %7206 = dma.vmem_to_hbm [thread:$0]  %s7204_s30, 32, %s10763_s12, [#allocation17]  }
 0xc69   :  { %s9354_s9 = smov [#allocation15]  }
 0xc6a   :  { %s7193_s19 = sshll.u32 %s9354_s9, 4  ;;  %s7194_s19 = int_to_ptr.vmem [resolvable:$true] %s7193_s19 }
 0xc6b   :  { %s9299_s20 = scalar_lea.vmem %s7194_s19, 32  ;;  %p9304_p9 = scmp.lt.s32.totalorder %s7194_s19, %s7194_s19 }
 0xc6c   :  { %p9300_p8 = scmp.ne.s32.totalorder %s7194_s19, %s9299_s20  ;;  %p9305_p10 = scmp.lt.s32.totalorder %s9299_s20, %s9299_s20 }
 0xc6e   :  { %p9306_p11 = por %p9305_p10, %p9304_p9 }
 0xc70   :  { %p9307_p12 = pnand %p9306_p11, %p9300_p8 }
 0xced   :  { %v7181_v3 = vpop.xlane.xlu0 %7180 }
 0xcee   :  { %9105 = vlog2.f32 %v7181_v3 }
 0xcf8   :  { %v9106_v46 = vpop.eup %9105 }
 0xcf9   :  { %v7183_v5 = vmul.f32 0.6931472, %v9106_v46 }
 0xcfb   :  { %v7184_v6 = vadd.f32 %v7183_v5, %v7174_v16 }
 0xcfd   :  { %v7185_v0 = vsub.f32 %v7164_v36, %v7184_v6 }
 0xcff   :  { %7186 = vst [vmem:[#allocation15] sm:$0x3] %v7185_v0 }
 0xd00   :  { %9310 = shalt.err (!%p9307_p12)
}
 0xd01   :  { %s9311_s12 = scalar_lea.hbm %s10762_s11, 32 }
 0xd02   :  { %p9312_p13 = scmp.ne.s32.totalorder %s10762_s11, %s9311_s12  ;;  %p9315_p0 = scmp.lt.u32.totalorder %s9311_s12, %s10762_s11 }
 0xd04   :  { %p9317_p1 = pnand %p9315_p0, %p9312_p13 }
 0xd06   :  { %9320 = shalt.err (!%p9317_p1)
}
 0xd07   :  { %7196 = dma.vmem_to_hbm [thread:$0]  %s7194_s19, 32, %s10762_s11, [#allocation5]  }
 0xd08   :  { %9329 = dma.done.wait [#allocation5], 32  }
 0xd09   :  { %9330 = vsyncadd [#allocation5], 4294967264 }
 0xd0a   :  { %9331 = dma.done.wait [#allocation17], 32  }
 0xd0b   :  { %9332 = vsyncadd [#allocation17], 4294967264 }
 0xd0c   :  { %7213 = vsyncpa [#allocation4], 1 }
 0xd0d   :  { %7214 = vsyncpa [#allocation7], 1 }
 0xd0e   :  { %7215 = vsyncpa [#allocation10], 1 }
 0xd0f   :  { %7216 = vsyncpa [#allocation13], 1 }
 0xd10   :  { %7217 = vsyncpa [#allocation5], 1 }
 0xd11   :  { %7218 = vsyncpa [#allocation17], 1 }

</bundles_post_ra>
